<compile_context>
chip_gen: v7x
topology: tpu7x:2x2x1
jax: 0.10.0
libtpu: 0.0.40
codegen_flags: <defaults>
</compile_context>

<pallas_src>
import math
import functools

import jax
import jax.numpy as jnp
from jax.experimental import pallas as pl
from jax.experimental.pallas import tpu as pltpu


def _round_up(x, m):
    return ((x + m - 1) // m) * m


def _pick_bt(B, HW):
    # Keep M = Bt*HW <= 2048 so per-step VMEM stays safely inside the v7x
    # 64 MiB budget while still amortizing per-grid-step overhead.
    cap = max(1, 2048 // HW)
    bt = 1
    for d in range(1, min(B, cap) + 1):
        if B % d == 0:
            bt = d
    return bt


# ---------------------------------------------------------------------------
# Fused kernel: surrogate-Unet forward for one block of Bt samples.
# ---------------------------------------------------------------------------
def _fused_unet_kernel(xcol_ref, tproj_ref, mask_ref,          # (Bt,HW,9C) bf16, (Bt,1,CP) f32, (HW,9) f32
                       w0_ref, b0_ref,                         # (9C,CP) bf16, (1,CP) f32
                       w1_ref, b1_ref,                         # (9*CP,CP) bf16, (1,CP) f32
                       w2_ref, b2_ref,                         # (CP,C) bf16, (1,C) f32
                       o_ref,                                  # (Bt,HW,C) f32
                       hstage_ref, imcol_ref,                  # VMEM scratch
                       *, Bt, HW, W, K0, CP, C_OUT, PAD):
    M = Bt * HW

    # -- conv0: single (M, 9C) x (9C, CP) matmul (bias-init, no zeros+add) ----
    xcol = xcol_ref[...].reshape(M, K0)                        # free leading merge
    a0 = jnp.dot(xcol, w0_ref[...],
                 preferred_element_type=jnp.float32) + b0_ref[...]
    h = a0 * jax.nn.sigmoid(a0)                                # SiLU (f32, EUP)

    # -- time-embedding injection (per-sample projection precomputed) --------
    h = (h.reshape(Bt, HW, CP) + tproj_ref[...]).reshape(M, CP)

    # -- stage h flat with PAD zero rows on each side for conv1 taps ---------
    # Only the halo strips are zeroed (cheap), every step (megacore-safe).
    hstage_ref[0:PAD, :] = jnp.zeros((PAD, CP), jnp.float32)
    hstage_ref[PAD + M:PAD + M + PAD, :] = jnp.zeros((PAD, CP), jnp.float32)
    hstage_ref[PAD:PAD + M, :] = h

    # -- conv1: build (M, 9*CP) bf16 im2col from 9 shifted row-slices,
    #           then ONE deep-K matmul (accumulation stays inside the MXU) ---
    ti = 0
    for dy in (-1, 0, 1):
        for dx in (-1, 0, 1):
            s = dy * W + dx
            tap = hstage_ref[PAD + s:PAD + s + M, :]           # (M, CP) f32
            if not (dy == 0 and dx == 0):
                m = mask_ref[:, ti:ti + 1]                     # (HW, 1) f32
                tap = (tap.reshape(Bt, HW, CP) * m[None]).reshape(M, CP)
            imcol_ref[:, ti * CP:(ti + 1) * CP] = tap.astype(jnp.bfloat16)
            ti += 1
    a1 = jnp.dot(imcol_ref[...], w1_ref[...],
                 preferred_element_type=jnp.float32) + b1_ref[...]
    h2 = a1 * jax.nn.sigmoid(a1)

    # -- final 1x1 conv straight to the real (unpadded) channel count --------
    out = jnp.dot(h2.astype(jnp.bfloat16), w2_ref[...],
                  preferred_element_type=jnp.float32) + b2_ref[...]
    o_ref[...] = out.reshape(Bt, HW, C_OUT)


def _fused_unet_forward(xcol, tproj, masks, params, *, Bt, H, W, C_out, CP):
    B = xcol.shape[0]
    HW = H * W
    K0 = xcol.shape[-1]
    PAD = _round_up(W + 1, 8)
    M = Bt * HW
    kernel = functools.partial(_fused_unet_kernel, Bt=Bt, HW=HW, W=W, K0=K0,
                               CP=CP, C_OUT=C_out, PAD=PAD)

    grid_spec = pltpu.PrefetchScalarGridSpec(
        num_scalar_prefetch=0,
        grid=(B // Bt,),
        in_specs=[
            pl.BlockSpec((Bt, HW, K0), lambda b: (b, 0, 0)),   # conv0 im2col (bf16)
            pl.BlockSpec((Bt, 1, CP), lambda b: (b, 0, 0)),    # time-emb projection
            pl.BlockSpec((HW, 9), lambda b: (0, 0)),           # conv1 border masks
            # weights / biases: constant index_map -> VMEM resident
            pl.BlockSpec((K0, CP), lambda b: (0, 0)),
            pl.BlockSpec((1, CP), lambda b: (0, 0)),
            pl.BlockSpec((9 * CP, CP), lambda b: (0, 0)),
            pl.BlockSpec((1, CP), lambda b: (0, 0)),
            pl.BlockSpec((CP, C_out), lambda b: (0, 0)),
            pl.BlockSpec((1, C_out), lambda b: (0, 0)),
        ],
        out_specs=pl.BlockSpec((Bt, HW, C_out), lambda b: (b, 0, 0)),
        scratch_shapes=[
            pltpu.VMEM((M + 2 * PAD, CP), jnp.float32),        # flat h staging + halo
            pltpu.VMEM((M, 9 * CP), jnp.bfloat16),             # conv1 im2col
        ],
    )
    return pl.pallas_call(
        kernel,
        out_shape=jax.ShapeDtypeStruct((B, HW, C_out), jnp.float32),
        grid_spec=grid_spec,
        compiler_params=pltpu.CompilerParams(
            dimension_semantics=("parallel",),                 # batch blocks -> TCs
            vmem_limit_bytes=48 * 1024 * 1024,
        ),
    )(xcol, tproj, masks,
      params["w0"], params["b0"], params["w1"], params["b1"],
      params["w2"], params["b2"])


# ---------------------------------------------------------------------------
# Glue: schedule + padded parameter init
# ---------------------------------------------------------------------------
def cosine_variance_schedule(timesteps, epsilon=0.008):
    steps = jnp.linspace(0.0, timesteps, timesteps + 1, dtype=jnp.float32)
    f_t = jnp.cos((steps / timesteps + epsilon) / (1.0 + epsilon) * math.pi * 0.5) ** 2
    betas = jnp.clip(1.0 - f_t[1:] / f_t[:timesteps], 0.0, 0.999)
    return betas


def init_unet_params(key, in_channels, base_dim, time_embedding_dim, timesteps, cp):
    ks = jax.random.split(key, 5)

    def dense(k, shape, fan_in):
        return jax.random.normal(k, shape, jnp.float32) * (1.0 / math.sqrt(fan_in))

    C = in_channels
    w0 = dense(ks[1], (3, 3, C, base_dim), 9 * C)
    w1 = dense(ks[3], (3, 3, base_dim, base_dim), 9 * base_dim)
    w2 = dense(ks[4], (base_dim, C), base_dim)
    wt = dense(ks[2], (time_embedding_dim, base_dim), time_embedding_dim)

    # padded regions are zero, so the real output channels are exact
    w0p = jnp.pad(w0.reshape(9 * C, base_dim), ((0, 0), (0, cp - base_dim)))
    w1p = jnp.zeros((9, cp, cp), jnp.float32).at[:, :base_dim, :base_dim].set(
        w1.reshape(9, base_dim, base_dim)).reshape(9 * cp, cp)
    w2p = jnp.pad(w2, ((0, cp - base_dim), (0, 0)))
    wtp = jnp.pad(wt, ((0, 0), (0, cp - base_dim)))

    return dict(
        time_emb=dense(ks[0], (timesteps, time_embedding_dim), time_embedding_dim),
        wt=wtp, bt=jnp.zeros((1, cp), jnp.float32),
        w0=w0p.astype(jnp.bfloat16), b0=jnp.zeros((1, cp), jnp.float32),
        w1=w1p.astype(jnp.bfloat16), b1=jnp.zeros((1, cp), jnp.float32),
        w2=w2p.astype(jnp.bfloat16), b2=jnp.zeros((1, in_channels), jnp.float32),
    )


# ---------------------------------------------------------------------------
# MNISTDiffusion (forward pass, Ls=None path)
# ---------------------------------------------------------------------------
class MNISTDiffusionPallas:
    def __init__(self, image_size, in_channels, time_embedding_dim=256,
                 timesteps=1000, base_dim=32, dim_mults=(1, 2, 4, 8),
                 param_key=jax.random.PRNGKey(42)):
        self.timesteps = timesteps
        self.in_channels = in_channels
        self.image_size = image_size

        betas = cosine_variance_schedule(timesteps)
        alphas = 1.0 - betas
        alphas_cumprod = jnp.cumprod(alphas, axis=-1)
        self.betas = betas
        self.alphas = alphas
        self.alphas_cumprod = alphas_cumprod
        self.sqrt_alphas_cumprod = jnp.sqrt(alphas_cumprod)
        self.sqrt_one_minus_alphas_cumprod = jnp.sqrt(1.0 - alphas_cumprod)

        self.cp = max(128, _round_up(base_dim, 128))    # hidden width (lane-dense)
        # dim_mults unused by the surrogate Unet (see TODO at top of file)
        self.params = init_unet_params(param_key, in_channels, base_dim,
                                       time_embedding_dim, timesteps, self.cp)

    def forward(self, x_nchw, noise_nchw, rng):
        """x, noise: (B, C, H, W) float32 (PyTorch NCHW convention); Ls=None path."""
        B, C, H, W = x_nchw.shape
        HW = H * W
        # TODO(synk): H*W must be a multiple of 8 (sublane tiling of the stacked M dim).
        assert HW % 8 == 0

        # t = torch.randint(0, timesteps, (B,)); forward diffusion fused here,
        # alongside the transpose/pad the wrapper does anyway.
        t = jax.random.randint(rng, (B,), 0, self.timesteps)
        a_t = self.sqrt_alphas_cumprod[t].reshape(B, 1, 1, 1)
        s_t = self.sqrt_one_minus_alphas_cumprod[t].reshape(B, 1, 1, 1)
        x_t = a_t * x_nchw + s_t * noise_nchw

        # NCHW -> NHWC, 1px zero halo, conv0 im2col (B, HW, 9*C) in bf16
        xh = jnp.pad(jnp.transpose(x_t, (0, 2, 3, 1)),
                     ((0, 0), (1, 1), (1, 1), (0, 0)))
        taps = [xh[:, dy:dy + H, dx:dx + W, :]
                for dy in range(3) for dx in range(3)]
        xcol = jnp.stack(taps, axis=3).reshape(B, HW, 9 * C).astype(jnp.bfloat16)

        # per-sample time-embedding projection (tiny, XLA), injected in-kernel
        temb = self.params["time_emb"][t]
        tlin = temb @ self.params["wt"] + self.params["bt"]
        tproj = (tlin * jax.nn.sigmoid(tlin)).reshape(B, 1, self.cp)

        # conv1 border-validity masks, one column per 3x3 tap
        yy, xx = jnp.meshgrid(jnp.arange(H), jnp.arange(W), indexing="ij")
        cols = []
        for dy in (-1, 0, 1):
            for dx in (-1, 0, 1):
                ok = ((yy + dy >= 0) & (yy + dy < H) &
                      (xx + dx >= 0) & (xx + dx < W))
                cols.append(ok.reshape(HW).astype(jnp.float32))
        masks = jnp.stack(cols, axis=1)                        # (HW, 9)

        Bt = _pick_bt(B, HW)
        out = _fused_unet_forward(xcol, tproj, masks, self.params,
                                  Bt=Bt, H=H, W=W, C_out=C, CP=self.cp)
        out = out.reshape(B, H, W, C)                          # exact-size output
        return jnp.transpose(out, (0, 3, 1, 2))                # NHWC -> NCHW


if __name__ == "__main__":
    key = jax.random.PRNGKey(0)
    k_x, k_n, k_t, k_p = jax.random.split(key, 4)

    B, C, H = 2, 4, 16
    model = MNISTDiffusionPallas(image_size=H, in_channels=C,
                                 time_embedding_dim=256, timesteps=1000,
                                 base_dim=32, param_key=k_p)

    x = jax.random.normal(k_x, (B, C, H, H), jnp.float32)
    noise = jax.random.normal(k_n, (B, C, H, H), jnp.float32)

    out = jax.jit(model.forward)(x, noise, k_t)
    out = jax.block_until_ready(out)

    assert out.shape == (B, C, H, H)
    assert out.dtype == jnp.float32
    assert bool(jnp.all(jnp.isfinite(out)))
    print("KERNEL_OK")
</pallas_src>

<mosaic_0001>
module attributes {stable_mosaic.version = 11 : i64} {
  func.func @_fused_unet_kernel(%arg0: i32, %arg1: memref<2x256x36xbf16, #tpu.memory_space<vmem>>, %arg2: memref<2x1x128xf32, #tpu.memory_space<vmem>>, %arg3: memref<256x9xf32, #tpu.memory_space<vmem>>, %arg4: memref<36x128xbf16, #tpu.memory_space<vmem>>, %arg5: memref<1x128xf32, #tpu.memory_space<vmem>>, %arg6: memref<1152x128xbf16, #tpu.memory_space<vmem>>, %arg7: memref<1x128xf32, #tpu.memory_space<vmem>>, %arg8: memref<128x4xbf16, #tpu.memory_space<vmem>>, %arg9: memref<1x4xf32, #tpu.memory_space<vmem>>, %arg10: memref<2x256x4xf32, #tpu.memory_space<vmem>>, %arg11: memref<560x128xf32, #tpu.memory_space<vmem>>, %arg12: memref<512x1152xbf16, #tpu.memory_space<vmem>>) attributes {dimension_semantics = [#tpu.dimension_semantics<parallel>], iteration_bounds = array<i64: 1>, scalar_prefetch = 0 : i64, scratch_operands = 2 : i64, tpu.core_type = #tpu.core_type<tc>, window_params = [{transform_indices = @transform_0, window_bounds = array<i64: 2, 256, 36>}, {transform_indices = @transform_1, window_bounds = array<i64: 2, 1, 128>}, {pipeline_mode = #tpu.pipeline_mode<synchronous>, transform_indices = @transform_2, window_bounds = array<i64: 256, 9>}, {pipeline_mode = #tpu.pipeline_mode<synchronous>, transform_indices = @transform_3, window_bounds = array<i64: 36, 128>}, {pipeline_mode = #tpu.pipeline_mode<synchronous>, transform_indices = @transform_4, window_bounds = array<i64: 1, 128>}, {pipeline_mode = #tpu.pipeline_mode<synchronous>, transform_indices = @transform_5, window_bounds = array<i64: 1152, 128>}, {pipeline_mode = #tpu.pipeline_mode<synchronous>, transform_indices = @transform_6, window_bounds = array<i64: 1, 128>}, {pipeline_mode = #tpu.pipeline_mode<synchronous>, transform_indices = @transform_7, window_bounds = array<i64: 128, 4>}, {pipeline_mode = #tpu.pipeline_mode<synchronous>, transform_indices = @transform_8, window_bounds = array<i64: 1, 4>}, {transform_indices = @transform_9, window_bounds = array<i64: 2, 256, 4>}]} {
    %c0 = arith.constant 0 : index
    %c0_0 = arith.constant 0 : index
    %c0_1 = arith.constant 0 : index
    %0 = vector.load %arg1[%c0, %c0_0, %c0_1] : memref<2x256x36xbf16, #tpu.memory_space<vmem>>, vector<2x256x36xbf16>
    %1 = vector.shape_cast %0 : vector<2x256x36xbf16> to vector<512x36xbf16>
    %c0_2 = arith.constant 0 : index
    %c0_3 = arith.constant 0 : index
    %2 = vector.load %arg4[%c0_2, %c0_3] : memref<36x128xbf16, #tpu.memory_space<vmem>>, vector<36x128xbf16>
    %cst = arith.constant dense<0.000000e+00> : vector<512x128xf32>
    %3 = tpu.matmul %1, %2, %cst {dimension_numbers = #tpu.dot_dimension_numbers<[1], [0], [0], [1], [0, 0, 1, 1], [], []>} : vector<512x36xbf16>, vector<36x128xbf16>, vector<512x128xf32> -> vector<512x128xf32>
    %c0_4 = arith.constant 0 : index
    %c0_5 = arith.constant 0 : index
    %4 = vector.load %arg5[%c0_4, %c0_5] : memref<1x128xf32, #tpu.memory_space<vmem>>, vector<1x128xf32>
    %5 = vector.broadcast %4 : vector<1x128xf32> to vector<512x128xf32>
    %6 = arith.addf %3, %5 : vector<512x128xf32>
    %7 = arith.negf %6 : vector<512x128xf32>
    %8 = math.exp %7 : vector<512x128xf32>
    %cst_6 = arith.constant 1.000000e+00 : f32
    %9 = vector.broadcast %cst_6 : f32 to vector<512x128xf32>
    %10 = arith.addf %9, %8 : vector<512x128xf32>
    %11 = arith.divf %9, %10 : vector<512x128xf32>
    %12 = arith.mulf %6, %11 : vector<512x128xf32>
    %13 = vector.shape_cast %12 : vector<512x128xf32> to vector<2x256x128xf32>
    %c0_7 = arith.constant 0 : index
    %c0_8 = arith.constant 0 : index
    %c0_9 = arith.constant 0 : index
    %14 = vector.load %arg2[%c0_7, %c0_8, %c0_9] : memref<2x1x128xf32, #tpu.memory_space<vmem>>, vector<2x1x128xf32>
    %15 = vector.broadcast %14 : vector<2x1x128xf32> to vector<2x256x128xf32>
    %16 = arith.addf %13, %15 : vector<2x256x128xf32>
    %17 = vector.shape_cast %16 : vector<2x256x128xf32> to vector<512x128xf32>
    %cst_10 = arith.constant 0.000000e+00 : f32
    %18 = vector.broadcast %cst_10 : f32 to vector<24x128xf32>
    %c0_11 = arith.constant 0 : index
    %c0_12 = arith.constant 0 : index
    %19 = vector.load %arg11[%c0_11, %c0_12] : memref<560x128xf32, #tpu.memory_space<vmem>>, vector<24x128xf32>
    tpu.vector_store %arg11[%c0_11, %c0_12], %18 {strides = array<i32>} : memref<560x128xf32, #tpu.memory_space<vmem>>, vector<24x128xf32>,
    %cst_13 = arith.constant 0.000000e+00 : f32
    %20 = vector.broadcast %cst_13 : f32 to vector<24x128xf32>
    %c536 = arith.constant 536 : index
    %c0_14 = arith.constant 0 : index
    %21 = vector.load %arg11[%c536, %c0_14] : memref<560x128xf32, #tpu.memory_space<vmem>>, vector<24x128xf32>
    tpu.vector_store %arg11[%c536, %c0_14], %20 {strides = array<i32>} : memref<560x128xf32, #tpu.memory_space<vmem>>, vector<24x128xf32>,
    %c24 = arith.constant 24 : index
    %c0_15 = arith.constant 0 : index
    %22 = vector.load %arg11[%c24, %c0_15] : memref<560x128xf32, #tpu.memory_space<vmem>>, vector<512x128xf32>
    tpu.vector_store %arg11[%c24, %c0_15], %17 {strides = array<i32>} : memref<560x128xf32, #tpu.memory_space<vmem>>, vector<512x128xf32>,
    %c7 = arith.constant 7 : index
    %c0_16 = arith.constant 0 : index
    %23 = vector.load %arg11[%c7, %c0_16] : memref<560x128xf32, #tpu.memory_space<vmem>>, vector<512x128xf32>
    %c0_17 = arith.constant 0 : index
    %c0_18 = arith.constant 0 : index
    %24 = vector.load %arg3[%c0_17, %c0_18] : memref<256x9xf32, #tpu.memory_space<vmem>>, vector<256x1xf32>
    %25 = vector.shape_cast %23 : vector<512x128xf32> to vector<2x256x128xf32>
    %26 = vector.shape_cast %24 : vector<256x1xf32> to vector<1x256x1xf32>
    %27 = vector.broadcast %26 : vector<1x256x1xf32> to vector<2x256x128xf32>
    %28 = arith.mulf %25, %27 : vector<2x256x128xf32>
    %29 = vector.shape_cast %28 : vector<2x256x128xf32> to vector<512x128xf32>
    %30 = arith.truncf %29 : vector<512x128xf32> to vector<512x128xbf16>
    %c0_19 = arith.constant 0 : index
    %c0_20 = arith.constant 0 : index
    %31 = vector.load %arg12[%c0_19, %c0_20] : memref<512x1152xbf16, #tpu.memory_space<vmem>>, vector<512x128xbf16>
    tpu.vector_store %arg12[%c0_19, %c0_20], %30 {strides = array<i32>} : memref<512x1152xbf16, #tpu.memory_space<vmem>>, vector<512x128xbf16>,
    %c8 = arith.constant 8 : index
    %c0_21 = arith.constant 0 : index
    %32 = vector.load %arg11[%c8, %c0_21] : memref<560x128xf32, #tpu.memory_space<vmem>>, vector<512x128xf32>
    %c0_22 = arith.constant 0 : index
    %c1 = arith.constant 1 : index
    %33 = vector.load %arg3[%c0_22, %c1] : memref<256x9xf32, #tpu.memory_space<vmem>>, vector<256x1xf32>
    %34 = vector.shape_cast %32 : vector<512x128xf32> to vector<2x256x128xf32>
    %35 = vector.shape_cast %33 : vector<256x1xf32> to vector<1x256x1xf32>
    %36 = vector.broadcast %35 : vector<1x256x1xf32> to vector<2x256x128xf32>
    %37 = arith.mulf %34, %36 : vector<2x256x128xf32>
    %38 = vector.shape_cast %37 : vector<2x256x128xf32> to vector<512x128xf32>
    %39 = arith.truncf %38 : vector<512x128xf32> to vector<512x128xbf16>
    %c0_23 = arith.constant 0 : index
    %c128 = arith.constant 128 : index
    %40 = vector.load %arg12[%c0_23, %c128] : memref<512x1152xbf16, #tpu.memory_space<vmem>>, vector<512x128xbf16>
    tpu.vector_store %arg12[%c0_23, %c128], %39 {strides = array<i32>} : memref<512x1152xbf16, #tpu.memory_space<vmem>>, vector<512x128xbf16>,
    %c9 = arith.constant 9 : index
    %c0_24 = arith.constant 0 : index
    %41 = vector.load %arg11[%c9, %c0_24] : memref<560x128xf32, #tpu.memory_space<vmem>>, vector<512x128xf32>
    %c0_25 = arith.constant 0 : index
    %c2 = arith.constant 2 : index
    %42 = vector.load %arg3[%c0_25, %c2] : memref<256x9xf32, #tpu.memory_space<vmem>>, vector<256x1xf32>
    %43 = vector.shape_cast %41 : vector<512x128xf32> to vector<2x256x128xf32>
    %44 = vector.shape_cast %42 : vector<256x1xf32> to vector<1x256x1xf32>
    %45 = vector.broadcast %44 : vector<1x256x1xf32> to vector<2x256x128xf32>
    %46 = arith.mulf %43, %45 : vector<2x256x128xf32>
    %47 = vector.shape_cast %46 : vector<2x256x128xf32> to vector<512x128xf32>
    %48 = arith.truncf %47 : vector<512x128xf32> to vector<512x128xbf16>
    %c0_26 = arith.constant 0 : index
    %c256 = arith.constant 256 : index
    %49 = vector.load %arg12[%c0_26, %c256] : memref<512x1152xbf16, #tpu.memory_space<vmem>>, vector<512x128xbf16>
    tpu.vector_store %arg12[%c0_26, %c256], %48 {strides = array<i32>} : memref<512x1152xbf16, #tpu.memory_space<vmem>>, vector<512x128xbf16>,
    %c23 = arith.constant 23 : index
    %c0_27 = arith.constant 0 : index
    %50 = vector.load %arg11[%c23, %c0_27] : memref<560x128xf32, #tpu.memory_space<vmem>>, vector<512x128xf32>
    %c0_28 = arith.constant 0 : index
    %c3 = arith.constant 3 : index
    %51 = vector.load %arg3[%c0_28, %c3] : memref<256x9xf32, #tpu.memory_space<vmem>>, vector<256x1xf32>
    %52 = vector.shape_cast %50 : vector<512x128xf32> to vector<2x256x128xf32>
    %53 = vector.shape_cast %51 : vector<256x1xf32> to vector<1x256x1xf32>
    %54 = vector.broadcast %53 : vector<1x256x1xf32> to vector<2x256x128xf32>
    %55 = arith.mulf %52, %54 : vector<2x256x128xf32>
    %56 = vector.shape_cast %55 : vector<2x256x128xf32> to vector<512x128xf32>
    %57 = arith.truncf %56 : vector<512x128xf32> to vector<512x128xbf16>
    %c0_29 = arith.constant 0 : index
    %c384 = arith.constant 384 : index
    %58 = vector.load %arg12[%c0_29, %c384] : memref<512x1152xbf16, #tpu.memory_space<vmem>>, vector<512x128xbf16>
    tpu.vector_store %arg12[%c0_29, %c384], %57 {strides = array<i32>} : memref<512x1152xbf16, #tpu.memory_space<vmem>>, vector<512x128xbf16>,
    %c24_30 = arith.constant 24 : index
    %c0_31 = arith.constant 0 : index
    %59 = vector.load %arg11[%c24_30, %c0_31] : memref<560x128xf32, #tpu.memory_space<vmem>>, vector<512x128xf32>
    %60 = arith.truncf %59 : vector<512x128xf32> to vector<512x128xbf16>
    %c0_32 = arith.constant 0 : index
    %c512 = arith.constant 512 : index
    %61 = vector.load %arg12[%c0_32, %c512] : memref<512x1152xbf16, #tpu.memory_space<vmem>>, vector<512x128xbf16>
    tpu.vector_store %arg12[%c0_32, %c512], %60 {strides = array<i32>} : memref<512x1152xbf16, #tpu.memory_space<vmem>>, vector<512x128xbf16>,
    %c25 = arith.constant 25 : index
    %c0_33 = arith.constant 0 : index
    %62 = vector.load %arg11[%c25, %c0_33] : memref<560x128xf32, #tpu.memory_space<vmem>>, vector<512x128xf32>
    %c0_34 = arith.constant 0 : index
    %c5 = arith.constant 5 : index
    %63 = vector.load %arg3[%c0_34, %c5] : memref<256x9xf32, #tpu.memory_space<vmem>>, vector<256x1xf32>
    %64 = vector.shape_cast %62 : vector<512x128xf32> to vector<2x256x128xf32>
    %65 = vector.shape_cast %63 : vector<256x1xf32> to vector<1x256x1xf32>
    %66 = vector.broadcast %65 : vector<1x256x1xf32> to vector<2x256x128xf32>
    %67 = arith.mulf %64, %66 : vector<2x256x128xf32>
    %68 = vector.shape_cast %67 : vector<2x256x128xf32> to vector<512x128xf32>
    %69 = arith.truncf %68 : vector<512x128xf32> to vector<512x128xbf16>
    %c0_35 = arith.constant 0 : index
    %c640 = arith.constant 640 : index
    %70 = vector.load %arg12[%c0_35, %c640] : memref<512x1152xbf16, #tpu.memory_space<vmem>>, vector<512x128xbf16>
    tpu.vector_store %arg12[%c0_35, %c640], %69 {strides = array<i32>} : memref<512x1152xbf16, #tpu.memory_space<vmem>>, vector<512x128xbf16>,
    %c39 = arith.constant 39 : index
    %c0_36 = arith.constant 0 : index
    %71 = vector.load %arg11[%c39, %c0_36] : memref<560x128xf32, #tpu.memory_space<vmem>>, vector<512x128xf32>
    %c0_37 = arith.constant 0 : index
    %c6 = arith.constant 6 : index
    %72 = vector.load %arg3[%c0_37, %c6] : memref<256x9xf32, #tpu.memory_space<vmem>>, vector<256x1xf32>
    %73 = vector.shape_cast %71 : vector<512x128xf32> to vector<2x256x128xf32>
    %74 = vector.shape_cast %72 : vector<256x1xf32> to vector<1x256x1xf32>
    %75 = vector.broadcast %74 : vector<1x256x1xf32> to vector<2x256x128xf32>
    %76 = arith.mulf %73, %75 : vector<2x256x128xf32>
    %77 = vector.shape_cast %76 : vector<2x256x128xf32> to vector<512x128xf32>
    %78 = arith.truncf %77 : vector<512x128xf32> to vector<512x128xbf16>
    %c0_38 = arith.constant 0 : index
    %c768 = arith.constant 768 : index
    %79 = vector.load %arg12[%c0_38, %c768] : memref<512x1152xbf16, #tpu.memory_space<vmem>>, vector<512x128xbf16>
    tpu.vector_store %arg12[%c0_38, %c768], %78 {strides = array<i32>} : memref<512x1152xbf16, #tpu.memory_space<vmem>>, vector<512x128xbf16>,
    %c40 = arith.constant 40 : index
    %c0_39 = arith.constant 0 : index
    %80 = vector.load %arg11[%c40, %c0_39] : memref<560x128xf32, #tpu.memory_space<vmem>>, vector<512x128xf32>
    %c0_40 = arith.constant 0 : index
    %c7_41 = arith.constant 7 : index
    %81 = vector.load %arg3[%c0_40, %c7_41] : memref<256x9xf32, #tpu.memory_space<vmem>>, vector<256x1xf32>
    %82 = vector.shape_cast %80 : vector<512x128xf32> to vector<2x256x128xf32>
    %83 = vector.shape_cast %81 : vector<256x1xf32> to vector<1x256x1xf32>
    %84 = vector.broadcast %83 : vector<1x256x1xf32> to vector<2x256x128xf32>
    %85 = arith.mulf %82, %84 : vector<2x256x128xf32>
    %86 = vector.shape_cast %85 : vector<2x256x128xf32> to vector<512x128xf32>
    %87 = arith.truncf %86 : vector<512x128xf32> to vector<512x128xbf16>
    %c0_42 = arith.constant 0 : index
    %c896 = arith.constant 896 : index
    %88 = vector.load %arg12[%c0_42, %c896] : memref<512x1152xbf16, #tpu.memory_space<vmem>>, vector<512x128xbf16>
    tpu.vector_store %arg12[%c0_42, %c896], %87 {strides = array<i32>} : memref<512x1152xbf16, #tpu.memory_space<vmem>>, vector<512x128xbf16>,
    %c41 = arith.constant 41 : index
    %c0_43 = arith.constant 0 : index
    %89 = vector.load %arg11[%c41, %c0_43] : memref<560x128xf32, #tpu.memory_space<vmem>>, vector<512x128xf32>
    %c0_44 = arith.constant 0 : index
    %c8_45 = arith.constant 8 : index
    %90 = vector.load %arg3[%c0_44, %c8_45] : memref<256x9xf32, #tpu.memory_space<vmem>>, vector<256x1xf32>
    %91 = vector.shape_cast %89 : vector<512x128xf32> to vector<2x256x128xf32>
    %92 = vector.shape_cast %90 : vector<256x1xf32> to vector<1x256x1xf32>
    %93 = vector.broadcast %92 : vector<1x256x1xf32> to vector<2x256x128xf32>
    %94 = arith.mulf %91, %93 : vector<2x256x128xf32>
    %95 = vector.shape_cast %94 : vector<2x256x128xf32> to vector<512x128xf32>
    %96 = arith.truncf %95 : vector<512x128xf32> to vector<512x128xbf16>
    %c0_46 = arith.constant 0 : index
    %c1024 = arith.constant 1024 : index
    %97 = vector.load %arg12[%c0_46, %c1024] : memref<512x1152xbf16, #tpu.memory_space<vmem>>, vector<512x128xbf16>
    tpu.vector_store %arg12[%c0_46, %c1024], %96 {strides = array<i32>} : memref<512x1152xbf16, #tpu.memory_space<vmem>>, vector<512x128xbf16>,
    %c0_47 = arith.constant 0 : index
    %c0_48 = arith.constant 0 : index
    %98 = vector.load %arg12[%c0_47, %c0_48] : memref<512x1152xbf16, #tpu.memory_space<vmem>>, vector<512x1152xbf16>
    %c0_49 = arith.constant 0 : index
    %c0_50 = arith.constant 0 : index
    %99 = vector.load %arg6[%c0_49, %c0_50] : memref<1152x128xbf16, #tpu.memory_space<vmem>>, vector<1152x128xbf16>
    %cst_51 = arith.constant dense<0.000000e+00> : vector<512x128xf32>
    %100 = tpu.matmul %98, %99, %cst_51 {dimension_numbers = #tpu.dot_dimension_numbers<[1], [0], [0], [1], [0, 0, 1, 1], [], []>} : vector<512x1152xbf16>, vector<1152x128xbf16>, vector<512x128xf32> -> vector<512x128xf32>
    %c0_52 = arith.constant 0 : index
    %c0_53 = arith.constant 0 : index
    %101 = vector.load %arg7[%c0_52, %c0_53] : memref<1x128xf32, #tpu.memory_space<vmem>>, vector<1x128xf32>
    %102 = vector.broadcast %101 : vector<1x128xf32> to vector<512x128xf32>
    %103 = arith.addf %100, %102 : vector<512x128xf32>
    %104 = arith.negf %103 : vector<512x128xf32>
    %105 = math.exp %104 : vector<512x128xf32>
    %cst_54 = arith.constant 1.000000e+00 : f32
    %106 = vector.broadcast %cst_54 : f32 to vector<512x128xf32>
    %107 = arith.addf %106, %105 : vector<512x128xf32>
    %108 = arith.divf %106, %107 : vector<512x128xf32>
    %109 = arith.mulf %103, %108 : vector<512x128xf32>
    %110 = arith.truncf %109 : vector<512x128xf32> to vector<512x128xbf16>
    %c0_55 = arith.constant 0 : index
    %c0_56 = arith.constant 0 : index
    %111 = vector.load %arg8[%c0_55, %c0_56] : memref<128x4xbf16, #tpu.memory_space<vmem>>, vector<128x4xbf16>
    %cst_57 = arith.constant dense<0.000000e+00> : vector<512x4xf32>
    %112 = tpu.matmul %110, %111, %cst_57 {dimension_numbers = #tpu.dot_dimension_numbers<[1], [0], [0], [1], [0, 0, 1, 1], [], []>} : vector<512x128xbf16>, vector<128x4xbf16>, vector<512x4xf32> -> vector<512x4xf32>
    %c0_58 = arith.constant 0 : index
    %c0_59 = arith.constant 0 : index
    %113 = vector.load %arg9[%c0_58, %c0_59] : memref<1x4xf32, #tpu.memory_space<vmem>>, vector<1x4xf32>
    %114 = vector.broadcast %113 : vector<1x4xf32> to vector<512x4xf32>
    %115 = arith.addf %112, %114 : vector<512x4xf32>
    %116 = vector.shape_cast %115 : vector<512x4xf32> to vector<2x256x4xf32>
    %c0_60 = arith.constant 0 : index
    %c0_61 = arith.constant 0 : index
    %c0_62 = arith.constant 0 : index
    %117 = vector.load %arg10[%c0_60, %c0_61, %c0_62] : memref<2x256x4xf32, #tpu.memory_space<vmem>>, vector<2x256x4xf32>
    tpu.vector_store %arg10[%c0_60, %c0_61, %c0_62], %116 {strides = array<i32>} : memref<2x256x4xf32, #tpu.memory_space<vmem>>, vector<2x256x4xf32>,
    return
  }
  func.func @transform_0(%arg0: i32) -> (i32, i32, i32) {
    %c0_i32 = arith.constant 0 : i32
    %c0_i32_0 = arith.constant 0 : i32
    %c0_i32_1 = arith.constant 0 : i32
    return %arg0, %c0_i32, %c0_i32_0 : i32, i32, i32
  }
  func.func @transform_1(%arg0: i32) -> (i32, i32, i32) {
    %c0_i32 = arith.constant 0 : i32
    %c0_i32_0 = arith.constant 0 : i32
    %c0_i32_1 = arith.constant 0 : i32
    return %arg0, %c0_i32, %c0_i32_0 : i32, i32, i32
  }
  func.func @transform_2(%arg0: i32) -> (i32, i32) {
    %c0_i32 = arith.constant 0 : i32
    %c0_i32_0 = arith.constant 0 : i32
    %c0_i32_1 = arith.constant 0 : i32
    return %c0_i32, %c0_i32_0 : i32, i32
  }
  func.func @transform_3(%arg0: i32) -> (i32, i32) {
    %c0_i32 = arith.constant 0 : i32
    %c0_i32_0 = arith.constant 0 : i32
    %c0_i32_1 = arith.constant 0 : i32
    return %c0_i32, %c0_i32_0 : i32, i32
  }
  func.func @transform_4(%arg0: i32) -> (i32, i32) {
    %c0_i32 = arith.constant 0 : i32
    %c0_i32_0 = arith.constant 0 : i32
    %c0_i32_1 = arith.constant 0 : i32
    return %c0_i32, %c0_i32_0 : i32, i32
  }
  func.func @transform_5(%arg0: i32) -> (i32, i32) {
    %c0_i32 = arith.constant 0 : i32
    %c0_i32_0 = arith.constant 0 : i32
    %c0_i32_1 = arith.constant 0 : i32
    return %c0_i32, %c0_i32_0 : i32, i32
  }
  func.func @transform_6(%arg0: i32) -> (i32, i32) {
    %c0_i32 = arith.constant 0 : i32
    %c0_i32_0 = arith.constant 0 : i32
    %c0_i32_1 = arith.constant 0 : i32
    return %c0_i32, %c0_i32_0 : i32, i32
  }
  func.func @transform_7(%arg0: i32) -> (i32, i32) {
    %c0_i32 = arith.constant 0 : i32
    %c0_i32_0 = arith.constant 0 : i32
    %c0_i32_1 = arith.constant 0 : i32
    return %c0_i32, %c0_i32_0 : i32, i32
  }
  func.func @transform_8(%arg0: i32) -> (i32, i32) {
    %c0_i32 = arith.constant 0 : i32
    %c0_i32_0 = arith.constant 0 : i32
    %c0_i32_1 = arith.constant 0 : i32
    return %c0_i32, %c0_i32_0 : i32, i32
  }
  func.func @transform_9(%arg0: i32) -> (i32, i32, i32) {
    %c0_i32 = arith.constant 0 : i32
    %c0_i32_0 = arith.constant 0 : i32
    %c0_i32_1 = arith.constant 0 : i32
    return %arg0, %c0_i32, %c0_i32_0 : i32, i32, i32
  }
}

</mosaic_0001>

<bundles_post_ra>
// kernel: forward.1
= control target key start
LH: loop header
LB: loop body
LE: loop exit
PB: predicated region body
PF: predicated region fallthrough
CT: control target
= control target key end

     0   :  { %v9627_v0 = vmov 3   ;;  %v9628_v1 = vmov 2   ;;  %vm284_vm0 = vcmask 293888   ;;  %vm381_vm1 = vcmask 1041408   ;;  %s14115_s2 = inlined_call_operand.vmem [shape: f32[256,9], index: 2, kind: input, shape index: {}]   ;;  %s14116_s3 = inlined_call_operand.vmem [shape: bf16[36,128], index: 3, kind: input, shape index: {}]   ;;  %s14117_s0 = inlined_call_operand.vmem [shape: bf16[2,256,36], index: 0, kind: input, shape index: {}]   ;;  %s14118_s5 = inlined_call_operand.vmem [shape: bf16[1152,128], index: 5, kind: input, shape index: {}]   ;;  %s14119_s4 = inlined_call_operand.vmem [shape: f32[1,128], index: 4, kind: input, shape index: {}, may-alias: {4,6}]   ;;  %s14120_s1 = inlined_call_operand.vmem [shape: f32[2,1,128], index: 1, kind: input, shape index: {}]   ;;  %s14121_s7 = inlined_call_operand.vmem [shape: bf16[128,4], index: 7, kind: input, shape index: {}]   ;;  %s14122_s6 = inlined_call_operand.vmem [shape: f32[1,128], index: 6, kind: input, shape index: {}, may-alias: {4,6}]   ;;  %s14123_s8 = inlined_call_operand.vmem [shape: f32[1,4], index: 8, kind: input, shape index: {}]   ;;  %s14124_s9 = inlined_call_operand.vmem [shape: f32[2,256,4], index: 9, kind: output, shape index: {}]  }
   0x1   :  { %8746 = vset.pattern.permute.xlu0 %v9627_v0  ;;  %8747 = vset.pattern.permute.xlu1 %v9628_v1  ;;  %v2508_v2 = vld [vmem:[%s14115_s2 + $0xb0] sm:$0xff]  ;;  %v8885_v3 = vld [vmem:[%s14116_s3] sm:$0xff]   ;;  %v9697_v4 = vld [vmem:[%s14115_s2 + $0xb8] sm:$0xff]  ;;  %v9629_v31 = vmov 0.0   ;;  %v14127_v52 = vmov 0   ;;  %v14125_v61 = vmov 5  }
   0x2   :  { %2630 = vperm.xlu0 %8746, %v2508_v2   ;;  %2246 = vperm.xlu1 %8747, %v2508_v2   ;;  %v8886_v5 = vld [vmem:[%s14116_s3 + $0x8] sm:$0xff]   ;;  %v8887_v6 = vld [vmem:[%s14116_s3 + $0x10] ss:$0 sps:$4 sm:$0x33]   ;;  %v8888_v7 = vld [vmem:[%s14117_s0] sm:$0xff]   ;;  %1201 = vst [vmem:[#allocation2 + $0x8] sm:$0xff] %v9629_v31 }
   0x3   :  { %8090 = vmatprep.subr.bf16.mxu0 %v8885_v3  ;;  %v2510_v8 = vld [vmem:[%s14115_s2 + $0xc0] sm:$0xff]  ;;  %v9716_v9 = vld [vmem:[%s14115_s2 + $0xc8] sm:$0xff]  ;;  %8096 = vmatprep.mubr.msk.bf16.mxu0 %vm284_vm0, %v8888_v7  ;;  %v383_v10 = vsel %vm381_vm1, %v8887_v6, 0  ;;  %v2513_v11 = vld [vmem:[%s14115_s2 + $0xd8] sm:$0xff]  ;;  %1202 = vst [vmem:[#allocation2 + $0x10] sm:$0xff] %v9629_v31  ;;  %vm7626_vm2 = vcmask 31744  }
   0x4   :  { %8091 = vmatpush3.bf16.msra.mxu0 %v8885_v3  ;;  %v8889_v12 = vld [vmem:[%s14117_s0 + $0x8] sm:$0xff]   ;;  %v8890_v13 = vld [vmem:[%s14117_s0 + $0x10] sm:$0xff]   ;;  %v2130_v15 = vld [vmem:[%s14115_s2 + $0xe0] sm:$0xff]  ;;  %1200 = vst [vmem:[#allocation2] sm:$0xff] %v9629_v31  ;;  %8320 = vmatprep.subr.bf16.mxu1 %v14127_v52 }
   0x5   :  { %8092 = vmatprep.subr.bf16.mxu0 %v8886_v5  ;;  %v2512_v14 = vld [vmem:[%s14115_s2 + $0xd0] sm:$0xff]  ;;  %v8891_v16 = vld [vmem:[%s14117_s0 + $0x18] sm:$0xff]   ;;  %v8892_v17 = vld [vmem:[%s14117_s0 + $0x20] sm:$0xff]   ;;  %1203 = vst [vmem:[#allocation2 + $0x218] sm:$0xff] %v9629_v31 }
   0x6   :  { %2635 = vperm.xlu0 %8746, %v9697_v4   ;;  %2251 = vperm.xlu1 %8747, %v9697_v4   ;;  %v8893_v18 = vld [vmem:[%s14117_s0 + $0x28] sm:$0xff]   ;;  %v9758_v19 = vld [vmem:[%s14115_s2 + $0xf8] sm:$0xff]  ;;  %v8894_v20 = vld [vmem:[%s14117_s0 + $0x30] sm:$0xff]   ;;  %1204 = vst [vmem:[#allocation2 + $0x220] sm:$0xff] %v9629_v31 }
   0x7   :  { %v9768_v21 = vld [vmem:[%s14115_s2 + $0xe8] sm:$0xff]  ;;  %v9773_v22 = vld [vmem:[%s14115_s2] sm:$0xff]  ;;  %v9782_v23 = vld [vmem:[%s14115_s2 + $0x18] sm:$0xff]  ;;  %1205 = vst [vmem:[#allocation2 + $0x228] sm:$0xff] %v9629_v31 }
   0x8   :  { %8093 = vmatpush3.bf16.msra.mxu0 %v8886_v5  ;;  %v8895_v24 = vld [vmem:[%s14117_s0 + $0x38] sm:$0xff]   ;;  %v8896_v25 = vld [vmem:[%s14117_s0 + $0x40] sm:$0xff]   ;;  %v2516_v26 = vld [vmem:[%s14115_s2 + $0xf0] sm:$0xff] }
   0x9   :  { %8736 = vmatprep.subr.msk.bf16.mxu0 %vm381_vm1, %v8887_v6  ;;  %v8897_v27 = vld [vmem:[%s14117_s0 + $0x48] sm:$0xff]   ;;  %v9807_v28 = vld [vmem:[%s14115_s2 + $0x20] sm:$0xff]  ;;  %v8898_v29 = vld [vmem:[%s14117_s0 + $0x50] sm:$0xff]   ;;  %v14129_v6 = vmov 1  }
   0xa   :  { %2640 = vperm.xlu0 %8746, %v2510_v8   ;;  %8748 = vset.pattern.permute.xlu1 %v9627_v0  ;;  %v8899_v30 = vld [vmem:[%s14117_s0 + $0x58] sm:$0xff]   ;;  %v8900_v32 = vld [vmem:[%s14117_s0 + $0x60] sm:$0xff]   ;;  %v9833_v34 = vld [vmem:[%s14115_s2 + $0x8] sm:$0xff] }
   0xb   :  { %2645 = vperm.xlu1 %8748, %v9716_v9   ;;  %v9828_v33 = vld [vmem:[%s14115_s2 + $0x38] sm:$0xff]  ;;  %v9843_v35 = vld [vmem:[%s14115_s2 + $0x40] sm:$0xff]  ;;  %v8901_v36 = vld [vmem:[%s14117_s0 + $0x68] sm:$0xff]  }
   0xc   :  { %8095 = vmatpush3.bf16.msra.mxu0 %v383_v10  ;;  %v8902_v37 = vld [vmem:[%s14117_s0 + $0x70] sm:$0xff]   ;;  %v9857_v38 = vld [vmem:[%s14115_s2 + $0x58] sm:$0xff]  ;;  %v8904_v41 = vld [vmem:[%s14117_s0 + $0x80] sm:$0xff]  }
   0xd   :  { %v9863_v39 = vld [vmem:[%s14115_s2 + $0x10] sm:$0xff]  ;;  %v8903_v40 = vld [vmem:[%s14117_s0 + $0x78] sm:$0xff]   ;;  %v9882_v42 = vld [vmem:[%s14115_s2 + $0x60] sm:$0xff]  ;;  %5341 = vmatprep.subr.bf16.mxu0 %v14127_v52 }
   0xe   :  { %2655 = vperm.xlu0 %8746, %v2513_v11   ;;  %v8905_v43 = vld [vmem:[%s14117_s0 + $0x88] sm:$0xff]   ;;  %v8906_v44 = vld [vmem:[%s14117_s0 + $0x90] sm:$0xff]   ;;  %v9906_v46 = vld [vmem:[%s14115_s2 + $0x78] sm:$0xff] }
   0xf   :  { %8749 = vset.pattern.permute.xlu1 %v9628_v1  ;;  %8097 = vmatmul.mubr.msk.bf16.vlgmr.msra.gmra.mrb[0].mxu0 %vm284_vm0, %v8889_v12  ;;  %v9898_v45 = vld [vmem:[%s14115_s2 + $0x28] sm:$0xff]  ;;  %v8907_v47 = vld [vmem:[%s14117_s0 + $0x98] sm:$0xff]   ;;  %v9917_v48 = vld [vmem:[%s14115_s2 + $0x80] sm:$0xff] }
  0x10   :  { %2261 = vperm.xlu1 %8749, %v9716_v9   ;;  %8100 = vmatprep.mubr.msk.bf16.mxu0 %vm284_vm0, %v8890_v13  ;;  %v8908_v49 = vld [vmem:[%s14117_s0 + $0xa0] sm:$0xff]   ;;  %v9929_v50 = vld [vmem:[%s14115_s2 + $0x30] sm:$0xff]  ;;  %v8909_v51 = vld [vmem:[%s14117_s0 + $0xa8] sm:$0xff]  }
  0x11   :  { %v8910_v53 = vld [vmem:[%s14117_s0 + $0xb0] sm:$0xff]   ;;  %v9947_v54 = vld [vmem:[%s14115_s2 + $0x98] sm:$0xff]  ;;  %v9958_v55 = vld [vmem:[%s14115_s2 + $0xa0] sm:$0xff] }
  0x12   :  { %8751 = vset.pattern.permute.xlu0 %v9628_v1  ;;  %v8911_v56 = vld [vmem:[%s14117_s0 + $0xb8] sm:$0xff]   ;;  %v8912_v57 = vld [vmem:[%s14117_s0 + $0xc0] sm:$0xff]   ;;  %v9971_v58 = vld [vmem:[%s14115_s2 + $0x48] sm:$0xff] }
  0x13   :  { %2256 = vperm.xlu0 %8751, %v2510_v8   ;;  %v8913_v59 = vld [vmem:[%s14117_s0 + $0xc8] sm:$0xff]   ;;  %v8914_v60 = vld [vmem:[%s14117_s0 + $0xd0] sm:$0xff]   ;;  %v8915_v63 = vld [vmem:[%s14117_s0 + $0xd8] sm:$0xff]  }
  0x14   :  { %8750 = vset.pattern.permute.xlu1 %v9627_v0  ;;  %v9993_v62 = vld [vmem:[%s14115_s2 + $0x50] sm:$0xff]  ;;  %v8916_v2 = vld [vmem:[%s14117_s0 + $0xe0] sm:$0xff]   ;;  %v8917_v3 = vld [vmem:[%s14117_s0 + $0xe8] sm:$0xff]  }
  0x15   :  { %2650 = vperm.xlu1 %8750, %v2512_v14   ;;  %v8920_v5 = vld [vmem:[%s14118_s5 + $0x80] sm:$0xff]   ;;  %v8918_v7 = vld [vmem:[%s14117_s0 + $0xf0] sm:$0xff]   ;;  %v2499_v8 = vld [vmem:[%s14115_s2 + $0x68] sm:$0xff] }
  0x16   :  { %8336 = vmatpush1.bf16.msra.mxu1 %v8920_v5  ;;  %v8921_v10 = vld [vmem:[%s14118_s5 + $0x88] sm:$0xff]   ;;  %v8919_v13 = vld [vmem:[%s14117_s0 + $0xf8] sm:$0xff]  }
  0x17   :  { %2276 = vperm.xlu0 %8751, %v2130_v15   ;;  %8101 = vmatmul.mubr.msk.bf16.gmra.mrb[4].mxu0 %vm284_vm0, %v8891_v16  ;;  %v8922_v16 = vld [vmem:[%s14118_s5 + $0x90] sm:$0xff]  }
  0x18   :  { %8104 = vmatprep.mubr.msk.bf16.mxu0 %vm284_vm0, %v8892_v17  ;;  %8321 = vmatprep.subr.bf16.mxu1 %v14127_v52  ;;  %v10055_v17 = vld [vmem:[%s14115_s2 + $0x70] sm:$0xff] }
  0x19   :  { %8752 = vset.pattern.permute.xlu1 %v9628_v1 }
  0x1a   :  { %2266 = vperm.xlu1 %8752, %v2512_v14   ;;  %8337 = vmatpush1.bf16.msra.mxu1 %v8921_v10  ;;  %v8937_v10 = vld [vmem:[%s14118_s5 + $0x10] sm:$0xff]  }
  0x1b   :  { %8754 = vset.pattern.permute.xlu0 %v9627_v0  ;;  %8322 = vmatprep.subr.bf16.mxu1 %v14127_v52 }
  0x1c   :  { %2660 = vperm.xlu0 %8754, %v2130_v15  }
  0x1e   :  { %2271 = vperm.xlu1 %8752, %v2513_v11   ;;  %8338 = vmatpush1.bf16.msra.mxu1 %v8922_v16 }
  0x1f   :  { %8105 = vmatmul.mubr.msk.bf16.gmra.mrb[8].mxu0 %vm284_vm0, %v8893_v18  ;;  %8323 = vmatprep.subr.bf16.mxu1 %v14127_v52 }
  0x20   :  { %2675 = vperm.xlu0 %8754, %v9758_v19   ;;  %8108 = vmatprep.mubr.msk.bf16.mxu0 %vm284_vm0, %v8894_v20  ;;  %v8923_v20 = vld [vmem:[%s14118_s5 + $0x98] sm:$0xff]  }
  0x22   :  { %8753 = vset.pattern.permute.xlu1 %v9627_v0  ;;  %8339 = vmatpush1.bf16.msra.mxu1 %v8923_v20 }
  0x23   :  { %2665 = vperm.xlu1 %8753, %v9768_v21   ;;  %8324 = vmatprep.subr.bf16.mxu1 %v14127_v52 }
  0x24   :  { %2520 = vperm.xlu0 %8754, %v9773_v22  }
  0x27   :  { %8755 = vset.pattern.permute.xlu1 %v9628_v1  ;;  %8109 = vmatmul.mubr.msk.bf16.gmra.mrb[12].mxu0 %vm284_vm0, %v8895_v24 }
  0x28   :  { %2535 = vperm.xlu0 %8754, %v9782_v23   ;;  %2281 = vperm.xlu1 %8755, %v9768_v21  }
  0x29   :  { %8112 = vmatprep.mubr.msk.bf16.mxu0 %vm284_vm0, %v8896_v25 }
  0x2c   :  { %8761 = vset.pattern.permute.xlu0 %v9628_v1  ;;  %8756 = vset.pattern.permute.xlu1 %v9627_v0 }
  0x2d   :  { %2670 = vperm.xlu1 %8756, %v2516_v26   ;;  %2136 = vperm.xlu0 %8761, %v9773_v22  }
  0x2f   :  { %8113 = vmatmul.mubr.msk.bf16.gmra.mrb[16].mxu0 %vm284_vm0, %v8897_v27 }
  0x30   :  { %8116 = vmatprep.mubr.msk.bf16.mxu0 %vm284_vm0, %v8898_v29  ;;  %v8925_v29 = vld [vmem:[%s14118_s5 + $0xa8] sm:$0xff]  }
  0x31   :  { %8757 = vset.pattern.permute.xlu1 %v9628_v1  ;;  %2156 = vperm.xlu0 %8761, %v9807_v28  }
  0x32   :  { %2286 = vperm.xlu1 %8757, %v2516_v26   ;;  %v8924_v26 = vld [vmem:[%s14118_s5 + $0xa0] sm:$0xff]  }
  0x33   :  { %8340 = vmatpush1.bf16.msra.mxu1 %v8924_v26  ;;  %v8938_v26 = vld [vmem:[%s14118_s5 + $0xf8] sm:$0xff]  }
  0x34   :  { %8325 = vmatprep.subr.bf16.mxu1 %v14127_v52 }
  0x35   :  { %8764 = vset.pattern.permute.xlu0 %v9627_v0 }
  0x36   :  { %2291 = vperm.xlu1 %8757, %v9758_v19   ;;  %2540 = vperm.xlu0 %8764, %v9807_v28  }
  0x37   :  { %8117 = vmatmul.mubr.msk.bf16.gmra.mrb[20].mxu0 %vm284_vm0, %v8899_v30  ;;  %8341 = vmatpush1.bf16.msra.mxu1 %v8925_v29  ;;  %v8939_v29 = vld [vmem:[%s14118_s5 + $0x18] sm:$0xff]  }
  0x38   :  { %8120 = vmatprep.mubr.msk.bf16.mxu0 %vm284_vm0, %v8900_v32  ;;  %8326 = vmatprep.subr.bf16.mxu1 %v14127_v52  ;;  %v8926_v32 = vld [vmem:[%s14118_s5 + $0xb0] sm:$0xff]  }
  0x3a   :  { %8758 = vset.pattern.permute.xlu1 %v9627_v0  ;;  %2555 = vperm.xlu0 %8764, %v9828_v33  }
  0x3b   :  { %2525 = vperm.xlu1 %8758, %v9833_v34   ;;  %8342 = vmatpush1.bf16.msra.mxu1 %v8926_v32 }
  0x3c   :  { %8327 = vmatprep.subr.bf16.mxu1 %v14127_v52 }
  0x3e   :  { %2560 = vperm.xlu0 %8764, %v9843_v35  }
  0x3f   :  { %8759 = vset.pattern.permute.xlu1 %v9628_v1  ;;  %8121 = vmatmul.mubr.msk.bf16.gmra.mrb[24].mxu0 %vm284_vm0, %v8901_v36  ;;  %v2503_v36 = vld [vmem:[%s14115_s2 + $0x88] sm:$0xff] }
  0x40   :  { %2141 = vperm.xlu1 %8759, %v9833_v34   ;;  %8124 = vmatprep.mubr.msk.bf16.mxu0 %vm284_vm0, %v8902_v37 }
  0x42   :  { %2575 = vperm.xlu0 %8764, %v9857_v38  }
  0x44   :  { %8760 = vset.pattern.permute.xlu1 %v9627_v0 }
  0x45   :  { %2530 = vperm.xlu1 %8760, %v9863_v39  }
  0x46   :  { %8771 = vset.pattern.permute.xlu0 %v9628_v1 }
  0x47   :  { %2176 = vperm.xlu0 %8771, %v9843_v35   ;;  %8125 = vmatmul.mubr.msk.bf16.gmra.mrb[28].mxu0 %vm284_vm0, %v8903_v40 }
  0x48   :  { %8128 = vmatprep.mubr.msk.bf16.mxu0 %vm284_vm0, %v8904_v41 }
  0x49   :  { %8762 = vset.pattern.permute.xlu1 %v9628_v1 }
  0x4a   :  { %2146 = vperm.xlu1 %8762, %v9863_v39  }
  0x4b   :  { %2196 = vperm.xlu0 %8771, %v9882_v42  }
  0x4e   :  { %2151 = vperm.xlu1 %8762, %v9782_v23  }
  0x4f   :  { %8774 = vset.pattern.permute.xlu0 %v9627_v0  ;;  %8129 = vmatmul.mubr.msk.bf16.gmra.mrb[32].mxu0 %vm284_vm0, %v8905_v43  ;;  %v8928_v43 = vld [vmem:[%s14118_s5 + $0xc0] sm:$0xff]  }
  0x50   :  { %2580 = vperm.xlu0 %8774, %v9882_v42   ;;  %8132 = vmatprep.mubr.msk.bf16.mxu0 %vm284_vm0, %v8906_v44 }
  0x52   :  { %8763 = vset.pattern.permute.xlu1 %v9627_v0 }
  0x53   :  { %2545 = vperm.xlu1 %8763, %v9898_v45  }
  0x54   :  { %2595 = vperm.xlu0 %8774, %v9906_v46  }
  0x57   :  { %8765 = vset.pattern.permute.xlu1 %v9628_v1  ;;  %8133 = vmatmul.mubr.msk.bf16.gmra.mrb[36].mxu0 %vm284_vm0, %v8907_v47  ;;  %v3019_v47 = vld [vmem:[%s14115_s2 + $0xa8] sm:$0xff] }
  0x58   :  { %2161 = vperm.xlu1 %8765, %v9898_v45   ;;  %2600 = vperm.xlu0 %8774, %v9917_v48  }
  0x59   :  { %8136 = vmatprep.mubr.msk.bf16.mxu0 %vm284_vm0, %v8908_v49 }
  0x5c   :  { %8766 = vset.pattern.permute.xlu1 %v9627_v0  ;;  %8779 = vset.pattern.permute.xlu0 %v9628_v1 }
  0x5d   :  { %2550 = vperm.xlu1 %8766, %v9929_v50   ;;  %2216 = vperm.xlu0 %8779, %v9917_v48  }
  0x5f   :  { %8137 = vmatmul.mubr.msk.bf16.gmra.mrb[40].mxu0 %vm284_vm0, %v8909_v51 }
  0x60   :  { %8140 = vmatprep.mubr.msk.bf16.mxu0 %vm284_vm0, %v8910_v53 }
  0x61   :  { %8767 = vset.pattern.permute.xlu1 %v9628_v1  ;;  %8782 = vset.pattern.permute.xlu0 %v9627_v0 }
  0x62   :  { %2166 = vperm.xlu1 %8767, %v9929_v50   ;;  %2615 = vperm.xlu0 %8782, %v9947_v54  }
  0x66   :  { %2171 = vperm.xlu1 %8767, %v9828_v33   ;;  %2620 = vperm.xlu0 %8782, %v9958_v55  }
  0x67   :  { %8141 = vmatmul.mubr.msk.bf16.gmra.mrb[44].mxu0 %vm284_vm0, %v8911_v56  ;;  %v8929_v56 = vld [vmem:[%s14118_s5 + $0xc8] sm:$0xff]  }
  0x68   :  { %8144 = vmatprep.mubr.msk.bf16.mxu0 %vm284_vm0, %v8912_v57 }
  0x6a   :  { %8768 = vset.pattern.permute.xlu1 %v9627_v0  ;;  %8785 = vset.pattern.permute.xlu0 %v9628_v1 }
  0x6b   :  { %2565 = vperm.xlu1 %8768, %v9971_v58   ;;  %2236 = vperm.xlu0 %8785, %v9958_v55  }
  0x6f   :  { %8769 = vset.pattern.permute.xlu1 %v9628_v1  ;;  %8788 = vset.pattern.permute.xlu0 %v14125_v61 }
  0x70   :  { %2181 = vperm.xlu1 %8769, %v9971_v58   ;;  %3037 = vperm.xlu0 %8788, %v9833_v34  }
  0x71   :  { %8145 = vmatmul.mubr.msk.bf16.gmra.mrb[48].mxu0 %vm284_vm0, %v8913_v59 }
  0x72   :  { %8148 = vmatprep.mubr.msk.bf16.mxu0 %vm284_vm0, %v8914_v60  ;;  %v8930_v60 = vld [vmem:[%s14118_s5 + $0xd0] sm:$0xff]  }
  0x74   :  { %8770 = vset.pattern.permute.xlu1 %v9627_v0  ;;  %3052 = vperm.xlu0 %8788, %v9807_v28  }
  0x75   :  { %2570 = vperm.xlu1 %8770, %v9993_v62  }
  0x78   :  { %3062 = vperm.xlu0 %8788, %v9929_v50  }
  0x79   :  { %8149 = vmatmul.mubr.msk.bf16.gmra.mrb[52].mxu0 %vm284_vm0, %v8915_v63  ;;  %8772 = vset.pattern.permute.xlu1 %v9628_v1 }
  0x7a   :  { %8152 = vmatprep.mubr.msk.bf16.mxu0 %vm284_vm0, %v8916_v2  ;;  %2186 = vperm.xlu1 %8772, %v9993_v62  }
  0x7c   :  { %8789 = vset.pattern.permute.xlu0 %v14129_v6 }
  0x7d   :  { %1752 = vperm.xlu0 %8789, %v9773_v22  }
  0x7e   :  { %2191 = vperm.xlu1 %8772, %v9857_v38  }
  0x81   :  { %8153 = vmatmul.mubr.msk.bf16.gmra.mrb[56].mxu0 %vm284_vm0, %v8917_v3  ;;  %v10030_v11 = vpop.permute.xlu0 %2630  ;;  %v10032_v12 = vpop.permute.xlu1 %2246  ;;  %1762 = vperm.xlu0 %8789, %v9863_v39   ;;  %v8933_v3 = vld [vmem:[%s14118_s5] sm:$0xff]  }
  0x82   :  { %14362 = vst [vmem:[#allocation4_spill] sm:$0xff] %v10030_v11  ;;  %14363 = vst [vmem:[#allocation5_spill] sm:$0xff] %v10032_v12  ;;  %8156 = vmatprep.mubr.msk.bf16.mxu0 %vm284_vm0, %v8918_v7  ;;  %8773 = vset.pattern.permute.xlu1 %v9627_v0 }
  0x83   :  { %2585 = vperm.xlu1 %8773, %v2499_v8   ;;  %5342 = vmatpush1.bf16.msra.mxu0 %v8933_v3  ;;  %v9513_v3 = vld [vmem:[%s14115_s2 + $0xb8] sm:$0xff] }
  0x84   :  { %5343 = vmatprep.subr.bf16.mxu0 %v14127_v52 }
  0x85   :  { %v10041_v14 = vpop.permute.xlu0 %2635  ;;  %v10043_v15 = vpop.permute.xlu1 %2251  ;;  %1772 = vperm.xlu0 %8789, %v9807_v28  }
  0x86   :  { %14364 = vst [vmem:[#allocation6_spill] sm:$0xff] %v10041_v14  ;;  %14365 = vst [vmem:[#allocation7_spill] sm:$0xff] %v10043_v15 }
  0x87   :  { %8775 = vset.pattern.permute.xlu1 %v9628_v1 }
  0x88   :  { %2201 = vperm.xlu1 %8775, %v2499_v8  }
  0x89   :  { %8157 = vmatmul.mubr.msk.bf16.gmra.mrb[60].mxu0 %vm284_vm0, %v8919_v13  ;;  %v10057_v18 = vpop.permute.xlu0 %2640  ;;  %1782 = vperm.xlu0 %8789, %v9929_v50  }
  0x8a   :  { %14366 = vst [vmem:[#allocation8_spill] sm:$0xff] %v10057_v18  ;;  %v10063_v24 = vpop.permute.xlu1 %2645 }
  0x8b   :  { %14367 = vst [vmem:[#allocation9_spill] sm:$0xff] %v10063_v24 }
  0x8c   :  { %8776 = vset.pattern.permute.xlu1 %v9627_v0 }
  0x8d   :  { %v10067_v25 = vpop.permute.xlu0 %2655  ;;  %2590 = vperm.xlu1 %8776, %v10055_v17   ;;  %8799 = vset.pattern.permute.xlu0 %v14125_v61 }
  0x8e   :  { %14368 = vst [vmem:[#allocation10_spill] sm:$0xff] %v10067_v25  ;;  %3072 = vperm.xlu0 %8799, %v9843_v35  }
  0x8f   :  { %v10075_v27 = vpop.permute.xlu1 %2261 }
  0x90   :  { %14369 = vst [vmem:[#allocation11_spill] sm:$0xff] %v10075_v27 }
  0x91   :  { %8777 = vset.pattern.permute.xlu1 %v9628_v1 }
  0x92   :  { %v10079_v28 = vpop.permute.xlu0 %2256  ;;  %2206 = vperm.xlu1 %8777, %v10055_v17   ;;  %3087 = vperm.xlu0 %8799, %v9857_v38   ;;  %v8927_v38 = vld [vmem:[%s14118_s5 + $0xb8] sm:$0xff]  }
  0x93   :  { %14370 = vst [vmem:[#allocation12_spill] sm:$0xff] %v10079_v28  ;;  %8343 = vmatpush1.bf16.msra.mxu1 %v8927_v38 }
  0x94   :  { %v10086_v30 = vpop.permute.xlu1 %2650  ;;  %8328 = vmatprep.subr.bf16.mxu1 %v14127_v52 }
  0x95   :  { %14371 = vst [vmem:[#allocation13_spill] sm:$0xff] %v10086_v30 }
  0x96   :  { %v10089_v31 = vpop.permute.xlu0 %2276  ;;  %2211 = vperm.xlu1 %8777, %v9906_v46   ;;  %3097 = vperm.xlu0 %8799, %v2499_v8  }
  0x97   :  { %14372 = vst [vmem:[#allocation14_spill] sm:$0xff] %v10089_v31  ;;  %8344 = vmatpush1.bf16.msra.mxu1 %v8928_v43 }
  0x98   :  { %8329 = vmatprep.subr.bf16.mxu1 %v14127_v52 }
  0x99   :  { %v10098_v37 = vpop.permute.xlu1 %2266 }
  0x9a   :  { %14373 = vst [vmem:[#allocation15_spill] sm:$0xff] %v10098_v37  ;;  %8778 = vset.pattern.permute.xlu1 %v9627_v0  ;;  %3107 = vperm.xlu0 %8799, %v9906_v46   ;;  %v10120_v46 = vld [vmem:[%s14115_s2 + $0x90] sm:$0xff] }
  0x9b   :  { %v10106_v40 = vpop.permute.xlu0 %2660  ;;  %2605 = vperm.xlu1 %8778, %v2503_v36   ;;  %8345 = vmatpush1.bf16.msra.mxu1 %v8929_v56 }
  0x9c   :  { %14374 = vst [vmem:[#allocation16_spill] sm:$0xff] %v10106_v40  ;;  %8330 = vmatprep.subr.bf16.mxu1 %v14127_v52 }
  0x9d   :  { %v10108_v41 = vpop.permute.xlu1 %2271 }
  0x9e   :  { %14375 = vst [vmem:[#allocation17_spill] sm:$0xff] %v10108_v41  ;;  %3117 = vperm.xlu0 %8799, %v2503_v36  }
  0x9f   :  { %v10114_v44 = vpop.permute.xlu0 %2675  ;;  %8780 = vset.pattern.permute.xlu1 %v9628_v1  ;;  %8346 = vmatpush1.bf16.msra.mxu1 %v8930_v60 }
  0xa0   :  { %14376 = vst [vmem:[#allocation18_spill] sm:$0xff] %v10114_v44  ;;  %2221 = vperm.xlu1 %8780, %v2503_v36   ;;  %8331 = vmatprep.subr.bf16.mxu1 %v14127_v52 }
  0xa2   :  { %v10126_v49 = vpop.permute.xlu1 %2665  ;;  %3127 = vperm.xlu0 %8799, %v9947_v54  }
  0xa3   :  { %14377 = vst [vmem:[#allocation19_spill] sm:$0xff] %v10126_v49  ;;  %v10129_v50 = vpop.permute.xlu0 %2520 }
  0xa4   :  { %14378 = vst [vmem:[#allocation20_spill] sm:$0xff] %v10129_v50  ;;  %8781 = vset.pattern.permute.xlu1 %v9627_v0 }
  0xa5   :  { %2610 = vperm.xlu1 %8781, %v10120_v46  }
  0xa6   :  { %3137 = vperm.xlu0 %8799, %v3019_v47  }
  0xa7   :  { %v10133_v51 = vpop.permute.xlu0 %2535  ;;  %v10135_v53 = vpop.permute.xlu1 %2281 }
  0xa8   :  { %14379 = vst [vmem:[#allocation21_spill] sm:$0xff] %v10133_v51  ;;  %14380 = vst [vmem:[#allocation22_spill] sm:$0xff] %v10135_v53 }
  0xa9   :  { %8783 = vset.pattern.permute.xlu1 %v9628_v1 }
  0xaa   :  { %2226 = vperm.xlu1 %8783, %v10120_v46   ;;  %3147 = vperm.xlu0 %8799, %v9697_v4   ;;  %v8931_v4 = vld [vmem:[%s14118_s5 + $0xd8] sm:$0xff]  }
  0xab   :  { %8347 = vmatpush1.bf16.msra.mxu1 %v8931_v4 }
  0xac   :  { %v10143_v57 = vpop.permute.xlu0 %2136  ;;  %v10145_v59 = vpop.permute.xlu1 %2670  ;;  %8332 = vmatprep.subr.bf16.mxu1 %v14127_v52 }
  0xad   :  { %14381 = vst [vmem:[#allocation23_spill] sm:$0xff] %v10143_v57  ;;  %14382 = vst [vmem:[#allocation24_spill] sm:$0xff] %v10145_v59 }
  0xae   :  { %2231 = vperm.xlu1 %8783, %v9947_v54   ;;  %3157 = vperm.xlu0 %8799, %v9716_v9   ;;  %v8932_v9 = vld [vmem:[%s14118_s5 + $0xe0] sm:$0xff]  }
  0xaf   :  { %8348 = vmatpush1.bf16.msra.mxu1 %v8932_v9 }
  0xb0   :  { %v10157_v63 = vpop.permute.xlu0 %2156  ;;  %8333 = vmatprep.subr.bf16.mxu1 %v14127_v52 }
  0xb1   :  { %14383 = vst [vmem:[#allocation25_spill] sm:$0xff] %v10157_v63  ;;  %v10159_v2 = vpop.permute.xlu1 %2286 }
  0xb2   :  { %14384 = vst [vmem:[#allocation26_spill] sm:$0xff] %v10159_v2  ;;  %8784 = vset.pattern.permute.xlu1 %v9627_v0  ;;  %8814 = vset.pattern.permute.xlu0 %v14129_v6  ;;  %v8934_v0 = vld [vmem:[%s14118_s5 + $0xe8] sm:$0xff]  }
  0xb3   :  { %2625 = vperm.xlu1 %8784, %v3019_v47   ;;  %1792 = vperm.xlu0 %8814, %v9843_v35   ;;  %v8935_v35 = vld [vmem:[%s14118_s5 + $0x8] sm:$0xff]  }
  0xb4   :  { %8349 = vmatpush1.bf16.msra.mxu1 %v8934_v0  ;;  %5344 = vmatpush1.bf16.msra.mxu0 %v8935_v35 }
  0xb5   :  { %v10167_v54 = vpop.permute.xlu1 %2291  ;;  %v10173_v5 = vpop.permute.xlu0 %2540  ;;  %8334 = vmatprep.subr.bf16.mxu1 %v14127_v52  ;;  %5345 = vmatprep.subr.bf16.mxu0 %v14127_v52 }
  0xb6   :  { %14385 = vst [vmem:[#allocation27_spill] sm:$0xff] %v10167_v54  ;;  %14386 = vst [vmem:[#allocation28_spill] sm:$0xff] %v10173_v5 }
  0xb7   :  { %8786 = vset.pattern.permute.xlu1 %v9628_v1  ;;  %1802 = vperm.xlu0 %8814, %v9993_v62   ;;  %v8936_v1 = vld [vmem:[%s14118_s5 + $0xf0] sm:$0xff]  }
  0xb8   :  { %2241 = vperm.xlu1 %8786, %v3019_v47   ;;  %8350 = vmatpush1.bf16.msra.mxu1 %v8936_v1  ;;  %v9514_v1 = vld [vmem:[%s14115_s2 + $0xb0] sm:$0xff] }
  0xb9   :  { %v10185_v7 = vpop.permute.xlu0 %2555  ;;  %5346 = vmatpush1.bf16.msra.mxu0 %v8937_v10  ;;  %8335 = vmatprep.subr.bf16.mxu1 %v14127_v52 }
  0xba   :  { %14387 = vst [vmem:[#allocation29_spill] sm:$0xff] %v10185_v7  ;;  %v10187_v8 = vpop.permute.xlu1 %2525  ;;  %5347 = vmatprep.subr.bf16.mxu0 %v14127_v52 }
  0xbb   :  { %14388 = vst [vmem:[#allocation30_spill] sm:$0xff] %v10187_v8  ;;  %1812 = vperm.xlu0 %8814, %v9882_v42  }
  0xbc   :  { %8787 = vset.pattern.permute.xlu1 %v14125_v61  ;;  %8351 = vmatpush1.bf16.msra.mxu1 %v8938_v26 }
  0xbd   :  { %3032 = vperm.xlu1 %8787, %v9773_v22   ;;  %v10200_v13 = vpop.permute.xlu0 %2560  ;;  %5348 = vmatpush1.bf16.msra.mxu0 %v8939_v29 }
  0xbe   :  { %14389 = vst [vmem:[#allocation31_spill] sm:$0xff] %v10200_v13  ;;  %5919 = vmatprep.subr.bf16.mxu1 %v14127_v52  ;;  %5349 = vmatprep.subr.bf16.mxu0 %v14127_v52 }
  0xbf   :  { %v10202_v16 = vpop.permute.xlu1 %2141  ;;  %1822 = vperm.xlu0 %8814, %v10055_v17  }
  0xc0   :  { %14390 = vst [vmem:[#allocation32_spill] sm:$0xff] %v10202_v16 }
  0xc1   :  { %3042 = vperm.xlu1 %8787, %v9863_v39   ;;  %v10208_v20 = vpop.permute.xlu0 %2575 }
  0xc2   :  { %14391 = vst [vmem:[#allocation33_spill] sm:$0xff] %v10208_v20 }
  0xc3   :  { %1832 = vperm.xlu0 %8814, %v9917_v48   ;;  %v8941_v48 = vld [vmem:[%s14118_s5 + $0x20] sm:$0xff]  }
  0xc4   :  { %v10217_v32 = vpop.permute.xlu1 %2530  ;;  %5350 = vmatpush1.bf16.msra.mxu0 %v8941_v48 }
  0xc5   :  { %14392 = vst [vmem:[#allocation34_spill] sm:$0xff] %v10217_v32  ;;  %3047 = vperm.xlu1 %8787, %v9782_v23   ;;  %5351 = vmatprep.subr.bf16.mxu0 %v14127_v52 }
  0xc6   :  { %v10222_v36 = vpop.permute.xlu0 %2176 }
  0xc7   :  { %14393 = vst [vmem:[#allocation35_spill] sm:$0xff] %v10222_v36  ;;  %1842 = vperm.xlu0 %8814, %v10120_v46   ;;  %v8942_v46 = vld [vmem:[%s14118_s5 + $0x28] sm:$0xff]  }
  0xc8   :  { %5352 = vmatpush1.bf16.msra.mxu0 %v8942_v46 }
  0xc9   :  { %v10225_v38 = vpop.permute.xlu1 %2146  ;;  %3057 = vperm.xlu1 %8787, %v9898_v45   ;;  %5353 = vmatprep.subr.bf16.mxu0 %v14127_v52  ;;  %v9512_v45 = vld [vmem:[%s14115_s2 + $0xd8] sm:$0xff] }
  0xca   :  { %14394 = vst [vmem:[#allocation36_spill] sm:$0xff] %v10225_v38  ;;  %v10231_v43 = vpop.permute.xlu0 %2196 }
  0xcb   :  { %14395 = vst [vmem:[#allocation37_spill] sm:$0xff] %v10231_v43  ;;  %1852 = vperm.xlu0 %8814, %v9958_v55  }
  0xcd   :  { %v10235_v47 = vpop.permute.xlu1 %2151  ;;  %3067 = vperm.xlu1 %8787, %v9828_v33  }
  0xce   :  { %14396 = vst [vmem:[#allocation38_spill] sm:$0xff] %v10235_v47  ;;  %v14160_v47 = vmov 6  }
  0xcf   :  { %8822 = vset.pattern.permute.xlu0 %v14125_v61  ;;  %v10242_v56 = vpop.permute.xlu0 %2580 }
  0xd0   :  { %14397 = vst [vmem:[#allocation39_spill] sm:$0xff] %v10242_v56  ;;  %3167 = vperm.xlu0 %8822, %v9512_v45  }
  0xd1   :  { %3077 = vperm.xlu1 %8787, %v9971_v58  }
  0xd2   :  { %v10249_v55 = vpop.permute.xlu1 %2545 }
  0xd3   :  { %14398 = vst [vmem:[#allocation40_spill] sm:$0xff] %v10249_v55  ;;  %v10251_v60 = vpop.permute.xlu0 %2595 }
  0xd4   :  { %14399 = vst [vmem:[#allocation41_spill] sm:$0xff] %v10251_v60  ;;  %3177 = vperm.xlu0 %8822, %v9768_v21   ;;  %v8943_v21 = vld [vmem:[%s14118_s5 + $0x30] sm:$0xff]  }
  0xd5   :  { %8790 = vset.pattern.permute.xlu1 %v14129_v6  ;;  %5354 = vmatpush1.bf16.msra.mxu0 %v8943_v21 }
  0xd6   :  { %1757 = vperm.xlu1 %8790, %v9833_v34   ;;  %5355 = vmatprep.subr.bf16.mxu0 %v14127_v52 }
  0xd7   :  { %v10256_v33 = vpop.permute.xlu1 %2161  ;;  %v10258_v4 = vpop.permute.xlu0 %2600 }
  0xd8   :  { %14400 = vst [vmem:[#allocation42_spill] sm:$0xff] %v10256_v33  ;;  %14401 = vst [vmem:[#allocation43_spill] sm:$0xff] %v10258_v4  ;;  %3187 = vperm.xlu0 %8822, %v9758_v19   ;;  %v8945_v19 = vld [vmem:[%s14118_s5 + $0x38] sm:$0xff]  }
  0xd9   :  { %5356 = vmatpush1.bf16.msra.mxu0 %v8945_v19 }
  0xda   :  { %8791 = vset.pattern.permute.xlu1 %v14125_v61  ;;  %5357 = vmatprep.subr.bf16.mxu0 %v14127_v52 }
  0xdb   :  { %3082 = vperm.xlu1 %8791, %v9993_v62   ;;  %v10283_v62 = vld [vmem:[%s14119_s4] ss:$0 sm:$0xff] }
  0xdc   :  { %v10263_v58 = vpop.permute.xlu1 %2550  ;;  %8828 = vset.pattern.permute.xlu0 %v14127_v52  ;;  %v10269_v9 = vpop.permute.xlu0 %2216 }
  0xdd   :  { %14402 = vst [vmem:[#allocation44_spill] sm:$0xff] %v10263_v58  ;;  %14403 = vst [vmem:[#allocation45_spill] sm:$0xff] %v10269_v9  ;;  %1483 = vperm.xlu0 %8828, %v9513_v3  }
  0xdf   :  { %8792 = vset.pattern.permute.xlu1 %v14127_v52 }
  0xe0   :  { %1368 = vperm.xlu1 %8792, %v9773_v22  }
  0xe1   :  { %v10285_v0 = vpop.permute.xlu1 %2166  ;;  %8829 = vset.pattern.permute.xlu0 %v14129_v6  ;;  %v10288_v35 = vpop.permute.xlu0 %2615 }
  0xe2   :  { %14404 = vst [vmem:[#allocation46_spill] sm:$0xff] %v10285_v0  ;;  %14405 = vst [vmem:[#allocation47_spill] sm:$0xff] %v10288_v35  ;;  %1862 = vperm.xlu0 %8829, %v9514_v1   ;;  %v8098_v10 = vpop.f32.mrb[0].mxu0  ;;  %v14411_v35 = vmov 5  }
  0xe3   :  { %v10295_v22 = vadd.f32 %v8098_v10, %v10283_v62  ;;  %v419_v26 = vpop.f32.mrb[1].mxu0 }
  0xe4   :  { %1373 = vperm.xlu1 %8792, %v9833_v34   ;;  %v10299_v29 = vadd.f32 %v10283_v62, %v419_v26  ;;  %v8099_v48 = vpop.f32.mrb[2].mxu0  ;;  %v9515_v34 = vld [vmem:[%s14115_s2 + $0xd0] sm:$0xff] }
  0xe5   :  { %v10301_v46 = vpop.permute.xlu1 %2171  ;;  %v7765_v45 = vmul.f32 -1.442695, %v10295_v22  ;;  %v10305_v21 = vadd.f32 %v8099_v48, %v10283_v62  ;;  %v422_v3 = vpop.f32.mrb[3].mxu0  ;;  %v8946_v48 = vld [vmem:[%s14118_s5 + $0x40] sm:$0xff]  }
  0xe6   :  { %14406 = vst [vmem:[#allocation48_spill] sm:$0xff] %v10301_v46  ;;  %v10307_v19 = vpop.permute.xlu0 %2620  ;;  %v7763_v1 = vmul.f32 -1.442695, %v10299_v29  ;;  %1882 = vperm.xlu0 %8829, %v9515_v34   ;;  %v10314_v10 = vadd.f32 %v10283_v62, %v422_v3  ;;  %5358 = vmatpush1.bf16.msra.mxu0 %v8946_v48  ;;  %v14409_v3 = vmov 0  }
  0xe7   :  { %14407 = vst [vmem:[#allocation49_spill] sm:$0xff] %v10307_v19  ;;  %9000 = vpow2.f32 %v7765_v45  ;;  %v7766_v26 = vmul.f32 -1.442695, %v10305_v21  ;;  %5359 = vmatprep.subr.bf16.mxu0 %v14409_v3 }
  0xe8   :  { %9002 = vpow2.f32 %v7763_v1  ;;  %v7764_v61 = vmul.f32 -1.442695, %v10314_v10  ;;  %8793 = vset.pattern.permute.xlu1 %v14129_v6  ;;  %v9516_v1 = vld [vmem:[%s14115_s2 + $0xc0] sm:$0xff] }
  0xe9   :  { %9004 = vpow2.f32 %v7766_v26  ;;  %1767 = vperm.xlu1 %8793, %v9782_v23  }
  0xea   :  { %v10323_v52 = vpop.permute.xlu1 %2565  ;;  %9006 = vpow2.f32 %v7764_v61  ;;  %8832 = vset.pattern.permute.xlu0 %v14409_v3  ;;  %v8102_v45 = vpop.f32.mrb[4].mxu0  ;;  %v8947_v61 = vld [vmem:[%s14118_s5 + $0x48] sm:$0xff]  }
  0xeb   :  { %14408 = vst [vmem:[#allocation50_spill] sm:$0xff] %v10323_v52  ;;  %v10326_v34 = vpop.permute.xlu0 %2236  ;;  %1488 = vperm.xlu0 %8832, %v9516_v1   ;;  %v10333_v26 = vadd.f32 %v8102_v45, %v10283_v62  ;;  %v435_v23 = vpop.f32.mrb[5].mxu0  ;;  %5360 = vmatpush1.bf16.msra.mxu0 %v8947_v61 }
  0xec   :  { %14410 = vst [vmem:[#allocation51_spill] sm:$0xff] %v10326_v34  ;;  %v10339_v48 = vadd.f32 %v10283_v62, %v435_v23  ;;  %v8103_v6 = vpop.f32.mrb[6].mxu0  ;;  %v1361_v34 = vld [vmem:[%s14115_s2 + $0xd8] sm:$0xff]  ;;  %5361 = vmatprep.subr.bf16.mxu0 %v14409_v3 }
  0xed   :  { %v7769_v19 = vmul.f32 -1.442695, %v10333_v26  ;;  %8794 = vset.pattern.permute.xlu1 %v14411_v35  ;;  %v10347_v45 = vadd.f32 %v8103_v6, %v10283_v62  ;;  %v438_v1 = vpop.f32.mrb[7].mxu0 }
  0xee   :  { %v7767_v9 = vmul.f32 -1.442695, %v10339_v48  ;;  %3092 = vperm.xlu1 %8794, %v9882_v42   ;;  %v10352_v23 = vadd.f32 %v10283_v62, %v438_v1 }
  0xef   :  { %v10354_v4 = vpop.permute.xlu1 %2181  ;;  %9008 = vpow2.f32 %v7769_v19  ;;  %v7770_v43 = vmul.f32 -1.442695, %v10347_v45  ;;  %1503 = vperm.xlu0 %8832, %v1361_v34   ;;  %v10358_v60 = vpop.permute.xlu0 %3037  ;;  %v9517_v19 = vld [vmem:[%s14115_s2 + $0xe0] sm:$0xff] }
  0xf0   :  { %14412 = vst [vmem:[#allocation52_spill] sm:$0xff] %v10354_v4  ;;  %14413 = vst [vmem:[#allocation53_spill] sm:$0xff] %v10358_v60  ;;  %9010 = vpow2.f32 %v7767_v9  ;;  %v7768_v6 = vmul.f32 -1.442695, %v10352_v23 }
  0xf1   :  { %v9001_v61 = vpop.eup %9000  ;;  %9012 = vpow2.f32 %v7770_v43 }
  0xf2   :  { %v9003_v56 = vpop.eup %9002  ;;  %v868_v42 = vadd.f32 1.0, %v9001_v61  ;;  %9014 = vpow2.f32 %v7768_v6  ;;  %8795 = vset.pattern.permute.xlu1 %v14409_v3  ;;  %v8106_v1 = vpop.f32.mrb[8].mxu0 }
  0xf3   :  { %v9005_v36 = vpop.eup %9004  ;;  %v866_v20 = vadd.f32 1.0, %v9003_v56  ;;  %1508 = vperm.xlu0 %8832, %v9517_v19   ;;  %1378 = vperm.xlu1 %8795, %v9863_v39   ;;  %v10367_v9 = vadd.f32 %v8106_v1, %v10283_v62  ;;  %v451_v34 = vpop.f32.mrb[9].mxu0 }
  0xf4   :  { %v10369_v43 = vpop.permute.xlu0 %3052  ;;  %v9007_v61 = vpop.eup %9006  ;;  %9016 = vrcp.f32 %v868_v42  ;;  %v869_v6 = vadd.f32 1.0, %v9005_v36  ;;  %v10372_v60 = vadd.f32 %v10283_v62, %v451_v34  ;;  %v14416_v34 = vmov 1  }
  0xf5   :  { %14414 = vst [vmem:[#allocation54_spill] sm:$0xff] %v10369_v43  ;;  %v8107_v56 = vpop.f32.mrb[10].mxu0  ;;  %v10374_v4 = vpop.permute.xlu1 %2570  ;;  %9018 = vrcp.f32 %v866_v20  ;;  %v867_v13 = vadd.f32 1.0, %v9007_v61  ;;  %v7773_v19 = vmul.f32 -1.442695, %v10367_v9  ;;  %v9518_v20 = vld [vmem:[%s14115_s2 + $0x18] sm:$0xff] }
  0xf6   :  { %14415 = vst [vmem:[#allocation55_spill] sm:$0xff] %v10374_v4  ;;  %v10378_v39 = vadd.f32 %v8107_v56, %v10283_v62  ;;  %v454_v1 = vpop.f32.mrb[11].mxu0  ;;  %9020 = vrcp.f32 %v869_v6  ;;  %v7771_v43 = vmul.f32 -1.442695, %v10372_v60  ;;  %v9519_v56 = vld [vmem:[%s14115_s2 + $0xf0] sm:$0xff] }
  0xf7   :  { %v10382_v42 = vadd.f32 %v10283_v62, %v454_v1  ;;  %9022 = vrcp.f32 %v867_v13  ;;  %8837 = vset.pattern.permute.xlu0 %v14416_v34  ;;  %1383 = vperm.xlu1 %8795, %v9518_v20   ;;  %v1365_v20 = vld [vmem:[%s14115_s2 + $0xf8] sm:$0xff] }
  0xf8   :  { %v7774_v36 = vmul.f32 -1.442695, %v10378_v39  ;;  %v10389_v61 = vpop.permute.xlu0 %3062  ;;  %9024 = vpow2.f32 %v7773_v19  ;;  %1902 = vperm.xlu0 %8837, %v9519_v56   ;;  %v8949_v19 = vld [vmem:[%s14118_s5 + $0x50] sm:$0xff]  }
  0xf9   :  { %14417 = vst [vmem:[#allocation56_spill] sm:$0xff] %v10389_v61  ;;  %v7772_v6 = vmul.f32 -1.442695, %v10382_v42  ;;  %v9009_v13 = vpop.eup %9008  ;;  %9026 = vpow2.f32 %v7771_v43  ;;  %v10395_v1 = vpop.permute.xlu1 %2186  ;;  %5362 = vmatpush1.bf16.msra.mxu0 %v8949_v19 }
  0xfa   :  { %14418 = vst [vmem:[#allocation57_spill] sm:$0xff] %v10395_v1  ;;  %v9011_v4 = vpop.eup %9010  ;;  %v872_v52 = vadd.f32 1.0, %v9009_v13  ;;  %9028 = vpow2.f32 %v7774_v36  ;;  %v8110_v56 = vpop.f32.mrb[12].mxu0  ;;  %v9520_v36 = vld [vmem:[%s14115_s2 + $0x28] sm:$0xff]  ;;  %5363 = vmatprep.subr.bf16.mxu0 %v14409_v3 }
  0xfb   :  { %v9013_v61 = vpop.eup %9012  ;;  %v870_v46 = vadd.f32 1.0, %v9011_v4  ;;  %9030 = vpow2.f32 %v7772_v6  ;;  %8796 = vset.pattern.permute.xlu1 %v14416_v34  ;;  %v10405_v13 = vadd.f32 %v8110_v56, %v10283_v62  ;;  %v467_v0 = vpop.f32.mrb[13].mxu0  ;;  %v10416_v4 = vld [vmem:[%s14120_s1] ss:$0 sm:$0xff] }
  0xfc   :  { %v9015_v43 = vpop.eup %9014  ;;  %9032 = vrcp.f32 %v872_v52  ;;  %v873_v1 = vadd.f32 1.0, %v9013_v61  ;;  %8840 = vset.pattern.permute.xlu0 %v14409_v3  ;;  %1777 = vperm.xlu1 %8796, %v9520_v36   ;;  %v10411_v63 = vpop.permute.xlu0 %1752  ;;  %v10419_v61 = vadd.f32 %v10283_v62, %v467_v0  ;;  %v8950_v0 = vld [vmem:[%s14118_s5 + $0x58] sm:$0xff]  }
  0xfd   :  { %14419 = vst [vmem:[#allocation58_spill] sm:$0xff] %v10411_v63  ;;  %9034 = vrcp.f32 %v870_v46  ;;  %v871_v52 = vadd.f32 1.0, %v9015_v43  ;;  %1523 = vperm.xlu0 %8840, %v1365_v20   ;;  %v8111_v6 = vpop.f32.mrb[14].mxu0  ;;  %v10421_v56 = vpop.permute.xlu1 %2191  ;;  %v7777_v36 = vmul.f32 -1.442695, %v10405_v13  ;;  %v3382_v43 = vld [vmem:[%s14115_s2] sm:$0xff]  ;;  %5364 = vmatpush1.bf16.msra.mxu0 %v8950_v0 }
  0xfe   :  { %14420 = vst [vmem:[#allocation59_spill] sm:$0xff] %v10421_v56  ;;  %v9017_v7 = vpop.eup %9016  ;;  %9036 = vrcp.f32 %v873_v1  ;;  %v10425_v58 = vadd.f32 %v8111_v6, %v10283_v62  ;;  %v470_v33 = vpop.f32.mrb[15].mxu0  ;;  %v7775_v19 = vmul.f32 -1.442695, %v10419_v61  ;;  %5365 = vmatprep.subr.bf16.mxu0 %v14409_v3 }
  0xff   :  { %v9019_v46 = vpop.eup %9018  ;;  %v1060_v20 = vmul.f32 %v9017_v7, %v10295_v22  ;;  %9038 = vrcp.f32 %v871_v52  ;;  %v10434_v1 = vadd.f32 %v10283_v62, %v470_v33 }
 0x100   :  { %v9021_v6 = vpop.eup %9020  ;;  %v1058_v56 = vmul.f32 %v9019_v46, %v10299_v29  ;;  %9040 = vpow2.f32 %v7777_v36  ;;  %v7778_v5 = vmul.f32 -1.442695, %v10425_v58  ;;  %8797 = vset.pattern.permute.xlu1 %v14411_v35  ;;  %v10442_v55 = vpop.permute.xlu0 %1762 }
 0x101   :  { %14421 = vst [vmem:[#allocation60_spill] sm:$0xff] %v10442_v55  ;;  %v9023_v7 = vpop.eup %9022  ;;  %v1138_v22 = vadd.f32 %v10416_v4, %v1060_v20  ;;  %v1061_v33 = vmul.f32 %v9021_v6, %v10305_v21  ;;  %9042 = vpow2.f32 %v7775_v19  ;;  %v7776_v52 = vmul.f32 -1.442695, %v10434_v1  ;;  %8842 = vset.pattern.permute.xlu0 %v14160_v47  ;;  %3102 = vperm.xlu1 %8797, %v10055_v17   ;;  %v10457_v17 = vld [vmem:[%s14115_s2 + $0x20] sm:$0xff] }
 0x102   :  { %v9025_v29 = vpop.eup %9024  ;;  %v1136_v36 = vadd.f32 %v10416_v4, %v1058_v56  ;;  %v1059_v46 = vmul.f32 %v9023_v7, %v10314_v10  ;;  %9044 = vpow2.f32 %v7778_v5  ;;  %3416 = vperm.xlu0 %8842, %v3382_v43   ;;  %v10451_v38 = vpop.permute.xlu1 %2585 }
 0x103   :  { %14422 = vst [vmem:[#allocation61_spill] sm:$0xff] %v10451_v38  ;;  %v9027_v20 = vpop.eup %9026  ;;  %1208 = vst [vmem:[#allocation2 + $0x28] sm:$0xff] %v1138_v22  ;;  %v1139_v21 = vadd.f32 %v10416_v4, %v1061_v33  ;;  %v876_v19 = vadd.f32 1.0, %v9025_v29  ;;  %9046 = vpow2.f32 %v7776_v52  ;;  %v8114_v6 = vpop.f32.mrb[16].mxu0  ;;  %v3769_v22 = vld [vmem:[%s14115_s2 + $0x18] sm:$0xff]  ;;  %v8952_v33 = vld [vmem:[%s14118_s5 + $0x60] sm:$0xff]  }
 0x104   :  { %v9029_v10 = vpop.eup %9028  ;;  %1206 = vst [vmem:[#allocation2 + $0x18] sm:$0xff] %v1136_v36  ;;  %v1137_v5 = vadd.f32 %v10416_v4, %v1059_v46  ;;  %v874_v56 = vadd.f32 1.0, %v9027_v20  ;;  %v10462_v0 = vadd.f32 %v8114_v6, %v10283_v62  ;;  %v483_v43 = vpop.f32.mrb[17].mxu0  ;;  %5366 = vmatpush1.bf16.msra.mxu0 %v8952_v33 }
 0x105   :  { %v10464_v7 = vpop.permute.xlu0 %1772  ;;  %v9031_v52 = vpop.eup %9030  ;;  %1209 = vst [vmem:[#allocation2 + $0x30] sm:$0xff] %v1139_v21  ;;  %9048 = vrcp.f32 %v876_v19  ;;  %v877_v29 = vadd.f32 1.0, %v9029_v10  ;;  %v10473_v36 = vadd.f32 %v10283_v62, %v483_v43  ;;  %8798 = vset.pattern.permute.xlu1 %v14409_v3  ;;  %5367 = vmatprep.subr.bf16.mxu0 %v14409_v3 }
 0x106   :  { %14423 = vst [vmem:[#allocation62_spill] sm:$0xff] %v10464_v7  ;;  %v8115_v46 = vpop.f32.mrb[18].mxu0  ;;  %v9033_v20 = vpop.eup %9032  ;;  %1207 = vst [vmem:[#allocation2 + $0x20] sm:$0xff] %v1137_v5  ;;  %9050 = vrcp.f32 %v874_v56  ;;  %v875_v6 = vadd.f32 1.0, %v9031_v52  ;;  %v7781_v47 = vmul.f32 -1.442695, %v10462_v0  ;;  %1388 = vperm.xlu1 %8798, %v10457_v17  }
 0x107   :  { %v10478_v38 = vadd.f32 %v8115_v46, %v10283_v62  ;;  %v14164_v7 = vmov 7   ;;  %v486_v21 = vpop.f32.mrb[19].mxu0  ;;  %v9035_v19 = vpop.eup %9034  ;;  %v1064_v10 = vmul.f32 %v9033_v20, %v10333_v26  ;;  %9052 = vrcp.f32 %v877_v29  ;;  %v1339_v56 = vld [vmem:[%s14115_s2 + $0x28] sm:$0xff] }
 0x108   :  { %8845 = vset.pattern.permute.xlu0 %v14164_v7  ;;  %v7779_v43 = vmul.f32 -1.442695, %v10473_v36  ;;  %v10485_v5 = vadd.f32 %v10283_v62, %v486_v21  ;;  %v10490_v52 = vpop.permute.xlu1 %2201  ;;  %v9037_v46 = vpop.eup %9036  ;;  %v1062_v7 = vmul.f32 %v9035_v19, %v10339_v48  ;;  %9054 = vrcp.f32 %v875_v6 }
 0x109   :  { %3815 = vperm.xlu0 %8845, %v3769_v22   ;;  %14424 = vst [vmem:[#allocation63_spill] sm:$0xff] %v10490_v52  ;;  %v7782_v26 = vmul.f32 -1.442695, %v10478_v38  ;;  %v10494_v29 = vpop.permute.xlu0 %1782  ;;  %v8953_v22 = vld [vmem:[%s14118_s5 + $0x68] sm:$0xff]   ;;  %v9039_v20 = vpop.eup %9038  ;;  %v1142_v21 = vadd.f32 %v10416_v4, %v1064_v10  ;;  %v1065_v52 = vmul.f32 %v9037_v46, %v10347_v45  ;;  %9056 = vpow2.f32 %v7781_v47 }
 0x10a   :  { %14425 = vst [vmem:[#allocation64_spill] sm:$0xff] %v10494_v29  ;;  %v7780_v33 = vmul.f32 -1.442695, %v10485_v5  ;;  %v9041_v48 = vpop.eup %9040  ;;  %v1140_v6 = vadd.f32 %v10416_v4, %v1062_v7  ;;  %v1063_v19 = vmul.f32 %v9039_v20, %v10352_v23  ;;  %9058 = vpow2.f32 %v7779_v43  ;;  %1393 = vperm.xlu1 %8798, %v1339_v56   ;;  %v8118_v10 = vpop.f32.mrb[20].mxu0  ;;  %5368 = vmatpush1.bf16.msra.mxu0 %v8953_v22  ;;  %v10511_v23 = vld [vmem:[%s14115_s2 + $0x38] sm:$0xff] }
 0x10b   :  { %v9043_v29 = vpop.eup %9042  ;;  %1212 = vst [vmem:[#allocation2 + $0x48] sm:$0xff] %v1142_v21  ;;  %v1143_v55 = vadd.f32 %v10416_v4, %v1065_v52  ;;  %v880_v51 = vadd.f32 1.0, %v9041_v48  ;;  %9060 = vpow2.f32 %v7782_v26  ;;  %v499_v7 = vpop.f32.mrb[21].mxu0  ;;  %5369 = vmatprep.subr.bf16.mxu0 %v14409_v3  ;;  %v10517_v26 = vadd.f32 %v8118_v10, %v10283_v62 }
 0x10c   :  { %v9045_v47 = vpop.eup %9044  ;;  %1210 = vst [vmem:[#allocation2 + $0x38] sm:$0xff] %v1140_v6  ;;  %v1141_v45 = vadd.f32 %v10416_v4, %v1063_v19  ;;  %v878_v46 = vadd.f32 1.0, %v9043_v29  ;;  %9062 = vpow2.f32 %v7780_v33  ;;  %v10513_v43 = vpop.permute.xlu1 %2590  ;;  %v10520_v29 = vadd.f32 %v10283_v62, %v499_v7 }
 0x10d   :  { %3820 = vperm.xlu0 %8845, %v10457_v17   ;;  %14426 = vst [vmem:[#allocation65_spill] sm:$0xff] %v10513_v43  ;;  %v9047_v56 = vpop.eup %9046  ;;  %1213 = vst [vmem:[#allocation2 + $0x50] sm:$0xff] %v1143_v55  ;;  %9064 = vrcp.f32 %v880_v51  ;;  %v881_v52 = vadd.f32 1.0, %v9045_v47  ;;  %v8119_v22 = vpop.f32.mrb[22].mxu0  ;;  %v7785_v48 = vmul.f32 -1.442695, %v10517_v26 }
 0x10e   :  { %v10522_v20 = vpop.permute.xlu0 %3072  ;;  %1211 = vst [vmem:[#allocation2 + $0x40] sm:$0xff] %v1141_v45  ;;  %9066 = vrcp.f32 %v878_v46  ;;  %v879_v21 = vadd.f32 1.0, %v9047_v56  ;;  %v10525_v33 = vadd.f32 %v8119_v22, %v10283_v62  ;;  %8800 = vset.pattern.permute.xlu1 %v14416_v34  ;;  %v502_v55 = vpop.f32.mrb[23].mxu0  ;;  %v7783_v6 = vmul.f32 -1.442695, %v10520_v29  ;;  %v10544_v22 = vld [vmem:[%s14115_s2 + $0x80] sm:$0xff] }
 0x10f   :  { %14427 = vst [vmem:[#allocation66_spill] sm:$0xff] %v10522_v20  ;;  %v9049_v51 = vpop.eup %9048  ;;  %9068 = vrcp.f32 %v881_v52  ;;  %v10531_v19 = vadd.f32 %v10283_v62, %v502_v55  ;;  %1787 = vperm.xlu1 %8800, %v10511_v23  }
 0x110   :  { %v9051_v10 = vpop.eup %9050  ;;  %v1068_v47 = vmul.f32 %v9049_v51, %v10367_v9  ;;  %9070 = vrcp.f32 %v879_v21  ;;  %v7786_v45 = vmul.f32 -1.442695, %v10525_v33 }
 0x111   :  { %3835 = vperm.xlu0 %8845, %v10511_v23   ;;  %v9053_v46 = vpop.eup %9052  ;;  %v1066_v7 = vmul.f32 %v9051_v10, %v10372_v60  ;;  %9072 = vpow2.f32 %v7785_v48  ;;  %v7784_v56 = vmul.f32 -1.442695, %v10531_v19  ;;  %v10546_v55 = vpop.permute.xlu1 %2206  ;;  %v8954_v60 = vld [vmem:[%s14118_s5 + $0x70] sm:$0xff]  }
 0x112   :  { %v10539_v52 = vpop.permute.xlu0 %3087  ;;  %14429 = vst [vmem:[#allocation68_spill] sm:$0xff] %v10546_v55  ;;  %v9055_v20 = vpop.eup %9054  ;;  %v1146_v9 = vadd.f32 %v10416_v4, %v1068_v47  ;;  %v1069_v21 = vmul.f32 %v9053_v46, %v10378_v39  ;;  %9074 = vpow2.f32 %v7783_v6  ;;  %5370 = vmatpush1.bf16.msra.mxu0 %v8954_v60 }
 0x113   :  { %14428 = vst [vmem:[#allocation67_spill] sm:$0xff] %v10539_v52  ;;  %v9057_v51 = vpop.eup %9056  ;;  %v1144_v48 = vadd.f32 %v10416_v4, %v1066_v7  ;;  %v1067_v10 = vmul.f32 %v9055_v20, %v10382_v42  ;;  %9076 = vpow2.f32 %v7786_v45  ;;  %v14430_v52 = vmov 6   ;;  %8801 = vset.pattern.permute.xlu1 %v14411_v35  ;;  %v8122_v55 = vpop.f32.mrb[24].mxu0  ;;  %5371 = vmatprep.subr.bf16.mxu0 %v14409_v3 }
 0x114   :  { %v9059_v43 = vpop.eup %9058  ;;  %1216 = vst [vmem:[#allocation2 + $0x68] sm:$0xff] %v1146_v9  ;;  %v1147_v39 = vadd.f32 %v10416_v4, %v1069_v21  ;;  %v884_v6 = vadd.f32 1.0, %v9057_v51  ;;  %9078 = vpow2.f32 %v7784_v56  ;;  %v10559_v47 = vadd.f32 %v8122_v55, %v10283_v62  ;;  %3112 = vperm.xlu1 %8801, %v10544_v22   ;;  %v515_v42 = vpop.f32.mrb[25].mxu0  ;;  %v10572_v56 = vld [vmem:[%s14115_s2 + $0x40] sm:$0xff] }
 0x115   :  { %8850 = vset.pattern.permute.xlu0 %v14430_v52  ;;  %v9061_v20 = vpop.eup %9060  ;;  %1214 = vst [vmem:[#allocation2 + $0x58] sm:$0xff] %v1144_v48  ;;  %v1145_v45 = vadd.f32 %v10416_v4, %v1067_v10  ;;  %v882_v46 = vadd.f32 1.0, %v9059_v43  ;;  %v10565_v7 = vadd.f32 %v10283_v62, %v515_v42  ;;  %v8123_v9 = vpop.f32.mrb[26].mxu0  ;;  %v1340_v48 = vld [vmem:[%s14115_s2 + $0x30] sm:$0xff] }
 0x116   :  { %3436 = vperm.xlu0 %8850, %v10457_v17   ;;  %v10567_v21 = vpop.permute.xlu0 %3097  ;;  %v8956_v17 = vld [vmem:[%s14118_s5 + $0x78] sm:$0xff]   ;;  %v9063_v55 = vpop.eup %9062  ;;  %1217 = vst [vmem:[#allocation2 + $0x70] sm:$0xff] %v1147_v39  ;;  %9080 = vrcp.f32 %v884_v6  ;;  %v885_v43 = vadd.f32 1.0, %v9061_v20  ;;  %v10587_v20 = vadd.f32 %v8123_v9, %v10283_v62 }
 0x117   :  { %14431 = vst [vmem:[#allocation69_spill] sm:$0xff] %v10567_v21  ;;  %v518_v51 = vpop.f32.mrb[27].mxu0  ;;  %v10580_v10 = vpop.permute.xlu1 %2211  ;;  %1215 = vst [vmem:[#allocation2 + $0x60] sm:$0xff] %v1145_v45  ;;  %9082 = vrcp.f32 %v882_v46  ;;  %v883_v60 = vadd.f32 1.0, %v9063_v55  ;;  %v7789_v21 = vmul.f32 -1.442695, %v10559_v47  ;;  %5372 = vmatpush1.bf16.msra.mxu0 %v8956_v17 }
 0x118   :  { %14432 = vst [vmem:[#allocation70_spill] sm:$0xff] %v10580_v10  ;;  %v9065_v42 = vpop.eup %9064  ;;  %v7787_v32 = vmul.f32 -1.442695, %v10565_v7  ;;  %9084 = vrcp.f32 %v885_v43  ;;  %v10590_v16 = vadd.f32 %v10283_v62, %v518_v51  ;;  %8802 = vset.pattern.permute.xlu1 %v14409_v3  ;;  %v7790_v51 = vmul.f32 -1.442695, %v10587_v20  ;;  %5630 = vmatprep.subr.bf16.mxu0 %v14409_v3 }
 0x119   :  { %v9067_v39 = vpop.eup %9066  ;;  %v1072_v6 = vmul.f32 %v9065_v42, %v10405_v13  ;;  %9086 = vrcp.f32 %v883_v60  ;;  %1398 = vperm.xlu1 %8802, %v1340_v48  }
 0x11a   :  { %3456 = vperm.xlu0 %8850, %v10572_v56   ;;  %v9069_v45 = vpop.eup %9068  ;;  %v1070_v46 = vmul.f32 %v9067_v39, %v10419_v61  ;;  %v10595_v55 = vpop.permute.xlu0 %3107  ;;  %9088 = vpow2.f32 %v7789_v21  ;;  %v7788_v17 = vmul.f32 -1.442695, %v10590_v16 }
 0x11b   :  { %14433 = vst [vmem:[#allocation71_spill] sm:$0xff] %v10595_v55  ;;  %v9071_v13 = vpop.eup %9070  ;;  %v1150_v43 = vadd.f32 %v10416_v4, %v1072_v6  ;;  %v1073_v9 = vmul.f32 %v9069_v45, %v10425_v58  ;;  %v10600_v42 = vpop.permute.xlu1 %2605  ;;  %9090 = vpow2.f32 %v7787_v32  ;;  %v14435_v45 = vmov 7  }
 0x11c   :  { %14434 = vst [vmem:[#allocation72_spill] sm:$0xff] %v10600_v42  ;;  %v9073_v10 = vpop.eup %9072  ;;  %v1148_v61 = vadd.f32 %v10416_v4, %v1070_v46  ;;  %v1071_v48 = vmul.f32 %v9071_v13, %v10434_v1  ;;  %v8126_v60 = vpop.f32.mrb[28].mxu0  ;;  %9092 = vpow2.f32 %v7790_v51 }
 0x11d   :  { %v9075_v39 = vpop.eup %9074  ;;  %1220 = vst [vmem:[#allocation2 + $0x88] sm:$0xff] %v1150_v43  ;;  %v1151_v58 = vadd.f32 %v10416_v4, %v1073_v9  ;;  %v888_v21 = vadd.f32 1.0, %v9073_v10  ;;  %v10608_v6 = vadd.f32 %v8126_v60, %v10283_v62  ;;  %v531_v55 = vpop.f32.mrb[29].mxu0  ;;  %9094 = vpow2.f32 %v7788_v17  ;;  %1403 = vperm.xlu1 %8802, %v10511_v23   ;;  %v10630_v17 = vld [vmem:[%s14115_s2 + $0x48] sm:$0xff] }
 0x11e   :  { %8853 = vset.pattern.permute.xlu0 %v14435_v45  ;;  %v9077_v42 = vpop.eup %9076  ;;  %1218 = vst [vmem:[#allocation2 + $0x78] sm:$0xff] %v1148_v61  ;;  %v1149_v1 = vadd.f32 %v10416_v4, %v1071_v48  ;;  %v886_v32 = vadd.f32 1.0, %v9075_v39  ;;  %v8127_v46 = vpop.f32.mrb[30].mxu0  ;;  %v10618_v51 = vadd.f32 %v10283_v62, %v531_v55  ;;  %v10623_v61 = vld [vmem:[%s14115_s2 + $0x58] sm:$0xff] }
 0x11f   :  { %3840 = vperm.xlu0 %8853, %v10572_v56   ;;  %v10614_v13 = vpop.permute.xlu0 %3117  ;;  %v9079_v10 = vpop.eup %9078  ;;  %1221 = vst [vmem:[#allocation2 + $0x90] sm:$0xff] %v1151_v58  ;;  %9096 = vrcp.f32 %v888_v21  ;;  %v889_v43 = vadd.f32 1.0, %v9077_v42  ;;  %v7793_v9 = vmul.f32 -1.442695, %v10608_v6  ;;  %v10635_v21 = vadd.f32 %v8127_v46, %v10283_v62 }
 0x120   :  { %14436 = vst [vmem:[#allocation73_spill] sm:$0xff] %v10614_v13  ;;  %1219 = vst [vmem:[#allocation2 + $0x80] sm:$0xff] %v1149_v1  ;;  %9098 = vrcp.f32 %v886_v32  ;;  %v534_v23 = vpop.f32.mrb[31].mxu0  ;;  %v10625_v48 = vpop.permute.xlu1 %2221  ;;  %v887_v60 = vadd.f32 1.0, %v9079_v10  ;;  %v7791_v55 = vmul.f32 -1.442695, %v10618_v51 }
 0x121   :  { %14437 = vst [vmem:[#allocation74_spill] sm:$0xff] %v10625_v48  ;;  %v9081_v42 = vpop.eup %9080  ;;  %9100 = vrcp.f32 %v889_v43  ;;  %8803 = vset.pattern.permute.xlu1 %v14416_v34  ;;  %v10643_v10 = vadd.f32 %v10283_v62, %v534_v23 }
 0x122   :  { %v9083_v39 = vpop.eup %9082  ;;  %v1076_v58 = vmul.f32 %v9081_v42, %v10462_v0  ;;  %9102 = vpow2.f32 %v7793_v9  ;;  %1797 = vperm.xlu1 %8803, %v10630_v17   ;;  %v10649_v0 = vld [vmem:[%s14115_s2 + $0x60] sm:$0xff]  ;;  %v7794_v42 = vmul.f32 -1.442695, %v10635_v21 }
 0x123   :  { %3855 = vperm.xlu0 %8853, %v10623_v61   ;;  %v10639_v1 = vpop.permute.xlu0 %3127  ;;  %v9085_v32 = vpop.eup %9084  ;;  %v1074_v13 = vmul.f32 %v9083_v39, %v10473_v36  ;;  %9104 = vrcp.f32 %v887_v60 }
 0x124   :  { %14438 = vst [vmem:[#allocation75_spill] sm:$0xff] %v10639_v1  ;;  %v9087_v46 = vpop.eup %9086  ;;  %v1154_v43 = vadd.f32 %v10416_v4, %v1076_v58  ;;  %v1077_v9 = vmul.f32 %v9085_v32, %v10478_v38  ;;  %9106 = vpow2.f32 %v7791_v55  ;;  %v8130_v36 = vpop.f32.mrb[32].mxu0  ;;  %v3016_v58 = vld [vmem:[%s14115_s2 + $0x90] sm:$0xff] }
 0x125   :  { %v9089_v60 = vpop.eup %9088  ;;  %v1152_v23 = vadd.f32 %v10416_v4, %v1074_v13  ;;  %v1075_v39 = vmul.f32 %v9087_v46, %v10485_v5  ;;  %v10657_v1 = vadd.f32 %v8130_v36, %v10283_v62  ;;  %v547_v48 = vpop.f32.mrb[33].mxu0  ;;  %9108 = vpow2.f32 %v7794_v42 }
 0x126   :  { %v10659_v57 = vpop.permute.xlu1 %2610  ;;  %v9091_v38 = vpop.eup %9090  ;;  %1224 = vst [vmem:[#allocation2 + $0xa8] sm:$0xff] %v1154_v43  ;;  %v1155_v55 = vadd.f32 %v10416_v4, %v1077_v9  ;;  %v892_v32 = vadd.f32 1.0, %v9089_v60  ;;  %8804 = vset.pattern.permute.xlu1 %v14411_v35  ;;  %v3781_v43 = vld [vmem:[%s14115_s2 + $0x78] sm:$0xff]  ;;  %v7792_v60 = vmul.f32 -1.442695, %v10643_v10  ;;  %v10677_v50 = vadd.f32 %v10283_v62, %v547_v48 }
 0x127   :  { %14439 = vst [vmem:[#allocation76_spill] sm:$0xff] %v10659_v57  ;;  %3860 = vperm.xlu0 %8853, %v10649_v0   ;;  %v8131_v13 = vpop.f32.mrb[34].mxu0  ;;  %v10666_v63 = vpop.permute.xlu0 %3137  ;;  %1222 = vst [vmem:[#allocation2 + $0x98] sm:$0xff] %v1152_v23  ;;  %v1153_v46 = vadd.f32 %v10416_v4, %v1075_v39  ;;  %v890_v36 = vadd.f32 1.0, %v9091_v38  ;;  %3122 = vperm.xlu1 %8804, %v3016_v58   ;;  %v7797_v42 = vmul.f32 -1.442695, %v10657_v1 }
 0x128   :  { %14440 = vst [vmem:[#allocation77_spill] sm:$0xff] %v10666_v63  ;;  %v9093_v5 = vpop.eup %9092  ;;  %1225 = vst [vmem:[#allocation2 + $0xb0] sm:$0xff] %v1155_v55  ;;  %9110 = vrcp.f32 %v892_v32  ;;  %v550_v8 = vpop.f32.mrb[35].mxu0 }
 0x129   :  { %v9095_v57 = vpop.eup %9094  ;;  %v893_v9 = vadd.f32 1.0, %v9093_v5  ;;  %1223 = vst [vmem:[#allocation2 + $0xa0] sm:$0xff] %v1153_v46  ;;  %9112 = vrcp.f32 %v890_v36  ;;  %v10688_v46 = vadd.f32 %v10283_v62, %v550_v8  ;;  %v7795_v36 = vmul.f32 -1.442695, %v10677_v50 }
 0x12a   :  { %v9097_v63 = vpop.eup %9096  ;;  %v891_v23 = vadd.f32 1.0, %v9095_v57  ;;  %v10679_v55 = vpop.permute.xlu1 %2226  ;;  %v10685_v57 = vadd.f32 %v8131_v13, %v10283_v62 }
 0x12b   :  { %v9099_v39 = vpop.eup %9098  ;;  %v1080_v38 = vmul.f32 %v9097_v63, %v10517_v26  ;;  %9114 = vrcp.f32 %v893_v9  ;;  %3875 = vperm.xlu0 %8853, %v3781_v43   ;;  %14441 = vst [vmem:[#allocation78_spill] sm:$0xff] %v10679_v55  ;;  %v10681_v32 = vpop.permute.xlu0 %3147  ;;  %8805 = vset.pattern.permute.xlu1 %v14409_v3 }
 0x12c   :  { %14442 = vst [vmem:[#allocation79_spill] sm:$0xff] %v10681_v32  ;;  %v9101_v5 = vpop.eup %9100  ;;  %v1078_v58 = vmul.f32 %v9099_v39, %v10520_v29  ;;  %9116 = vrcp.f32 %v891_v23  ;;  %v8134_v43 = vpop.f32.mrb[36].mxu0  ;;  %v7798_v13 = vmul.f32 -1.442695, %v10685_v57  ;;  %1408 = vperm.xlu1 %8805, %v10572_v56  }
 0x12d   :  { %v9103_v63 = vpop.eup %9102  ;;  %v1158_v26 = vadd.f32 %v10416_v4, %v1080_v38  ;;  %v1081_v48 = vmul.f32 %v9101_v5, %v10525_v33  ;;  %9118 = vpow2.f32 %v7792_v60  ;;  %v563_v8 = vpop.f32.mrb[37].mxu0  ;;  %v7796_v38 = vmul.f32 -1.442695, %v10688_v46 }
 0x12e   :  { %v9105_v9 = vpop.eup %9104  ;;  %v1156_v29 = vadd.f32 %v10416_v4, %v1078_v58  ;;  %v896_v23 = vadd.f32 1.0, %v9103_v63  ;;  %9120 = vpow2.f32 %v7797_v42  ;;  %v8135_v5 = vpop.f32.mrb[38].mxu0 }
 0x12f   :  { %v9107_v39 = vpop.eup %9106  ;;  %1228 = vst [vmem:[#allocation2 + $0xc8] sm:$0xff] %v1158_v26  ;;  %v1159_v33 = vadd.f32 %v10416_v4, %v1081_v48  ;;  %v1079_v60 = vmul.f32 %v9105_v9, %v10531_v19  ;;  %9122 = vpow2.f32 %v7795_v36  ;;  %8860 = vset.pattern.permute.xlu0 %v14430_v52  ;;  %v10701_v58 = vpop.permute.xlu1 %2231  ;;  %v10708_v19 = vadd.f32 %v8134_v43, %v10283_v62 }
 0x130   :  { %14443 = vst [vmem:[#allocation80_spill] sm:$0xff] %v10701_v58  ;;  %1226 = vst [vmem:[#allocation2 + $0xb8] sm:$0xff] %v1156_v29  ;;  %9124 = vrcp.f32 %v896_v23  ;;  %v894_v42 = vadd.f32 1.0, %v9107_v39  ;;  %v10703_v63 = vpop.permute.xlu0 %3157  ;;  %3476 = vperm.xlu0 %8860, %v10649_v0   ;;  %v566_v56 = vpop.f32.mrb[39].mxu0  ;;  %v10711_v48 = vadd.f32 %v10283_v62, %v563_v8  ;;  %1413 = vperm.xlu1 %8805, %v10630_v17  }
 0x131   :  { %14444 = vst [vmem:[#allocation81_spill] sm:$0xff] %v10703_v63  ;;  %1229 = vst [vmem:[#allocation2 + $0xd0] sm:$0xff] %v1159_v33  ;;  %v1157_v26 = vadd.f32 %v10416_v4, %v1079_v60  ;;  %9126 = vpow2.f32 %v7798_v13  ;;  %v9109_v36 = vpop.eup %9108  ;;  %v7801_v23 = vmul.f32 -1.442695, %v10708_v19  ;;  %v10718_v43 = vadd.f32 %v8135_v5, %v10283_v62 }
 0x132   :  { %9128 = vrcp.f32 %v894_v42  ;;  %v9111_v9 = vpop.eup %9110  ;;  %v897_v29 = vadd.f32 1.0, %v9109_v36  ;;  %v7799_v13 = vmul.f32 -1.442695, %v10711_v48 }
 0x133   :  { %1227 = vst [vmem:[#allocation2 + $0xc0] sm:$0xff] %v1157_v26  ;;  %9130 = vpow2.f32 %v7796_v38  ;;  %v9113_v39 = vpop.eup %9112  ;;  %v1084_v33 = vmul.f32 %v9111_v9, %v10559_v47  ;;  %v10723_v60 = vpop.permute.xlu1 %2625  ;;  %v10727_v38 = vadd.f32 %v10283_v62, %v566_v56  ;;  %v7802_v9 = vmul.f32 -1.442695, %v10718_v43 }
 0x134   :  { %v10720_v8 = vpop.permute.xlu0 %1792  ;;  %3496 = vperm.xlu0 %8860, %v10544_v22   ;;  %14446 = vst [vmem:[#allocation83_spill] sm:$0xff] %v10723_v60  ;;  %v1082_v42 = vmul.f32 %v9113_v39, %v10565_v7  ;;  %9132 = vrcp.f32 %v897_v29  ;;  %v8138_v26 = vpop.f32.mrb[40].mxu0  ;;  %8806 = vset.pattern.permute.xlu1 %v14416_v34 }
 0x135   :  { %14445 = vst [vmem:[#allocation82_spill] sm:$0xff] %v10720_v8  ;;  %v9115_v17 = vpop.eup %9114  ;;  %v1162_v36 = vadd.f32 %v10416_v4, %v1084_v33  ;;  %9134 = vpow2.f32 %v7801_v23  ;;  %v579_v63 = vpop.f32.mrb[41].mxu0  ;;  %v7800_v62 = vmul.f32 -1.442695, %v10727_v38  ;;  %1807 = vperm.xlu1 %8806, %v10623_v61  }
 0x136   :  { %v9117_v47 = vpop.eup %9116  ;;  %v1085_v5 = vmul.f32 %v9115_v17, %v10587_v20  ;;  %v1160_v60 = vadd.f32 %v10416_v4, %v1082_v42  ;;  %9136 = vpow2.f32 %v7799_v13  ;;  %v8139_v56 = vpop.f32.mrb[42].mxu0  ;;  %v10745_v42 = vld [vmem:[%s14119_s4] ss:$0 sm:$0xff] }
 0x137   :  { %v9119_v32 = vpop.eup %9118  ;;  %v1083_v7 = vmul.f32 %v9117_v47, %v10590_v16  ;;  %1232 = vst [vmem:[#allocation2 + $0xe8] sm:$0xff] %v1162_v36  ;;  %9138 = vpow2.f32 %v7802_v9  ;;  %v582_v33 = vpop.f32.mrb[43].mxu0  ;;  %v10748_v47 = vadd.f32 %v10745_v42, %v8138_v26  ;;  %v10759_v9 = vadd.f32 %v10745_v42, %v579_v63  ;;  %v3785_v26 = vld [vmem:[%s14115_s2 + $0x98] sm:$0xff] }
 0x138   :  { %v9121_v29 = vpop.eup %9120  ;;  %v1163_v20 = vadd.f32 %v10416_v4, %v1085_v5  ;;  %v895_v23 = vadd.f32 1.0, %v9119_v32  ;;  %v10738_v39 = vpop.permute.xlu0 %1802  ;;  %8863 = vset.pattern.permute.xlu0 %v14435_v45  ;;  %1230 = vst [vmem:[#allocation2 + $0xd8] sm:$0xff] %v1160_v60  ;;  %9140 = vpow2.f32 %v7800_v62  ;;  %v10756_v60 = vld [vmem:[%s14115_s2 + $0xa0] sm:$0xff] }
 0x139   :  { %14447 = vst [vmem:[#allocation84_spill] sm:$0xff] %v10738_v39  ;;  %v9123_v17 = vpop.eup %9122  ;;  %v1161_v16 = vadd.f32 %v10416_v4, %v1083_v7  ;;  %v900_v13 = vadd.f32 1.0, %v9121_v29  ;;  %v10750_v32 = vpop.permute.xlu1 %2241  ;;  %3880 = vperm.xlu0 %8863, %v10544_v22   ;;  %v10762_v7 = vadd.f32 %v10745_v42, %v8139_v56  ;;  %8807 = vset.pattern.permute.xlu1 %v14411_v35  ;;  %v7805_v63 = vmul.f32 -1.442695, %v10748_v47 }
 0x13a   :  { %14448 = vst [vmem:[#allocation85_spill] sm:$0xff] %v10750_v32  ;;  %v9125_v36 = vpop.eup %9124  ;;  %1233 = vst [vmem:[#allocation2 + $0xf0] sm:$0xff] %v1163_v20  ;;  %9142 = vrcp.f32 %v895_v23  ;;  %v898_v5 = vadd.f32 1.0, %v9123_v17  ;;  %3132 = vperm.xlu1 %8807, %v10756_v60  }
 0x13b   :  { %v9127_v22 = vpop.eup %9126  ;;  %1231 = vst [vmem:[#allocation2 + $0xe0] sm:$0xff] %v1161_v16  ;;  %v1088_v62 = vmul.f32 %v9125_v36, %v10608_v6  ;;  %9144 = vrcp.f32 %v900_v13  ;;  %v7803_v16 = vmul.f32 -1.442695, %v10759_v9  ;;  %v8142_v6 = vpop.f32.mrb[44].mxu0  ;;  %v2444_v13 = vld [vmem:[#allocation2 + $0xc7] sm:$0xff] }
 0x13c   :  { %v9129_v29 = vpop.eup %9128  ;;  %9146 = vrcp.f32 %v898_v5  ;;  %v901_v20 = vadd.f32 1.0, %v9127_v22  ;;  %v10770_v23 = vpop.permute.xlu0 %1812  ;;  %v7806_v5 = vmul.f32 -1.442695, %v10762_v7  ;;  %v2700_v39 = vmul.f32 %v10030_v11, %v2444_v13 }
 0x13d   :  { %14449 = vst [vmem:[#allocation86_spill] sm:$0xff] %v10770_v23  ;;  %v9131_v56 = vpop.eup %9130  ;;  %v1166_v17 = vadd.f32 %v10416_v4, %v1088_v62  ;;  %v1086_v32 = vmul.f32 %v9129_v29, %v10618_v51  ;;  %3895 = vperm.xlu0 %8863, %v3785_v26   ;;  %v10777_v22 = vpop.permute.xlu1 %3032  ;;  %v1344_v23 = vld [vmem:[%s14115_s2 + $0x50] sm:$0xff]  ;;  %v10784_v26 = vadd.f32 %v10745_v42, %v582_v33 }
 0x13e   :  { %9148 = vrcp.f32 %v901_v20  ;;  %v899_v36 = vadd.f32 1.0, %v9131_v56  ;;  %14450 = vst [vmem:[#allocation87_spill] sm:$0xff] %v10777_v22  ;;  %v595_v58 = vpop.f32.mrb[45].mxu0  ;;  %v9133_v55 = vpop.eup %9132  ;;  %v10787_v62 = vadd.f32 %v10745_v42, %v8142_v6  ;;  %v2445_v29 = vld [vmem:[#allocation2 + $0xcf] sm:$0xff]  ;;  %8808 = vset.pattern.permute.xlu1 %v14409_v3 }
 0x13f   :  { %1236 = vst [vmem:[#allocation2 + $0x108] sm:$0xff] %v1166_v17  ;;  %v1164_v51 = vadd.f32 %v10416_v4, %v1086_v32  ;;  %9150 = vpow2.f32 %v7805_v63  ;;  %v8143_v20 = vpop.f32.mrb[46].mxu0  ;;  %v9135_v56 = vpop.eup %9134  ;;  %v1089_v22 = vmul.f32 %v9133_v55, %v10635_v21  ;;  %1418 = vperm.xlu1 %8808, %v1344_v23   ;;  %v2955_v21 = vld [vmem:[#allocation2 + $0xc1] sm:$0xff]  ;;  %v2701_v13 = vmul.f32 %v10041_v14, %v2445_v29 }
 0x140   :  { %9152 = vrcp.f32 %v899_v36  ;;  %v10791_v8 = vpop.permute.xlu0 %1822  ;;  %v10794_v32 = vpop.f32.mrb[47].mxu0  ;;  %v904_v33 = vadd.f32 1.0, %v9135_v56  ;;  %v2060_v36 = vld [vmem:[#allocation2 + $0xb9] sm:$0xff]  ;;  %v7804_v23 = vmul.f32 -1.442695, %v10784_v26  ;;  %v10807_v29 = vadd.f32 %v10745_v42, %v595_v58 }
 0x141   :  { %14451 = vst [vmem:[#allocation88_spill] sm:$0xff] %v10791_v8  ;;  %v9137_v63 = vpop.eup %9136  ;;  %1234 = vst [vmem:[#allocation2 + $0xf8] sm:$0xff] %v1164_v51  ;;  %9154 = vpow2.f32 %v7803_v16  ;;  %3900 = vperm.xlu0 %8863, %v10756_v60   ;;  %v1167_v6 = vadd.f32 %v10416_v4, %v1089_v22  ;;  %v10799_v8 = vpop.permute.xlu1 %3042  ;;  %v3789_v51 = vld [vmem:[%s14115_s2 + $0xb8] sm:$0xff]  ;;  %v7809_v11 = vmul.f32 -1.442695, %v10787_v62 }
 0x142   :  { %v9139_v17 = vpop.eup %9138  ;;  %v902_v55 = vadd.f32 1.0, %v9137_v63  ;;  %9156 = vpow2.f32 %v7806_v5  ;;  %14452 = vst [vmem:[#allocation89_spill] sm:$0xff] %v10799_v8  ;;  %v2753_v63 = vpack.c.bf16 %v2701_v13, %v2700_v39  ;;  %v8940_v13 = vld [vmem:[%s14118_s5 + $0x100] sm:$0xff]  }
 0x143   :  { %v9141_v56 = vpop.eup %9140  ;;  %9158 = vrcp.f32 %v904_v33  ;;  %v905_v16 = vadd.f32 1.0, %v9139_v17  ;;  %1237 = vst [vmem:[#allocation2 + $0x110] sm:$0xff] %v1167_v6  ;;  %v10815_v33 = vld [vmem:[%s14120_s1 + $0x1] ss:$0 sm:$0xff]  ;;  %v2316_v17 = vmul.f32 %v10032_v12, %v2060_v36  ;;  %v2317_v6 = vmul.f32 %v2955_v21, %v10043_v15  ;;  %1423 = vperm.xlu1 %8808, %v10623_v61  }
 0x144   :  { %v9143_v22 = vpop.eup %9142  ;;  %9160 = vrcp.f32 %v902_v55  ;;  %v903_v5 = vadd.f32 1.0, %v9141_v56  ;;  %v10809_v14 = vpop.permute.xlu0 %1832  ;;  %5750 = vmatprep.mubr.bf16.mxu1 %v2753_v63  ;;  %v10826_v56 = vadd.f32 %v10745_v42, %v8143_v20 }
 0x145   :  { %14453 = vst [vmem:[#allocation90_spill] sm:$0xff] %v10809_v14  ;;  %v9145_v8 = vpop.eup %9144  ;;  %v1087_v54 = vmul.f32 %v9143_v22, %v10643_v10  ;;  %9162 = vrcp.f32 %v905_v16  ;;  %3915 = vperm.xlu0 %8863, %v3789_v51   ;;  %v8146_v58 = vpop.f32.mrb[48].mxu0  ;;  %v7807_v10 = vmul.f32 -1.442695, %v10807_v29 }
 0x146   :  { %v9147_v39 = vpop.eup %9146  ;;  %v1092_v55 = vmul.f32 %v9145_v8, %v10657_v1  ;;  %9164 = vrcp.f32 %v903_v5  ;;  %v10828_v36 = vpop.permute.xlu1 %3047  ;;  %v2369_v1 = vpack.c.bf16 %v2317_v6, %v2316_v17  ;;  %v7810_v5 = vmul.f32 -1.442695, %v10826_v56  ;;  %v10852_v17 = vld [vmem:[%s14115_s2 + $0x68] sm:$0xff] }
 0x147   :  { %v10830_v21 = vpop.f32.mrb[49].mxu0  ;;  %v1165_v61 = vadd.f32 %v10416_v4, %v1087_v54  ;;  %v1090_v51 = vmul.f32 %v9147_v39, %v10677_v50  ;;  %9166 = vpow2.f32 %v7804_v23  ;;  %v10846_v4 = vadd.f32 %v10745_v42, %v10794_v32  ;;  %v2446_v23 = vld [vmem:[#allocation2 + $0xd7] sm:$0xff]  ;;  %8809 = vset.pattern.permute.xlu1 %v14416_v34 }
 0x148   :  { %v10834_v8 = vpop.f32.mrb[50].mxu0  ;;  %v9149_v16 = vpop.eup %9148  ;;  %v1170_v22 = vadd.f32 %v10815_v33, %v1092_v55  ;;  %9168 = vpow2.f32 %v7809_v11  ;;  %5751 = vmatmul.mubr.bf16.vlgmr.msra.gmra.mrb[0].mxu1 %v2369_v1  ;;  %v2447_v11 = vld [vmem:[#allocation2 + $0xdf] sm:$0xff]  ;;  %1817 = vperm.xlu1 %8809, %v10852_v17  }
 0x149   :  { %v10838_v20 = vpop.permute.xlu0 %1842  ;;  %v10840_v63 = vpop.f32.mrb[51].mxu0  ;;  %1235 = vst [vmem:[#allocation2 + $0x100] sm:$0xff] %v1165_v61  ;;  %v1168_v54 = vadd.f32 %v10815_v33, %v1090_v51  ;;  %v1093_v50 = vmul.f32 %v9149_v16, %v10685_v57  ;;  %9170 = vpow2.f32 %v7807_v10  ;;  %8870 = vset.pattern.permute.xlu0 %v14430_v52  ;;  %5920 = vmatpush1.bf16.msra.mxu1 %v8940_v13  ;;  %v8944_v57 = vld [vmem:[%s14118_s5 + $0x108] sm:$0xff]   ;;  %v7808_v51 = vmul.f32 -1.442695, %v10846_v4 }
 0x14a   :  { %14454 = vst [vmem:[#allocation91_spill] sm:$0xff] %v10838_v20  ;;  %v9151_v14 = vpop.eup %9150  ;;  %1240 = vst [vmem:[#allocation2 + $0x128] sm:$0xff] %v1170_v22  ;;  %9172 = vpow2.f32 %v7810_v5  ;;  %v10858_v32 = vpop.permute.xlu1 %3057  ;;  %5921 = vmatprep.subr.bf16.mxu1 %v14409_v3  ;;  %3516 = vperm.xlu0 %8870, %v10756_v60   ;;  %v2702_v16 = vmul.f32 %v10057_v18, %v2446_v23  ;;  %v2703_v22 = vmul.f32 %v10063_v24, %v2447_v11  ;;  %v2062_v5 = vld [vmem:[#allocation2 + $0xc9] sm:$0xff] }
 0x14b   :  { %v9153_v6 = vpop.eup %9152  ;;  %v908_v39 = vadd.f32 1.0, %v9151_v14  ;;  %14455 = vst [vmem:[#allocation92_spill] sm:$0xff] %v10858_v32  ;;  %1238 = vst [vmem:[#allocation2 + $0x118] sm:$0xff] %v1168_v54  ;;  %v1171_v10 = vadd.f32 %v10815_v33, %v1093_v50  ;;  %v10864_v14 = vadd.f32 %v10745_v42, %v8146_v58  ;;  %v10876_v58 = vld [vmem:[%s14115_s2 + $0xc0] sm:$0xff]  ;;  %v2957_v50 = vld [vmem:[#allocation2 + $0xd1] sm:$0xff] }
 0x14c   :  { %v9155_v55 = vpop.eup %9154  ;;  %v1091_v61 = vmul.f32 %v9153_v6, %v10688_v46  ;;  %v10880_v11 = vpop.f32.mrb[52].mxu0  ;;  %8810 = vset.pattern.permute.xlu1 %v14411_v35 }
 0x14d   :  { %v9157_v13 = vpop.eup %9156  ;;  %9174 = vrcp.f32 %v908_v39  ;;  %v906_v1 = vadd.f32 1.0, %v9155_v55  ;;  %v10871_v46 = vpop.permute.xlu0 %1852  ;;  %1241 = vst [vmem:[#allocation2 + $0x130] sm:$0xff] %v1171_v10  ;;  %v7813_v23 = vmul.f32 -1.442695, %v10864_v14  ;;  %5922 = vmatpush1.bf16.msra.mxu1 %v8944_v57  ;;  %v3020_v10 = vld [vmem:[%s14115_s2 + $0xb0] sm:$0xff]  ;;  %v2318_v57 = vmul.f32 %v10079_v28, %v2062_v5 }
 0x14e   :  { %14456 = vst [vmem:[#allocation93_spill] sm:$0xff] %v10871_v46  ;;  %v9159_v54 = vpop.eup %9158  ;;  %v1169_v60 = vadd.f32 %v10815_v33, %v1091_v61  ;;  %v909_v6 = vadd.f32 1.0, %v9157_v13  ;;  %9176 = vpow2.f32 %v7808_v51  ;;  %v2754_v46 = vpack.c.bf16 %v2703_v22, %v2702_v16  ;;  %v10883_v20 = vpop.permute.xlu1 %3067  ;;  %v8948_v61 = vld [vmem:[%s14118_s5 + $0x110] sm:$0xff]   ;;  %3536 = vperm.xlu0 %8870, %v10876_v58   ;;  %5923 = vmatprep.subr.bf16.mxu1 %v14409_v3 }
 0x14f   :  { %v9161_v39 = vpop.eup %9160  ;;  %v1096_v55 = vmul.f32 %v9159_v54, %v10708_v19  ;;  %9178 = vrcp.f32 %v906_v1  ;;  %14457 = vst [vmem:[#allocation94_spill] sm:$0xff] %v10883_v20  ;;  %v10885_v32 = vpop.f32.mrb[53].mxu0  ;;  %v10896_v19 = vadd.f32 %v10745_v42, %v10830_v21  ;;  %3142 = vperm.xlu1 %8810, %v3020_v10  }
 0x150   :  { %v9163_v51 = vpop.eup %9162  ;;  %1239 = vst [vmem:[#allocation2 + $0x120] sm:$0xff] %v1169_v60  ;;  %v1094_v13 = vmul.f32 %v9161_v39, %v10711_v48  ;;  %9180 = vrcp.f32 %v909_v6  ;;  %v10900_v1 = vpop.f32.mrb[54].mxu0  ;;  %5758 = vmatprep.mubr.bf16.mxu1 %v2754_v46  ;;  %v2319_v48 = vmul.f32 %v2957_v50, %v10075_v27 }
 0x151   :  { %v9165_v16 = vpop.eup %9164  ;;  %v1174_v22 = vadd.f32 %v10815_v33, %v1096_v55  ;;  %v1097_v54 = vmul.f32 %v9163_v51, %v10718_v43  ;;  %9182 = vpow2.f32 %v7813_v23  ;;  %v10907_v21 = vpop.f32.mrb[55].mxu0  ;;  %v7811_v39 = vmul.f32 -1.442695, %v10896_v19  ;;  %v2448_v43 = vld [vmem:[#allocation2 + $0xe7] sm:$0xff]  ;;  %v2449_v23 = vld [vmem:[#allocation2 + $0xef] sm:$0xff]  ;;  %5924 = vmatpush1.bf16.msra.mxu1 %v8948_v61 }
 0x152   :  { %v9167_v5 = vpop.eup %9166  ;;  %v1172_v60 = vadd.f32 %v10815_v33, %v1094_v13  ;;  %v1095_v6 = vmul.f32 %v9165_v16, %v10727_v38  ;;  %v10914_v55 = vadd.f32 %v10745_v42, %v10834_v8  ;;  %v10916_v46 = vpop.permute.xlu0 %3167  ;;  %v2370_v28 = vpack.c.bf16 %v2319_v48, %v2318_v57  ;;  %v8951_v38 = vld [vmem:[%s14118_s5 + $0x118] sm:$0xff]   ;;  %8873 = vset.pattern.permute.xlu0 %v14435_v45 }
 0x153   :  { %14458 = vst [vmem:[#allocation95_spill] sm:$0xff] %v10916_v46  ;;  %v9169_v50 = vpop.eup %9168  ;;  %1244 = vst [vmem:[#allocation2 + $0x148] sm:$0xff] %v1174_v22  ;;  %v1175_v51 = vadd.f32 %v10815_v33, %v1097_v54  ;;  %v907_v20 = vadd.f32 1.0, %v9167_v5  ;;  %v10919_v13 = vpop.permute.xlu1 %3077  ;;  %9184 = vpow2.f32 %v7811_v39  ;;  %5925 = vmatprep.subr.bf16.mxu1 %v14409_v3  ;;  %v2704_v22 = vmul.f32 %v10086_v30, %v2448_v43  ;;  %v2070_v30 = vld [vmem:[#allocation2 + $0x109] sm:$0xff] }
 0x154   :  { %14459 = vst [vmem:[#allocation96_spill] sm:$0xff] %v10919_v13  ;;  %v9171_v8 = vpop.eup %9170  ;;  %1242 = vst [vmem:[#allocation2 + $0x138] sm:$0xff] %v1172_v60  ;;  %v1173_v16 = vadd.f32 %v10815_v33, %v1095_v6  ;;  %v912_v10 = vadd.f32 1.0, %v9169_v50  ;;  %v7814_v46 = vmul.f32 -1.442695, %v10914_v55  ;;  %5759 = vmatmul.mubr.bf16.gmra.mrb[4].mxu1 %v2370_v28  ;;  %v2705_v54 = vmul.f32 %v10067_v25, %v2449_v23  ;;  %v10934_v60 = vpop.f32.mrb[56].mxu0 }
 0x155   :  { %v9173_v57 = vpop.eup %9172  ;;  %1245 = vst [vmem:[#allocation2 + $0x150] sm:$0xff] %v1175_v51  ;;  %9186 = vrcp.f32 %v907_v20  ;;  %v910_v61 = vadd.f32 1.0, %v9171_v8  ;;  %3920 = vperm.xlu0 %8873, %v10876_v58   ;;  %8811 = vset.pattern.permute.xlu1 %v14409_v3  ;;  %v10939_v20 = vld [vmem:[%s14115_s2 + $0xd8] sm:$0xff]  ;;  %v10943_v39 = vadd.f32 %v10745_v42, %v10840_v63  ;;  %v10946_v43 = vpop.f32.mrb[57].mxu0  ;;  %v8955_v23 = vld [vmem:[%s14118_s5 + $0x120] sm:$0xff]  }
 0x156   :  { %1243 = vst [vmem:[#allocation2 + $0x140] sm:$0xff] %v1173_v16  ;;  %9188 = vrcp.f32 %v912_v10  ;;  %v913_v48 = vadd.f32 1.0, %v9173_v57  ;;  %v10932_v5 = vpop.permute.xlu0 %3177  ;;  %v2755_v6 = vpack.c.bf16 %v2705_v54, %v2704_v22  ;;  %1428 = vperm.xlu1 %8811, %v10649_v0   ;;  %5926 = vmatpush1.bf16.msra.mxu1 %v8951_v38  ;;  %v2064_v8 = vld [vmem:[#allocation2 + $0xd9] sm:$0xff]  ;;  %v10954_v10 = vpop.f32.mrb[58].mxu0  ;;  %v10960_v57 = vadd.f32 %v10745_v42, %v10880_v11  ;;  %v2959_v22 = vld [vmem:[#allocation2 + $0xe1] sm:$0xff] }
 0x157   :  { %14460 = vst [vmem:[#allocation97_spill] sm:$0xff] %v10932_v5  ;;  %v9175_v28 = vpop.eup %9174  ;;  %9190 = vrcp.f32 %v910_v61  ;;  %v10952_v16 = vpop.permute.xlu1 %1757  ;;  %5927 = vmatprep.subr.bf16.mxu1 %v14409_v3  ;;  %v7812_v38 = vmul.f32 -1.442695, %v10943_v39  ;;  %v10976_v11 = vld [vmem:[%s14115_s2 + $0xe0] sm:$0xff] }
 0x158   :  { %v9177_v50 = vpop.eup %9176  ;;  %v1100_v51 = vmul.f32 %v9175_v28, %v10748_v47  ;;  %9192 = vrcp.f32 %v913_v48  ;;  %14461 = vst [vmem:[#allocation98_spill] sm:$0xff] %v10952_v16  ;;  %5766 = vmatprep.mubr.bf16.mxu1 %v2755_v6  ;;  %v10963_v47 = vpop.f32.mrb[59].mxu0  ;;  %v7817_v5 = vmul.f32 -1.442695, %v10960_v57  ;;  %v2966_v18 = vld [vmem:[#allocation2 + $0x119] sm:$0xff] }
 0x159   :  { %v9179_v63 = vpop.eup %9178  ;;  %v911_v0 = vadd.f32 1.0, %v9177_v50  ;;  %9194 = vpow2.f32 %v7814_v46  ;;  %3935 = vperm.xlu0 %8873, %v10939_v20   ;;  %v10969_v46 = vadd.f32 %v10745_v42, %v10885_v32 }
 0x15a   :  { %v9181_v61 = vpop.eup %9180  ;;  %v1178_v54 = vadd.f32 %v10815_v33, %v1100_v51  ;;  %v1098_v48 = vmul.f32 %v9179_v63, %v10759_v9  ;;  %v10971_v28 = vpop.permute.xlu0 %3187  ;;  %v2320_v51 = vmul.f32 %v10098_v37, %v2064_v8  ;;  %1433 = vperm.xlu1 %8811, %v10852_v17   ;;  %5928 = vmatpush1.bf16.msra.mxu1 %v8955_v23  ;;  %v8957_v9 = vld [vmem:[%s14118_s5 + $0x128] sm:$0xff]  }
 0x15b   :  { %14462 = vst [vmem:[#allocation99_spill] sm:$0xff] %v10971_v28  ;;  %v9183_v6 = vpop.eup %9182  ;;  %v1101_v50 = vmul.f32 %v9181_v61, %v10762_v7  ;;  %9196 = vrcp.f32 %v911_v0  ;;  %v2450_v28 = vld [vmem:[#allocation2 + $0xf7] sm:$0xff]  ;;  %5929 = vmatprep.subr.bf16.mxu1 %v14409_v3  ;;  %v7815_v0 = vmul.f32 -1.442695, %v10969_v46  ;;  %v2321_v8 = vmul.f32 %v2959_v22, %v10108_v41  ;;  %v2451_v61 = vld [vmem:[#allocation2 + $0xff] sm:$0xff]  ;;  %v10991_v23 = vpop.permute.xlu1 %3082 }
 0x15c   :  { %1248 = vst [vmem:[#allocation2 + $0x168] sm:$0xff] %v1178_v54  ;;  %v1176_v32 = vadd.f32 %v10815_v33, %v1098_v48  ;;  %v916_v63 = vadd.f32 1.0, %v9183_v6  ;;  %9198 = vpow2.f32 %v7812_v38  ;;  %14463 = vst [vmem:[#allocation100_spill] sm:$0xff] %v10991_v23  ;;  %v10996_v54 = vld [vmem:[%s14115_s2 + $0x78] sm:$0xff]  ;;  %v11000_v38 = vadd.f32 %v10745_v42, %v10900_v1  ;;  %v11002_v6 = vpop.f32.mrb[60].mxu0  ;;  %v8958_v1 = vld [vmem:[%s14118_s5 + $0x130] sm:$0xff]  }
 0x15d   :  { %v1179_v7 = vadd.f32 %v10815_v33, %v1101_v50  ;;  %3940 = vperm.xlu0 %8873, %v10976_v11   ;;  %v9185_v48 = vpop.eup %9184  ;;  %v2371_v13 = vpack.c.bf16 %v2321_v8, %v2320_v51  ;;  %v2706_v23 = vmul.f32 %v10106_v40, %v2450_v28  ;;  %v11008_v37 = vpop.f32.mrb[61].mxu0  ;;  %v2707_v51 = vmul.f32 %v10126_v49, %v2451_v61 }
 0x15e   :  { %1246 = vst [vmem:[#allocation2 + $0x158] sm:$0xff] %v1176_v32  ;;  %9200 = vrcp.f32 %v916_v63  ;;  %v914_v50 = vadd.f32 1.0, %v9185_v48  ;;  %8812 = vset.pattern.permute.xlu1 %v14416_v34  ;;  %v11006_v41 = vpop.permute.xlu0 %1483  ;;  %5930 = vmatpush1.bf16.msra.mxu1 %v8957_v9  ;;  %v11017_v28 = vpop.f32.mrb[62].mxu0  ;;  %v11023_v8 = vadd.f32 %v10745_v42, %v10907_v21 }
 0x15f   :  { %v9187_v22 = vpop.eup %9186  ;;  %1249 = vst [vmem:[#allocation2 + $0x170] sm:$0xff] %v1179_v7  ;;  %9202 = vpow2.f32 %v7817_v5  ;;  %v7818_v5 = vmul.f32 -1.442695, %v11000_v38  ;;  %1827 = vperm.xlu1 %8812, %v10996_v54   ;;  %5931 = vmatprep.subr.bf16.mxu1 %v14409_v3 }
 0x160   :  { %v9189_v32 = vpop.eup %9188  ;;  %v1099_v63 = vmul.f32 %v9187_v22, %v10784_v26  ;;  %9204 = vpow2.f32 %v7815_v0  ;;  %5767 = vmatmul.mubr.bf16.gmra.mrb[8].mxu1 %v2371_v13  ;;  %v11026_v26 = vpop.f32.mrb[63].mxu0  ;;  %v2756_v22 = vpack.c.bf16 %v2707_v51, %v2706_v23  ;;  %v11042_v51 = vadd.f32 %v10745_v42, %v10934_v60 }
 0x161   :  { %v9191_v7 = vpop.eup %9190  ;;  %v1104_v9 = vmul.f32 %v9189_v32, %v10787_v62  ;;  %9206 = vrcp.f32 %v914_v50  ;;  %8878 = vset.pattern.permute.xlu0 %v14430_v52  ;;  %v11031_v62 = vpop.permute.xlu1 %1368  ;;  %v7816_v32 = vmul.f32 -1.442695, %v11023_v8 }
 0x162   :  { %v9193_v0 = vpop.eup %9192  ;;  %v1177_v61 = vadd.f32 %v10815_v33, %v1099_v63  ;;  %v1102_v48 = vmul.f32 %v9191_v7, %v10807_v29  ;;  %9208 = vpow2.f32 %v7818_v5  ;;  %3556 = vperm.xlu0 %8878, %v10976_v11   ;;  %5932 = vmatpush1.bf16.msra.mxu1 %v8958_v1  ;;  %v8959_v63 = vld [vmem:[%s14118_s5 + $0x138] sm:$0xff]   ;;  %v2066_v7 = vld [vmem:[#allocation2 + $0xe9] sm:$0xff] }
 0x163   :  { %v9195_v13 = vpop.eup %9194  ;;  %v1182_v50 = vadd.f32 %v10815_v33, %v1104_v9  ;;  %v1105_v21 = vmul.f32 %v9193_v0, %v10826_v56  ;;  %5774 = vmatprep.mubr.bf16.mxu1 %v2756_v22  ;;  %v2961_v5 = vld [vmem:[#allocation2 + $0xf1] sm:$0xff]  ;;  %8813 = vset.pattern.permute.xlu1 %v14411_v35  ;;  %v11045_v56 = vpop.permute.xlu0 %1862  ;;  %9210 = vpow2.f32 %v7816_v32 }
 0x164   :  { %1247 = vst [vmem:[#allocation2 + $0x160] sm:$0xff] %v1177_v61  ;;  %v1180_v29 = vadd.f32 %v10815_v33, %v1102_v48  ;;  %v917_v23 = vadd.f32 1.0, %v9195_v13  ;;  %v11050_v1 = vld [vmem:[%s14115_s2 + $0xf8] sm:$0xff]  ;;  %v11055_v61 = vadd.f32 %v10745_v42, %v10946_v43  ;;  %3152 = vperm.xlu1 %8813, %v10876_v58   ;;  %5933 = vmatprep.subr.bf16.mxu1 %v14409_v3  ;;  %v1348_v22 = vld [vmem:[%s14115_s2 + $0x70] sm:$0xff]  ;;  %v7821_v43 = vmul.f32 -1.442695, %v11042_v51 }
 0x165   :  { %v9197_v9 = vpop.eup %9196  ;;  %1252 = vst [vmem:[#allocation2 + $0x188] sm:$0xff] %v1182_v50  ;;  %v1183_v0 = vadd.f32 %v10815_v33, %v1105_v21  ;;  %v11061_v48 = vpop.permute.xlu1 %1373  ;;  %v2322_v50 = vmul.f32 %v10089_v31, %v2066_v7  ;;  %v2323_v21 = vmul.f32 %v2961_v5, %v10135_v53  ;;  %v11072_v32 = vld [vmem:[#allocation2 + $0x10f] sm:$0xff]  ;;  %v8960_v7 = vld [vmem:[%s14118_s5 + $0x140] sm:$0xff]  }
 0x166   :  { %1250 = vst [vmem:[#allocation2 + $0x178] sm:$0xff] %v1180_v29  ;;  %v1103_v60 = vmul.f32 %v9197_v9, %v10846_v4  ;;  %9212 = vrcp.f32 %v917_v23  ;;  %8881 = vset.pattern.permute.xlu0 %v14435_v45  ;;  %v9199_v13 = vpop.eup %9198  ;;  %v7819_v58 = vmul.f32 -1.442695, %v11055_v61  ;;  %v11070_v4 = vld [vmem:[#allocation2 + $0x107] sm:$0xff]  ;;  %5934 = vmatpush1.bf16.msra.mxu1 %v8959_v63  ;;  %v11085_v63 = vadd.f32 %v10745_v42, %v10954_v10 }
 0x167   :  { %1253 = vst [vmem:[#allocation2 + $0x190] sm:$0xff] %v1183_v0  ;;  %3955 = vperm.xlu0 %8881, %v11050_v1   ;;  %v915_v9 = vadd.f32 1.0, %v9199_v13  ;;  %v11076_v0 = vpop.permute.xlu0 %1882  ;;  %5935 = vmatprep.subr.bf16.mxu1 %v14409_v3  ;;  %9214 = vpow2.f32 %v7821_v43  ;;  %v2372_v31 = vpack.c.bf16 %v2323_v21, %v2322_v50  ;;  %v2708_v45 = vmul.f32 %v10145_v59, %v11070_v4 }
 0x168   :  { %v9201_v29 = vpop.eup %9200  ;;  %v1181_v23 = vadd.f32 %v10815_v33, %v1103_v60  ;;  %8815 = vset.pattern.permute.xlu1 %v14409_v3  ;;  %v4150_v60 = vld [vmem:[%s14115_s2] sm:$0xff]  ;;  %v7822_v21 = vmul.f32 -1.442695, %v11085_v63 }
 0x169   :  { %v9203_v5 = vpop.eup %9202  ;;  %v1108_v52 = vmul.f32 %v9201_v29, %v10864_v14  ;;  %9216 = vrcp.f32 %v915_v9  ;;  %v2709_v14 = vmul.f32 %v10114_v44, %v11072_v32  ;;  %1438 = vperm.xlu1 %8815, %v1348_v22   ;;  %5775 = vmatmul.mubr.bf16.gmra.mrb[12].mxu1 %v2372_v31  ;;  %v14222_v29 = vmov 8   ;;  %v1270_v44 = vld [vmem:[#allocation2 + $0x7] sm:$0xff] }
 0x16a   :  { %v9205_v13 = vpop.eup %9204  ;;  %1251 = vst [vmem:[#allocation2 + $0x180] sm:$0xff] %v1181_v23  ;;  %v920_v53 = vadd.f32 1.0, %v9203_v5  ;;  %9218 = vpow2.f32 %v7819_v58  ;;  %v11098_v23 = vpop.permute.xlu1 %1767  ;;  %5936 = vmatpush1.bf16.msra.mxu1 %v8960_v7  ;;  %v11106_v22 = vadd.f32 %v10745_v42, %v10963_v47 }
 0x16b   :  { %v9207_v43 = vpop.eup %9206  ;;  %v1186_v10 = vadd.f32 %v10815_v33, %v1108_v52  ;;  %v918_v50 = vadd.f32 1.0, %v9205_v13  ;;  %8883 = vset.pattern.permute.xlu0 %v14222_v29  ;;  %14464 = vst [vmem:[#allocation101_spill] sm:$0xff] %v11098_v23  ;;  %v2757_v59 = vpack.c.bf16 %v2709_v14, %v2708_v45  ;;  %v8961_v52 = vld [vmem:[%s14118_s5 + $0x148] sm:$0xff]   ;;  %v11108_v58 = vpop.permute.xlu0 %1488  ;;  %5937 = vmatprep.subr.bf16.mxu1 %v14409_v3 }
 0x16c   :  { %v9209_v9 = vpop.eup %9208  ;;  %v1106_v5 = vmul.f32 %v9207_v43, %v10896_v19  ;;  %9220 = vrcp.f32 %v920_v53  ;;  %4184 = vperm.xlu0 %8883, %v4150_v60   ;;  %14465 = vst [vmem:[#allocation102_spill] sm:$0xff] %v11108_v58  ;;  %v4153_v53 = vld [vmem:[%s14115_s2 + $0x18] sm:$0xff]  ;;  %v2963_v60 = vld [vmem:[#allocation2 + $0x101] sm:$0xff]  ;;  %v7820_v47 = vmul.f32 -1.442695, %v11106_v22  ;;  %v11119_v13 = vadd.f32 %v10745_v42, %v11002_v6  ;;  %v8962_v6 = vld [vmem:[%s14118_s5 + $0x150] sm:$0xff]  }
 0x16d   :  { %1256 = vst [vmem:[#allocation2 + $0x1a8] sm:$0xff] %v1186_v10  ;;  %9222 = vrcp.f32 %v918_v50  ;;  %v921_v31 = vadd.f32 1.0, %v9209_v9  ;;  %5782 = vmatprep.mubr.bf16.mxu1 %v2757_v59  ;;  %v2068_v19 = vld [vmem:[#allocation2 + $0xf9] sm:$0xff]  ;;  %1443 = vperm.xlu1 %8815, %v10996_v54   ;;  %v9211_v7 = vpop.eup %9210  ;;  %v11124_v14 = vld [vmem:[%s14115_s2 + $0x88] sm:$0xff]  ;;  %v11128_v10 = vadd.f32 %v10745_v42, %v11008_v37 }
 0x16e   :  { %v1184_v45 = vadd.f32 %v10815_v33, %v1106_v5  ;;  %9224 = vpow2.f32 %v7822_v21  ;;  %v919_v59 = vadd.f32 1.0, %v9211_v7  ;;  %v11130_v50 = vld [vmem:[#allocation2 + $0x117] sm:$0xff]  ;;  %v11132_v21 = vld [vmem:[#allocation2 + $0x11f] sm:$0xff]  ;;  %v11134_v9 = vpop.permute.xlu1 %3092  ;;  %5938 = vmatpush1.bf16.msra.mxu1 %v8961_v52  ;;  %v2324_v37 = vmul.f32 %v10159_v2, %v2068_v19  ;;  %v14467_v7 = vld [vmem:[#allocation27_spill] sm:$0xff] }
 0x16f   :  { %9226 = vrcp.f32 %v921_v31  ;;  %14466 = vst [vmem:[#allocation103_spill] sm:$0xff] %v11134_v9  ;;  %v7825_v31 = vmul.f32 -1.442695, %v11119_v13  ;;  %5939 = vmatprep.subr.bf16.mxu1 %v14409_v3  ;;  %v7823_v52 = vmul.f32 -1.442695, %v11128_v10  ;;  %v2325_v29 = vmul.f32 %v2963_v60, %v14467_v7  ;;  %v14469_v9 = vld [vmem:[#allocation30_spill] sm:$0xff] }
 0x170   :  { %v9213_v43 = vpop.eup %9212  ;;  %1254 = vst [vmem:[#allocation2 + $0x198] sm:$0xff] %v1184_v45  ;;  %4199 = vperm.xlu0 %8883, %v4153_v53   ;;  %9228 = vpow2.f32 %v7820_v47  ;;  %v11142_v45 = vpop.permute.xlu0 %1503  ;;  %v4155_v53 = vld [vmem:[%s14115_s2 + $0x28] sm:$0xff] }
 0x171   :  { %v1109_v5 = vmul.f32 %v9213_v43, %v10914_v55  ;;  %9230 = vrcp.f32 %v919_v59  ;;  %v11152_v55 = vadd.f32 %v10745_v42, %v11017_v28  ;;  %8816 = vset.pattern.permute.xlu1 %v14416_v34  ;;  %v9215_v19 = vpop.eup %9214  ;;  %v14468_v43 = vld [vmem:[#allocation20_spill] sm:$0xff]  ;;  %v2711_v59 = vmul.f32 %v14469_v9, %v11132_v21 }
 0x172   :  { %9232 = vpow2.f32 %v7825_v31  ;;  %v2710_v58 = vmul.f32 %v14468_v43, %v11130_v50  ;;  %1837 = vperm.xlu1 %8816, %v11124_v14   ;;  %v924_v60 = vadd.f32 1.0, %v9215_v19  ;;  %v2373_v7 = vpack.c.bf16 %v2325_v29, %v2324_v37  ;;  %5940 = vmatpush1.bf16.msra.mxu1 %v8962_v6  ;;  %v11169_v49 = vpop.permute.xlu1 %1378  ;;  %v11174_v29 = vld [vmem:[%s14115_s2 + $0xd0] sm:$0xff]  ;;  %v4157_v6 = vld [vmem:[%s14115_s2 + $0x38] sm:$0xff] }
 0x173   :  { %v1187_v47 = vadd.f32 %v10815_v33, %v1109_v5  ;;  %v9217_v2 = vpop.eup %9216  ;;  %9234 = vpow2.f32 %v7823_v52  ;;  %v7826_v28 = vmul.f32 -1.442695, %v11152_v55  ;;  %v11165_v43 = vadd.f32 %v10745_v42, %v11026_v26  ;;  %5941 = vmatprep.subr.bf16.mxu1 %v14409_v3  ;;  %v14470_v26 = vld [vmem:[#allocation58_spill] sm:$0xff] }
 0x174   :  { %4209 = vperm.xlu0 %8883, %v4155_v53   ;;  %v9219_v40 = vpop.eup %9218  ;;  %v1107_v5 = vmul.f32 %v9217_v2, %v10943_v39  ;;  %v2758_v31 = vpack.c.bf16 %v2711_v59, %v2710_v58  ;;  %v11167_v9 = vpop.permute.xlu0 %1508  ;;  %v8963_v2 = vld [vmem:[%s14118_s5 + $0x158] sm:$0xff]   ;;  %v9522_v39 = vld [vmem:[#allocation2 + $0x8] sm:$0xff]  ;;  %9236 = vrcp.f32 %v924_v60  ;;  %5783 = vmatmul.mubr.bf16.gmra.mrb[16].mxu1 %v2373_v7  ;;  %v11195_v7 = vmul.f32 %v11031_v62, %v1270_v44 }
 0x175   :  { %1257 = vst [vmem:[#allocation2 + $0x1b0] sm:$0xff] %v1187_v47  ;;  %v11184_v58 = vmul.f32 %v9522_v39, %v14470_v26  ;;  %v922_v37 = vadd.f32 1.0, %v9219_v40  ;;  %v1271_v53 = vld [vmem:[#allocation2 + $0xf] sm:$0xff]  ;;  %9238 = vpow2.f32 %v7826_v28  ;;  %v7824_v25 = vmul.f32 -1.442695, %v11165_v43  ;;  %v11197_v60 = vld [vmem:[#allocation2 + $0x127] sm:$0xff] }
 0x176   :  { %v9221_v42 = vpop.eup %9220  ;;  %v1185_v19 = vadd.f32 %v10815_v33, %v1107_v5  ;;  %v2965_v59 = vld [vmem:[#allocation2 + $0x111] sm:$0xff]  ;;  %5790 = vmatprep.mubr.bf16.mxu1 %v2758_v31  ;;  %8817 = vset.pattern.permute.xlu1 %v14411_v35  ;;  %v11192_v40 = vmul.f32 %v9522_v39, %v10952_v16  ;;  %v4159_v44 = vld [vmem:[%s14115_s2 + $0x48] sm:$0xff] }
 0x177   :  { %v9223_v52 = vpop.eup %9222  ;;  %v1112_v47 = vmul.f32 %v9221_v42, %v10960_v57  ;;  %9240 = vrcp.f32 %v922_v37  ;;  %v11199_v57 = vld [vmem:[#allocation2 + $0x12f] sm:$0xff]  ;;  %3162 = vperm.xlu1 %8817, %v11174_v29   ;;  %v11206_v42 = vpop.permute.xlu1 %1383  ;;  %5942 = vmatpush1.bf16.msra.mxu1 %v8963_v2  ;;  %v14473_v2 = vld [vmem:[#allocation34_spill] sm:$0xff] }
 0x178   :  { %v9225_v27 = vpop.eup %9224  ;;  %v1110_v26 = vmul.f32 %v9223_v52, %v10969_v46  ;;  %4219 = vperm.xlu0 %8883, %v4157_v6   ;;  %1255 = vst [vmem:[#allocation2 + $0x1a0] sm:$0xff] %v1185_v19  ;;  %9242 = vpow2.f32 %v7824_v25  ;;  %v11204_v46 = vmul.f32 %v11061_v48, %v1271_v53  ;;  %v14471_v37 = vld [vmem:[#allocation23_spill] sm:$0xff]  ;;  %v14472_v19 = vld [vmem:[#allocation32_spill] sm:$0xff]  ;;  %v1350_v25 = vld [vmem:[%s14115_s2 + $0x80] sm:$0xff]  ;;  %5943 = vmatprep.subr.bf16.mxu1 %v14409_v3 }
 0x179   :  { %v9227_v28 = vpop.eup %9226  ;;  %v1190_v5 = vadd.f32 %v10815_v33, %v1112_v47  ;;  %v925_v31 = vadd.f32 1.0, %v9225_v27  ;;  %v2326_v52 = vmul.f32 %v14471_v37, %v2070_v30  ;;  %v2327_v47 = vmul.f32 %v2965_v59, %v14472_v19  ;;  %v11215_v27 = vpop.permute.xlu0 %1902  ;;  %v8964_v30 = vld [vmem:[%s14118_s5 + $0x160] sm:$0xff]  }
 0x17a   :  { %v1188_v39 = vadd.f32 %v10815_v33, %v1110_v26  ;;  %v1113_v6 = vmul.f32 %v9227_v28, %v11000_v38  ;;  %v9229_v53 = vpop.eup %9228  ;;  %v2712_v26 = vmul.f32 %v14473_v2, %v11197_v60  ;;  %v14474_v38 = vld [vmem:[#allocation21_spill] sm:$0xff]  ;;  %v1590_v24 = vpack.c.bf16 %v11204_v46, %v11195_v7 }
 0x17b   :  { %1260 = vst [vmem:[#allocation2 + $0x1c8] sm:$0xff] %v1190_v5  ;;  %9244 = vrcp.f32 %v925_v31  ;;  %v2713_v28 = vmul.f32 %v14474_v38, %v11199_v57  ;;  %v9231_v59 = vpop.eup %9230  ;;  %v923_v37 = vadd.f32 1.0, %v9229_v53  ;;  %v2374_v5 = vpack.c.bf16 %v2327_v47, %v2326_v52  ;;  %v1657_v31 = vld [vmem:[#allocation2 + $0x20] sm:$0xff]  ;;  %8818 = vset.pattern.permute.xlu1 %v14409_v3  ;;  %v9523_v47 = vld [vmem:[#allocation2 + $0x18] sm:$0xff]  ;;  %v14476_v53 = vld [vmem:[#allocation60_spill] sm:$0xff]  ;;  %v11243_v7 = vpop.permute.xlu1 %1777  ;;  %5944 = vmatpush1.bf16.msra.mxu1 %v8964_v30 }
 0x17c   :  { %1258 = vst [vmem:[#allocation2 + $0x1b8] sm:$0xff] %v1188_v39  ;;  %v1191_v19 = vadd.f32 %v10815_v33, %v1113_v6  ;;  %v11230_v16 = vmul.f32 %v11045_v56, %v1188_v39  ;;  %4229 = vperm.xlu0 %8883, %v4159_v44   ;;  %v9233_v2 = vpop.eup %9232  ;;  %v1111_v38 = vmul.f32 %v9231_v59, %v11023_v8  ;;  %v2073_v6 = vld [vmem:[#allocation2 + $0x121] sm:$0xff]  ;;  %v4161_v39 = vld [vmem:[%s14115_s2 + $0x58] sm:$0xff]  ;;  %14477 = vst [vmem:[#allocation105_spill] sm:$0xff] %v11243_v7 }
 0x17d   :  { %v2759_v15 = vpack.c.bf16 %v2713_v28, %v2712_v26  ;;  %v1913_v12 = vmul.f32 %v11098_v23, %v1657_v31  ;;  %1448 = vperm.xlu1 %8818, %v1350_v25   ;;  %v9235_v52 = vpop.eup %9234  ;;  %v1912_v44 = vmul.f32 %v9523_v47, %v14476_v53  ;;  %9246 = vrcp.f32 %v923_v37  ;;  %5791 = vmatmul.mubr.bf16.gmra.mrb[20].mxu1 %v2374_v5  ;;  %v11246_v26 = vld [vmem:[#allocation2 + $0x13f] sm:$0xff]  ;;  %v11248_v28 = vpop.permute.xlu0 %1523  ;;  %v8965_v37 = vld [vmem:[%s14118_s5 + $0x168] sm:$0xff]   ;;  %v14481_v47 = vld [vmem:[#allocation28_spill] sm:$0xff] }
 0x17e   :  { %14475 = vst [vmem:[#allocation104_spill] sm:$0xff] %v11230_v16  ;;  %1261 = vst [vmem:[#allocation2 + $0x1d0] sm:$0xff] %v1191_v19  ;;  %v928_v16 = vadd.f32 1.0, %v9233_v2  ;;  %v1974_v8 = vpack.c.bf16 %v11192_v40, %v11184_v58  ;;  %v1189_v46 = vadd.f32 %v10815_v33, %v1111_v38  ;;  %v926_v25 = vadd.f32 1.0, %v9235_v52  ;;  %v9237_v19 = vpop.eup %9236  ;;  %v14478_v2 = vld [vmem:[#allocation36_spill] sm:$0xff]  ;;  %v14479_v40 = vld [vmem:[#allocation38_spill] sm:$0xff]  ;;  %5945 = vmatprep.subr.bf16.mxu1 %v14409_v3 }
 0x17f   :  { %5798 = vmatprep.mubr.bf16.mxu1 %v2759_v15  ;;  %v2328_v58 = vmul.f32 %v2966_v18, %v14478_v2  ;;  %v2329_v59 = vmul.f32 %v14479_v40, %v2073_v6  ;;  %v1975_v5 = vpack.c.bf16 %v1913_v12, %v1912_v44  ;;  %v11255_v38 = vld [vmem:[#allocation2 + $0x137] sm:$0xff]  ;;  %v9239_v15 = vpop.eup %9238  ;;  %v1116_v31 = vmul.f32 %v9237_v19, %v11042_v51  ;;  %v14524_v23 = vld [vmem:[#allocation63_spill] sm:$0xff] }
 0x180   :  { %9248 = vrcp.f32 %v928_v16  ;;  %5373 = vmatprep.mubr.bf16.mxu0 %v1974_v8  ;;  %4239 = vperm.xlu0 %8883, %v4161_v39   ;;  %1259 = vst [vmem:[#allocation2 + $0x1c0] sm:$0xff] %v1189_v46  ;;  %v929_v52 = vadd.f32 1.0, %v9239_v15  ;;  %v14480_v16 = vld [vmem:[#allocation40_spill] sm:$0xff]  ;;  %v2714_v51 = vmul.f32 %v14481_v47, %v11255_v38  ;;  %v11266_v44 = vpop.permute.xlu1 %3102  ;;  %v14491_v2 = vld [vmem:[#allocation25_spill] sm:$0xff] }
 0x181   :  { %9250 = vrcp.f32 %v926_v25  ;;  %5374 = vmatmul.mubr.bf16.vlgmr.msra.gmra.mrb[64].mxu0 %v1590_v24  ;;  %1453 = vperm.xlu1 %8818, %v11124_v14   ;;  %v9241_v30 = vpop.eup %9240  ;;  %v2715_v18 = vmul.f32 %v14480_v16, %v11246_v26  ;;  %v1194_v6 = vadd.f32 %v10815_v33, %v1116_v31  ;;  %14482 = vst [vmem:[#allocation106_spill] sm:$0xff] %v11266_v44  ;;  %v11271_v24 = vld [vmem:[%s14115_s2 + $0x98] sm:$0xff]  ;;  %v11274_v19 = vpop.permute.xlu0 %3416 }
 0x182   :  { %5381 = vmatprep.mubr.bf16.mxu0 %v1975_v5  ;;  %v9243_v12 = vpop.eup %9242  ;;  %v1114_v39 = vmul.f32 %v9241_v30, %v11055_v61  ;;  %5946 = vmatpush1.bf16.msra.mxu1 %v8965_v37  ;;  %9252 = vrcp.f32 %v929_v52  ;;  %v2375_v46 = vpack.c.bf16 %v2329_v59, %v2328_v58  ;;  %v1272_v25 = vld [vmem:[#allocation2 + $0x17] sm:$0xff]  ;;  %14483 = vst [vmem:[#allocation107_spill] sm:$0xff] %v11274_v19  ;;  %v1273_v30 = vld [vmem:[#allocation2 + $0x1f] sm:$0xff]  ;;  %v11286_v59 = vld [vmem:[#allocation2 + $0x147] sm:$0xff] }
 0x183   :  { %v927_v8 = vadd.f32 1.0, %v9243_v12  ;;  %5947 = vmatprep.subr.bf16.mxu1 %v14409_v3  ;;  %v11277_v5 = vld [vmem:[#allocation2 + $0x131] sm:$0xff]  ;;  %1264 = vst [vmem:[#allocation2 + $0x1e8] sm:$0xff] %v1194_v6  ;;  %v2760_v31 = vpack.c.bf16 %v2715_v18, %v2714_v51  ;;  %v1528_v58 = vmul.f32 %v11169_v49, %v1272_v25  ;;  %v1529_v12 = vmul.f32 %v11206_v42, %v1273_v30  ;;  %v11292_v18 = vld [vmem:[#allocation2 + $0x129] sm:$0xff] }
 0x184   :  { %4249 = vperm.xlu0 %8883, %v10852_v17   ;;  %v1192_v15 = vadd.f32 %v10815_v33, %v1114_v39  ;;  %v8966_v37 = vld [vmem:[%s14118_s5 + $0x170] sm:$0xff]   ;;  %v14488_v16 = vld [vmem:[#allocation29_spill] sm:$0xff] }
 0x185   :  { %v9245_v61 = vpop.eup %9244  ;;  %8819 = vset.pattern.permute.xlu1 %v14416_v34  ;;  %9254 = vrcp.f32 %v927_v8  ;;  %5799 = vmatmul.mubr.bf16.gmra.mrb[24].mxu1 %v2375_v46  ;;  %v11288_v52 = vld [vmem:[#allocation2 + $0x14f] sm:$0xff]  ;;  %v14485_v46 = vld [vmem:[#allocation42_spill] sm:$0xff]  ;;  %v1591_v30 = vpack.c.bf16 %v1529_v12, %v1528_v58  ;;  %v11304_v47 = vpop.permute.xlu1 %1388 }
 0x186   :  { %v1117_v17 = vmul.f32 %v9245_v61, %v11085_v63  ;;  %1847 = vperm.xlu1 %8819, %v11271_v24   ;;  %1262 = vst [vmem:[#allocation2 + $0x1d8] sm:$0xff] %v1192_v15  ;;  %v11295_v6 = vmul.f32 %v11076_v0, %v1192_v15  ;;  %5806 = vmatprep.mubr.bf16.mxu1 %v2760_v31  ;;  %v1659_v63 = vld [vmem:[#allocation2 + $0x30] sm:$0xff]  ;;  %v9524_v12 = vld [vmem:[#allocation2 + $0x28] sm:$0xff] }
 0x187   :  { %v9247_v39 = vpop.eup %9246  ;;  %v11298_v8 = vld [vmem:[#allocation2 + $0x1bf] sm:$0xff]  ;;  %v2331_v25 = vmul.f32 %v11277_v5, %v14485_v46  ;;  %v1915_v61 = vmul.f32 %v11243_v7, %v1659_v63  ;;  %v2717_v40 = vmul.f32 %v14488_v16, %v11288_v52  ;;  %5948 = vmatpush1.bf16.msra.mxu1 %v8966_v37 }
 0x188   :  { %14484 = vst [vmem:[#allocation108_spill] sm:$0xff] %v11295_v6  ;;  %v1195_v51 = vadd.f32 %v10815_v33, %v1117_v17  ;;  %4259 = vperm.xlu0 %8883, %v10996_v54   ;;  %v1115_v15 = vmul.f32 %v9247_v39, %v11106_v22  ;;  %v11309_v31 = vmul.f32 %v11006_v41, %v11298_v8  ;;  %v14487_v33 = vld [vmem:[#allocation44_spill] sm:$0xff]  ;;  %v11315_v46 = vpop.permute.xlu0 %3815  ;;  %v14490_v54 = vld [vmem:[#allocation62_spill] sm:$0xff] }
 0x189   :  { %v2716_v17 = vmul.f32 %v14487_v33, %v11286_v59  ;;  %14489 = vst [vmem:[#allocation110_spill] sm:$0xff] %v11315_v46  ;;  %v1914_v63 = vmul.f32 %v9524_v12, %v14490_v54  ;;  %v2330_v22 = vmul.f32 %v11292_v18, %v14491_v2  ;;  %5382 = vmatmul.mubr.bf16.gmra.mrb[68].mxu0 %v1591_v30  ;;  %v9525_v33 = vld [vmem:[%s14120_s1 + $0x1] ss:$0 sm:$0xff]  ;;  %v2076_v54 = vld [vmem:[#allocation2 + $0x139] sm:$0xff] }
 0x18a   :  { %14486 = vst [vmem:[#allocation109_spill] sm:$0xff] %v11309_v31  ;;  %v9249_v58 = vpop.eup %9248  ;;  %1265 = vst [vmem:[#allocation2 + $0x1f0] sm:$0xff] %v1195_v51  ;;  %v1193_v6 = vadd.f32 %v9525_v33, %v1115_v15  ;;  %8820 = vset.pattern.permute.xlu1 %v14411_v35  ;;  %v11327_v51 = vpop.permute.xlu1 %1393  ;;  %v2971_v12 = vld [vmem:[#allocation2 + $0x141] sm:$0xff]  ;;  %v11331_v15 = vmul.f32 %v11274_v19, %v11197_v60  ;;  %5949 = vmatprep.subr.bf16.mxu1 %v14409_v3 }
 0x18b   :  { %v9251_v39 = vpop.eup %9250  ;;  %v1120_v16 = vmul.f32 %v9249_v58, %v11119_v13  ;;  %v2376_v31 = vpack.c.bf16 %v2331_v25, %v2330_v22  ;;  %v1976_v7 = vpack.c.bf16 %v1915_v61, %v1914_v63  ;;  %3172 = vperm.xlu1 %8820, %v10976_v11   ;;  %v2761_v2 = vpack.c.bf16 %v2717_v40, %v2716_v17  ;;  %v11336_v61 = vld [vmem:[#allocation2 + $0x15f] sm:$0xff]  ;;  %v1352_v11 = vld [vmem:[%s14115_s2 + $0x90] sm:$0xff] }
 0x18c   :  { %v1118_v37 = vmul.f32 %v9251_v39, %v11128_v10  ;;  %1263 = vst [vmem:[#allocation2 + $0x1e0] sm:$0xff] %v1193_v6  ;;  %14492 = vst [vmem:[#allocation111_spill] sm:$0xff] %v11331_v15  ;;  %4269 = vperm.xlu0 %8883, %v11124_v14   ;;  %v11334_v13 = vpop.permute.xlu0 %3820  ;;  %v9253_v10 = vpop.eup %9252  ;;  %v14495_v17 = vld [vmem:[#allocation46_spill] sm:$0xff]  ;;  %v11347_v22 = vld [vmem:[#allocation2 + $0x157] sm:$0xff] }
 0x18d   :  { %v1198_v30 = vadd.f32 %v9525_v33, %v1120_v16  ;;  %14493 = vst [vmem:[#allocation112_spill] sm:$0xff] %v11334_v13  ;;  %5807 = vmatmul.mubr.bf16.gmra.mrb[28].mxu1 %v2376_v31  ;;  %5389 = vmatprep.mubr.bf16.mxu0 %v1976_v7  ;;  %v1121_v40 = vmul.f32 %v9253_v10, %v11152_v55  ;;  %v3737_v16 = vld [vmem:[#allocation2 + $0x140] sm:$0xff]  ;;  %v14496_v31 = vld [vmem:[#allocation48_spill] sm:$0xff]  ;;  %v8967_v55 = vld [vmem:[%s14118_s5 + $0x178] sm:$0xff]  }
 0x18e   :  { %v1196_v25 = vadd.f32 %v9525_v33, %v1118_v37  ;;  %5814 = vmatprep.mubr.bf16.mxu1 %v2761_v2  ;;  %v2332_v58 = vmul.f32 %v14495_v17, %v2076_v54  ;;  %v2333_v63 = vmul.f32 %v2971_v12, %v14496_v31  ;;  %v11350_v7 = vmul.f32 %v11315_v46, %v3737_v16  ;;  %v14498_v37 = vld [vmem:[#allocation50_spill] sm:$0xff]  ;;  %v1275_v54 = vld [vmem:[#allocation2 + $0x2f] sm:$0xff]  ;;  %v11361_v10 = vpop.permute.xlu1 %1787 }
 0x18f   :  { %1268 = vst [vmem:[#allocation2 + $0x208] sm:$0xff] %v1198_v30  ;;  %v9255_v6 = vpop.eup %9254  ;;  %8821 = vset.pattern.permute.xlu1 %v14409_v3  ;;  %v1199_v2 = vadd.f32 %v9525_v33, %v1121_v40  ;;  %v2719_v30 = vmul.f32 %v14498_v37, %v11336_v61  ;;  %14500 = vst [vmem:[#allocation116_spill] sm:$0xff] %v11361_v10  ;;  %v1531_v16 = vmul.f32 %v11327_v51, %v1275_v54  ;;  %v14501_v15 = vld [vmem:[#allocation64_spill] sm:$0xff]  ;;  %v3705_v37 = vld [vmem:[#allocation2 + $0x40] sm:$0xff] }
 0x190   :  { %1266 = vst [vmem:[#allocation2 + $0x1f8] sm:$0xff] %v1196_v25  ;;  %v11343_v14 = vmul.f32 %v11215_v27, %v1196_v25  ;;  %14497 = vst [vmem:[#allocation114_spill] sm:$0xff] %v11350_v7  ;;  %v1119_v39 = vmul.f32 %v9255_v6, %v11165_v43  ;;  %1458 = vperm.xlu1 %8821, %v1352_v11   ;;  %v11359_v12 = vpop.permute.xlu0 %3835  ;;  %v3318_v25 = vld [vmem:[#allocation2 + $0x27] sm:$0xff]  ;;  %4279 = vperm.xlu0 %8883, %v11271_v24   ;;  %v9526_v7 = vld [vmem:[#allocation2 + $0x38] sm:$0xff] }
 0x191   :  { %14499 = vst [vmem:[#allocation115_spill] sm:$0xff] %v11359_v12  ;;  %v1916_v13 = vmul.f32 %v9526_v7, %v14501_v15  ;;  %1269 = vst [vmem:[#allocation2 + $0x210] sm:$0xff] %v1199_v2  ;;  %v14502_v43 = vld [vmem:[#allocation31_spill] sm:$0xff]  ;;  %v3741_v17 = vld [vmem:[#allocation2 + $0x160] sm:$0xff]  ;;  %v2377_v46 = vpack.c.bf16 %v2333_v63, %v2332_v58  ;;  %v1530_v7 = vmul.f32 %v3318_v25, %v11304_v47  ;;  %5950 = vmatpush1.bf16.msra.mxu1 %v8967_v55 }
 0x192   :  { %14494 = vst [vmem:[#allocation113_spill] sm:$0xff] %v11343_v14  ;;  %v1197_v40 = vadd.f32 %v9525_v33, %v1119_v39  ;;  %v2718_v6 = vmul.f32 %v14502_v43, %v11347_v22  ;;  %v11371_v11 = vld [vmem:[%s14115_s2 + $0xa8] sm:$0xff]  ;;  %v11380_v33 = vmul.f32 %v11359_v12, %v3741_v17  ;;  %v1917_v2 = vmul.f32 %v3705_v37, %v11361_v10  ;;  %v2973_v39 = vld [vmem:[#allocation2 + $0x151] sm:$0xff] }
 0x193   :  { %v11374_v54 = vld [vmem:[#allocation2 + $0x1df] sm:$0xff]  ;;  %v11376_v31 = vld [vmem:[#allocation2 + $0x1e7] sm:$0xff]  ;;  %v2465_v17 = vld [vmem:[#allocation2 + $0x16f] sm:$0xff]  ;;  %v1592_v63 = vpack.c.bf16 %v1531_v16, %v1530_v7  ;;  %v11395_v37 = vpop.permute.xlu1 %3112  ;;  %6208 = vmatprep.subr.bf16.mxu1 %v14409_v3 }
 0x194   :  { %14503 = vst [vmem:[#allocation117_spill] sm:$0xff] %v11380_v33  ;;  %1267 = vst [vmem:[#allocation2 + $0x200] sm:$0xff] %v1197_v40  ;;  %v11385_v43 = vmul.f32 %v11142_v45, %v11374_v54  ;;  %v11389_v19 = vmul.f32 %v11167_v9, %v11376_v31  ;;  %v2762_v14 = vpack.c.bf16 %v2719_v30, %v2718_v6  ;;  %1463 = vperm.xlu1 %8821, %v11271_v24   ;;  %v2464_v58 = vld [vmem:[#allocation2 + $0x167] sm:$0xff]  ;;  %v11404_v24 = vld [vmem:[%s14115_s2 + $0xb8] sm:$0xff] }
 0x195   :  { %5815 = vmatmul.mubr.bf16.gmra.mrb[32].mxu1 %v2377_v46  ;;  %4289 = vperm.xlu0 %8883, %v11371_v11   ;;  %v11393_v55 = vpop.permute.xlu0 %3436  ;;  %v1977_v25 = vpack.c.bf16 %v1917_v2, %v1916_v13  ;;  %v2078_v40 = vld [vmem:[#allocation2 + $0x149] sm:$0xff]  ;;  %v14510_v7 = vld [vmem:[#allocation33_spill] sm:$0xff] }
 0x196   :  { %14504 = vst [vmem:[#allocation118_spill] sm:$0xff] %v11385_v43  ;;  %14505 = vst [vmem:[#allocation119_spill] sm:$0xff] %v11389_v19  ;;  %5822 = vmatprep.mubr.bf16.mxu1 %v2762_v14  ;;  %v11399_v43 = vmul.f32 %v11393_v55, %v11286_v59  ;;  %v14508_v46 = vld [vmem:[#allocation52_spill] sm:$0xff]  ;;  %5390 = vmatmul.mubr.bf16.gmra.mrb[72].mxu0 %v1592_v63  ;;  %v14509_v16 = vld [vmem:[#allocation55_spill] sm:$0xff]  ;;  %v2721_v19 = vmul.f32 %v14510_v7, %v2465_v17 }
 0x197   :  { %14506 = vst [vmem:[#allocation120_spill] sm:$0xff] %v11393_v55  ;;  %v2335_v30 = vmul.f32 %v2973_v39, %v14508_v46  ;;  %v2720_v6 = vmul.f32 %v14509_v16, %v2464_v58  ;;  %5397 = vmatprep.mubr.bf16.mxu0 %v1977_v25  ;;  %v14511_v13 = vld [vmem:[#allocation35_spill] sm:$0xff]  ;;  %v9527_v25 = vld [vmem:[%s14118_s5 + $0x80] sm:$0xff]   ;;  %v11435_v16 = vld [vmem:[%s14115_s2 + $0xf0] sm:$0xff] }
 0x198   :  { %14507 = vst [vmem:[#allocation121_spill] sm:$0xff] %v11399_v43  ;;  %8823 = vset.pattern.permute.xlu1 %v14416_v34  ;;  %v2334_v14 = vmul.f32 %v14511_v13, %v2078_v40  ;;  %v11418_v39 = vld [vmem:[%s14115_s2 + $0xc8] sm:$0xff]  ;;  %v11420_v63 = vpop.permute.xlu1 %1398  ;;  %5631 = vmatpush1.bf16.msra.mxu0 %v9527_v25  ;;  %v2080_v7 = vld [vmem:[#allocation2 + $0x159] sm:$0xff]  ;;  %v2083_v10 = vld [vmem:[#allocation2 + $0x171] sm:$0xff] }
 0x199   :  { %4299 = vperm.xlu0 %8883, %v11404_v24   ;;  %1857 = vperm.xlu1 %8823, %v11371_v11   ;;  %v11413_v2 = vpop.permute.xlu0 %3456  ;;  %v2975_v40 = vld [vmem:[#allocation2 + $0x161] sm:$0xff]  ;;  %v2763_v13 = vpack.c.bf16 %v2721_v19, %v2720_v6  ;;  %v14515_v6 = vld [vmem:[#allocation57_spill] sm:$0xff] }
 0x19a   :  { %14512 = vst [vmem:[#allocation122_spill] sm:$0xff] %v11413_v2  ;;  %v2378_v17 = vpack.c.bf16 %v2335_v30, %v2334_v14  ;;  %5632 = vmatprep.subr.bf16.mxu0 %v14409_v3  ;;  %v2467_v30 = vld [vmem:[#allocation2 + $0x17f] sm:$0xff]  ;;  %v1276_v14 = vld [vmem:[#allocation2 + $0x37] sm:$0xff]  ;;  %v2336_v46 = vmul.f32 %v14515_v6, %v2080_v7 }
 0x19b   :  { %v11423_v58 = vld [vmem:[#allocation2 + $0x1ff] sm:$0xff]  ;;  %v2466_v33 = vld [vmem:[#allocation2 + $0x177] sm:$0xff]  ;;  %v1532_v12 = vmul.f32 %v11420_v63, %v1276_v14 }
 0x19c   :  { %v11430_v43 = vmul.f32 %v11248_v28, %v11423_v58  ;;  %v11442_v55 = vpop.permute.xlu1 %1403  ;;  %v1277_v19 = vld [vmem:[#allocation2 + $0x3f] sm:$0xff] }
 0x19d   :  { %5823 = vmatmul.mubr.bf16.gmra.mrb[36].mxu1 %v2378_v17  ;;  %4309 = vperm.xlu0 %8883, %v11418_v39   ;;  %v1533_v17 = vmul.f32 %v11442_v55, %v1277_v19  ;;  %v1354_v7 = vld [vmem:[%s14115_s2 + $0xa0] sm:$0xff]  ;;  %v11461_v19 = vld [vmem:[%s14115_s2 + $0xe8] sm:$0xff] }
 0x19e   :  { %14513 = vst [vmem:[#allocation123_spill] sm:$0xff] %v11430_v43  ;;  %5830 = vmatprep.mubr.bf16.mxu1 %v2763_v13  ;;  %8824 = vset.pattern.permute.xlu1 %v14411_v35  ;;  %v11440_v25 = vpop.permute.xlu0 %3840  ;;  %v14516_v43 = vld [vmem:[#allocation59_spill] sm:$0xff]  ;;  %v14517_v13 = vld [vmem:[#allocation61_spill] sm:$0xff] }
 0x19f   :  { %14514 = vst [vmem:[#allocation124_spill] sm:$0xff] %v11440_v25  ;;  %v2337_v2 = vmul.f32 %v2975_v40, %v14516_v43  ;;  %3182 = vperm.xlu1 %8824, %v11435_v16   ;;  %v2723_v15 = vmul.f32 %v14517_v13, %v2467_v30  ;;  %v9528_v35 = vld [vmem:[%s14118_s5 + $0x88] sm:$0xff]   ;;  %v1593_v40 = vpack.c.bf16 %v1533_v17, %v1532_v12  ;;  %v3745_v13 = vld [vmem:[#allocation2 + $0x180] sm:$0xff] }
 0x1a0   :  { %5633 = vmatpush1.bf16.msra.mxu0 %v9528_v35  ;;  %v14518_v43 = vld [vmem:[#allocation39_spill] sm:$0xff]  ;;  %v14522_v17 = vld [vmem:[#allocation82_spill] sm:$0xff] }
 0x1a1   :  { %4319 = vperm.xlu0 %8883, %v10939_v20   ;;  %v2722_v14 = vmul.f32 %v14518_v43, %v2466_v33  ;;  %5634 = vmatprep.subr.bf16.mxu0 %v14409_v3  ;;  %v1662_v35 = vld [vmem:[#allocation2 + $0x48] sm:$0xff]  ;;  %v2379_v6 = vpack.c.bf16 %v2337_v2, %v2336_v46  ;;  %v11470_v12 = vpop.permute.xlu1 %1797  ;;  %v11472_v33 = vld [vmem:[#allocation2 + $0x50] sm:$0xff] }
 0x1a2   :  { %v11463_v30 = vpop.permute.xlu0 %3855  ;;  %14521 = vst [vmem:[#allocation127_spill] sm:$0xff] %v11470_v12  ;;  %5398 = vmatmul.mubr.bf16.gmra.mrb[76].mxu0 %v1593_v40  ;;  %v1918_v43 = vmul.f32 %v14522_v17, %v1662_v35  ;;  %v1919_v53 = vmul.f32 %v11470_v12, %v11472_v33  ;;  %v2468_v46 = vld [vmem:[#allocation2 + $0x187] sm:$0xff]  ;;  %v2469_v2 = vld [vmem:[#allocation2 + $0x18f] sm:$0xff]  ;;  %v2339_v40 = vmul.f32 %v14524_v23, %v2083_v10  ;;  %v14526_v35 = vld [vmem:[#allocation41_spill] sm:$0xff] }
 0x1a3   :  { %14519 = vst [vmem:[#allocation125_spill] sm:$0xff] %v11463_v30  ;;  %8825 = vset.pattern.permute.xlu1 %v14409_v3  ;;  %v11468_v20 = vmul.f32 %v11463_v30, %v3745_v13  ;;  %v2764_v25 = vpack.c.bf16 %v2723_v15, %v2722_v14  ;;  %v2976_v13 = vld [vmem:[#allocation2 + $0x169] sm:$0xff]  ;;  %v2087_v23 = vld [vmem:[#allocation2 + $0x191] sm:$0xff] }
 0x1a4   :  { %1468 = vperm.xlu1 %8825, %v1354_v7   ;;  %v1978_v30 = vpack.c.bf16 %v1919_v53, %v1918_v43  ;;  %v9529_v15 = vld [vmem:[%s14118_s5 + $0x90] sm:$0xff]   ;;  %v14525_v7 = vld [vmem:[#allocation65_spill] sm:$0xff] }
 0x1a5   :  { %14520 = vst [vmem:[#allocation126_spill] sm:$0xff] %v11468_v20  ;;  %5831 = vmatmul.mubr.bf16.gmra.mrb[40].mxu1 %v2379_v6  ;;  %4329 = vperm.xlu0 %8883, %v11461_v19   ;;  %v2724_v14 = vmul.f32 %v14525_v7, %v2468_v46  ;;  %v2725_v6 = vmul.f32 %v14526_v35, %v2469_v2  ;;  %v9530_v43 = vld [vmem:[%s14118_s5 + $0x98] sm:$0xff]   ;;  %v14533_v35 = vld [vmem:[#allocation72_spill] sm:$0xff] }
 0x1a6   :  { %5838 = vmatprep.mubr.bf16.mxu1 %v2764_v25  ;;  %v11478_v20 = vpop.permute.xlu0 %3860  ;;  %5635 = vmatpush1.bf16.msra.mxu0 %v9529_v15  ;;  %v11487_v17 = vpop.permute.xlu1 %3122  ;;  %v14527_v25 = vld [vmem:[#allocation37_spill] sm:$0xff]  ;;  %v14529_v15 = vld [vmem:[#allocation68_spill] sm:$0xff] }
 0x1a7   :  { %14523 = vst [vmem:[#allocation128_spill] sm:$0xff] %v11478_v20  ;;  %5405 = vmatprep.mubr.bf16.mxu0 %v1978_v30  ;;  %v2338_v12 = vmul.f32 %v2976_v13, %v14527_v25  ;;  %5636 = vmatprep.subr.bf16.mxu0 %v14409_v3  ;;  %v2978_v46 = vld [vmem:[#allocation2 + $0x179] sm:$0xff]  ;;  %v2765_v2 = vpack.c.bf16 %v2725_v6, %v2724_v14  ;;  %v14532_v6 = vld [vmem:[#allocation43_spill] sm:$0xff] }
 0x1a8   :  { %1473 = vperm.xlu1 %8825, %v11371_v11   ;;  %v2085_v11 = vld [vmem:[#allocation2 + $0x181] sm:$0xff]  ;;  %v2470_v30 = vld [vmem:[#allocation2 + $0x197] sm:$0xff] }
 0x1a9   :  { %4339 = vperm.xlu0 %8883, %v11050_v1   ;;  %v2380_v10 = vpack.c.bf16 %v2339_v40, %v2338_v12  ;;  %v2471_v13 = vld [vmem:[#allocation2 + $0x19f] sm:$0xff]  ;;  %v2340_v12 = vmul.f32 %v2978_v46, %v14529_v15  ;;  %v11516_v46 = vmul.f32 %v10828_v36, %v11277_v5  ;;  %v11533_v5 = vmul.f32 %v11070_v4, %v11031_v62 }
 0x1aa   :  { %v11491_v53 = vpop.permute.xlu0 %3875  ;;  %5637 = vmatpush1.bf16.msra.mxu0 %v9530_v43  ;;  %v14530_v40 = vld [vmem:[#allocation70_spill] sm:$0xff]  ;;  %v1356_v43 = vld [vmem:[%s14115_s2 + $0xb0] sm:$0xff]  ;;  %v2727_v7 = vmul.f32 %v14533_v35, %v2471_v13 }
 0x1ab   :  { %14528 = vst [vmem:[#allocation129_spill] sm:$0xff] %v11491_v53  ;;  %v11499_v1 = vpop.permute.xlu1 %1408  ;;  %v2341_v25 = vmul.f32 %v14530_v40, %v2085_v11  ;;  %5638 = vmatprep.subr.bf16.mxu0 %v14409_v3  ;;  %v3322_v11 = vld [vmem:[#allocation2 + $0x47] sm:$0xff] }
 0x1ac   :  { %8826 = vset.pattern.permute.xlu1 %v14416_v34  ;;  %v1534_v13 = vmul.f32 %v3322_v11, %v11499_v1  ;;  %v2472_v53 = vld [vmem:[#allocation2 + $0x1a7] sm:$0xff] }
 0x1ad   :  { %5839 = vmatmul.mubr.bf16.gmra.mrb[44].mxu1 %v2380_v10  ;;  %1867 = vperm.xlu1 %8826, %v11404_v24   ;;  %v2726_v10 = vmul.f32 %v14532_v6, %v2470_v30  ;;  %v9531_v24 = vld [vmem:[%s14118_s5 + $0xa0] sm:$0xff]   ;;  %v1279_v30 = vld [vmem:[#allocation2 + $0x4f] sm:$0xff]  ;;  %v2381_v15 = vpack.c.bf16 %v2341_v25, %v2340_v12  ;;  %v11554_v12 = vmul.f32 %v11130_v50, %v11169_v49 }
 0x1ae   :  { %5846 = vmatprep.mubr.bf16.mxu1 %v2765_v2  ;;  %5639 = vmatpush1.bf16.msra.mxu0 %v9531_v24  ;;  %v11520_v2 = vmul.f32 %v11072_v32, %v11061_v48  ;;  %v14534_v24 = vld [vmem:[#allocation89_spill] sm:$0xff]  ;;  %v11537_v48 = vmul.f32 %v11132_v21, %v11206_v42  ;;  %v2980_v32 = vld [vmem:[#allocation2 + $0x189] sm:$0xff]  ;;  %v1742_v62 = vld [vmem:[%s14115_s2 + $0xc0] sm:$0xff]  ;;  %v11571_v50 = vmul.f32 %v11246_v26, %v11442_v55 }
 0x1af   :  { %v11506_v14 = vpop.permute.xlu0 %3476  ;;  %v11523_v40 = vpop.permute.xlu1 %1413  ;;  %v11529_v35 = vmul.f32 %v14534_v24, %v11292_v18  ;;  %5640 = vmatprep.subr.bf16.mxu0 %v14409_v3  ;;  %v9532_v21 = vld [vmem:[%s14118_s5 + $0xa8] sm:$0xff]   ;;  %v14537_v42 = vld [vmem:[#allocation84_spill] sm:$0xff]  ;;  %v11587_v26 = vmul.f32 %v11255_v38, %v11420_v63  ;;  %v2982_v63 = vld [vmem:[#allocation2 + $0x199] sm:$0xff] }
 0x1b0   :  { %14531 = vst [vmem:[#allocation130_spill] sm:$0xff] %v11506_v14  ;;  %v1535_v6 = vmul.f32 %v11523_v40, %v1279_v30  ;;  %v2766_v30 = vpack.c.bf16 %v2727_v7, %v2726_v10  ;;  %v2473_v7 = vld [vmem:[#allocation2 + $0x1af] sm:$0xff] }
 0x1b1   :  { %8827 = vset.pattern.permute.xlu1 %v14409_v3  ;;  %v14547_v38 = vld [vmem:[#allocation83_spill] sm:$0xff] }
 0x1b2   :  { %1478 = vperm.xlu1 %8827, %v1356_v43   ;;  %v1664_v43 = vld [vmem:[#allocation2 + $0x58] sm:$0xff]  ;;  %v1594_v4 = vpack.c.bf16 %v1535_v6, %v1534_v13  ;;  %5641 = vmatpush1.bf16.msra.mxu0 %v9532_v21  ;;  %v11562_v6 = vmul.f32 %v11199_v57, %v11327_v51  ;;  %v3709_v13 = vld [vmem:[#allocation2 + $0x60] sm:$0xff]  ;;  %v11578_v51 = vmul.f32 %v11197_v60, %v11304_v47 }
 0x1b3   :  { %v11539_v11 = vpop.permute.xlu0 %3496  ;;  %v1920_v25 = vmul.f32 %v14537_v42, %v1664_v43  ;;  %v14538_v21 = vld [vmem:[#allocation45_spill] sm:$0xff]  ;;  %5642 = vmatprep.subr.bf16.mxu0 %v14409_v3 }
 0x1b4   :  { %14535 = vst [vmem:[#allocation89_spill] sm:$0xff] %v11539_v11  ;;  %v11543_v18 = vmul.f32 %v11539_v11, %v2472_v53  ;;  %v2342_v43 = vmul.f32 %v2980_v32, %v14538_v21  ;;  %v11567_v49 = vpop.permute.xlu1 %1807  ;;  %5406 = vmatmul.mubr.bf16.gmra.mrb[80].mxu0 %v1594_v4 }
 0x1b5   :  { %5847 = vmatmul.mubr.bf16.gmra.mrb[48].mxu1 %v2381_v15  ;;  %v1921_v15 = vmul.f32 %v3709_v13, %v11567_v49  ;;  %v2474_v13 = vld [vmem:[#allocation2 + $0x1b7] sm:$0xff] }
 0x1b6   :  { %14536 = vst [vmem:[#allocation131_spill] sm:$0xff] %v11543_v18  ;;  %5854 = vmatprep.mubr.bf16.mxu1 %v2766_v30  ;;  %v14539_v18 = vld [vmem:[#allocation74_spill] sm:$0xff]  ;;  %8830 = vset.pattern.permute.xlu1 %v14416_v34  ;;  %v14541_v30 = vld [vmem:[#allocation47_spill] sm:$0xff] }
 0x1b7   :  { %v2343_v14 = vmul.f32 %v14539_v18, %v2087_v23  ;;  %1872 = vperm.xlu1 %8830, %v1742_v62   ;;  %v14540_v23 = vld [vmem:[#allocation76_spill] sm:$0xff]  ;;  %v2729_v10 = vmul.f32 %v14541_v30, %v2473_v7  ;;  %v1979_v55 = vpack.c.bf16 %v1921_v15, %v1920_v25  ;;  %v2089_v25 = vld [vmem:[#allocation2 + $0x1a1] sm:$0xff]  ;;  %v9534_v15 = vld [vmem:[%s14118_s5 + $0xb8] sm:$0xff]  }
 0x1b8   :  { %v2728_v32 = vmul.f32 %v14540_v23, %v2472_v53  ;;  %v11582_v11 = vpop.permute.xlu0 %3880  ;;  %v9533_v62 = vld [vmem:[%s14118_s5 + $0xb0] sm:$0xff]   ;;  %v14551_v23 = vld [vmem:[#allocation85_spill] sm:$0xff] }
 0x1b9   :  { %14542 = vst [vmem:[#allocation84_spill] sm:$0xff] %v11582_v11  ;;  %5643 = vmatpush1.bf16.msra.mxu0 %v9533_v62  ;;  %v2382_v47 = vpack.c.bf16 %v2343_v14, %v2342_v43  ;;  %v11596_v53 = vpop.permute.xlu1 %3132  ;;  %5413 = vmatprep.mubr.bf16.mxu0 %v1979_v55  ;;  %v14544_v14 = vld [vmem:[#allocation78_spill] sm:$0xff]  ;;  %v14545_v55 = vld [vmem:[#allocation80_spill] sm:$0xff]  ;;  %v1670_v11 = vld [vmem:[#allocation2 + $0x88] sm:$0xff] }
 0x1ba   :  { %5644 = vmatprep.subr.bf16.mxu0 %v14409_v3  ;;  %v2767_v4 = vpack.c.bf16 %v2729_v10, %v2728_v32  ;;  %v2344_v43 = vmul.f32 %v2982_v63, %v14544_v14  ;;  %v2345_v62 = vmul.f32 %v14545_v55, %v2089_v25  ;;  %v14546_v10 = vld [vmem:[#allocation49_spill] sm:$0xff]  ;;  %v1326_v14 = vld [vmem:[#allocation2 + $0x1c7] sm:$0xff] }
 0x1bb   :  { %1877 = vperm.xlu1 %8830, %v11418_v39   ;;  %v2730_v32 = vmul.f32 %v14546_v10, %v2474_v13  ;;  %v1745_v63 = vld [vmem:[%s14115_s2 + $0xd8] sm:$0xff] }
 0x1bc   :  { %v11600_v7 = vpop.permute.xlu0 %3895  ;;  %v2383_v25 = vpack.c.bf16 %v2345_v62, %v2344_v43  ;;  %v1280_v13 = vld [vmem:[#allocation2 + $0x57] sm:$0xff]  ;;  %v1281_v55 = vld [vmem:[#allocation2 + $0x5f] sm:$0xff]  ;;  %v11633_v43 = vmul.f32 %v11288_v52, %v11523_v40  ;;  %v9536_v62 = vld [vmem:[%s14118_s5 + $0xc8] sm:$0xff]  }
 0x1bd   :  { %14543 = vst [vmem:[#allocation132_spill] sm:$0xff] %v11600_v7  ;;  %5855 = vmatmul.mubr.bf16.gmra.mrb[52].mxu1 %v2382_v47  ;;  %5645 = vmatpush1.bf16.msra.mxu0 %v9534_v15  ;;  %v2731_v47 = vmul.f32 %v14547_v38, %v11298_v8  ;;  %v2984_v8 = vld [vmem:[#allocation2 + $0x1a9] sm:$0xff]  ;;  %v14553_v52 = vld [vmem:[#allocation6_spill] sm:$0xff] }
 0x1be   :  { %5862 = vmatprep.mubr.bf16.mxu1 %v2767_v4  ;;  %5646 = vmatprep.subr.bf16.mxu0 %v14409_v3  ;;  %v11615_v57 = vpop.permute.xlu1 %1418  ;;  %v9535_v4 = vld [vmem:[%s14118_s5 + $0xc0] sm:$0xff]  }
 0x1bf   :  { %8831 = vset.pattern.permute.xlu1 %v14409_v3  ;;  %v2768_v15 = vpack.c.bf16 %v2731_v47, %v2730_v32  ;;  %v1536_v21 = vmul.f32 %v11615_v57, %v1280_v13  ;;  %v14550_v32 = vld [vmem:[#allocation51_spill] sm:$0xff] }
 0x1c0   :  { %1493 = vperm.xlu1 %8831, %v11418_v39   ;;  %v11613_v60 = vpop.permute.xlu0 %3900  ;;  %v2091_v39 = vld [vmem:[#allocation2 + $0x1b1] sm:$0xff]  ;;  %v2346_v47 = vmul.f32 %v2984_v8, %v14550_v32 }
 0x1c1   :  { %14548 = vst [vmem:[#allocation133_spill] sm:$0xff] %v11613_v60  ;;  %5647 = vmatpush1.bf16.msra.mxu0 %v9535_v4  ;;  %v2477_v4 = vld [vmem:[#allocation2 + $0x1cf] sm:$0xff]  ;;  %v2101_v60 = vld [vmem:[#allocation2 + $0x201] sm:$0xff] }
 0x1c2   :  { %5648 = vmatprep.subr.bf16.mxu0 %v14409_v3  ;;  %v11627_v38 = vpop.permute.xlu1 %1423  ;;  %v2733_v40 = vmul.f32 %v14553_v52, %v2477_v4  ;;  %v11658_v8 = vld [vmem:[#allocation2 + $0x70] sm:$0xff]  ;;  %v2986_v4 = vld [vmem:[#allocation2 + $0x1b9] sm:$0xff] }
 0x1c3   :  { %v1537_v30 = vmul.f32 %v11627_v38, %v1281_v55  ;;  %v11643_v55 = vmul.f32 %v11286_v59, %v11499_v1  ;;  %v1666_v59 = vld [vmem:[#allocation2 + $0x68] sm:$0xff]  ;;  %v1746_v52 = vld [vmem:[%s14115_s2 + $0xe0] sm:$0xff] }
 0x1c4   :  { %8833 = vset.pattern.permute.xlu1 %v14416_v34  ;;  %v11625_v10 = vpop.permute.xlu0 %3915 }
 0x1c5   :  { %14549 = vst [vmem:[#allocation134_spill] sm:$0xff] %v11625_v10  ;;  %5863 = vmatmul.mubr.bf16.gmra.mrb[56].mxu1 %v2383_v25  ;;  %1887 = vperm.xlu1 %8833, %v1745_v63   ;;  %v2347_v25 = vmul.f32 %v14551_v23, %v2091_v39  ;;  %v1595_v18 = vpack.c.bf16 %v1537_v30, %v1536_v21  ;;  %v14552_v63 = vld [vmem:[#allocation4_spill] sm:$0xff] }
 0x1c6   :  { %5870 = vmatprep.mubr.bf16.mxu1 %v2768_v15  ;;  %5649 = vmatpush1.bf16.msra.mxu0 %v9536_v62  ;;  %v2732_v13 = vmul.f32 %v14552_v63, %v1326_v14  ;;  %v9537_v30 = vld [vmem:[%s14118_s5 + $0xd0] sm:$0xff]   ;;  %v2093_v62 = vld [vmem:[#allocation2 + $0x1c1] sm:$0xff] }
 0x1c7   :  { %5650 = vmatprep.subr.bf16.mxu0 %v14409_v3  ;;  %5414 = vmatmul.mubr.bf16.gmra.mrb[84].mxu0 %v1595_v18  ;;  %v2384_v1 = vpack.c.bf16 %v2347_v25, %v2346_v47  ;;  %v11656_v14 = vpop.permute.xlu1 %1817  ;;  %v14555_v18 = vld [vmem:[#allocation86_spill] sm:$0xff] }
 0x1c8   :  { %v2769_v39 = vpack.c.bf16 %v2733_v40, %v2732_v13  ;;  %v1923_v63 = vmul.f32 %v11656_v14, %v11658_v8  ;;  %v2478_v40 = vld [vmem:[#allocation2 + $0x1d7] sm:$0xff] }
 0x1c9   :  { %8834 = vset.pattern.permute.xlu1 %v14409_v3  ;;  %v11649_v15 = vpop.permute.xlu0 %3516 }
 0x1ca   :  { %1498 = vperm.xlu1 %8834, %v11174_v29   ;;  %14554 = vst [vmem:[#allocation4_spill] sm:$0xff] %v11649_v15  ;;  %5651 = vmatpush1.bf16.msra.mxu0 %v9537_v30  ;;  %v1922_v29 = vmul.f32 %v14555_v18, %v1666_v59  ;;  %v14557_v30 = vld [vmem:[#allocation5_spill] sm:$0xff]  ;;  %v14558_v59 = vld [vmem:[#allocation7_spill] sm:$0xff] }
 0x1cb   :  { %5652 = vmatprep.subr.bf16.mxu0 %v14409_v3  ;;  %v2348_v21 = vmul.f32 %v2986_v4, %v14557_v30  ;;  %v2349_v13 = vmul.f32 %v14558_v59, %v2093_v62  ;;  %v2095_v59 = vld [vmem:[#allocation2 + $0x1d1] sm:$0xff]  ;;  %v2100_v15 = vld [vmem:[#allocation2 + $0x1f9] sm:$0xff] }
 0x1cc   :  { %v1980_v25 = vpack.c.bf16 %v1923_v63, %v1922_v29  ;;  %v14561_v29 = vld [vmem:[#allocation8_spill] sm:$0xff] }
 0x1cd   :  { %5871 = vmatmul.mubr.bf16.gmra.mrb[60].mxu1 %v2384_v1  ;;  %v11668_v47 = vpop.permute.xlu0 %3536  ;;  %v9538_v1 = vld [vmem:[%s14118_s5 + $0xd8] sm:$0xff]   ;;  %v2734_v4 = vmul.f32 %v14561_v29, %v2478_v40  ;;  %v2385_v62 = vpack.c.bf16 %v2349_v13, %v2348_v21  ;;  %v2094_v40 = vld [vmem:[#allocation2 + $0x1c9] sm:$0xff] }
 0x1ce   :  { %5878 = vmatprep.mubr.bf16.mxu1 %v2769_v39  ;;  %8835 = vset.pattern.permute.xlu1 %v14416_v34  ;;  %14556 = vst [vmem:[#allocation6_spill] sm:$0xff] %v11668_v47  ;;  %v11674_v32 = vmul.f32 %v11668_v47, %v11376_v31  ;;  %v14560_v39 = vld [vmem:[#allocation9_spill] sm:$0xff]  ;;  %v11681_v10 = vpop.permute.xlu1 %3142  ;;  %v14564_v21 = vld [vmem:[#allocation11_spill] sm:$0xff] }
 0x1cf   :  { %1892 = vperm.xlu1 %8835, %v1746_v52   ;;  %5653 = vmatpush1.bf16.msra.mxu0 %v9538_v1  ;;  %v2735_v23 = vmul.f32 %v14560_v39, %v11374_v54  ;;  %v9539_v52 = vld [vmem:[%s14118_s5 + $0xe0] sm:$0xff]   ;;  %v2481_v54 = vld [vmem:[#allocation2 + $0x1ef] sm:$0xff]  ;;  %v2351_v13 = vmul.f32 %v14564_v21, %v2095_v59 }
 0x1d0   :  { %14559 = vst [vmem:[#allocation86_spill] sm:$0xff] %v11674_v32  ;;  %5421 = vmatprep.mubr.bf16.mxu0 %v1980_v25  ;;  %5654 = vmatprep.subr.bf16.mxu0 %v14409_v3  ;;  %v9540_v39 = vld [vmem:[%s14118_s5 + $0xe8] sm:$0xff]   ;;  %v14569_v59 = vld [vmem:[#allocation12_spill] sm:$0xff] }
 0x1d1   :  { %v2770_v30 = vpack.c.bf16 %v2735_v23, %v2734_v4  ;;  %v14566_v23 = vld [vmem:[#allocation13_spill] sm:$0xff]  ;;  %v14567_v4 = vld [vmem:[#allocation10_spill] sm:$0xff]  ;;  %v2350_v21 = vmul.f32 %v14569_v59, %v2094_v40 }
 0x1d2   :  { %v2736_v29 = vmul.f32 %v14566_v23, %v11376_v31 }
 0x1d3   :  { %1897 = vperm.xlu1 %8835, %v11461_v19   ;;  %5655 = vmatpush1.bf16.msra.mxu0 %v9539_v52  ;;  %v3326_v52 = vld [vmem:[#allocation2 + $0x67] sm:$0xff]  ;;  %v2386_v23 = vpack.c.bf16 %v2351_v13, %v2350_v21  ;;  %v14574_v21 = vld [vmem:[#allocation88_spill] sm:$0xff] }
 0x1d4   :  { %v11686_v63 = vpop.permute.xlu0 %3920  ;;  %5656 = vmatprep.subr.bf16.mxu0 %v14409_v3  ;;  %v3713_v13 = vld [vmem:[#allocation2 + $0x80] sm:$0xff] }
 0x1d5   :  { %14562 = vst [vmem:[#allocation5_spill] sm:$0xff] %v11686_v63  ;;  %5879 = vmatmul.mubr.bf16.gmra.mrb[64].mxu1 %v2385_v62  ;;  %v11692_v25 = vpop.permute.xlu1 %1428  ;;  %v2737_v62 = vmul.f32 %v14567_v4, %v2481_v54  ;;  %v11720_v54 = vmul.f32 %v11347_v22, %v11615_v57  ;;  %v2096_v4 = vld [vmem:[#allocation2 + $0x1d9] sm:$0xff]  ;;  %v2484_v22 = vld [vmem:[#allocation2 + $0x207] sm:$0xff] }
 0x1d6   :  { %14563 = vst [vmem:[#allocation7_spill] sm:$0xff] %v11692_v25  ;;  %5886 = vmatprep.mubr.bf16.mxu1 %v2770_v30  ;;  %v11708_v30 = vmul.f32 %v11336_v61, %v11627_v38  ;;  %v9541_v38 = vld [vmem:[%s14118_s5 + $0xf0] sm:$0xff]   ;;  %v1668_v57 = vld [vmem:[#allocation2 + $0x78] sm:$0xff] }
 0x1d7   :  { %8836 = vset.pattern.permute.xlu1 %v14409_v3  ;;  %5657 = vmatpush1.bf16.msra.mxu0 %v9540_v39  ;;  %v1538_v39 = vmul.f32 %v3326_v52, %v11692_v25  ;;  %14571 = vst [vmem:[#allocation13_spill] sm:$0xff] %v11720_v54  ;;  %v2771_v40 = vpack.c.bf16 %v2737_v62, %v2736_v29  ;;  %v2097_v52 = vld [vmem:[#allocation2 + $0x1e1] sm:$0xff]  ;;  %v3389_v25 = vld [vmem:[%s14115_s2 + $0x38] sm:$0xff] }
 0x1d8   :  { %v11696_v1 = vpop.permute.xlu0 %3935  ;;  %1513 = vperm.xlu1 %8836, %v11461_v19   ;;  %5658 = vmatprep.subr.bf16.mxu0 %v14409_v3  ;;  %14568 = vst [vmem:[#allocation8_spill] sm:$0xff] %v11708_v30  ;;  %v1749_v19 = vld [vmem:[%s14115_s2 + $0xf8] sm:$0xff]  ;;  %v1924_v29 = vmul.f32 %v14574_v21, %v1668_v57  ;;  %v14575_v62 = vld [vmem:[#allocation15_spill] sm:$0xff]  ;;  %v3721_v30 = vld [vmem:[#allocation2 + $0xc0] sm:$0xff] }
 0x1d9   :  { %14565 = vst [vmem:[#allocation9_spill] sm:$0xff] %v11696_v1  ;;  %v11711_v47 = vpop.permute.xlu1 %1433  ;;  %v1283_v1 = vld [vmem:[#allocation2 + $0x6f] sm:$0xff] }
 0x1da   :  { %14570 = vst [vmem:[#allocation11_spill] sm:$0xff] %v11711_v47  ;;  %v1539_v31 = vmul.f32 %v11711_v47, %v1283_v1 }
 0x1db   :  { %5659 = vmatpush1.bf16.msra.mxu0 %v9541_v38  ;;  %v2352_v38 = vmul.f32 %v14575_v62, %v2096_v4 }
 0x1dc   :  { %v11722_v61 = vpop.permute.xlu0 %3940  ;;  %8838 = vset.pattern.permute.xlu1 %v14416_v34  ;;  %v1596_v1 = vpack.c.bf16 %v1539_v31, %v1538_v39  ;;  %5660 = vmatprep.subr.bf16.mxu0 %v14409_v3  ;;  %v2482_v39 = vld [vmem:[#allocation2 + $0x1f7] sm:$0xff] }
 0x1dd   :  { %14572 = vst [vmem:[#allocation10_spill] sm:$0xff] %v11722_v61  ;;  %5887 = vmatmul.mubr.bf16.gmra.mrb[68].mxu1 %v2386_v23  ;;  %1907 = vperm.xlu1 %8838, %v1749_v19   ;;  %v14576_v61 = vld [vmem:[#allocation17_spill] sm:$0xff]  ;;  %v14577_v23 = vld [vmem:[#allocation19_spill] sm:$0xff] }
 0x1de   :  { %5894 = vmatprep.mubr.bf16.mxu1 %v2771_v40  ;;  %v11731_v59 = vpop.permute.xlu1 %1827  ;;  %5422 = vmatmul.mubr.bf16.gmra.mrb[88].mxu0 %v1596_v1  ;;  %v2353_v34 = vmul.f32 %v14576_v61, %v2097_v52  ;;  %v9542_v19 = vld [vmem:[%s14118_s5 + $0xf8] sm:$0xff]   ;;  %v2739_v40 = vmul.f32 %v14577_v23, %v11423_v58  ;;  %v14580_v52 = vld [vmem:[#allocation16_spill] sm:$0xff]  ;;  %v3766_v58 = vld [vmem:[%s14115_s2] sm:$0xff] }
 0x1df   :  { %14573 = vst [vmem:[#allocation12_spill] sm:$0xff] %v11731_v59  ;;  %v1925_v31 = vmul.f32 %v3713_v13, %v11731_v59  ;;  %5661 = vmatpush1.bf16.msra.mxu0 %v9542_v19  ;;  %v2738_v1 = vmul.f32 %v14580_v52, %v2482_v39  ;;  %v2099_v19 = vld [vmem:[#allocation2 + $0x1f1] sm:$0xff]  ;;  %v14587_v52 = vld [vmem:[#allocation14_spill] sm:$0xff] }
 0x1e0   :  { %v2387_v57 = vpack.c.bf16 %v2353_v34, %v2352_v38  ;;  %v2485_v23 = vld [vmem:[#allocation2 + $0x20f] sm:$0xff]  ;;  %v14585_v34 = vld [vmem:[#allocation18_spill] sm:$0xff] }
 0x1e1   :  { %v11742_v32 = vpop.permute.xlu0 %3556  ;;  %8839 = vset.pattern.permute.xlu1 %v14409_v3  ;;  %v1981_v61 = vpack.c.bf16 %v1925_v31, %v1924_v29  ;;  %v2772_v62 = vpack.c.bf16 %v2739_v40, %v2738_v1  ;;  %v14583_v29 = vld [vmem:[#allocation22_spill] sm:$0xff]  ;;  %v2741_v31 = vmul.f32 %v14585_v34, %v2485_v23  ;;  %v3767_v40 = vld [vmem:[%s14115_s2 + $0x8] sm:$0xff] }
 0x1e2   :  { %14578 = vst [vmem:[#allocation15_spill] sm:$0xff] %v11742_v32  ;;  %v11746_v4 = vmul.f32 %v11742_v32, %v2484_v22  ;;  %1518 = vperm.xlu1 %8839, %v11435_v16   ;;  %v2098_v32 = vld [vmem:[#allocation2 + $0x1e9] sm:$0xff]  ;;  %v2355_v39 = vmul.f32 %v14583_v29, %v2099_v19  ;;  %v2935_v29 = vld [vmem:[#allocation2 + $0x21] sm:$0xff] }
 0x1e3   :  { %v11750_v13 = vpop.permute.xlu1 %3152  ;;  %5429 = vmatprep.mubr.bf16.mxu0 %v1981_v61  ;;  %v14584_v16 = vld [vmem:[#allocation24_spill] sm:$0xff]  ;;  %v2354_v1 = vmul.f32 %v14587_v52, %v2098_v32  ;;  %v14589_v34 = vld [vmem:[#allocation26_spill] sm:$0xff]  ;;  %v14590_v32 = vld [vmem:[#allocation27_spill] sm:$0xff]  ;;  %v14591_v52 = vmov 6  }
 0x1e4   :  { %14579 = vst [vmem:[#allocation17_spill] sm:$0xff] %v11746_v4  ;;  %14581 = vst [vmem:[#allocation19_spill] sm:$0xff] %v11750_v13  ;;  %v14582_v4 = vmov 7   ;;  %v2740_v38 = vmul.f32 %v14584_v16, %v2484_v22  ;;  %v2934_v16 = vld [vmem:[#allocation2 + $0x19] sm:$0xff]  ;;  %v2356_v7 = vmul.f32 %v14589_v34, %v2100_v15 }
 0x1e5   :  { %5895 = vmatmul.mubr.bf16.gmra.mrb[72].mxu1 %v2387_v57  ;;  %v2388_v57 = vpack.c.bf16 %v2355_v39, %v2354_v1  ;;  %v2357_v39 = vmul.f32 %v14590_v32, %v2101_v60  ;;  %v3768_v60 = vld [vmem:[%s14115_s2 + $0x10] sm:$0xff]  ;;  %v2807_v34 = vld [vmem:[#allocation2 + $0x20] sm:$0xff] }
 0x1e6   :  { %5902 = vmatprep.mubr.bf16.mxu1 %v2772_v62  ;;  %8841 = vset.pattern.permute.xlu1 %v14582_v4  ;;  %v1284_v62 = vld [vmem:[#allocation2 + $0x77] sm:$0xff]  ;;  %v2773_v63 = vpack.c.bf16 %v2741_v31, %v2740_v38  ;;  %v14592_v31 = vld [vmem:[#allocation87_spill] sm:$0xff] }
 0x1e7   :  { %3800 = vperm.xlu1 %8841, %v3766_v58   ;;  %v1285_v58 = vld [vmem:[#allocation2 + $0x7f] sm:$0xff]  ;;  %v3190_v1 = vmul.f32 %v14592_v31, %v2934_v16  ;;  %v2936_v32 = vld [vmem:[#allocation2 + $0x29] sm:$0xff] }
 0x1e8   :  { %v11759_v61 = vpop.permute.xlu1 %1438 }
 0x1e9   :  { %14586 = vst [vmem:[#allocation16_spill] sm:$0xff] %v11759_v61  ;;  %v1540_v22 = vmul.f32 %v11759_v61, %v1284_v62  ;;  %v14594_v62 = vld [vmem:[#allocation53_spill] sm:$0xff] }
 0x1eb   :  { %3805 = vperm.xlu1 %8841, %v3767_v40  }
 0x1ec   :  { %v11765_v19 = vpop.permute.xlu1 %1443 }
 0x1ed   :  { %14588 = vst [vmem:[#allocation22_spill] sm:$0xff] %v11765_v19  ;;  %5903 = vmatmul.mubr.bf16.gmra.mrb[76].mxu1 %v2388_v57  ;;  %v1541_v23 = vmul.f32 %v11765_v19, %v1285_v58  ;;  %v11775_v57 = vld [vmem:[#allocation2 + $0x90] sm:$0xff]  ;;  %v14595_v58 = vld [vmem:[#allocation90_spill] sm:$0xff] }
 0x1ee   :  { %5910 = vmatprep.mubr.bf16.mxu1 %v2773_v63  ;;  %v3191_v63 = vmul.f32 %v14594_v62, %v2935_v29  ;;  %v1926_v61 = vmul.f32 %v14595_v58, %v1670_v11  ;;  %v2937_v29 = vld [vmem:[#allocation2 + $0x31] sm:$0xff]  ;;  %v2811_v19 = vld [vmem:[#allocation2 + $0x40] sm:$0xff] }
 0x1ef   :  { %8843 = vset.pattern.permute.xlu1 %v14591_v52  ;;  %v1597_v38 = vpack.c.bf16 %v1541_v23, %v1540_v22  ;;  %v2389_v22 = vpack.c.bf16 %v2357_v39, %v2356_v7  ;;  %v3193_v11 = vmul.f32 %v10828_v36, %v2937_v29  ;;  %v2806_v7 = vld [vmem:[#allocation2 + $0x18] sm:$0xff]  ;;  %v14598_v29 = vld [vmem:[#allocation92_spill] sm:$0xff] }
 0x1f0   :  { %3421 = vperm.xlu1 %8843, %v3767_v40   ;;  %v3254_v23 = vpack.c.bf16 %v3191_v63, %v3190_v1  ;;  %v2870_v39 = vpack.c.bf16 %v2807_v34, %v2806_v7  ;;  %v3385_v36 = vld [vmem:[%s14115_s2 + $0x18] sm:$0xff]  ;;  %v2809_v34 = vld [vmem:[#allocation2 + $0x30] sm:$0xff]  ;;  %v3771_v7 = vld [vmem:[%s14115_s2 + $0x28] sm:$0xff] }
 0x1f1   :  { %v11773_v20 = vpop.permute.xlu1 %1837  ;;  %5430 = vmatmul.mubr.bf16.gmra.mrb[92].mxu0 %v1597_v38  ;;  %v3192_v38 = vmul.f32 %v14534_v24, %v2936_v32  ;;  %v8969_v24 = vld [vmem:[%s14118_s5 + $0x188] sm:$0xff]  }
 0x1f2   :  { %14593 = vst [vmem:[#allocation24_spill] sm:$0xff] %v11773_v20  ;;  %v1927_v15 = vmul.f32 %v11773_v20, %v11775_v57 }
 0x1f3   :  { %v3255_v63 = vpack.c.bf16 %v3193_v11, %v3192_v38 }
 0x1f4   :  { %8844 = vset.pattern.permute.xlu1 %v14582_v4  ;;  %v1982_v40 = vpack.c.bf16 %v1927_v15, %v1926_v61  ;;  %v8968_v61 = vld [vmem:[%s14118_s5 + $0x180] sm:$0xff]  }
 0x1f5   :  { %5911 = vmatmul.mubr.bf16.gmra.mrb[80].mxu1 %v2389_v22  ;;  %3810 = vperm.xlu1 %8844, %v3768_v60   ;;  %v2938_v15 = vld [vmem:[#allocation2 + $0x39] sm:$0xff]  ;;  %v2939_v22 = vld [vmem:[#allocation2 + $0x41] sm:$0xff] }
 0x1f6   :  { %5951 = vmatprep.mubr.bf16.mxu1 %v3254_v23  ;;  %v11785_v16 = vpop.permute.xlu1 %3162  ;;  %5437 = vmatprep.mubr.bf16.mxu0 %v1982_v40  ;;  %v3330_v23 = vld [vmem:[#allocation2 + $0x87] sm:$0xff]  ;;  %v1287_v40 = vld [vmem:[#allocation2 + $0x8f] sm:$0xff]  ;;  %v3195_v11 = vmul.f32 %v14598_v29, %v2939_v22  ;;  %v1672_v22 = vld [vmem:[#allocation2 + $0x98] sm:$0xff] }
 0x1f9   :  { %8846 = vset.pattern.permute.xlu1 %v14591_v52 }
 0x1fa   :  { %3426 = vperm.xlu1 %8846, %v3768_v60  }
 0x1fc   :  { %v11793_v1 = vpop.permute.xlu1 %1448 }
 0x1fd   :  { %14596 = vst [vmem:[#allocation18_spill] sm:$0xff] %v11793_v1  ;;  %5952 = vmatmul.mubr.bf16.vlgmr.msra.gmra.mrb[84].mxu1 %v2870_v39  ;;  %v1542_v32 = vmul.f32 %v3330_v23, %v11793_v1  ;;  %v3717_v23 = vld [vmem:[#allocation2 + $0xa0] sm:$0xff] }
 0x1fe   :  { %6209 = vmatpush1.bf16.msra.mxu1 %v8968_v61  ;;  %5959 = vmatprep.mubr.bf16.mxu1 %v3255_v63  ;;  %v14599_v61 = vld [vmem:[#allocation54_spill] sm:$0xff]  ;;  %v2808_v63 = vld [vmem:[#allocation2 + $0x28] sm:$0xff] }
 0x1ff   :  { %6210 = vmatprep.subr.bf16.mxu1 %v14409_v3  ;;  %3431 = vperm.xlu1 %8846, %v3385_v36   ;;  %v3194_v39 = vmul.f32 %v14599_v61, %v2938_v15  ;;  %v8970_v36 = vld [vmem:[%s14118_s5 + $0x190] sm:$0xff]   ;;  %v2871_v20 = vpack.c.bf16 %v2809_v34, %v2808_v63  ;;  %v14601_v15 = vld [vmem:[#allocation91_spill] sm:$0xff]  ;;  %v8971_v34 = vld [vmem:[%s14118_s5 + $0x198] sm:$0xff]  }
 0x200   :  { %v11802_v60 = vpop.permute.xlu1 %1453 }
 0x201   :  { %14597 = vst [vmem:[#allocation14_spill] sm:$0xff] %v11802_v60  ;;  %v1543_v38 = vmul.f32 %v11802_v60, %v1287_v40  ;;  %v3256_v40 = vpack.c.bf16 %v3195_v11, %v3194_v39  ;;  %v1928_v60 = vmul.f32 %v14601_v15, %v1672_v22  ;;  %v14602_v11 = vld [vmem:[#allocation94_spill] sm:$0xff]  ;;  %v2810_v22 = vld [vmem:[#allocation2 + $0x38] sm:$0xff] }
 0x202   :  { %6211 = vmatpush1.bf16.msra.mxu1 %v8969_v24 }
 0x203   :  { %v1598_v58 = vpack.c.bf16 %v1543_v38, %v1542_v32  ;;  %8847 = vset.pattern.permute.xlu1 %v14582_v4  ;;  %6212 = vmatprep.subr.bf16.mxu1 %v14409_v3  ;;  %v2940_v32 = vld [vmem:[#allocation2 + $0x49] sm:$0xff]  ;;  %v2941_v38 = vld [vmem:[#allocation2 + $0x51] sm:$0xff] }
 0x204   :  { %3825 = vperm.xlu1 %8847, %v3771_v7   ;;  %v3197_v39 = vmul.f32 %v14602_v11, %v2941_v38  ;;  %v14606_v38 = vld [vmem:[#allocation96_spill] sm:$0xff] }
 0x205   :  { %v11816_v1 = vpop.permute.xlu1 %1847  ;;  %5438 = vmatmul.mubr.bf16.gmra.mrb[96].mxu0 %v1598_v58  ;;  %5960 = vmatmul.mubr.bf16.gmra.mrb[88].mxu1 %v2871_v20  ;;  %v14603_v20 = vld [vmem:[#allocation56_spill] sm:$0xff] }
 0x206   :  { %14600 = vst [vmem:[#allocation26_spill] sm:$0xff] %v11816_v1  ;;  %v1929_v24 = vmul.f32 %v3717_v23, %v11816_v1  ;;  %5967 = vmatprep.mubr.bf16.mxu1 %v3256_v40  ;;  %6213 = vmatpush1.bf16.msra.mxu1 %v8970_v36  ;;  %v3196_v58 = vmul.f32 %v14603_v20, %v2940_v32  ;;  %v8972_v40 = vld [vmem:[%s14118_s5 + $0x1a0] sm:$0xff]   ;;  %v8974_v1 = vld [vmem:[%s14118_s5 + $0x1b0] sm:$0xff]  }
 0x207   :  { %6214 = vmatprep.subr.bf16.mxu1 %v14409_v3  ;;  %v2872_v23 = vpack.c.bf16 %v2811_v19, %v2810_v22  ;;  %v2943_v32 = vld [vmem:[#allocation2 + $0x61] sm:$0xff] }
 0x208   :  { %v1983_v63 = vpack.c.bf16 %v1929_v24, %v1928_v60  ;;  %8848 = vset.pattern.permute.xlu1 %v14591_v52  ;;  %v3772_v60 = vld [vmem:[%s14115_s2 + $0x30] sm:$0xff]  ;;  %v3257_v24 = vpack.c.bf16 %v3197_v39, %v3196_v58  ;;  %v8973_v19 = vld [vmem:[%s14118_s5 + $0x1a8] sm:$0xff]   ;;  %v14607_v22 = vld [vmem:[#allocation66_spill] sm:$0xff] }
 0x209   :  { %3441 = vperm.xlu1 %8848, %v3771_v7   ;;  %v2048_v7 = vld [vmem:[#allocation2 + $0x59] sm:$0xff]  ;;  %v2812_v58 = vld [vmem:[#allocation2 + $0x48] sm:$0xff] }
 0x20a   :  { %5445 = vmatprep.mubr.bf16.mxu0 %v1983_v63  ;;  %v11827_v36 = vpop.permute.xlu1 %3172  ;;  %6215 = vmatpush1.bf16.msra.mxu1 %v8971_v34  ;;  %v3199_v63 = vmul.f32 %v14606_v38, %v2943_v32  ;;  %v3198_v39 = vmul.f32 %v14607_v22, %v2048_v7 }
 0x20b   :  { %14604 = vst [vmem:[#allocation27_spill] sm:$0xff] %v11827_v36  ;;  %6216 = vmatprep.subr.bf16.mxu1 %v14409_v3 }
 0x20c   :  { %v3258_v32 = vpack.c.bf16 %v3199_v63, %v3198_v39  ;;  %v8975_v63 = vld [vmem:[%s14118_s5 + $0x1b8] sm:$0xff]   ;;  %v1674_v39 = vld [vmem:[#allocation2 + $0xa8] sm:$0xff] }
 0x20d   :  { %5968 = vmatmul.mubr.bf16.gmra.mrb[92].mxu1 %v2872_v23  ;;  %8849 = vset.pattern.permute.xlu1 %v14582_v4  ;;  %v2873_v23 = vpack.c.bf16 %v11472_v33, %v2812_v58  ;;  %v14609_v58 = vld [vmem:[#allocation100_spill] sm:$0xff] }
 0x20e   :  { %5975 = vmatprep.mubr.bf16.mxu1 %v3257_v24  ;;  %3830 = vperm.xlu1 %8849, %v3772_v60   ;;  %v1288_v24 = vld [vmem:[#allocation2 + $0x97] sm:$0xff] }
 0x20f   :  { %v11837_v34 = vpop.permute.xlu1 %1458  ;;  %6217 = vmatpush1.bf16.msra.mxu1 %v8972_v40  ;;  %v1289_v40 = vld [vmem:[#allocation2 + $0x9f] sm:$0xff] }
 0x210   :  { %14605 = vst [vmem:[#allocation87_spill] sm:$0xff] %v11837_v34  ;;  %6218 = vmatprep.subr.bf16.mxu1 %v14409_v3  ;;  %v1544_v21 = vmul.f32 %v11837_v34, %v1288_v24 }
 0x212   :  { %8851 = vset.pattern.permute.xlu1 %v14591_v52 }
 0x213   :  { %3446 = vperm.xlu1 %8851, %v3772_v60   ;;  %v11847_v15 = vpop.permute.xlu1 %1463  ;;  %6219 = vmatpush1.bf16.msra.mxu1 %v8973_v19  ;;  %v2051_v60 = vld [vmem:[#allocation2 + $0x71] sm:$0xff]  ;;  %v2944_v19 = vld [vmem:[#allocation2 + $0x69] sm:$0xff] }
 0x214   :  { %14608 = vst [vmem:[#allocation53_spill] sm:$0xff] %v11847_v15  ;;  %v1545_v7 = vmul.f32 %v11847_v15, %v1289_v40  ;;  %6220 = vmatprep.subr.bf16.mxu1 %v14409_v3  ;;  %v3200_v24 = vmul.f32 %v14609_v58, %v2944_v19  ;;  %v2815_v40 = vld [vmem:[#allocation2 + $0x60] sm:$0xff]  ;;  %v11864_v15 = vld [vmem:[#allocation2 + $0xb0] sm:$0xff]  ;;  %v11874_v19 = vld [vmem:[#allocation2 + $0x58] sm:$0xff] }
 0x215   :  { %5976 = vmatmul.mubr.bf16.gmra.mrb[96].mxu1 %v2873_v23  ;;  %v2874_v59 = vpack.c.bf16 %v2815_v40, %v11874_v19  ;;  %v2946_v58 = vld [vmem:[#allocation2 + $0x79] sm:$0xff]  ;;  %v14613_v40 = vld [vmem:[#allocation103_spill] sm:$0xff] }
 0x216   :  { %5983 = vmatprep.mubr.bf16.mxu1 %v3258_v32  ;;  %v1599_v33 = vpack.c.bf16 %v1545_v7, %v1544_v21  ;;  %v14611_v21 = vld [vmem:[#allocation93_spill] sm:$0xff]  ;;  %v14612_v32 = vld [vmem:[#allocation67_spill] sm:$0xff] }
 0x217   :  { %3451 = vperm.xlu1 %8851, %v3389_v25   ;;  %6221 = vmatpush1.bf16.msra.mxu1 %v8974_v1  ;;  %v1930_v23 = vmul.f32 %v14611_v21, %v1674_v39  ;;  %v3775_v1 = vld [vmem:[%s14115_s2 + $0x48] sm:$0xff]  ;;  %v3201_v7 = vmul.f32 %v14612_v32, %v2051_v60  ;;  %v8976_v39 = vld [vmem:[%s14118_s5 + $0x1c0] sm:$0xff]   ;;  %v11909_v32 = vld [vmem:[#allocation2 + $0x78] sm:$0xff] }
 0x218   :  { %v11862_v34 = vpop.permute.xlu1 %1857  ;;  %5446 = vmatmul.mubr.bf16.gmra.mrb[100].mxu0 %v1599_v33  ;;  %6222 = vmatprep.subr.bf16.mxu1 %v14409_v3 }
 0x219   :  { %14610 = vst [vmem:[#allocation92_spill] sm:$0xff] %v11862_v34  ;;  %v1931_v25 = vmul.f32 %v11862_v34, %v11864_v15  ;;  %v3259_v21 = vpack.c.bf16 %v3201_v7, %v3200_v24  ;;  %v2947_v34 = vld [vmem:[#allocation2 + $0x81] sm:$0xff]  ;;  %v14614_v24 = vld [vmem:[#allocation69_spill] sm:$0xff] }
 0x21b   :  { %8852 = vset.pattern.permute.xlu1 %v14582_v4  ;;  %v1984_v33 = vpack.c.bf16 %v1931_v25, %v1930_v23  ;;  %6223 = vmatpush1.bf16.msra.mxu1 %v8975_v63  ;;  %v8977_v63 = vld [vmem:[%s14118_s5 + $0x1c8] sm:$0xff]   ;;  %v3202_v23 = vmul.f32 %v14613_v40, %v2946_v58  ;;  %v8978_v58 = vld [vmem:[%s14118_s5 + $0x1d0] sm:$0xff]   ;;  %v2819_v40 = vld [vmem:[#allocation2 + $0x80] sm:$0xff] }
 0x21c   :  { %3845 = vperm.xlu1 %8852, %v3775_v1   ;;  %6224 = vmatprep.subr.bf16.mxu1 %v14409_v3  ;;  %v2816_v25 = vld [vmem:[#allocation2 + $0x68] sm:$0xff]  ;;  %v2876_v54 = vpack.c.bf16 %v2819_v40, %v11909_v32 }
 0x21d   :  { %5984 = vmatmul.mubr.bf16.gmra.mrb[100].mxu1 %v2874_v59  ;;  %5453 = vmatprep.mubr.bf16.mxu0 %v1984_v33  ;;  %v3203_v59 = vmul.f32 %v14614_v24, %v2947_v34  ;;  %v3776_v33 = vld [vmem:[%s14115_s2 + $0x50] sm:$0xff]  ;;  %v2951_v40 = vld [vmem:[#allocation2 + $0xa1] sm:$0xff] }
 0x21e   :  { %5991 = vmatprep.mubr.bf16.mxu1 %v3259_v21  ;;  %v11882_v60 = vpop.permute.xlu1 %3182  ;;  %v2875_v21 = vpack.c.bf16 %v11658_v8, %v2816_v25  ;;  %v2948_v34 = vld [vmem:[#allocation2 + $0x89] sm:$0xff]  ;;  %v2949_v8 = vld [vmem:[#allocation2 + $0x91] sm:$0xff] }
 0x21f   :  { %6225 = vmatpush1.bf16.msra.mxu1 %v8976_v39  ;;  %v3260_v39 = vpack.c.bf16 %v3203_v59, %v3202_v23  ;;  %v1291_v24 = vld [vmem:[#allocation2 + $0xaf] sm:$0xff] }
 0x220   :  { %8854 = vset.pattern.permute.xlu1 %v14591_v52  ;;  %6226 = vmatprep.subr.bf16.mxu1 %v14409_v3  ;;  %v14616_v59 = vld [vmem:[#allocation71_spill] sm:$0xff] }
 0x221   :  { %3461 = vperm.xlu1 %8854, %v3775_v1   ;;  %v3334_v1 = vld [vmem:[#allocation2 + $0xa7] sm:$0xff] }
 0x223   :  { %v11892_v7 = vpop.permute.xlu1 %1468  ;;  %6227 = vmatpush1.bf16.msra.mxu1 %v8977_v63  ;;  %v3204_v63 = vmul.f32 %v11266_v44, %v2948_v34 }
 0x224   :  { %14615 = vst [vmem:[#allocation54_spill] sm:$0xff] %v11892_v7  ;;  %6228 = vmatprep.subr.bf16.mxu1 %v14409_v3  ;;  %v1546_v47 = vmul.f32 %v3334_v1, %v11892_v7  ;;  %v2953_v7 = vld [vmem:[#allocation2 + $0xb1] sm:$0xff] }
 0x225   :  { %5992 = vmatmul.mubr.bf16.gmra.mrb[104].mxu1 %v2875_v21  ;;  %8855 = vset.pattern.permute.xlu1 %v14582_v4  ;;  %v3205_v21 = vmul.f32 %v14616_v59, %v2949_v8 }
 0x226   :  { %5999 = vmatprep.mubr.bf16.mxu1 %v3260_v39  ;;  %3850 = vperm.xlu1 %8855, %v3776_v33  }
 0x227   :  { %v11902_v25 = vpop.permute.xlu1 %1473  ;;  %6229 = vmatpush1.bf16.msra.mxu1 %v8978_v58  ;;  %v1676_v58 = vld [vmem:[#allocation2 + $0xb8] sm:$0xff]  ;;  %v3261_v34 = vpack.c.bf16 %v3205_v21, %v3204_v63 }
 0x228   :  { %v1547_v23 = vmul.f32 %v11902_v25, %v1291_v24  ;;  %6230 = vmatprep.subr.bf16.mxu1 %v14409_v3  ;;  %v3393_v24 = vld [vmem:[%s14115_s2 + $0x58] sm:$0xff]  ;;  %v1932_v8 = vmul.f32 %v11045_v56, %v1676_v58 }
 0x229   :  { %v2443_v21 = vld [vmem:[#allocation2 + $0xbf] sm:$0xff]  ;;  %v1292_v56 = vld [vmem:[#allocation2 + $0xb7] sm:$0xff] }
 0x22a   :  { %8856 = vset.pattern.permute.xlu1 %v14591_v52  ;;  %v1600_v39 = vpack.c.bf16 %v1547_v23, %v1546_v47  ;;  %v8979_v47 = vld [vmem:[%s14118_s5 + $0x1d8] sm:$0xff]  }
 0x22b   :  { %3466 = vperm.xlu1 %8856, %v3776_v33   ;;  %v2950_v33 = vld [vmem:[#allocation2 + $0x99] sm:$0xff]  ;;  %6231 = vmatpush1.bf16.msra.mxu1 %v8979_v47 }
 0x22c   :  { %v11913_v44 = vpop.permute.xlu1 %1867  ;;  %5454 = vmatmul.mubr.bf16.gmra.mrb[104].mxu0 %v1600_v39  ;;  %v3206_v23 = vmul.f32 %v11395_v37, %v2950_v33  ;;  %6232 = vmatprep.subr.bf16.mxu1 %v14409_v3 }
 0x22d   :  { %14617 = vst [vmem:[#allocation94_spill] sm:$0xff] %v11913_v44  ;;  %6000 = vmatmul.mubr.bf16.gmra.mrb[108].mxu1 %v2876_v54  ;;  %v1933_v1 = vmul.f32 %v3721_v30, %v11913_v44  ;;  %v3779_v30 = vld [vmem:[%s14115_s2 + $0x68] sm:$0xff]  ;;  %v14619_v54 = vld [vmem:[#allocation73_spill] sm:$0xff] }
 0x22e   :  { %6007 = vmatprep.mubr.bf16.mxu1 %v3261_v34  ;;  %v3207_v58 = vmul.f32 %v14619_v54, %v2951_v40  ;;  %v1549_v34 = vmul.f32 %v2443_v21, %v11006_v41  ;;  %v2952_v44 = vld [vmem:[#allocation2 + $0xa9] sm:$0xff]  ;;  %v2823_v41 = vld [vmem:[#allocation2 + $0xa0] sm:$0xff] }
 0x22f   :  { %3471 = vperm.xlu1 %8856, %v3393_v24   ;;  %v1985_v63 = vpack.c.bf16 %v1933_v1, %v1932_v8  ;;  %v2820_v24 = vld [vmem:[#allocation2 + $0x88] sm:$0xff]  ;;  %v3208_v40 = vmul.f32 %v11487_v17, %v2952_v44  ;;  %v11950_v44 = vld [vmem:[%s14115_s2 + $0x70] sm:$0xff] }
 0x230   :  { %v2877_v1 = vpack.c.bf16 %v11775_v57, %v2820_v24  ;;  %v3262_v47 = vpack.c.bf16 %v3207_v58, %v3206_v23  ;;  %v14621_v21 = vld [vmem:[#allocation75_spill] sm:$0xff]  ;;  %v2822_v24 = vld [vmem:[#allocation2 + $0x98] sm:$0xff]  ;;  %v11942_v58 = vld [vmem:[#allocation2 + $0xd0] sm:$0xff]  ;;  %14623 = vst [vmem:[#allocation71_spill] sm:$0xff] %v11950_v44 }
 0x231   :  { %v11925_v39 = vpop.permute.xlu1 %1478  ;;  %5461 = vmatprep.mubr.bf16.mxu0 %v1985_v63  ;;  %v3209_v57 = vmul.f32 %v14621_v21, %v2953_v7 }
 0x232   :  { %14618 = vst [vmem:[#allocation56_spill] sm:$0xff] %v11925_v39  ;;  %v1548_v8 = vmul.f32 %v11925_v39, %v1292_v56  ;;  %v3722_v56 = vld [vmem:[#allocation2 + $0xc8] sm:$0xff] }
 0x233   :  { %8857 = vset.pattern.permute.xlu1 %v14582_v4 }
 0x234   :  { %3865 = vperm.xlu1 %8857, %v3779_v30   ;;  %v1601_v33 = vpack.c.bf16 %v1549_v34, %v1548_v8  ;;  %v2878_v34 = vpack.c.bf16 %v2823_v41, %v2822_v24  ;;  %v9543_v24 = vld [vmem:[#allocation2 + $0xc7] sm:$0xff] }
 0x235   :  { %6008 = vmatmul.mubr.bf16.gmra.mrb[112].mxu1 %v2877_v1 }
 0x236   :  { %6015 = vmatprep.mubr.bf16.mxu1 %v3262_v47  ;;  %v11935_v63 = vpop.permute.xlu1 %1872  ;;  %5462 = vmatmul.mubr.bf16.gmra.mrb[108].mxu0 %v1601_v33  ;;  %v8980_v47 = vld [vmem:[%s14118_s5 + $0x1e0] sm:$0xff]  }
 0x237   :  { %14620 = vst [vmem:[#allocation96_spill] sm:$0xff] %v11935_v63  ;;  %v1934_v8 = vmul.f32 %v3722_v56, %v11935_v63  ;;  %v2954_v33 = vld [vmem:[#allocation2 + $0xb9] sm:$0xff]  ;;  %v1295_v56 = vld [vmem:[#allocation2 + $0xcf] sm:$0xff]  ;;  %6233 = vmatpush1.bf16.msra.mxu1 %v8980_v47 }
 0x238   :  { %8858 = vset.pattern.permute.xlu1 %v14591_v52  ;;  %v14625_v63 = vld [vmem:[#allocation102_spill] sm:$0xff]  ;;  %6234 = vmatprep.subr.bf16.mxu1 %v14409_v3 }
 0x239   :  { %3481 = vperm.xlu1 %8858, %v3779_v30   ;;  %v3263_v30 = vpack.c.bf16 %v3209_v57, %v3208_v40  ;;  %v1550_v40 = vmul.f32 %v9543_v24, %v14625_v63  ;;  %v3210_v57 = vmul.f32 %v11596_v53, %v2954_v33  ;;  %v11969_v33 = vld [vmem:[#allocation2 + $0xe0] sm:$0xff]  ;;  %v3783_v63 = vld [vmem:[%s14115_s2 + $0x88] sm:$0xff] }
 0x23a   :  { %v11940_v23 = vpop.permute.xlu1 %1877 }
 0x23b   :  { %14622 = vst [vmem:[#allocation66_spill] sm:$0xff] %v11940_v23  ;;  %v1935_v1 = vmul.f32 %v11940_v23, %v11942_v58  ;;  %v2824_v23 = vld [vmem:[#allocation2 + $0xa8] sm:$0xff] }
 0x23c   :  { %v2879_v21 = vpack.c.bf16 %v11864_v15, %v2824_v23  ;;  %v2956_v15 = vld [vmem:[#allocation2 + $0xc9] sm:$0xff] }
 0x23d   :  { %6016 = vmatmul.mubr.bf16.gmra.mrb[116].mxu1 %v2878_v34  ;;  %8859 = vset.pattern.permute.xlu1 %v14582_v4  ;;  %v1986_v7 = vpack.c.bf16 %v1935_v1, %v1934_v8  ;;  %v9544_v8 = vld [vmem:[#allocation2 + $0xc1] sm:$0xff]  ;;  %v14626_v1 = vld [vmem:[#allocation77_spill] sm:$0xff] }
 0x23e   :  { %6023 = vmatprep.mubr.bf16.mxu1 %v3263_v30  ;;  %3870 = vperm.xlu1 %8859, %v11950_v44   ;;  %v3211_v30 = vmul.f32 %v9544_v8, %v14626_v1 }
 0x23f   :  { %v11957_v41 = vpop.permute.xlu1 %1493  ;;  %5469 = vmatprep.mubr.bf16.mxu0 %v1986_v7  ;;  %v1680_v7 = vld [vmem:[#allocation2 + $0xd8] sm:$0xff] }
 0x240   :  { %14624 = vst [vmem:[#allocation73_spill] sm:$0xff] %v11957_v41  ;;  %v1551_v34 = vmul.f32 %v11957_v41, %v1295_v56  ;;  %v3264_v47 = vpack.c.bf16 %v3211_v30, %v3210_v57  ;;  %v3397_v56 = vld [vmem:[%s14115_s2 + $0x78] sm:$0xff]  ;;  %v1936_v8 = vmul.f32 %v11076_v0, %v1680_v7  ;;  %v3212_v57 = vmul.f32 %v11681_v10, %v2956_v15 }
 0x241   :  { %v9545_v0 = vld [vmem:[#allocation2 + $0xd1] sm:$0xff]  ;;  %v9546_v41 = vld [vmem:[#allocation2 + $0xdf] sm:$0xff] }
 0x242   :  { %8861 = vset.pattern.permute.xlu1 %v14591_v52  ;;  %v1602_v39 = vpack.c.bf16 %v1551_v34, %v1550_v40  ;;  %v2827_v34 = vld [vmem:[#allocation2 + $0xc0] sm:$0xff] }
 0x243   :  { %3486 = vperm.xlu1 %8861, %v11950_v44  }
 0x244   :  { %v11967_v24 = vpop.permute.xlu1 %1887  ;;  %5470 = vmatmul.mubr.bf16.gmra.mrb[112].mxu0 %v1602_v39  ;;  %v1296_v39 = vld [vmem:[#allocation2 + $0xd7] sm:$0xff] }
 0x245   :  { %14627 = vst [vmem:[#allocation77_spill] sm:$0xff] %v11967_v24  ;;  %6024 = vmatmul.mubr.bf16.gmra.mrb[120].mxu1 %v2879_v21  ;;  %v1937_v40 = vmul.f32 %v11967_v24, %v11969_v33  ;;  %v14629_v21 = vld [vmem:[#allocation79_spill] sm:$0xff]  ;;  %v2826_v24 = vld [vmem:[#allocation2 + $0xb8] sm:$0xff] }
 0x246   :  { %6031 = vmatprep.mubr.bf16.mxu1 %v3264_v47  ;;  %v3213_v7 = vmul.f32 %v9545_v0, %v14629_v21  ;;  %v1553_v47 = vmul.f32 %v9546_v41, %v11142_v45  ;;  %v2958_v0 = vld [vmem:[#allocation2 + $0xd9] sm:$0xff]  ;;  %v9547_v41 = vld [vmem:[#allocation2 + $0xe1] sm:$0xff] }
 0x247   :  { %3491 = vperm.xlu1 %8861, %v3397_v56   ;;  %v1987_v23 = vpack.c.bf16 %v1937_v40, %v1936_v8  ;;  %v2880_v8 = vpack.c.bf16 %v2827_v34, %v2826_v24  ;;  %v3214_v45 = vmul.f32 %v11750_v13, %v2958_v0  ;;  %v14631_v24 = vld [vmem:[#allocation81_spill] sm:$0xff]  ;;  %v11996_v34 = vld [vmem:[#allocation2 + $0xe8] sm:$0xff] }
 0x248   :  { %v3265_v40 = vpack.c.bf16 %v3213_v7, %v3212_v57  ;;  %v3215_v57 = vmul.f32 %v9547_v41, %v14631_v24  ;;  %v2960_v0 = vld [vmem:[#allocation2 + $0xe9] sm:$0xff] }
 0x249   :  { %v11978_v30 = vpop.permute.xlu1 %1498  ;;  %5477 = vmatprep.mubr.bf16.mxu0 %v1987_v23  ;;  %v8981_v23 = vld [vmem:[%s14118_s5 + $0x1e8] sm:$0xff]   ;;  %v3216_v24 = vmul.f32 %v11785_v16, %v2960_v0 }
 0x24a   :  { %14628 = vst [vmem:[#allocation135_spill] sm:$0xff] %v11978_v30  ;;  %v1552_v56 = vmul.f32 %v11978_v30, %v1296_v39  ;;  %6235 = vmatpush1.bf16.msra.mxu1 %v8981_v23  ;;  %v2828_v39 = vld [vmem:[#allocation2 + $0xc8] sm:$0xff]  ;;  %v2830_v30 = vld [vmem:[#allocation2 + $0xd8] sm:$0xff] }
 0x24b   :  { %8862 = vset.pattern.permute.xlu1 %v14582_v4  ;;  %6236 = vmatprep.subr.bf16.mxu1 %v14409_v3  ;;  %v1299_v41 = vld [vmem:[#allocation2 + $0xef] sm:$0xff] }
 0x24c   :  { %3885 = vperm.xlu1 %8862, %v3783_v63   ;;  %v1603_v15 = vpack.c.bf16 %v1553_v47, %v1552_v56  ;;  %v1683_v47 = vld [vmem:[#allocation2 + $0xf0] sm:$0xff]  ;;  %v2881_v56 = vpack.c.bf16 %v11942_v58, %v2828_v39  ;;  %v9548_v39 = vld [vmem:[#allocation2 + $0xe7] sm:$0xff] }
 0x24d   :  { %6032 = vmatmul.mubr.bf16.gmra.mrb[124].mxu1 %v2880_v8 }
 0x24e   :  { %6039 = vmatprep.mubr.bf16.mxu1 %v3265_v40  ;;  %v11990_v44 = vpop.permute.xlu1 %1892  ;;  %5478 = vmatmul.mubr.bf16.gmra.mrb[116].mxu0 %v1603_v15  ;;  %v3266_v15 = vpack.c.bf16 %v3215_v57, %v3214_v45  ;;  %v9549_v45 = vld [vmem:[#allocation2 + $0xf1] sm:$0xff]  ;;  %v14633_v57 = vld [vmem:[#allocation95_spill] sm:$0xff] }
 0x24f   :  { %14630 = vst [vmem:[#allocation136_spill] sm:$0xff] %v11990_v44  ;;  %v1938_v8 = vmul.f32 %v11996_v34, %v11990_v44  ;;  %v1554_v44 = vmul.f32 %v9548_v39, %v11167_v9  ;;  %v3401_v9 = vld [vmem:[%s14115_s2 + $0x98] sm:$0xff]  ;;  %v1686_v39 = vld [vmem:[#allocation2 + $0x108] sm:$0xff] }
 0x250   :  { %8864 = vset.pattern.permute.xlu1 %v14591_v52 }
 0x251   :  { %3501 = vperm.xlu1 %8864, %v3783_v63   ;;  %v12007_v63 = vld [vmem:[%s14115_s2 + $0x90] sm:$0xff] }
 0x252   :  { %v11998_v7 = vpop.permute.xlu1 %1897 }
 0x253   :  { %14632 = vst [vmem:[#allocation137_spill] sm:$0xff] %v11998_v7  ;;  %v1939_v40 = vmul.f32 %v11998_v7, %v1683_v47 }
 0x255   :  { %6040 = vmatmul.mubr.bf16.gmra.mrb[0].mxu1 %v2881_v56  ;;  %8865 = vset.pattern.permute.xlu1 %v14582_v4  ;;  %v1988_v23 = vpack.c.bf16 %v1939_v40, %v1938_v8  ;;  %v3217_v56 = vmul.f32 %v9549_v45, %v14633_v57  ;;  %v2882_v40 = vpack.c.bf16 %v11969_v33, %v2830_v30  ;;  %v2962_v33 = vld [vmem:[#allocation2 + $0xf9] sm:$0xff] }
 0x256   :  { %6047 = vmatprep.mubr.bf16.mxu1 %v3266_v15  ;;  %3890 = vperm.xlu1 %8865, %v12007_v63   ;;  %v1684_v15 = vld [vmem:[#allocation2 + $0xf8] sm:$0xff]  ;;  %v14634_v45 = vld [vmem:[#allocation98_spill] sm:$0xff] }
 0x257   :  { %v12011_v58 = vpop.permute.xlu1 %1513  ;;  %5485 = vmatprep.mubr.bf16.mxu0 %v1988_v23  ;;  %v3729_v23 = vld [vmem:[#allocation2 + $0x100] sm:$0xff]  ;;  %v3267_v13 = vpack.c.bf16 %v3217_v56, %v3216_v24  ;;  %v1940_v0 = vmul.f32 %v11215_v27, %v1684_v15  ;;  %v1687_v24 = vld [vmem:[#allocation2 + $0x110] sm:$0xff]  ;;  %v14635_v15 = vld [vmem:[#allocation97_spill] sm:$0xff] }
 0x258   :  { %v1555_v7 = vmul.f32 %v12011_v58, %v1299_v41  ;;  %v1943_v27 = vmul.f32 %v14634_v45, %v1687_v24 }
 0x25a   :  { %8866 = vset.pattern.permute.xlu1 %v14591_v52  ;;  %v1604_v8 = vpack.c.bf16 %v1555_v7, %v1554_v44  ;;  %v8982_v44 = vld [vmem:[%s14118_s5 + $0x1f0] sm:$0xff]   ;;  %v3218_v7 = vmul.f32 %v11827_v36, %v2962_v33  ;;  %v14636_v33 = vld [vmem:[#allocation58_spill] sm:$0xff] }
 0x25b   :  { %3506 = vperm.xlu1 %8866, %v12007_v63   ;;  %6237 = vmatpush1.bf16.msra.mxu1 %v8982_v44  ;;  %v1942_v24 = vmul.f32 %v14636_v33, %v1686_v39  ;;  %v14638_v39 = vld [vmem:[#allocation99_spill] sm:$0xff]  ;;  %v14641_v33 = vld [vmem:[#allocation60_spill] sm:$0xff] }
 0x25c   :  { %v12020_v21 = vpop.permute.xlu1 %1907  ;;  %5486 = vmatmul.mubr.bf16.gmra.mrb[120].mxu0 %v1604_v8  ;;  %6238 = vmatprep.subr.bf16.mxu1 %v14409_v3  ;;  %v1300_v8 = vld [vmem:[#allocation2 + $0xf7] sm:$0xff]  ;;  %v2883_v3 = vpack.c.bf16 %v1683_v47, %v11996_v34  ;;  %v1689_v34 = vld [vmem:[#allocation2 + $0x120] sm:$0xff] }
 0x25d   :  { %6048 = vmatmul.mubr.bf16.gmra.mrb[4].mxu1 %v2882_v40  ;;  %v1941_v41 = vmul.f32 %v3729_v23, %v12020_v21  ;;  %v9550_v40 = vld [vmem:[#allocation2 + $0x101] sm:$0xff]  ;;  %v1990_v36 = vpack.c.bf16 %v1943_v27, %v1942_v24  ;;  %v2838_v47 = vld [vmem:[#allocation2 + $0x118] sm:$0xff] }
 0x25e   :  { %6055 = vmatprep.mubr.bf16.mxu1 %v3267_v13  ;;  %v3787_v13 = vld [vmem:[%s14115_s2 + $0xa8] sm:$0xff]  ;;  %v1944_v24 = vmul.f32 %v2838_v47, %v14641_v33 }
 0x25f   :  { %3511 = vperm.xlu1 %8866, %v3401_v9   ;;  %v1989_v30 = vpack.c.bf16 %v1941_v41, %v1940_v0  ;;  %v3219_v9 = vmul.f32 %v9550_v40, %v14635_v15  ;;  %v9551_v0 = vld [vmem:[#allocation2 + $0xff] sm:$0xff]  ;;  %v2964_v40 = vld [vmem:[#allocation2 + $0x109] sm:$0xff] }
 0x260   :  { %v1557_v41 = vmul.f32 %v9551_v0, %v11248_v28  ;;  %v3220_v28 = vmul.f32 %v11882_v60, %v2964_v40  ;;  %v3730_v33 = vld [vmem:[#allocation2 + $0x108] sm:$0xff] }
 0x261   :  { %v12033_v56 = vpop.permute.xlu1 %1518  ;;  %5493 = vmatprep.mubr.bf16.mxu0 %v1989_v30  ;;  %v3268_v45 = vpack.c.bf16 %v3219_v9, %v3218_v7  ;;  %v14639_v9 = vld [vmem:[#allocation101_spill] sm:$0xff] }
 0x262   :  { %v1556_v44 = vmul.f32 %v12033_v56, %v1300_v8  ;;  %v9552_v8 = vld [vmem:[#allocation2 + $0x111] sm:$0xff]  ;;  %v1945_v0 = vmul.f32 %v14639_v9, %v1689_v34 }
 0x263   :  { %8867 = vset.pattern.permute.xlu1 %v14582_v4  ;;  %v3221_v7 = vmul.f32 %v9552_v8, %v14638_v39  ;;  %v2837_v8 = vld [vmem:[#allocation2 + $0x110] sm:$0xff] }
 0x264   :  { %3905 = vperm.xlu1 %8867, %v3787_v13   ;;  %v1605_v30 = vpack.c.bf16 %v1557_v41, %v1556_v44  ;;  %v2834_v41 = vld [vmem:[#allocation2 + $0xf8] sm:$0xff]  ;;  %v1691_v9 = vld [vmem:[#allocation2 + $0x130] sm:$0xff] }
 0x265   :  { %6056 = vmatmul.mubr.bf16.gmra.mrb[8].mxu1 %v2883_v3  ;;  %v2884_v44 = vpack.c.bf16 %v3729_v23, %v2834_v41  ;;  %v3269_v3 = vpack.c.bf16 %v3221_v7, %v3220_v28  ;;  %v1991_v23 = vpack.c.bf16 %v1945_v0, %v1944_v24  ;;  %v9553_v28 = vld [vmem:[#allocation2 + $0x119] sm:$0xff]  ;;  %v3734_v41 = vld [vmem:[#allocation2 + $0x128] sm:$0xff]  ;;  %v2885_v0 = vpack.c.bf16 %v2837_v8, %v3730_v33 }
 0x266   :  { %6063 = vmatprep.mubr.bf16.mxu1 %v3268_v45  ;;  %v12044_v57 = vpop.permute.xlu1 %3800  ;;  %5494 = vmatmul.mubr.bf16.gmra.mrb[124].mxu0 %v1605_v30  ;;  %v4117_v45 = vld [vmem:[#allocation2 + $0x121] sm:$0xff]  ;;  %v14642_v30 = vpack.c.bf16 %v11520_v2, %v11533_v5  ;;  %v3222_v34 = vmul.f32 %v9553_v28, %v14592_v31  ;;  %v3405_v31 = vld [vmem:[%s14115_s2 + $0xb8] sm:$0xff] }
 0x267   :  { %14637 = vst [vmem:[#allocation98_spill] sm:$0xff] %v12044_v57  ;;  %5501 = vmatprep.mubr.bf16.mxu0 %v1990_v36  ;;  %v12055_v36 = vld [vmem:[%s14115_s2 + $0xb0] sm:$0xff]  ;;  %v3223_v7 = vmul.f32 %v4117_v45, %v14594_v62  ;;  %v14646_v24 = vld [vmem:[#allocation62_spill] sm:$0xff] }
 0x268   :  { %8868 = vset.pattern.permute.xlu1 %v14591_v52  ;;  %v1946_v62 = vmul.f32 %v3734_v41, %v14646_v24  ;;  %v9554_v8 = vld [vmem:[#allocation2 + $0x140] sm:$0xff] }
 0x269   :  { %3521 = vperm.xlu1 %8868, %v3787_v13   ;;  %v8983_v13 = vld [vmem:[%s14118_s5 + $0x1f8] sm:$0xff]   ;;  %v3270_v2 = vpack.c.bf16 %v3223_v7, %v3222_v34  ;;  %v3791_v34 = vld [vmem:[%s14115_s2 + $0xc8] sm:$0xff]  ;;  %v14649_v7 = vld [vmem:[#allocation116_spill] sm:$0xff] }
 0x26a   :  { %v12050_v27 = vpop.permute.xlu1 %3805  ;;  %6239 = vmatpush1.bf16.msra.mxu1 %v8983_v13  ;;  %v14647_v13 = vpack.c.bf16 %v11537_v48, %v11554_v12  ;;  %v2970_v48 = vld [vmem:[#allocation2 + $0x139] sm:$0xff]  ;;  %v14651_v12 = vpack.c.bf16 %v11516_v46, %v11529_v35  ;;  %v9555_v24 = vld [vmem:[#allocation2 + $0x141] sm:$0xff] }
 0x26b   :  { %14640 = vst [vmem:[#allocation97_spill] sm:$0xff] %v12050_v27  ;;  %v14653_v35 = vld [vmem:[#allocation127_spill] sm:$0xff] }
 0x26d   :  { %6064 = vmatmul.mubr.bf16.gmra.mrb[12].mxu1 %v2884_v44  ;;  %8869 = vset.pattern.permute.xlu1 %v14582_v4  ;;  %v14644_v44 = vld [vmem:[#allocation105_spill] sm:$0xff] }
 0x26e   :  { %6071 = vmatprep.mubr.bf16.mxu1 %v3269_v3  ;;  %3910 = vperm.xlu1 %8869, %v12055_v36   ;;  %v1947_v3 = vmul.f32 %v14644_v44, %v1691_v9  ;;  %v1949_v9 = vmul.f32 %v9554_v8, %v14649_v7 }
 0x26f   :  { %5502 = vmatmul.mubr.bf16.gmra.mrb[128].mxu0 %v14642_v30  ;;  %v12066_v40 = vpop.permute.xlu1 %3421  ;;  %v3736_v30 = vld [vmem:[#allocation2 + $0x138] sm:$0xff] }
 0x270   :  { %14643 = vst [vmem:[#allocation58_spill] sm:$0xff] %v12066_v40  ;;  %5509 = vmatprep.mubr.bf16.mxu0 %v1991_v23  ;;  %v1992_v45 = vpack.c.bf16 %v1947_v3, %v1946_v62  ;;  %v3733_v23 = vld [vmem:[#allocation2 + $0x120] sm:$0xff]  ;;  %v14650_v3 = vld [vmem:[#allocation64_spill] sm:$0xff] }
 0x271   :  { %v2886_v44 = vpack.c.bf16 %v3733_v23, %v2838_v47  ;;  %v1948_v33 = vmul.f32 %v3736_v30, %v14650_v3  ;;  %v3227_v47 = vmul.f32 %v9555_v24, %v14598_v29  ;;  %v3735_v62 = vld [vmem:[#allocation2 + $0x130] sm:$0xff]  ;;  %v14654_v29 = vld [vmem:[#allocation82_spill] sm:$0xff] }
 0x272   :  { %8871 = vset.pattern.permute.xlu1 %v14591_v52  ;;  %v2887_v23 = vpack.c.bf16 %v3735_v62, %v3734_v41  ;;  %v14655_v41 = vpack.c.bf16 %v11571_v50, %v11587_v26  ;;  %v2974_v62 = vld [vmem:[#allocation2 + $0x159] sm:$0xff] }
 0x273   :  { %3526 = vperm.xlu1 %8871, %v12055_v36  }
 0x274   :  { %v12073_v5 = vpop.permute.xlu1 %3810 }
 0x275   :  { %14645 = vst [vmem:[#allocation99_spill] sm:$0xff] %v12073_v5  ;;  %6072 = vmatmul.mubr.bf16.gmra.mrb[16].mxu1 %v2885_v0 }
 0x276   :  { %6079 = vmatprep.mubr.bf16.mxu1 %v3270_v2  ;;  %v1993_v2 = vpack.c.bf16 %v1949_v9, %v1948_v33  ;;  %v2843_v33 = vld [vmem:[#allocation2 + $0x140] sm:$0xff] }
 0x277   :  { %3531 = vperm.xlu1 %8871, %v3405_v31   ;;  %5510 = vmatmul.mubr.bf16.gmra.mrb[132].mxu0 %v14647_v13  ;;  %v14652_v31 = vpack.c.bf16 %v11562_v6, %v11578_v51  ;;  %v1695_v13 = vld [vmem:[#allocation2 + $0x150] sm:$0xff]  ;;  %v9556_v51 = vld [vmem:[#allocation2 + $0x148] sm:$0xff]  ;;  %v2888_v24 = vpack.c.bf16 %v2843_v33, %v3736_v30 }
 0x278   :  { %5517 = vmatprep.mubr.bf16.mxu0 %v1992_v45  ;;  %v3226_v45 = vmul.f32 %v14599_v61, %v2970_v48  ;;  %v1951_v46 = vmul.f32 %v14653_v35, %v1695_v13  ;;  %v12107_v6 = vld [vmem:[%s14115_s2 + $0xd0] sm:$0xff]  ;;  %v1950_v7 = vmul.f32 %v9556_v51, %v14654_v29  ;;  %v9560_v13 = vld [vmem:[#allocation2 + $0x60] sm:$0xff] }
 0x279   :  { %v12082_v28 = vpop.permute.xlu1 %3426  ;;  %v9561_v51 = vld [vmem:[#allocation2 + $0x161] sm:$0xff] }
 0x27a   :  { %14648 = vst [vmem:[#allocation101_spill] sm:$0xff] %v12082_v28  ;;  %v3272_v9 = vpack.c.bf16 %v3227_v47, %v3226_v45  ;;  %v1994_v61 = vpack.c.bf16 %v1951_v46, %v1950_v7  ;;  %v9559_v47 = vld [vmem:[#allocation2 + $0x158] sm:$0xff]  ;;  %v3231_v29 = vmul.f32 %v9561_v51, %v14606_v38  ;;  %v3739_v7 = vld [vmem:[#allocation2 + $0x150] sm:$0xff]  ;;  %v14666_v51 = vld [vmem:[#allocation67_spill] sm:$0xff] }
 0x27b   :  { %8872 = vset.pattern.permute.xlu1 %v14582_v4  ;;  %v1952_v50 = vmul.f32 %v9559_v47, %v14537_v42  ;;  %v12126_v45 = vld [vmem:[#allocation2 + $0x158] sm:$0xff] }
 0x27c   :  { %3925 = vperm.xlu1 %8872, %v3791_v34  }
 0x27d   :  { %6080 = vmatmul.mubr.bf16.gmra.mrb[20].mxu1 %v2886_v44  ;;  %v9557_v44 = vld [vmem:[#allocation2 + $0x151] sm:$0xff] }
 0x27e   :  { %6087 = vmatprep.mubr.bf16.mxu1 %v14651_v12  ;;  %v12093_v0 = vpop.permute.xlu1 %3431  ;;  %v3229_v3 = vmul.f32 %v9557_v44, %v14602_v11  ;;  %v9558_v12 = vld [vmem:[#allocation2 + $0x160] sm:$0xff]  ;;  %v3409_v11 = vld [vmem:[%s14115_s2 + $0xd8] sm:$0xff]  ;;  %v3795_v44 = vld [vmem:[%s14115_s2 + $0xe8] sm:$0xff] }
 0x27f   :  { %5518 = vmatmul.mubr.bf16.gmra.mrb[136].mxu0 %v14652_v31 }
 0x280   :  { %8874 = vset.pattern.permute.xlu1 %v14591_v52  ;;  %5525 = vmatprep.mubr.bf16.mxu0 %v1993_v2  ;;  %v1953_v2 = vmul.f32 %v9558_v12, %v11567_v49 }
 0x281   :  { %3541 = vperm.xlu1 %8874, %v3791_v34   ;;  %v2972_v34 = vld [vmem:[#allocation2 + $0x149] sm:$0xff] }
 0x282   :  { %v3228_v31 = vmul.f32 %v14603_v20, %v2972_v34  ;;  %v14657_v20 = vld [vmem:[#allocation115_spill] sm:$0xff]  ;;  %v1995_v46 = vpack.c.bf16 %v1953_v2, %v1952_v50  ;;  %v2977_v2 = vld [vmem:[#allocation2 + $0x171] sm:$0xff]  ;;  %v12154_v50 = vld [vmem:[#allocation2 + $0x5f] sm:$0xff] }
 0x283   :  { %v12102_v8 = vpop.permute.xlu1 %3825  ;;  %v12129_v35 = vmul.f32 %v9560_v13, %v14657_v20  ;;  %v14663_v13 = vld [vmem:[#allocation8_spill] sm:$0xff]  ;;  %v14664_v20 = vld [vmem:[#allocation13_spill] sm:$0xff] }
 0x284   :  { %v3273_v26 = vpack.c.bf16 %v3229_v3, %v3228_v31  ;;  %v12152_v31 = vld [vmem:[#allocation2 + $0x57] sm:$0xff]  ;;  %v12208_v34 = vld [vmem:[#allocation2 + $0x6f] sm:$0xff] }
 0x285   :  { %6088 = vmatmul.mubr.bf16.gmra.mrb[24].mxu1 %v2887_v23  ;;  %8875 = vset.pattern.permute.xlu1 %v14582_v4  ;;  %v14659_v23 = vpack.c.bf16 %v11633_v43, %v11643_v55  ;;  %v2844_v55 = vld [vmem:[#allocation2 + $0x148] sm:$0xff] }
 0x286   :  { %6095 = vmatprep.mubr.bf16.mxu1 %v3272_v9  ;;  %3930 = vperm.xlu1 %8875, %v12107_v6   ;;  %v3230_v9 = vmul.f32 %v14607_v22, %v2974_v62  ;;  %v2889_v38 = vpack.c.bf16 %v3739_v7, %v2844_v55  ;;  %v9562_v22 = vld [vmem:[#allocation2 + $0x168] sm:$0xff] }
 0x287   :  { %5526 = vmatmul.mubr.bf16.gmra.mrb[140].mxu0 %v14655_v41  ;;  %v1699_v41 = vld [vmem:[#allocation2 + $0x170] sm:$0xff]  ;;  %v1954_v33 = vmul.f32 %v9562_v22, %v14555_v18 }
 0x288   :  { %v12116_v48 = vpop.permute.xlu1 %3441  ;;  %5533 = vmatprep.mubr.bf16.mxu0 %v1994_v61  ;;  %v1955_v43 = vmul.f32 %v11656_v14, %v1699_v41  ;;  %v3274_v12 = vpack.c.bf16 %v3231_v29, %v3230_v9  ;;  %v3357_v14 = vld [vmem:[#allocation2 + $0x15f] sm:$0xff]  ;;  %v3233_v29 = vmul.f32 %v14666_v51, %v2977_v2  ;;  %v9563_v7 = vld [vmem:[#allocation2 + $0x16f] sm:$0xff] }
 0x289   :  { %14656 = vst [vmem:[#allocation60_spill] sm:$0xff] %v12116_v48  ;;  %v14667_v9 = vld [vmem:[#allocation11_spill] sm:$0xff]  ;;  %v12185_v51 = vld [vmem:[%s14115_s2 + $0xf0] sm:$0xff] }
 0x28a   :  { %8876 = vset.pattern.permute.xlu1 %v14591_v52  ;;  %v1571_v41 = vmul.f32 %v9563_v7, %v14667_v9  ;;  %v3742_v2 = vld [vmem:[#allocation2 + $0x168] sm:$0xff]  ;;  %v14671_v7 = vld [vmem:[#allocation88_spill] sm:$0xff] }
 0x28b   :  { %3546 = vperm.xlu1 %8876, %v12107_v6  }
 0x28d   :  { %6096 = vmatmul.mubr.bf16.gmra.mrb[28].mxu1 %v2888_v24  ;;  %v3831_v49 = vpop.permute.xlu1 %3830  ;;  %v3356_v24 = vld [vmem:[#allocation2 + $0x157] sm:$0xff] }
 0x28e   :  { %6103 = vmatprep.mubr.bf16.mxu1 %v3273_v26  ;;  %v12132_v30 = vmul.f32 %v3831_v49, %v11874_v19  ;;  %v12135_v42 = vmul.f32 %v3831_v49, %v12126_v45  ;;  %v1996_v26 = vpack.c.bf16 %v1955_v43, %v1954_v33  ;;  %v9565_v33 = vld [vmem:[#allocation2 + $0x180] sm:$0xff] }
 0x28f   :  { %3551 = vperm.xlu1 %8876, %v3409_v11   ;;  %5534 = vmatmul.mubr.bf16.gmra.mrb[144].mxu0 %v14659_v23  ;;  %v2847_v23 = vld [vmem:[#allocation2 + $0x160] sm:$0xff] }
 0x290   :  { %14658 = vst [vmem:[#allocation105_spill] sm:$0xff] %v12135_v42  ;;  %5541 = vmatprep.mubr.bf16.mxu0 %v1995_v46  ;;  %v14665_v46 = vpack.c.bf16 %v14663_v13, %v14664_v20  ;;  %v2890_v13 = vpack.c.bf16 %v2847_v23, %v12126_v45  ;;  %v2849_v20 = vld [vmem:[#allocation2 + $0x170] sm:$0xff]  ;;  %v2979_v45 = vld [vmem:[#allocation2 + $0x181] sm:$0xff] }
 0x291   :  { %v14679_v43 = vld [vmem:[#allocation22_spill] sm:$0xff] }
 0x292   :  { %v3447_v3 = vpop.permute.xlu1 %3446 }
 0x293   :  { %8877 = vset.pattern.permute.xlu1 %v14582_v4  ;;  %v12157_v11 = vmul.f32 %v3447_v3, %v12152_v31  ;;  %v12159_v62 = vmul.f32 %v3447_v3, %v3356_v24  ;;  %v9564_v3 = vld [vmem:[#allocation2 + $0x169] sm:$0xff] }
 0x294   :  { %3945 = vperm.xlu1 %8877, %v3795_v44  }
 0x295   :  { %6104 = vmatmul.mubr.bf16.gmra.mrb[32].mxu1 %v2889_v38  ;;  %14661 = vst [vmem:[#allocation62_spill] sm:$0xff] %v12159_v62  ;;  %v14668_v38 = vld [vmem:[#allocation100_spill] sm:$0xff] }
 0x296   :  { %6111 = vmatprep.mubr.bf16.mxu1 %v3274_v12  ;;  %v3452_v47 = vpop.permute.xlu1 %3451  ;;  %v3232_v22 = vmul.f32 %v9564_v3, %v14668_v38  ;;  %v14669_v12 = vld [vmem:[#allocation12_spill] sm:$0xff] }
 0x297   :  { %v12162_v18 = vmul.f32 %v3452_v47, %v12154_v50  ;;  %v12164_v49 = vmul.f32 %v3452_v47, %v3357_v14  ;;  %5542 = vmatmul.mubr.bf16.gmra.mrb[148].mxu0 %v14665_v46  ;;  %v1957_v24 = vmul.f32 %v9565_v33, %v14669_v12  ;;  %v9566_v47 = vld [vmem:[#allocation2 + $0x167] sm:$0xff]  ;;  %v14672_v3 = vld [vmem:[#allocation124_spill] sm:$0xff] }
 0x298   :  { %8879 = vset.pattern.permute.xlu1 %v14591_v52  ;;  %5549 = vmatprep.mubr.bf16.mxu0 %v1996_v26  ;;  %v14670_v14 = vld [vmem:[#allocation7_spill] sm:$0xff]  ;;  %v12189_v38 = vmul.f32 %v14672_v3, %v3742_v2  ;;  %v3275_v33 = vpack.c.bf16 %v3233_v29, %v3232_v22  ;;  %v12201_v2 = vld [vmem:[%s14118_s5 + $0x200] sm:$0xff]  }
 0x299   :  { %14662 = vst [vmem:[#allocation116_spill] sm:$0xff] %v12164_v49  ;;  %3561 = vperm.xlu1 %8879, %v3795_v44   ;;  %v1570_v26 = vmul.f32 %v9566_v47, %v14670_v14  ;;  %v9567_v44 = vld [vmem:[#allocation2 + $0x178] sm:$0xff]  ;;  %v14675_v22 = vld [vmem:[#allocation103_spill] sm:$0xff]  ;;  %8160 = vmatprep.subr.bf16.mxu0 %v12201_v2 }
 0x29a   :  { %v1956_v9 = vmul.f32 %v9567_v44, %v14671_v7  ;;  %14673 = vst [vmem:[#allocation64_spill] sm:$0xff] %v12189_v38  ;;  %v9568_v29 = vld [vmem:[#allocation2 + $0x179] sm:$0xff]  ;;  %v9569_v44 = vld [vmem:[#allocation2 + $0x67] sm:$0xff] }
 0x29b   :  { %v12180_v46 = vpop.permute.xlu1 %3845  ;;  %v1612_v23 = vpack.c.bf16 %v1571_v41, %v1570_v26  ;;  %v14676_v7 = vld [vmem:[#allocation122_spill] sm:$0xff]  ;;  %v2848_v41 = vld [vmem:[#allocation2 + $0x168] sm:$0xff]  ;;  %v14677_v26 = vld [vmem:[#allocation69_spill] sm:$0xff] }
 0x29c   :  { %v12192_v12 = vmul.f32 %v12180_v46, %v2849_v20  ;;  %v1997_v55 = vpack.c.bf16 %v1957_v24, %v1956_v9  ;;  %v3359_v24 = vld [vmem:[#allocation2 + $0x16f] sm:$0xff]  ;;  %v12212_v9 = vmul.f32 %v9566_v47, %v14676_v7  ;;  %v9571_v38 = vld [vmem:[#allocation2 + $0x177] sm:$0xff]  ;;  %v2891_v62 = vpack.c.bf16 %v2849_v20, %v2848_v41  ;;  %v9573_v41 = vld [vmem:[#allocation2 + $0x80] sm:$0xff] }
 0x29d   :  { %6112 = vmatmul.mubr.bf16.gmra.mrb[36].mxu1 %v2890_v13  ;;  %8880 = vset.pattern.permute.xlu1 %v14582_v4  ;;  %v3234_v13 = vmul.f32 %v9568_v29, %v14675_v22  ;;  %v12205_v4 = vmul.f32 %v9569_v44, %v14676_v7  ;;  %v1703_v22 = vld [vmem:[#allocation2 + $0x190] sm:$0xff]  ;;  %v9572_v7 = vld [vmem:[#allocation2 + $0x188] sm:$0xff] }
 0x29e   :  { %14674 = vst [vmem:[#allocation127_spill] sm:$0xff] %v12192_v12  ;;  %6119 = vmatprep.mubr.bf16.mxu1 %v3275_v33  ;;  %3950 = vperm.xlu1 %8880, %v12185_v51   ;;  %v3235_v33 = vmul.f32 %v14677_v26, %v2979_v45  ;;  %14678 = vst [vmem:[#allocation82_spill] sm:$0xff] %v12212_v9  ;;  %v14681_v45 = vld [vmem:[#allocation24_spill] sm:$0xff]  ;;  %v2851_v9 = vld [vmem:[#allocation2 + $0x180] sm:$0xff] }
 0x29f   :  { %5550 = vmatmul.mubr.bf16.gmra.mrb[152].mxu0 %v1612_v23  ;;  %v9570_v23 = vld [vmem:[#allocation2 + $0x17f] sm:$0xff]  ;;  %v1959_v26 = vmul.f32 %v14681_v45, %v1703_v22  ;;  %v12260_v49 = vld [vmem:[#allocation2 + $0x77] sm:$0xff] }
 0x2a0   :  { %v3462_v14 = vpop.permute.xlu1 %3461  ;;  %5557 = vmatprep.mubr.bf16.mxu0 %v1997_v55  ;;  %v1573_v29 = vmul.f32 %v9570_v23, %v14679_v43  ;;  %v14682_v55 = vld [vmem:[#allocation16_spill] sm:$0xff]  ;;  %v14683_v23 = vld [vmem:[#allocation90_spill] sm:$0xff]  ;;  %v2850_v22 = vld [vmem:[#allocation2 + $0x178] sm:$0xff] }
 0x2a1   :  { %v12216_v44 = vmul.f32 %v3462_v14, %v12208_v34  ;;  %v12218_v61 = vmul.f32 %v3462_v14, %v3359_v24  ;;  %v1572_v12 = vmul.f32 %v9571_v38, %v14682_v55  ;;  %v1958_v14 = vmul.f32 %v9572_v7, %v14683_v23  ;;  %v14684_v45 = vld [vmem:[#allocation125_spill] sm:$0xff]  ;;  %v14687_v23 = vld [vmem:[#allocation106_spill] sm:$0xff] }
 0x2a2   :  { %8882 = vset.pattern.permute.xlu1 %v14591_v52  ;;  %v3276_v24 = vpack.c.bf16 %v3235_v33, %v3234_v13  ;;  %v3413_v52 = vld [vmem:[%s14115_s2 + $0xf8] sm:$0xff]  ;;  %v12233_v55 = vmul.f32 %v9573_v41, %v14684_v45  ;;  %v9574_v33 = vld [vmem:[#allocation2 + $0x189] sm:$0xff]  ;;  %v2892_v41 = vpack.c.bf16 %v2851_v9, %v2850_v22 }
 0x2a3   :  { %14680 = vst [vmem:[#allocation115_spill] sm:$0xff] %v12218_v61  ;;  %3566 = vperm.xlu1 %8882, %v12185_v51   ;;  %v1613_v20 = vpack.c.bf16 %v1573_v29, %v1572_v12  ;;  %v1998_v7 = vpack.c.bf16 %v1959_v26, %v1958_v14  ;;  %v2981_v13 = vld [vmem:[#allocation2 + $0x191] sm:$0xff]  ;;  %v4151_v26 = vld [vmem:[%s14115_s2 + $0x8] sm:$0xff]  ;;  %v14690_v14 = vld [vmem:[#allocation26_spill] sm:$0xff] }
 0x2a4   :  { %v14691_v12 = vld [vmem:[#allocation18_spill] sm:$0xff]  ;;  %v9577_v29 = vld [vmem:[#allocation2 + $0x198] sm:$0xff] }
 0x2a5   :  { %6120 = vmatmul.mubr.bf16.gmra.mrb[40].mxu1 %v2891_v62  ;;  %v3851_v38 = vpop.permute.xlu1 %3850  ;;  %v3236_v62 = vmul.f32 %v9574_v33, %v14687_v23  ;;  %v12254_v23 = vld [vmem:[#allocation2 + $0x187] sm:$0xff]  ;;  %v3361_v9 = vld [vmem:[#allocation2 + $0x17f] sm:$0xff] }
 0x2a6   :  { %6127 = vmatprep.mubr.bf16.mxu1 %v3276_v24  ;;  %v12236_v43 = vmul.f32 %v3851_v38, %v11909_v32  ;;  %v12238_v47 = vmul.f32 %v3851_v38, %v2850_v22  ;;  %v12245_v24 = vld [vmem:[#allocation2 + $0x1a0] sm:$0xff]  ;;  %v9575_v32 = vld [vmem:[#allocation2 + $0x18f] sm:$0xff] }
 0x2a7   :  { %3571 = vperm.xlu1 %8882, %v3413_v52   ;;  %5558 = vmatmul.mubr.bf16.gmra.mrb[156].mxu0 %v1613_v20  ;;  %v14689_v38 = vld [vmem:[#allocation14_spill] sm:$0xff]  ;;  %v1961_v52 = vmul.f32 %v12245_v24, %v14690_v14  ;;  %v3237_v20 = vmul.f32 %v14616_v59, %v2981_v13  ;;  %v4152_v59 = vld [vmem:[%s14115_s2 + $0x10] sm:$0xff] }
 0x2a8   :  { %14685 = vst [vmem:[#allocation8_spill] sm:$0xff] %v12236_v43  ;;  %14686 = vst [vmem:[#allocation13_spill] sm:$0xff] %v12238_v47  ;;  %5565 = vmatprep.mubr.bf16.mxu0 %v1998_v7  ;;  %v1575_v45 = vmul.f32 %v9575_v32, %v14689_v38  ;;  %v1574_v7 = vmul.f32 %v12254_v23, %v14691_v12  ;;  %v14692_v47 = vmov 8   ;;  %v14693_v32 = vld [vmem:[#allocation91_spill] sm:$0xff]  ;;  %v3360_v13 = vld [vmem:[#allocation2 + $0x177] sm:$0xff] }
 0x2a9   :  { %v1960_v38 = vmul.f32 %v9577_v29, %v14693_v32  ;;  %v3277_v61 = vpack.c.bf16 %v3237_v20, %v3236_v62  ;;  %v3329_v12 = vld [vmem:[#allocation2 + $0x7f] sm:$0xff]  ;;  %v2852_v20 = vld [vmem:[#allocation2 + $0x188] sm:$0xff] }
 0x2aa   :  { %v3467_v33 = vpop.permute.xlu1 %3466  ;;  %v1614_v14 = vpack.c.bf16 %v1575_v45, %v1574_v7  ;;  %v9578_v45 = vld [vmem:[#allocation2 + $0x199] sm:$0xff]  ;;  %v2853_v7 = vld [vmem:[#allocation2 + $0x190] sm:$0xff]  ;;  %v9580_v43 = vld [vmem:[#allocation2 + $0x1a8] sm:$0xff] }
 0x2ab   :  { %8884 = vset.pattern.permute.xlu1 %v14692_v47  ;;  %v1999_v22 = vpack.c.bf16 %v1961_v52, %v1960_v38  ;;  %v2983_v47 = vld [vmem:[#allocation2 + $0x1a1] sm:$0xff]  ;;  %v12266_v19 = vmul.f32 %v3467_v33, %v12260_v49  ;;  %v12268_v62 = vmul.f32 %v3467_v33, %v3360_v13  ;;  %v14698_v52 = vld [vmem:[#allocation53_spill] sm:$0xff]  ;;  %v1707_v38 = vld [vmem:[#allocation2 + $0x1b0] sm:$0xff] }
 0x2ac   :  { %4189 = vperm.xlu1 %8884, %v4151_v26   ;;  %v3238_v26 = vmul.f32 %v9578_v45, %v11395_v37  ;;  %v14701_v33 = vld [vmem:[#allocation93_spill] sm:$0xff] }
 0x2ad   :  { %6128 = vmatmul.mubr.bf16.gmra.mrb[44].mxu1 %v2892_v41  ;;  %14694 = vst [vmem:[#allocation67_spill] sm:$0xff] %v12266_v19  ;;  %14695 = vst [vmem:[#allocation11_spill] sm:$0xff] %v12268_v62  ;;  %v1962_v19 = vmul.f32 %v9580_v43, %v14701_v33  ;;  %v2985_v43 = vld [vmem:[#allocation2 + $0x1b1] sm:$0xff] }
 0x2ae   :  { %6135 = vmatprep.mubr.bf16.mxu1 %v3277_v61  ;;  %v3472_v42 = vpop.permute.xlu1 %3471  ;;  %v1321_v61 = vld [vmem:[#allocation2 + $0x19f] sm:$0xff]  ;;  %v3363_v33 = vld [vmem:[#allocation2 + $0x18f] sm:$0xff] }
 0x2af   :  { %v12270_v29 = vmul.f32 %v3472_v42, %v3329_v12  ;;  %v12272_v41 = vmul.f32 %v3472_v42, %v3361_v9  ;;  %5566 = vmatmul.mubr.bf16.gmra.mrb[160].mxu0 %v1614_v14  ;;  %v1577_v32 = vmul.f32 %v14698_v52, %v1321_v61  ;;  %v4154_v42 = vld [vmem:[%s14115_s2 + $0x20] sm:$0xff]  ;;  %v14699_v14 = vld [vmem:[#allocation92_spill] sm:$0xff]  ;;  %v3239_v12 = vmul.f32 %v14619_v54, %v2983_v47  ;;  %v3746_v9 = vld [vmem:[#allocation2 + $0x188] sm:$0xff] }
 0x2b0   :  { %4194 = vperm.xlu1 %8884, %v4152_v59   ;;  %5573 = vmatprep.mubr.bf16.mxu0 %v1999_v22  ;;  %v1963_v37 = vmul.f32 %v14699_v14, %v1707_v38  ;;  %v9579_v59 = vld [vmem:[#allocation2 + $0x197] sm:$0xff]  ;;  %v14700_v22 = vld [vmem:[#allocation87_spill] sm:$0xff]  ;;  %v2893_v61 = vpack.c.bf16 %v2853_v7, %v2852_v20 }
 0x2b1   :  { %14696 = vst [vmem:[#allocation100_spill] sm:$0xff] %v12270_v29  ;;  %14697 = vst [vmem:[#allocation12_spill] sm:$0xff] %v12272_v41  ;;  %v1576_v45 = vmul.f32 %v9579_v59, %v14700_v22  ;;  %v14702_v29 = vld [vmem:[#allocation128_spill] sm:$0xff]  ;;  %v3278_v62 = vpack.c.bf16 %v3239_v12, %v3238_v26  ;;  %v2854_v12 = vld [vmem:[#allocation2 + $0x198] sm:$0xff] }
 0x2b2   :  { %v12290_v13 = vmul.f32 %v14702_v29, %v3746_v9  ;;  %v4156_v47 = vld [vmem:[%s14115_s2 + $0x30] sm:$0xff]  ;;  %v2000_v38 = vpack.c.bf16 %v1963_v37, %v1962_v19  ;;  %v14706_v9 = vld [vmem:[#allocation130_spill] sm:$0xff] }
 0x2b3   :  { %v12286_v52 = vpop.permute.xlu1 %3865  ;;  %v1615_v54 = vpack.c.bf16 %v1577_v32, %v1576_v45  ;;  %v9581_v14 = vld [vmem:[#allocation2 + $0x1a9] sm:$0xff]  ;;  %v12307_v59 = vld [vmem:[#allocation2 + $0x1c0] sm:$0xff] }
 0x2b4   :  { %14703 = vst [vmem:[#allocation7_spill] sm:$0xff] %v12290_v13  ;;  %v12293_v41 = vmul.f32 %v12286_v52, %v2853_v7  ;;  %4204 = vperm.xlu1 %8884, %v4154_v42   ;;  %v3240_v26 = vmul.f32 %v9581_v14, %v11487_v17  ;;  %v1323_v7 = vld [vmem:[#allocation2 + $0x1af] sm:$0xff]  ;;  %v2855_v42 = vld [vmem:[#allocation2 + $0x1a0] sm:$0xff] }
 0x2b5   :  { %6136 = vmatmul.mubr.bf16.gmra.mrb[48].mxu1 %v2893_v61  ;;  %v1579_v19 = vmul.f32 %v11902_v25, %v1323_v7  ;;  %v4158_v17 = vld [vmem:[%s14115_s2 + $0x40] sm:$0xff]  ;;  %v2894_v14 = vpack.c.bf16 %v2855_v42, %v2854_v12  ;;  %v4160_v13 = vld [vmem:[%s14115_s2 + $0x50] sm:$0xff] }
 0x2b6   :  { %14704 = vst [vmem:[#allocation88_spill] sm:$0xff] %v12293_v41  ;;  %6143 = vmatprep.mubr.bf16.mxu1 %v3278_v62  ;;  %v12305_v62 = vmul.f32 %v12254_v23, %v14706_v9  ;;  %v1322_v22 = vld [vmem:[#allocation2 + $0x1a7] sm:$0xff]  ;;  %v14716_v42 = vld [vmem:[#allocation104_spill] sm:$0xff] }
 0x2b7   :  { %5574 = vmatmul.mubr.bf16.gmra.mrb[164].mxu0 %v1615_v54  ;;  %v14709_v45 = vld [vmem:[#allocation94_spill] sm:$0xff]  ;;  %v14710_v54 = vld [vmem:[#allocation75_spill] sm:$0xff] }
 0x2b8   :  { %4214 = vperm.xlu1 %8884, %v4156_v47   ;;  %v12301_v32 = vpop.permute.xlu1 %3481  ;;  %5581 = vmatprep.mubr.bf16.mxu0 %v2000_v38  ;;  %14707 = vst [vmem:[#allocation103_spill] sm:$0xff] %v12305_v62  ;;  %v1965_v61 = vmul.f32 %v12307_v59, %v14709_v45  ;;  %v3241_v47 = vmul.f32 %v14710_v54, %v2985_v43  ;;  %v14711_v38 = vld [vmem:[#allocation54_spill] sm:$0xff]  ;;  %v14713_v45 = vld [vmem:[#allocation129_spill] sm:$0xff] }
 0x2b9   :  { %14705 = vst [vmem:[#allocation124_spill] sm:$0xff] %v12301_v32  ;;  %v12311_v37 = vmul.f32 %v12301_v32, %v3363_v33  ;;  %v1578_v23 = vmul.f32 %v14711_v38, %v1322_v22  ;;  %v12329_v41 = vmul.f32 %v14713_v45, %v12245_v24  ;;  %v2857_v38 = vld [vmem:[#allocation2 + $0x1b0] sm:$0xff]  ;;  %v12366_v9 = vld [vmem:[#allocation2 + $0x1e0] sm:$0xff] }
 0x2ba   :  { %v3279_v25 = vpack.c.bf16 %v3241_v47, %v3240_v26  ;;  %v2001_v22 = vpack.c.bf16 %v1965_v61, %v14716_v42  ;;  %v2987_v26 = vld [vmem:[#allocation2 + $0x1c1] sm:$0xff]  ;;  %v14717_v24 = vld [vmem:[#allocation56_spill] sm:$0xff] }
 0x2bb   :  { %14708 = vst [vmem:[#allocation122_spill] sm:$0xff] %v12311_v37  ;;  %v1616_v7 = vpack.c.bf16 %v1579_v19, %v1578_v23  ;;  %14714 = vst [vmem:[#allocation22_spill] sm:$0xff] %v12329_v41  ;;  %v1324_v19 = vld [vmem:[#allocation2 + $0x1b7] sm:$0xff]  ;;  %v2856_v47 = vld [vmem:[#allocation2 + $0x1a8] sm:$0xff] }
 0x2bc   :  { %4224 = vperm.xlu1 %8884, %v4158_v17   ;;  %v9582_v17 = vld [vmem:[#allocation2 + $0x1b9] sm:$0xff]  ;;  %v2895_v20 = vpack.c.bf16 %v2857_v38, %v2856_v47  ;;  %v14719_v23 = vld [vmem:[#allocation96_spill] sm:$0xff] }
 0x2bd   :  { %6144 = vmatmul.mubr.bf16.gmra.mrb[52].mxu1 %v2894_v14  ;;  %v12322_v33 = vpop.permute.xlu1 %3870  ;;  %v3242_v54 = vmul.f32 %v9582_v17, %v11596_v53  ;;  %v1580_v14 = vmul.f32 %v14717_v24, %v1324_v19  ;;  %v14718_v61 = vld [vmem:[#allocation66_spill] sm:$0xff]  ;;  %v3243_v53 = vmul.f32 %v14626_v1, %v2987_v26  ;;  %v12347_v17 = vld [vmem:[#allocation2 + $0x1c8] sm:$0xff]  ;;  %v12351_v19 = vld [vmem:[#allocation2 + $0x97] sm:$0xff] }
 0x2be   :  { %14712 = vst [vmem:[#allocation69_spill] sm:$0xff] %v12322_v33  ;;  %6151 = vmatprep.mubr.bf16.mxu1 %v3279_v25  ;;  %v12332_v43 = vmul.f32 %v12322_v33, %v2854_v12  ;;  %v12339_v25 = vld [vmem:[#allocation2 + $0x1d0] sm:$0xff]  ;;  %v4162_v12 = vld [vmem:[%s14115_s2 + $0x60] sm:$0xff]  ;;  %v14720_v24 = vld [vmem:[#allocation109_spill] sm:$0xff] }
 0x2bf   :  { %5582 = vmatmul.mubr.bf16.gmra.mrb[168].mxu0 %v1616_v7  ;;  %v1967_v7 = vmul.f32 %v14718_v61, %v12339_v25  ;;  %v3364_v41 = vld [vmem:[#allocation2 + $0x197] sm:$0xff]  ;;  %v3333_v61 = vld [vmem:[#allocation2 + $0x9f] sm:$0xff]  ;;  %v14734_v33 = vld [vmem:[#allocation19_spill] sm:$0xff] }
 0x2c0   :  { %14715 = vst [vmem:[#allocation24_spill] sm:$0xff] %v12332_v43  ;;  %4234 = vperm.xlu1 %8884, %v4160_v13   ;;  %5589 = vmatprep.mubr.bf16.mxu0 %v2001_v22  ;;  %v1966_v13 = vmul.f32 %v12347_v17, %v14719_v23  ;;  %v3280_v22 = vpack.c.bf16 %v3243_v53, %v3242_v54  ;;  %v3365_v37 = vld [vmem:[#allocation2 + $0x19f] sm:$0xff]  ;;  %v2989_v26 = vld [vmem:[#allocation2 + $0x1d1] sm:$0xff] }
 0x2c1   :  { %v1617_v43 = vpack.c.bf16 %v14720_v24, %v1580_v14  ;;  %v2858_v53 = vld [vmem:[#allocation2 + $0x1b8] sm:$0xff]  ;;  %v14725_v24 = vld [vmem:[#allocation71_spill] sm:$0xff] }
 0x2c2   :  { %v3487_v42 = vpop.permute.xlu1 %3486  ;;  %v2002_v1 = vpack.c.bf16 %v1967_v7, %v1966_v13  ;;  %v14726_v7 = vld [vmem:[#allocation73_spill] sm:$0xff] }
 0x2c3   :  { %v12355_v45 = vmul.f32 %v3487_v42, %v12351_v19  ;;  %v12357_v47 = vmul.f32 %v3487_v42, %v3364_v41  ;;  %v14728_v42 = vld [vmem:[#allocation79_spill] sm:$0xff] }
 0x2c4   :  { %4244 = vperm.xlu1 %8884, %v4162_v12   ;;  %v1327_v12 = vld [vmem:[#allocation2 + $0x1cf] sm:$0xff] }
 0x2c5   :  { %6152 = vmatmul.mubr.bf16.gmra.mrb[56].mxu1 %v2895_v20  ;;  %14721 = vst [vmem:[#allocation16_spill] sm:$0xff] %v12355_v45  ;;  %14722 = vst [vmem:[#allocation90_spill] sm:$0xff] %v12357_v47  ;;  %v9583_v20 = vld [vmem:[#allocation2 + $0x1c9] sm:$0xff]  ;;  %v1583_v13 = vmul.f32 %v14726_v7, %v1327_v12 }
 0x2c6   :  { %6159 = vmatprep.mubr.bf16.mxu1 %v3280_v22  ;;  %v3492_v62 = vpop.permute.xlu1 %3491  ;;  %v3244_v14 = vmul.f32 %v9583_v20, %v11681_v10  ;;  %v2859_v22 = vld [vmem:[#allocation2 + $0x1c0] sm:$0xff]  ;;  %v14730_v45 = vld [vmem:[#allocation84_spill] sm:$0xff] }
 0x2c7   :  { %v12359_v23 = vmul.f32 %v3492_v62, %v3333_v61  ;;  %v12361_v54 = vmul.f32 %v3492_v62, %v3365_v37  ;;  %5590 = vmatmul.mubr.bf16.gmra.mrb[172].mxu0 %v1617_v43  ;;  %v4166_v10 = vld [vmem:[%s14115_s2 + $0x80] sm:$0xff]  ;;  %v14727_v37 = vld [vmem:[#allocation77_spill] sm:$0xff]  ;;  %v3245_v61 = vmul.f32 %v14728_v42, %v2989_v26  ;;  %v2896_v7 = vpack.c.bf16 %v2859_v22, %v2858_v53  ;;  %v14733_v42 = vld [vmem:[#allocation108_spill] sm:$0xff] }
 0x2c8   :  { %4254 = vperm.xlu1 %8884, %v14725_v24   ;;  %5597 = vmatprep.mubr.bf16.mxu0 %v2002_v1  ;;  %v1969_v43 = vmul.f32 %v14727_v37, %v12366_v9  ;;  %v12378_v1 = vld [vmem:[#allocation2 + $0x1c7] sm:$0xff]  ;;  %v9585_v22 = vld [vmem:[#allocation2 + $0x1d9] sm:$0xff] }
 0x2c9   :  { %14723 = vst [vmem:[#allocation125_spill] sm:$0xff] %v12359_v23  ;;  %14724 = vst [vmem:[#allocation106_spill] sm:$0xff] %v12361_v54  ;;  %v14729_v20 = vld [vmem:[#allocation102_spill] sm:$0xff]  ;;  %v3750_v24 = vld [vmem:[#allocation2 + $0x1a8] sm:$0xff]  ;;  %v3281_v47 = vpack.c.bf16 %v3245_v61, %v3244_v14  ;;  %v3246_v32 = vmul.f32 %v9585_v22, %v14734_v33 }
 0x2ca   :  { %v1582_v12 = vmul.f32 %v12378_v1, %v14729_v20  ;;  %v12385_v62 = vmul.f32 %v14730_v45, %v3750_v24  ;;  %v2003_v20 = vpack.c.bf16 %v1969_v43, %v14733_v42  ;;  %v2991_v23 = vld [vmem:[#allocation2 + $0x1e1] sm:$0xff]  ;;  %v1328_v24 = vld [vmem:[#allocation2 + $0x1d7] sm:$0xff]  ;;  %v3367_v14 = vld [vmem:[#allocation2 + $0x1af] sm:$0xff] }
 0x2cb   :  { %v12382_v41 = vpop.permute.xlu1 %3885  ;;  %v2860_v45 = vld [vmem:[#allocation2 + $0x1c8] sm:$0xff]  ;;  %v4170_v43 = vld [vmem:[%s14115_s2 + $0xa0] sm:$0xff]  ;;  %v14737_v33 = vld [vmem:[#allocation137_spill] sm:$0xff] }
 0x2cc   :  { %14731 = vst [vmem:[#allocation14_spill] sm:$0xff] %v12385_v62  ;;  %v12388_v54 = vmul.f32 %v12382_v41, %v2857_v38  ;;  %4264 = vperm.xlu1 %8884, %v4166_v10   ;;  %v1618_v37 = vpack.c.bf16 %v1583_v13, %v1582_v12  ;;  %v14735_v13 = vld [vmem:[#allocation135_spill] sm:$0xff]  ;;  %v12398_v10 = vld [vmem:[#allocation2 + $0x1f0] sm:$0xff]  ;;  %v2897_v42 = vpack.c.bf16 %v12339_v25, %v2860_v45  ;;  %v14741_v62 = vld [vmem:[#allocation118_spill] sm:$0xff] }
 0x2cd   :  { %6160 = vmatmul.mubr.bf16.gmra.mrb[60].mxu1 %v2896_v7  ;;  %v1971_v12 = vmul.f32 %v14737_v33, %v12398_v10  ;;  %v14738_v7 = vld [vmem:[#allocation81_spill] sm:$0xff]  ;;  %v14742_v33 = vld [vmem:[#allocation132_spill] sm:$0xff] }
 0x2ce   :  { %14732 = vst [vmem:[#allocation26_spill] sm:$0xff] %v12388_v54  ;;  %6167 = vmatprep.mubr.bf16.mxu1 %v3281_v47  ;;  %v1584_v47 = vmul.f32 %v14735_v13, %v1328_v24  ;;  %v14740_v24 = vld [vmem:[#allocation136_spill] sm:$0xff] }
 0x2cf   :  { %5598 = vmatmul.mubr.bf16.gmra.mrb[176].mxu0 %v1618_v37  ;;  %v12409_v37 = vld [vmem:[#allocation2 + $0x1e8] sm:$0xff] }
 0x2d0   :  { %4274 = vperm.xlu1 %8884, %v12007_v63   ;;  %v12395_v38 = vpop.permute.xlu1 %3501  ;;  %5605 = vmatprep.mubr.bf16.mxu0 %v2003_v20  ;;  %v3247_v63 = vmul.f32 %v14738_v7, %v2991_v23  ;;  %v1619_v54 = vpack.c.bf16 %v14741_v62, %v1584_v47  ;;  %v12421_v23 = vmul.f32 %v14742_v33, %v12307_v59  ;;  %v2993_v7 = vld [vmem:[#allocation2 + $0x1f1] sm:$0xff]  ;;  %v9586_v22 = vld [vmem:[#allocation2 + $0x1e9] sm:$0xff]  ;;  %v12432_v59 = vld [vmem:[#allocation2 + $0x200] sm:$0xff] }
 0x2d1   :  { %v12401_v61 = vmul.f32 %v12395_v38, %v3367_v14  ;;  %v1970_v14 = vmul.f32 %v12409_v37, %v14740_v24  ;;  %v14745_v47 = vld [vmem:[#allocation95_spill] sm:$0xff]  ;;  %v3369_v62 = vld [vmem:[#allocation2 + $0x1bf] sm:$0xff] }
 0x2d2   :  { %v3282_v13 = vpack.c.bf16 %v3247_v63, %v3246_v32  ;;  %14743 = vst [vmem:[#allocation91_spill] sm:$0xff] %v12421_v23  ;;  %v3248_v32 = vmul.f32 %v9586_v22, %v11785_v16  ;;  %v12427_v63 = vld [vmem:[#allocation2 + $0x1d8] sm:$0xff]  ;;  %v1973_v16 = vmul.f32 %v12432_v59, %v12020_v21  ;;  %v2995_v23 = vld [vmem:[#allocation2 + $0x201] sm:$0xff] }
 0x2d3   :  { %14736 = vst [vmem:[#allocation18_spill] sm:$0xff] %v12401_v61  ;;  %v2004_v25 = vpack.c.bf16 %v1971_v12, %v1970_v14  ;;  %v3249_v12 = vmul.f32 %v14745_v47, %v2993_v7  ;;  %v2898_v22 = vpack.c.bf16 %v12366_v9, %v12427_v63  ;;  %v14746_v14 = vld [vmem:[#allocation119_spill] sm:$0xff] }
 0x2d4   :  { %4284 = vperm.xlu1 %8884, %v4170_v43   ;;  %v1331_v43 = vld [vmem:[#allocation2 + $0x1ef] sm:$0xff] }
 0x2d5   :  { %6168 = vmatmul.mubr.bf16.gmra.mrb[64].mxu1 %v2897_v42  ;;  %v12416_v26 = vpop.permute.xlu1 %3890  ;;  %v3283_v24 = vpack.c.bf16 %v3249_v12, %v3248_v32  ;;  %v14750_v12 = vld [vmem:[#allocation27_spill] sm:$0xff] }
 0x2d6   :  { %6175 = vmatprep.mubr.bf16.mxu1 %v3282_v13  ;;  %v12424_v45 = vmul.f32 %v12416_v26, %v2858_v53  ;;  %v1587_v53 = vmul.f32 %v12011_v58, %v1331_v43  ;;  %v3368_v13 = vld [vmem:[#allocation2 + $0x1b7] sm:$0xff]  ;;  %v3337_v43 = vld [vmem:[#allocation2 + $0xbf] sm:$0xff] }
 0x2d7   :  { %5606 = vmatmul.mubr.bf16.gmra.mrb[180].mxu0 %v1619_v54  ;;  %v4174_v54 = vld [vmem:[%s14115_s2 + $0xc0] sm:$0xff] }
 0x2d8   :  { %14744 = vst [vmem:[#allocation53_spill] sm:$0xff] %v12424_v45  ;;  %4294 = vperm.xlu1 %8884, %v12055_v36   ;;  %5613 = vmatprep.mubr.bf16.mxu0 %v2004_v25  ;;  %v12443_v36 = vld [vmem:[#allocation2 + $0xb7] sm:$0xff]  ;;  %v1620_v58 = vpack.c.bf16 %v1587_v53, %v14746_v14  ;;  %v2864_v14 = vld [vmem:[#allocation2 + $0x1e8] sm:$0xff] }
 0x2d9   :  { %v14747_v45 = vld [vmem:[#allocation113_spill] sm:$0xff] }
 0x2da   :  { %v3507_v42 = vpop.permute.xlu1 %3506  ;;  %v2005_v21 = vpack.c.bf16 %v1973_v16, %v14747_v45  ;;  %v9587_v53 = vld [vmem:[#allocation2 + $0x1f9] sm:$0xff]  ;;  %v14755_v16 = vld [vmem:[#allocation20_spill] sm:$0xff] }
 0x2db   :  { %v12448_v7 = vmul.f32 %v3507_v42, %v12443_v36  ;;  %v12450_v47 = vmul.f32 %v3507_v42, %v3368_v13  ;;  %v3251_v13 = vmul.f32 %v14635_v15, %v2995_v23  ;;  %v14756_v15 = vld [vmem:[#allocation123_spill] sm:$0xff] }
 0x2dc   :  { %4304 = vperm.xlu1 %8884, %v4174_v54   ;;  %v2423_v54 = vld [vmem:[#allocation2 + $0x1f] sm:$0xff] }
 0x2dd   :  { %6176 = vmatmul.mubr.bf16.gmra.mrb[68].mxu1 %v2898_v22  ;;  %14748 = vst [vmem:[#allocation92_spill] sm:$0xff] %v12450_v47  ;;  %v3250_v22 = vmul.f32 %v9587_v53, %v14750_v12  ;;  %v14752_v53 = vld [vmem:[#allocation133_spill] sm:$0xff] }
 0x2de   :  { %6183 = vmatprep.mubr.bf16.mxu1 %v3283_v24  ;;  %v3512_v25 = vpop.permute.xlu1 %3511  ;;  %v1332_v24 = vld [vmem:[#allocation2 + $0x1f7] sm:$0xff]  ;;  %v12473_v12 = vmul.f32 %v14752_v53, %v12347_v17 }
 0x2df   :  { %v12452_v9 = vmul.f32 %v3512_v25, %v3337_v43  ;;  %v12454_v32 = vmul.f32 %v3512_v25, %v3369_v62  ;;  %5614 = vmatmul.mubr.bf16.gmra.mrb[184].mxu0 %v1620_v58  ;;  %v1588_v45 = vmul.f32 %v12033_v56, %v1332_v24  ;;  %v4178_v62 = vld [vmem:[%s14115_s2 + $0xe0] sm:$0xff]  ;;  %v2422_v58 = vld [vmem:[#allocation2 + $0x17] sm:$0xff]  ;;  %v3284_v24 = vpack.c.bf16 %v3251_v13, %v3250_v22 }
 0x2e0   :  { %4314 = vperm.xlu1 %8884, %v12107_v6   ;;  %5621 = vmatprep.mubr.bf16.mxu0 %v2005_v21  ;;  %v14751_v25 = vld [vmem:[#allocation30_spill] sm:$0xff]  ;;  %v2899_v6 = vpack.c.bf16 %v12398_v10, %v2864_v14  ;;  %v3755_v56 = vld [vmem:[#allocation2 + $0x1d0] sm:$0xff]  ;;  %14753 = vst [vmem:[#allocation93_spill] sm:$0xff] %v12473_v12  ;;  %v2678_v47 = vmul.f32 %v14755_v16, %v2422_v58 }
 0x2e1   :  { %14749 = vst [vmem:[#allocation87_spill] sm:$0xff] %v12454_v32  ;;  %v2679_v43 = vmul.f32 %v14751_v25, %v2423_v54  ;;  %v1621_v23 = vpack.c.bf16 %v14756_v15, %v1588_v45  ;;  %v2038_v54 = vld [vmem:[#allocation2 + $0x9] sm:$0xff]  ;;  %v2039_v17 = vld [vmem:[#allocation2 + $0x11] sm:$0xff]  ;;  %v2867_v16 = vld [vmem:[#allocation2 + $0x200] sm:$0xff] }
 0x2e2   :  { %v12480_v25 = vld [vmem:[#allocation2 + $0x2f] sm:$0xff]  ;;  %v2424_v13 = vld [vmem:[#allocation2 + $0x27] sm:$0xff] }
 0x2e3   :  { %v12469_v21 = vpop.permute.xlu1 %3905  ;;  %v2742_v14 = vpack.c.bf16 %v2679_v43, %v2678_v47  ;;  %v2996_v32 = vld [vmem:[#allocation2 + $0x209] sm:$0xff]  ;;  %v2997_v22 = vld [vmem:[#allocation2 + $0x211] sm:$0xff]  ;;  %v14762_v10 = vld [vmem:[#allocation34_spill] sm:$0xff] }
 0x2e4   :  { %v12476_v42 = vmul.f32 %v12469_v21, %v3755_v56  ;;  %4324 = vperm.xlu1 %8884, %v4178_v62   ;;  %v3252_v62 = vmul.f32 %v11882_v60, %v2996_v32  ;;  %v12485_v56 = vld [vmem:[#allocation2 + $0x1f8] sm:$0xff]  ;;  %v3371_v58 = vld [vmem:[#allocation2 + $0x1cf] sm:$0xff]  ;;  %v3253_v32 = vmul.f32 %v14638_v39, %v2997_v22  ;;  %v2680_v12 = vmul.f32 %v14762_v10, %v2424_v13 }
 0x2e5   :  { %6184 = vmatmul.mubr.bf16.gmra.mrb[72].mxu1 %v2899_v6  ;;  %v14757_v6 = vld [vmem:[#allocation23_spill] sm:$0xff]  ;;  %v14758_v15 = vld [vmem:[#allocation4_spill] sm:$0xff] }
 0x2e6   :  { %14754 = vst [vmem:[#allocation128_spill] sm:$0xff] %v12476_v42  ;;  %6191 = vmatprep.mubr.bf16.mxu1 %v3284_v24  ;;  %v2294_v24 = vmul.f32 %v14757_v6, %v2038_v54  ;;  %v12493_v47 = vmul.f32 %v12378_v1, %v14758_v15  ;;  %v3285_v6 = vpack.c.bf16 %v3253_v32, %v3252_v62  ;;  %v3757_v1 = vld [vmem:[#allocation2 + $0x1e0] sm:$0xff]  ;;  %v8985_v39 = vld [vmem:[%s14118_s5 + $0x208] sm:$0xff]   ;;  %v9588_v32 = vld [vmem:[#allocation2 + $0x30] sm:$0xff] }
 0x2e7   :  { %5622 = vmatmul.mubr.bf16.gmra.mrb[188].mxu0 %v1621_v23  ;;  %v14761_v23 = vld [vmem:[#allocation32_spill] sm:$0xff]  ;;  %v2041_v62 = vld [vmem:[#allocation2 + $0x21] sm:$0xff] }
 0x2e8   :  { %4334 = vperm.xlu1 %8884, %v12185_v51   ;;  %v12488_v45 = vpop.permute.xlu1 %3521  ;;  %5662 = vmatprep.mubr.bf16.mxu0 %v2742_v14  ;;  %14759 = vst [vmem:[#allocation94_spill] sm:$0xff] %v12493_v47  ;;  %v2295_v60 = vmul.f32 %v14761_v23, %v2039_v17  ;;  %v14763_v51 = vld [vmem:[#allocation21_spill] sm:$0xff]  ;;  %v2900_v14 = vpack.c.bf16 %v2867_v16, %v12485_v56  ;;  %v14764_v17 = vld [vmem:[#allocation134_spill] sm:$0xff] }
 0x2e9   :  { %v12496_v43 = vmul.f32 %v12488_v45, %v3371_v58  ;;  %v2681_v42 = vmul.f32 %v12480_v25, %v14763_v51  ;;  %v12512_v10 = vmul.f32 %v14764_v17, %v3757_v1  ;;  %v2040_v16 = vld [vmem:[#allocation2 + $0x19] sm:$0xff]  ;;  %v12521_v51 = vld [vmem:[#allocation2 + $0x210] sm:$0xff] }
 0x2ea   :  { %v2358_v58 = vpack.c.bf16 %v2295_v60, %v2294_v24  ;;  %v12518_v23 = vld [vmem:[#allocation2 + $0x3f] sm:$0xff]  ;;  %v3959_v24 = vmul.f32 %v9588_v32, %v12050_v27  ;;  %v2868_v60 = vld [vmem:[#allocation2 + $0x208] sm:$0xff] }
 0x2eb   :  { %14760 = vst [vmem:[#allocation75_spill] sm:$0xff] %v12496_v43  ;;  %14765 = vst [vmem:[#allocation54_spill] sm:$0xff] %v12512_v10  ;;  %v2743_v13 = vpack.c.bf16 %v2681_v42, %v2680_v12  ;;  %v14767_v42 = vld [vmem:[#allocation36_spill] sm:$0xff]  ;;  %v9589_v32 = vld [vmem:[#allocation2 + $0x28] sm:$0xff] }
 0x2ec   :  { %v2296_v12 = vmul.f32 %v14767_v42, %v2040_v16  ;;  %v3958_v54 = vmul.f32 %v9589_v32, %v12044_v57  ;;  %v14769_v43 = vld [vmem:[#allocation40_spill] sm:$0xff]  ;;  %v8987_v32 = vld [vmem:[%s14118_s5 + $0x218] sm:$0xff]   ;;  %v2428_v57 = vld [vmem:[#allocation2 + $0x47] sm:$0xff] }
 0x2ed   :  { %6192 = vmatmul.mubr.bf16.gmra.mrb[76].mxu1 %v2900_v14  ;;  %v12506_v20 = vpop.permute.xlu1 %3910  ;;  %v3373_v10 = vld [vmem:[#allocation2 + $0x1df] sm:$0xff] }
 0x2ee   :  { %6199 = vmatprep.mubr.bf16.mxu1 %v3285_v6  ;;  %v12516_v22 = vmul.f32 %v12506_v20, %v12427_v63  ;;  %v12526_v63 = vld [vmem:[#allocation2 + $0x37] sm:$0xff]  ;;  %v14768_v6 = vld [vmem:[#allocation38_spill] sm:$0xff]  ;;  %v4022_v14 = vpack.c.bf16 %v3959_v24, %v3958_v54 }
 0x2ef   :  { %5663 = vmatmul.mubr.bf16.vlgmr.msra.gmra.mrb[64].mxu0 %v2358_v58  ;;  %v2297_v1 = vmul.f32 %v14768_v6, %v2041_v62  ;;  %v8986_v58 = vld [vmem:[%s14118_s5 + $0x210] sm:$0xff]   ;;  %v3341_v24 = vld [vmem:[#allocation2 + $0xdf] sm:$0xff] }
 0x2f0   :  { %14766 = vst [vmem:[#allocation104_spill] sm:$0xff] %v12516_v22  ;;  %5670 = vmatprep.mubr.bf16.mxu0 %v2743_v13  ;;  %8161 = vmatpush3.bf16.msra.mxu0 %v12201_v2  ;;  %v2683_v13 = vmul.f32 %v12518_v23, %v14769_v43  ;;  %v2901_v2 = vpack.c.bf16 %v12521_v51, %v2868_v60  ;;  %v14770_v22 = vld [vmem:[#allocation28_spill] sm:$0xff]  ;;  %v9590_v27 = vld [vmem:[#allocation2 + $0x38] sm:$0xff] }
 0x2f1   :  { %8162 = vmatprep.subr.bf16.mxu0 %v8985_v39  ;;  %v2682_v16 = vmul.f32 %v12526_v63, %v14770_v22  ;;  %v3340_v62 = vld [vmem:[#allocation2 + $0xd7] sm:$0xff]  ;;  %v2359_v42 = vpack.c.bf16 %v2297_v1, %v2296_v12  ;;  %v3575_v43 = vmul.f32 %v12066_v40, %v12480_v25  ;;  %v3960_v25 = vmul.f32 %v9590_v27, %v12073_v5  ;;  %v9591_v40 = vld [vmem:[#allocation2 + $0x27] sm:$0xff] }
 0x2f2   :  { %v3527_v47 = vpop.permute.xlu1 %3526  ;;  %v12539_v6 = vld [vmem:[#allocation2 + $0x31] sm:$0xff]  ;;  %v8988_v27 = vld [vmem:[%s14118_s5 + $0x220] sm:$0xff]  }
 0x2f3   :  { %v3372_v60 = vld [vmem:[#allocation2 + $0x1d7] sm:$0xff]  ;;  %v2744_v22 = vpack.c.bf16 %v2683_v13, %v2682_v16  ;;  %v14775_v13 = vld [vmem:[#allocation107_spill] sm:$0xff] }
 0x2f4   :  { %8163 = vmatpush3.bf16.msra.mxu0 %v8985_v39  ;;  %v12546_v39 = vld [vmem:[#allocation2 + $0x4f] sm:$0xff]  ;;  %v12550_v12 = vmul.f32 %v3527_v47, %v3372_v60  ;;  %v3574_v16 = vmul.f32 %v9591_v40, %v14775_v13  ;;  %v14779_v40 = vld [vmem:[#allocation29_spill] sm:$0xff] }
 0x2f5   :  { %6200 = vmatmul.mubr.bf16.gmra.mrb[80].mxu1 %v2901_v2  ;;  %8164 = vmatprep.subr.bf16.mxu0 %v8986_v58  ;;  %v12548_v2 = vmul.f32 %v3527_v47, %v3340_v62  ;;  %v2685_v13 = vmul.f32 %v12546_v39, %v14779_v40  ;;  %v3759_v47 = vld [vmem:[#allocation2 + $0x1f0] sm:$0xff] }
 0x2f6   :  { %6240 = vmatprep.mubr.bf16.mxu1 %v4022_v14  ;;  %v3532_v54 = vpop.permute.xlu1 %3531  ;;  %14772 = vst [vmem:[#allocation66_spill] sm:$0xff] %v12550_v12  ;;  %v2042_v14 = vld [vmem:[#allocation2 + $0x29] sm:$0xff]  ;;  %v3638_v62 = vpack.c.bf16 %v3575_v43, %v3574_v16  ;;  %v14780_v12 = vld [vmem:[#allocation25_spill] sm:$0xff]  ;;  %v2045_v16 = vld [vmem:[#allocation2 + $0x41] sm:$0xff] }
 0x2f7   :  { %14771 = vst [vmem:[#allocation56_spill] sm:$0xff] %v12548_v2  ;;  %v12552_v1 = vmul.f32 %v3532_v54, %v3341_v24  ;;  %v12554_v61 = vmul.f32 %v3532_v54, %v3373_v10  ;;  %5671 = vmatmul.mubr.bf16.gmra.mrb[68].mxu0 %v2359_v42  ;;  %v14776_v10 = vld [vmem:[#allocation42_spill] sm:$0xff]  ;;  %v14778_v24 = vld [vmem:[#allocation44_spill] sm:$0xff]  ;;  %v8989_v43 = vld [vmem:[%s14118_s5 + $0x228] sm:$0xff]  }
 0x2f8   :  { %5678 = vmatprep.mubr.bf16.mxu0 %v2744_v22  ;;  %8165 = vmatpush3.bf16.msra.mxu0 %v8986_v58  ;;  %v2299_v60 = vmul.f32 %v14776_v10, %v12539_v6  ;;  %v9592_v42 = vld [vmem:[#allocation2 + $0x40] sm:$0xff]  ;;  %v2684_v22 = vmul.f32 %v14778_v24, %v2428_v57  ;;  %v14781_v10 = vld [vmem:[#allocation5_spill] sm:$0xff]  ;;  %v14787_v40 = vld [vmem:[#allocation112_spill] sm:$0xff] }
 0x2f9   :  { %14773 = vst [vmem:[#allocation96_spill] sm:$0xff] %v12552_v1  ;;  %14774 = vst [vmem:[#allocation109_spill] sm:$0xff] %v12554_v61  ;;  %8166 = vmatprep.subr.bf16.mxu0 %v8987_v32  ;;  %v14777_v54 = vld [vmem:[#allocation110_spill] sm:$0xff]  ;;  %v2298_v61 = vmul.f32 %v14780_v12, %v2042_v14  ;;  %v12576_v2 = vmul.f32 %v14781_v10, %v12409_v37 }
 0x2fa   :  { %v3961_v58 = vmul.f32 %v9592_v42, %v14777_v54  ;;  %v2745_v14 = vpack.c.bf16 %v2685_v13, %v2684_v22  ;;  %v12586_v37 = vld [vmem:[#allocation2 + $0x39] sm:$0xff]  ;;  %v3706_v42 = vld [vmem:[#allocation2 + $0x48] sm:$0xff]  ;;  %v3576_v54 = vmul.f32 %v12082_v28, %v12526_v63  ;;  %v8990_v22 = vld [vmem:[%s14118_s5 + $0x230] sm:$0xff]  }
 0x2fb   :  { %v12571_v5 = vpop.permute.xlu1 %3925  ;;  %14782 = vst [vmem:[#allocation71_spill] sm:$0xff] %v12576_v2  ;;  %v2360_v57 = vpack.c.bf16 %v2299_v60, %v2298_v61  ;;  %v14784_v60 = vld [vmem:[#allocation48_spill] sm:$0xff]  ;;  %v3962_v13 = vmul.f32 %v14787_v40, %v3706_v42  ;;  %v14791_v42 = vld [vmem:[#allocation9_spill] sm:$0xff] }
 0x2fc   :  { %v4023_v1 = vpack.c.bf16 %v3961_v58, %v3960_v25  ;;  %v12579_v17 = vmul.f32 %v12571_v5, %v3759_v47  ;;  %8167 = vmatpush3.bf16.msra.mxu0 %v8987_v32  ;;  %v3577_v25 = vmul.f32 %v12093_v0, %v12518_v23  ;;  %v3707_v47 = vld [vmem:[#allocation2 + $0x50] sm:$0xff]  ;;  %v14786_v23 = vld [vmem:[#allocation46_spill] sm:$0xff] }
 0x2fd   :  { %6241 = vmatmul.mubr.bf16.vlgmr.msra.gmra.mrb[84].mxu1 %v3638_v62  ;;  %8168 = vmatprep.subr.bf16.mxu0 %v8988_v27  ;;  %v3963_v61 = vmul.f32 %v12102_v8, %v3707_v47  ;;  %v3375_v62 = vld [vmem:[#allocation2 + $0x1ef] sm:$0xff]  ;;  %v2300_v24 = vmul.f32 %v14786_v23, %v12586_v37  ;;  %v12611_v23 = vpop.permute.xlu0 %3955 }
 0x2fe   :  { %14783 = vst [vmem:[#allocation73_spill] sm:$0xff] %v12579_v17  ;;  %6248 = vmatprep.mubr.bf16.mxu1 %v4023_v1  ;;  %v2301_v1 = vmul.f32 %v14784_v60, %v2045_v16  ;;  %v3639_v16 = vpack.c.bf16 %v3577_v25, %v3576_v54  ;;  %v2047_v25 = vld [vmem:[#allocation2 + $0x51] sm:$0xff]  ;;  %v12620_v54 = vmul.f32 %v14791_v42, %v12432_v59 }
 0x2ff   :  { %5679 = vmatmul.mubr.bf16.gmra.mrb[72].mxu0 %v2360_v57  ;;  %v4024_v47 = vpack.c.bf16 %v3963_v61, %v3962_v13  ;;  %v2432_v61 = vld [vmem:[#allocation2 + $0x67] sm:$0xff]  ;;  %v14794_v59 = vld [vmem:[#allocation52_spill] sm:$0xff] }
 0x300   :  { %v12591_v32 = vpop.permute.xlu1 %3541  ;;  %5686 = vmatprep.mubr.bf16.mxu0 %v2745_v14  ;;  %8169 = vmatpush3.bf16.msra.mxu0 %v8988_v27  ;;  %v14788_v27 = vld [vmem:[#allocation50_spill] sm:$0xff]  ;;  %v2361_v2 = vpack.c.bf16 %v2301_v1, %v2300_v24  ;;  %14792 = vst [vmem:[#allocation79_spill] sm:$0xff] %v12620_v54  ;;  %v3579_v1 = vmul.f32 %v12116_v48, %v12546_v39  ;;  %v12630_v13 = vld [vmem:[#allocation2 + $0x49] sm:$0xff]  ;;  %v3716_v14 = vld [vmem:[#allocation2 + $0x98] sm:$0xff] }
 0x301   :  { %v12597_v58 = vmul.f32 %v12591_v32, %v3375_v62  ;;  %8170 = vmatprep.subr.bf16.mxu0 %v8989_v43  ;;  %v2687_v57 = vmul.f32 %v12154_v50, %v14788_v27  ;;  %v14790_v62 = vld [vmem:[#allocation31_spill] sm:$0xff]  ;;  %v8991_v50 = vld [vmem:[%s14118_s5 + $0x238] sm:$0xff]   ;;  %v2303_v27 = vmul.f32 %v14794_v59, %v2047_v25  ;;  %v14851_v28 = vld [vmem:[#allocation84_spill] sm:$0xff] }
 0x302   :  { %v2686_v60 = vmul.f32 %v12152_v31, %v14790_v62  ;;  %v14800_v25 = vld [vmem:[#allocation35_spill] sm:$0xff] }
 0x303   :  { %14785 = vst [vmem:[#allocation77_spill] sm:$0xff] %v12597_v58  ;;  %v2302_v59 = vmul.f32 %v14800_v25, %v12630_v13  ;;  %v3762_v54 = vld [vmem:[#allocation2 + $0x208] sm:$0xff] }
 0x304   :  { %8171 = vmatpush3.bf16.msra.mxu0 %v8989_v43  ;;  %v2746_v43 = vpack.c.bf16 %v2687_v57, %v2686_v60  ;;  %v14797_v57 = vld [vmem:[#allocation55_spill] sm:$0xff] }
 0x305   :  { %6249 = vmatmul.mubr.bf16.gmra.mrb[88].mxu1 %v3639_v16  ;;  %v12613_v12 = vpop.permute.xlu1 %3930  ;;  %8172 = vmatprep.subr.bf16.mxu0 %v8990_v22  ;;  %v9593_v16 = vld [vmem:[#allocation2 + $0x47] sm:$0xff]  ;;  %v2688_v60 = vmul.f32 %v14797_v57, %v2432_v61  ;;  %v14801_v61 = vpack.c.bf16 %v12129_v35, %v12132_v30  ;;  %v3376_v57 = vld [vmem:[#allocation2 + $0x1f7] sm:$0xff] }
 0x306   :  { %6256 = vmatprep.mubr.bf16.mxu1 %v4024_v47  ;;  %v12624_v31 = vmul.f32 %v12613_v12, %v12485_v56  ;;  %v14795_v47 = vld [vmem:[#allocation120_spill] sm:$0xff]  ;;  %v14804_v35 = vld [vmem:[#allocation57_spill] sm:$0xff] }
 0x307   :  { %5687 = vmatmul.mubr.bf16.gmra.mrb[76].mxu0 %v2361_v2  ;;  %v3578_v62 = vmul.f32 %v9593_v16, %v14795_v47  ;;  %v14798_v2 = vld [vmem:[#allocation33_spill] sm:$0xff]  ;;  %v2362_v47 = vpack.c.bf16 %v2303_v27, %v2302_v59  ;;  %v14805_v27 = vld [vmem:[#allocation59_spill] sm:$0xff] }
 0x308   :  { %14793 = vst [vmem:[#allocation102_spill] sm:$0xff] %v12624_v31  ;;  %5694 = vmatprep.mubr.bf16.mxu0 %v2746_v43  ;;  %8173 = vmatpush3.bf16.msra.mxu0 %v8990_v22  ;;  %v2689_v24 = vmul.f32 %v12208_v34, %v14798_v2  ;;  %v12641_v43 = vpop.permute.xlu0 %4184  ;;  %v3377_v34 = vld [vmem:[#allocation2 + $0x1ff] sm:$0xff] }
 0x309   :  { %v12634_v56 = vpop.f32.mrb[108].mxu0  ;;  %8174 = vmatprep.subr.bf16.mxu0 %v8991_v50  ;;  %v3640_v31 = vpack.c.bf16 %v3579_v1, %v3578_v62  ;;  %v2435_v1 = vld [vmem:[#allocation2 + $0x7f] sm:$0xff]  ;;  %v3711_v62 = vld [vmem:[#allocation2 + $0x70] sm:$0xff] }
 0x30a   :  { %14796 = vst [vmem:[#allocation108_spill] sm:$0xff] %v12634_v56  ;;  %v12637_v63 = vpop.permute.xlu1 %3546  ;;  %v5465_v39 = vpop.f32.mrb[109].mxu0  ;;  %v2049_v56 = vld [vmem:[#allocation2 + $0x61] sm:$0xff]  ;;  %v2747_v2 = vpack.c.bf16 %v2689_v24, %v2688_v60  ;;  %v14806_v60 = vld [vmem:[#allocation61_spill] sm:$0xff] }
 0x30b   :  { %v12643_v22 = vpop.f32.mrb[110].mxu0  ;;  %v2305_v59 = vmul.f32 %v14805_v27, %v2049_v56  ;;  %v14811_v27 = vpack.c.bf16 %v12162_v18, %v12157_v11  ;;  %v12689_v11 = vld [vmem:[#allocation2 + $0x69] sm:$0xff]  ;;  %v9595_v18 = vld [vmem:[#allocation2 + $0x71] sm:$0xff] }
 0x30c   :  { %14799 = vst [vmem:[#allocation19_spill] sm:$0xff] %v12643_v22  ;;  %v5468_v16 = vpop.f32.mrb[111].mxu0  ;;  %8175 = vmatpush3.bf16.msra.mxu0 %v8991_v50  ;;  %v12653_v22 = vmul.f32 %v12637_v63, %v3376_v57  ;;  %v3967_v50 = vmul.f32 %v12180_v46, %v3711_v62  ;;  %v2691_v57 = vmul.f32 %v14806_v60, %v2435_v1  ;;  %v14807_v46 = vld [vmem:[#allocation10_spill] sm:$0xff] }
 0x30d   :  { %6257 = vmatmul.mubr.bf16.gmra.mrb[92].mxu1 %v3640_v31  ;;  %v9594_v31 = vld [vmem:[#allocation2 + $0x59] sm:$0xff]  ;;  %v3710_v16 = vld [vmem:[#allocation2 + $0x68] sm:$0xff] }
 0x30e   :  { %6264 = vmatprep.mubr.bf16.mxu1 %v14801_v61  ;;  %v12650_v39 = vpop.permute.xlu1 %3551  ;;  %14802 = vst [vmem:[#allocation135_spill] sm:$0xff] %v12653_v22  ;;  %v2304_v30 = vmul.f32 %v9594_v31, %v14804_v35  ;;  %v12661_v61 = vpop.permute.xlu0 %4199  ;;  %v14810_v31 = vld [vmem:[#allocation39_spill] sm:$0xff] }
 0x30f   :  { %v12656_v25 = vmul.f32 %v12650_v39, %v3377_v34  ;;  %5695 = vmatmul.mubr.bf16.gmra.mrb[80].mxu0 %v2362_v47  ;;  %v3966_v34 = vmul.f32 %v14672_v3, %v3710_v16  ;;  %v2690_v35 = vmul.f32 %v12260_v49, %v14810_v31  ;;  %v3379_v49 = vld [vmem:[#allocation2 + $0x20f] sm:$0xff]  ;;  %v14817_v3 = vld [vmem:[#allocation41_spill] sm:$0xff] }
 0x310   :  { %5702 = vmatprep.mubr.bf16.mxu0 %v2747_v2  ;;  %v12670_v2 = vmul.f32 %v14807_v46, %v3762_v54  ;;  %v2363_v1 = vpack.c.bf16 %v2305_v59, %v2304_v30  ;;  %v2436_v54 = vld [vmem:[#allocation2 + $0x87] sm:$0xff] }
 0x311   :  { %14803 = vst [vmem:[#allocation137_spill] sm:$0xff] %v12656_v25  ;;  %v4026_v62 = vpack.c.bf16 %v3967_v50, %v3966_v34  ;;  %v2748_v16 = vpack.c.bf16 %v2691_v57, %v2690_v35  ;;  %v3331_v50 = vld [vmem:[#allocation2 + $0x8f] sm:$0xff]  ;;  %v14816_v35 = vld [vmem:[#allocation65_spill] sm:$0xff] }
 0x312   :  { %14808 = vst [vmem:[#allocation81_spill] sm:$0xff] %v12670_v2  ;;  %v12683_v60 = vpop.permute.xlu0 %4209  ;;  %v14813_v30 = vld [vmem:[#allocation63_spill] sm:$0xff]  ;;  %v2693_v24 = vmul.f32 %v3331_v50, %v14817_v3  ;;  %v14822_v3 = vld [vmem:[#allocation8_spill] sm:$0xff] }
 0x313   :  { %v12667_v47 = vpop.permute.xlu1 %3945  ;;  %v2307_v59 = vmul.f32 %v9595_v18, %v14813_v30  ;;  %v2052_v30 = vld [vmem:[#allocation2 + $0x79] sm:$0xff] }
 0x314   :  { %v12674_v56 = vmul.f32 %v12667_v47, %v12521_v51 }
 0x315   :  { %6265 = vmatmul.mubr.bf16.gmra.mrb[96].mxu1 %v14811_v27  ;;  %v2692_v27 = vmul.f32 %v14816_v35, %v2436_v54 }
 0x316   :  { %14809 = vst [vmem:[#allocation136_spill] sm:$0xff] %v12674_v56  ;;  %6272 = vmatprep.mubr.bf16.mxu1 %v4026_v62  ;;  %v9596_v56 = vld [vmem:[#allocation2 + $0x8] sm:$0xff]  ;;  %v12711_v35 = vpop.permute.xlu0 %4219 }
 0x317   :  { %5703 = vmatmul.mubr.bf16.gmra.mrb[84].mxu0 %v2363_v1  ;;  %v12685_v51 = vpop.f32.mrb[112].mxu0  ;;  %v12704_v22 = vmul.f32 %v9596_v56, %v12611_v23  ;;  %v2749_v2 = vpack.c.bf16 %v2693_v24, %v2692_v27 }
 0x318   :  { %14812 = vst [vmem:[#allocation118_spill] sm:$0xff] %v12685_v51  ;;  %v12687_v34 = vpop.permute.xlu1 %3561  ;;  %5710 = vmatprep.mubr.bf16.mxu0 %v2748_v16  ;;  %v5473_v31 = vpop.f32.mrb[113].mxu0  ;;  %v14819_v16 = vld [vmem:[#allocation37_spill] sm:$0xff]  ;;  %v3715_v51 = vld [vmem:[#allocation2 + $0x90] sm:$0xff] }
 0x319   :  { %v12693_v62 = vmul.f32 %v12687_v34, %v3379_v49  ;;  %v12695_v57 = vpop.f32.mrb[114].mxu0  ;;  %v2306_v31 = vmul.f32 %v14819_v16, %v12689_v11  ;;  %14820 = vst [vmem:[#allocation119_spill] sm:$0xff] %v12704_v22  ;;  %v14821_v49 = vpack.c.bf16 %v12216_v44, %v12205_v4  ;;  %v3971_v4 = vmul.f32 %v12286_v52, %v3715_v51 }
 0x31a   :  { %14815 = vst [vmem:[#allocation95_spill] sm:$0xff] %v12695_v57  ;;  %v5476_v1 = vpop.f32.mrb[115].mxu0  ;;  %v2439_v57 = vld [vmem:[#allocation2 + $0x9f] sm:$0xff]  ;;  %v12732_v51 = vpop.permute.xlu0 %4229 }
 0x31b   :  { %14814 = vst [vmem:[#allocation132_spill] sm:$0xff] %v12693_v62  ;;  %v2364_v54 = vpack.c.bf16 %v2307_v59, %v2306_v31  ;;  %v14823_v1 = vpack.c.bf16 %v12233_v55, %v14822_v3  ;;  %v14825_v59 = vld [vmem:[#allocation68_spill] sm:$0xff]  ;;  %v14826_v62 = vld [vmem:[#allocation70_spill] sm:$0xff]  ;;  %v3714_v55 = vld [vmem:[#allocation2 + $0x88] sm:$0xff] }
 0x31c   :  { %v2308_v31 = vmul.f32 %v14825_v59, %v2052_v30  ;;  %v3970_v24 = vmul.f32 %v14702_v29, %v3714_v55  ;;  %v3381_v30 = vld [vmem:[#allocation2 + $0x21f] sm:$0xff]  ;;  %v14830_v59 = vld [vmem:[#allocation43_spill] sm:$0xff]  ;;  %v3380_v29 = vld [vmem:[#allocation2 + $0x217] sm:$0xff] }
 0x31d   :  { %6273 = vmatmul.mubr.bf16.gmra.mrb[100].mxu1 %v14821_v49  ;;  %v12709_v18 = vpop.permute.xlu1 %3950  ;;  %v9597_v49 = vld [vmem:[#allocation2 + $0x81] sm:$0xff] }
 0x31e   :  { %6280 = vmatprep.mubr.bf16.mxu1 %v14823_v1  ;;  %v12717_v16 = vmul.f32 %v9596_v56, %v12709_v18  ;;  %v2309_v25 = vmul.f32 %v9597_v49, %v14826_v62  ;;  %v14828_v56 = vld [vmem:[#allocation72_spill] sm:$0xff]  ;;  %v2694_v62 = vmul.f32 %v12351_v19, %v14830_v59 }
 0x31f   :  { %5711 = vmatmul.mubr.bf16.gmra.mrb[88].mxu0 %v2364_v54  ;;  %v2695_v1 = vmul.f32 %v14828_v56, %v2439_v57  ;;  %v14831_v49 = vld [vmem:[#allocation100_spill] sm:$0xff] }
 0x320   :  { %14824 = vst [vmem:[#allocation113_spill] sm:$0xff] %v12717_v16  ;;  %5718 = vmatprep.mubr.bf16.mxu0 %v2749_v2  ;;  %v4028_v2 = vpack.c.bf16 %v3971_v4, %v3970_v24  ;;  %v14832_v16 = vld [vmem:[#allocation67_spill] sm:$0xff]  ;;  %v2365_v57 = vpack.c.bf16 %v2309_v25, %v2308_v31  ;;  %v3719_v59 = vld [vmem:[#allocation2 + $0xb0] sm:$0xff] }
 0x321   :  { %v12724_v3 = vpop.f32.mrb[116].mxu0  ;;  %v2750_v56 = vpack.c.bf16 %v2695_v1, %v2694_v62  ;;  %v12742_v4 = vld [vmem:[#allocation2 + $0xaf] sm:$0xff]  ;;  %v14838_v1 = vld [vmem:[#allocation74_spill] sm:$0xff] }
 0x322   :  { %14827 = vst [vmem:[#allocation27_spill] sm:$0xff] %v12724_v3  ;;  %v12728_v27 = vpop.permute.xlu1 %3566  ;;  %v5481_v54 = vpop.f32.mrb[117].mxu0  ;;  %v14833_v3 = vpack.c.bf16 %v14831_v49, %v14832_v16  ;;  %v14837_v16 = vld [vmem:[#allocation69_spill] sm:$0xff]  ;;  %v12751_v31 = vld [vmem:[#allocation2 + $0x89] sm:$0xff] }
 0x323   :  { %v12730_v52 = vpop.f32.mrb[118].mxu0  ;;  %v2440_v54 = vld [vmem:[#allocation2 + $0xa7] sm:$0xff]  ;;  %v3972_v25 = vmul.f32 %v14837_v16, %v3716_v14  ;;  %v14840_v62 = vld [vmem:[#allocation76_spill] sm:$0xff] }
 0x324   :  { %14829 = vst [vmem:[#allocation30_spill] sm:$0xff] %v12730_v52  ;;  %v5484_v44 = vpop.f32.mrb[119].mxu0  ;;  %v14834_v52 = vld [vmem:[#allocation124_spill] sm:$0xff]  ;;  %v2696_v49 = vmul.f32 %v14840_v62, %v2440_v54  ;;  %v14842_v14 = vld [vmem:[#allocation47_spill] sm:$0xff] }
 0x325   :  { %6281 = vmatmul.mubr.bf16.gmra.mrb[104].mxu1 %v14833_v3  ;;  %v3587_v22 = vmul.f32 %v14834_v52, %v3331_v50  ;;  %v12745_v44 = vmul.f32 %v12728_v27, %v3380_v29  ;;  %v9598_v3 = vld [vmem:[#allocation2 + $0x91] sm:$0xff]  ;;  %v14839_v50 = vld [vmem:[#allocation130_spill] sm:$0xff]  ;;  %v4118_v16 = vld [vmem:[#allocation2 + $0x129] sm:$0xff] }
 0x326   :  { %6288 = vmatprep.mubr.bf16.mxu1 %v4028_v2  ;;  %v12739_v55 = vpop.permute.xlu1 %3571  ;;  %v2311_v24 = vmul.f32 %v9598_v3, %v14838_v1  ;;  %v9599_v2 = vld [vmem:[#allocation2 + $0x87] sm:$0xff]  ;;  %v4119_v3 = vld [vmem:[#allocation2 + $0x131] sm:$0xff] }
 0x327   :  { %14835 = vst [vmem:[#allocation133_spill] sm:$0xff] %v12745_v44  ;;  %v12748_v19 = vmul.f32 %v12739_v55, %v3381_v30  ;;  %5719 = vmatmul.mubr.bf16.gmra.mrb[92].mxu0 %v2365_v57  ;;  %v3586_v52 = vmul.f32 %v9599_v2, %v14839_v50  ;;  %v9600_v29 = vld [vmem:[#allocation2 + $0xa0] sm:$0xff]  ;;  %v14841_v30 = vld [vmem:[#allocation129_spill] sm:$0xff]  ;;  %v12759_v57 = vpop.permute.xlu0 %4239  ;;  %v12768_v50 = vmul.f32 %v12641_v43, %v4118_v16 }
 0x328   :  { %5726 = vmatprep.mubr.bf16.mxu0 %v2750_v56  ;;  %v3973_v58 = vmul.f32 %v9600_v29, %v14841_v30  ;;  %v2697_v56 = vmul.f32 %v12742_v4, %v14842_v14  ;;  %v14843_v1 = vld [vmem:[#allocation45_spill] sm:$0xff]  ;;  %v4121_v14 = vld [vmem:[#allocation2 + $0x141] sm:$0xff] }
 0x329   :  { %14836 = vst [vmem:[#allocation20_spill] sm:$0xff] %v12748_v19  ;;  %v3644_v17 = vpack.c.bf16 %v3587_v22, %v3586_v52  ;;  %v2310_v2 = vmul.f32 %v14843_v1, %v12751_v31  ;;  %14844 = vst [vmem:[#allocation123_spill] sm:$0xff] %v12768_v50  ;;  %v2056_v30 = vld [vmem:[#allocation2 + $0x99] sm:$0xff] }
 0x32a   :  { %v4029_v54 = vpack.c.bf16 %v3973_v58, %v3972_v25  ;;  %v2751_v52 = vpack.c.bf16 %v2697_v56, %v2696_v49  ;;  %v4120_v1 = vld [vmem:[#allocation2 + $0x139] sm:$0xff]  ;;  %v12780_v58 = vmul.f32 %v12661_v61, %v4121_v14  ;;  %v14850_v14 = vld [vmem:[#allocation83_spill] sm:$0xff] }
 0x32b   :  { %v12763_v48 = vpop.permute.xlu1 %4189  ;;  %v2366_v29 = vpack.c.bf16 %v2311_v24, %v2310_v2  ;;  %v12782_v25 = vpop.permute.xlu0 %4249  ;;  %v14847_v56 = vld [vmem:[#allocation78_spill] sm:$0xff] }
 0x32c   :  { %v12771_v62 = vmul.f32 %v12763_v48, %v4119_v3  ;;  %v2312_v3 = vmul.f32 %v14847_v56, %v2056_v30  ;;  %v9601_v2 = vld [vmem:[#allocation2 + $0xa1] sm:$0xff] }
 0x32d   :  { %6289 = vmatmul.mubr.bf16.gmra.mrb[108].mxu1 %v3644_v17  ;;  %v3975_v17 = vmul.f32 %v12382_v41, %v3719_v59 }
 0x32e   :  { %6296 = vmatprep.mubr.bf16.mxu1 %v4029_v54  ;;  %v14848_v54 = vld [vmem:[#allocation80_spill] sm:$0xff] }
 0x32f   :  { %v12775_v44 = vpop.permute.xlu1 %4194  ;;  %5727 = vmatmul.mubr.bf16.gmra.mrb[96].mxu0 %v2366_v29  ;;  %v12777_v16 = vpop.f32.mrb[120].mxu0  ;;  %v2313_v22 = vmul.f32 %v9601_v2, %v14848_v54  ;;  %v3718_v29 = vld [vmem:[#allocation2 + $0xa8] sm:$0xff]  ;;  %v14853_v54 = vld [vmem:[#allocation49_spill] sm:$0xff] }
 0x330   :  { %14845 = vst [vmem:[#allocation23_spill] sm:$0xff] %v12777_v16  ;;  %v12786_v24 = vmul.f32 %v12775_v44, %v4120_v1  ;;  %5734 = vmatprep.mubr.bf16.mxu0 %v2751_v52  ;;  %v5489_v49 = vpop.f32.mrb[121].mxu0  ;;  %v9602_v16 = vld [vmem:[#allocation2 + $0xbf] sm:$0xff]  ;;  %v3974_v50 = vmul.f32 %v14851_v28, %v3718_v29  ;;  %v4123_v1 = vld [vmem:[#allocation2 + $0x151] sm:$0xff] }
 0x331   :  { %v12790_v19 = vpop.f32.mrb[122].mxu0  ;;  %v2699_v40 = vmul.f32 %v9602_v16, %v14850_v14  ;;  %v4122_v49 = vld [vmem:[#allocation2 + $0x149] sm:$0xff]  ;;  %v12799_v30 = vmul.f32 %v12683_v60, %v4123_v1  ;;  %v2698_v16 = vmul.f32 %v12443_v36, %v14853_v54  ;;  %v14854_v14 = vld [vmem:[#allocation125_spill] sm:$0xff]  ;;  %v2367_v41 = vpack.c.bf16 %v2313_v22, %v2312_v3 }
 0x332   :  { %14846 = vst [vmem:[#allocation4_spill] sm:$0xff] %v12786_v24  ;;  %14849 = vst [vmem:[#allocation32_spill] sm:$0xff] %v12790_v19  ;;  %v5492_v59 = vpop.f32.mrb[123].mxu0  ;;  %v4030_v56 = vpack.c.bf16 %v3975_v17, %v3974_v50  ;;  %v14855_v28 = vld [vmem:[#allocation16_spill] sm:$0xff]  ;;  %v4125_v24 = vld [vmem:[#allocation2 + $0x161] sm:$0xff]  ;;  %v3591_v50 = vmul.f32 %v12395_v38, %v12742_v4 }
 0x333   :  { %v12796_v52 = vpop.permute.xlu1 %4204  ;;  %v14856_v29 = vpack.c.bf16 %v14854_v14, %v14855_v28  ;;  %v12809_v59 = vpop.permute.xlu0 %4259  ;;  %v2752_v1 = vpack.c.bf16 %v2699_v40, %v2698_v16  ;;  %v3720_v17 = vld [vmem:[#allocation2 + $0xb8] sm:$0xff]  ;;  %v12818_v54 = vmul.f32 %v12711_v35, %v4125_v24  ;;  %v9604_v38 = vld [vmem:[#allocation2 + $0xa7] sm:$0xff] }
 0x334   :  { %v12802_v2 = vmul.f32 %v12796_v52, %v4122_v49  ;;  %v4124_v36 = vld [vmem:[#allocation2 + $0x159] sm:$0xff]  ;;  %v3976_v22 = vmul.f32 %v12416_v26, %v3720_v17  ;;  %v9603_v40 = vld [vmem:[#allocation2 + $0xb1] sm:$0xff]  ;;  %v4343_v26 = vmul.f32 %v12763_v48, %v12539_v6 }
 0x335   :  { %6297 = vmatmul.mubr.bf16.gmra.mrb[112].mxu1 %v14856_v29  ;;  %v14858_v16 = vld [vmem:[#allocation85_spill] sm:$0xff] }
 0x336   :  { %14852 = vst [vmem:[#allocation34_spill] sm:$0xff] %v12802_v2  ;;  %6304 = vmatprep.mubr.bf16.mxu1 %v4030_v56  ;;  %v12824_v56 = vld [vmem:[#allocation2 + $0xa9] sm:$0xff]  ;;  %v2315_v14 = vmul.f32 %v9603_v40, %v14858_v16  ;;  %v14859_v4 = vld [vmem:[#allocation89_spill] sm:$0xff] }
 0x337   :  { %v12815_v49 = vpop.permute.xlu1 %4214  ;;  %5735 = vmatmul.mubr.bf16.gmra.mrb[100].mxu0 %v2367_v41  ;;  %v3590_v28 = vmul.f32 %v9604_v38, %v14859_v4  ;;  %v9605_v41 = vld [vmem:[#allocation2 + $0xc0] sm:$0xff]  ;;  %v4126_v40 = vld [vmem:[#allocation2 + $0x169] sm:$0xff]  ;;  %v12845_v48 = vpop.permute.xlu0 %4269 }
 0x338   :  { %v12822_v3 = vmul.f32 %v12815_v49, %v4124_v36  ;;  %5742 = vmatprep.mubr.bf16.mxu0 %v2752_v1  ;;  %v3977_v24 = vmul.f32 %v9605_v41, %v14742_v33  ;;  %v4086_v36 = vld [vmem:[#allocation2 + $0x29] sm:$0xff]  ;;  %v9606_v33 = vld [vmem:[#allocation2 + $0x171] sm:$0xff] }
 0x339   :  { %v12828_v29 = vpop.f32.mrb[124].mxu0  ;;  %v3646_v19 = vpack.c.bf16 %v3591_v50, %v3590_v28  ;;  %v14862_v38 = vld [vmem:[#allocation51_spill] sm:$0xff]  ;;  %v12843_v41 = vmul.f32 %v9606_v33, %v12732_v51 }
 0x33a   :  { %14857 = vst [vmem:[#allocation21_spill] sm:$0xff] %v12822_v3  ;;  %14860 = vst [vmem:[#allocation36_spill] sm:$0xff] %v12828_v29  ;;  %v5497_v1 = vpop.f32.mrb[125].mxu0  ;;  %v2314_v4 = vmul.f32 %v14862_v38, %v12824_v56  ;;  %v4342_v29 = vmul.f32 %v12641_v43, %v4086_v36  ;;  %v4031_v6 = vpack.c.bf16 %v3977_v24, %v3976_v22  ;;  %v4128_v36 = vld [vmem:[#allocation2 + $0x179] sm:$0xff]  ;;  %v9607_v33 = vld [vmem:[#allocation2 + $0x181] sm:$0xff] }
 0x33b   :  { %v12835_v2 = vpop.permute.xlu1 %4224  ;;  %v12837_v16 = vpop.f32.mrb[126].mxu0  ;;  %v12855_v3 = vmul.f32 %v9607_v33, %v12759_v57 }
 0x33c   :  { %14861 = vst [vmem:[#allocation38_spill] sm:$0xff] %v12837_v16  ;;  %v12848_v1 = vmul.f32 %v12835_v2, %v4126_v40  ;;  %v5500_v50 = vpop.f32.mrb[127].mxu0  ;;  %v2368_v28 = vpack.c.bf16 %v2315_v14, %v2314_v4  ;;  %v4406_v17 = vpack.c.bf16 %v4343_v26, %v4342_v29  ;;  %v3723_v16 = vld [vmem:[#allocation2 + $0xd0] sm:$0xff]  ;;  %v9608_v14 = vld [vmem:[#allocation2 + $0xc8] sm:$0xff]  ;;  %v12864_v40 = vpop.permute.xlu0 %4279  ;;  %v4346_v4 = vmul.f32 %v12796_v52, %v12630_v13 }
 0x33d   :  { %6305 = vmatmul.mubr.bf16.gmra.mrb[116].mxu1 %v3646_v19  ;;  %v3979_v22 = vmul.f32 %v12469_v21, %v3723_v16  ;;  %v4344_v19 = vmul.f32 %v12775_v44, %v12586_v37  ;;  %v3978_v29 = vmul.f32 %v9608_v14, %v14752_v53  ;;  %v4089_v26 = vld [vmem:[#allocation2 + $0x41] sm:$0xff]  ;;  %v4130_v37 = vld [vmem:[#allocation2 + $0x189] sm:$0xff] }
 0x33e   :  { %6312 = vmatprep.mubr.bf16.mxu1 %v4031_v6  ;;  %v4345_v16 = vmul.f32 %v12661_v61, %v4089_v26  ;;  %v14863_v61 = vpack.c.bf16 %v12452_v9, %v12448_v7  ;;  %v3339_v6 = vld [vmem:[#allocation2 + $0xcf] sm:$0xff] }
 0x33f   :  { %v12852_v43 = vpop.permute.xlu1 %4234  ;;  %5743 = vmatmul.mubr.bf16.gmra.mrb[104].mxu0 %v2368_v28  ;;  %v9609_v28 = vld [vmem:[#allocation2 + $0x191] sm:$0xff]  ;;  %v4032_v33 = vpack.c.bf16 %v3979_v22, %v3978_v29 }
 0x340   :  { %v12859_v24 = vmul.f32 %v12852_v43, %v4128_v36  ;;  %8176 = vmatprep.mubr.bf16.mxu0 %v4406_v17  ;;  %v4091_v17 = vld [vmem:[#allocation2 + $0x51] sm:$0xff]  ;;  %v12877_v36 = vmul.f32 %v9609_v28, %v12782_v25  ;;  %v4407_v14 = vpack.c.bf16 %v4345_v16, %v4344_v19  ;;  %v3338_v28 = vld [vmem:[#allocation2 + $0xc7] sm:$0xff]  ;;  %v12895_v7 = vpop.permute.xlu0 %4289 }
 0x341   :  { %v4347_v53 = vmul.f32 %v12683_v60, %v4091_v17  ;;  %v3595_v17 = vmul.f32 %v12488_v45, %v3339_v6  ;;  %v3724_v22 = vld [vmem:[#allocation2 + $0xd8] sm:$0xff]  ;;  %v9610_v19 = vld [vmem:[#allocation2 + $0x1a1] sm:$0xff]  ;;  %v3594_v6 = vmul.f32 %v14758_v15, %v3338_v28  ;;  %v4134_v15 = vld [vmem:[#allocation2 + $0x1a9] sm:$0xff] }
 0x342   :  { %v12870_v21 = vpop.f32.mrb[128].mxu0  ;;  %v12893_v16 = vmul.f32 %v9610_v19, %v12809_v59  ;;  %v3980_v9 = vmul.f32 %v12506_v20, %v3724_v22  ;;  %v3725_v45 = vld [vmem:[#allocation2 + $0xe0] sm:$0xff]  ;;  %v4350_v19 = vmul.f32 %v12835_v2, %v12689_v11 }
 0x343   :  { %v12873_v50 = vpop.permute.xlu1 %4244  ;;  %v5505_v44 = vpop.f32.mrb[129].mxu0 }
 0x344   :  { %v12880_v13 = vmul.f32 %v12873_v50, %v4130_v37  ;;  %v12882_v52 = vpop.f32.mrb[130].mxu0  ;;  %v4408_v44 = vpack.c.bf16 %v4347_v53, %v4346_v4  ;;  %v4132_v37 = vld [vmem:[#allocation2 + $0x199] sm:$0xff] }
 0x345   :  { %6313 = vmatmul.mubr.bf16.gmra.mrb[120].mxu1 %v14863_v61  ;;  %v5508_v26 = vpop.f32.mrb[131].mxu0  ;;  %v4092_v4 = vld [vmem:[#allocation2 + $0x59] sm:$0xff] }
 0x346   :  { %6320 = vmatprep.mubr.bf16.mxu1 %v4032_v33  ;;  %v4348_v33 = vmul.f32 %v12815_v49, %v4092_v4  ;;  %v4093_v26 = vld [vmem:[#allocation2 + $0x61] sm:$0xff]  ;;  %v9611_v4 = vld [vmem:[#allocation2 + $0x1b1] sm:$0xff] }
 0x347   :  { %v12890_v29 = vpop.permute.xlu1 %4254  ;;  %8177 = vmatmul.mubr.bf16.vlgmr.msra.gmra.mrb[192].mxu0 %v4407_v14  ;;  %v14864_v14 = vld [vmem:[#allocation134_spill] sm:$0xff]  ;;  %v4349_v22 = vmul.f32 %v12711_v35, %v4093_v26  ;;  %v3727_v26 = vld [vmem:[#allocation2 + $0xf0] sm:$0xff] }
 0x348   :  { %v12899_v53 = vmul.f32 %v12890_v29, %v4132_v37  ;;  %8180 = vmatprep.mubr.bf16.mxu0 %v4408_v44  ;;  %v3981_v61 = vmul.f32 %v14864_v14, %v3725_v45  ;;  %v4095_v37 = vld [vmem:[#allocation2 + $0x71] sm:$0xff]  ;;  %v3648_v44 = vpack.c.bf16 %v3595_v17, %v3594_v6  ;;  %v12915_v45 = vmul.f32 %v9611_v4, %v12845_v48  ;;  %v12922_v17 = vpop.permute.xlu0 %4299  ;;  %v4097_v4 = vld [vmem:[#allocation2 + $0x81] sm:$0xff] }
 0x349   :  { %v4351_v49 = vmul.f32 %v12732_v51, %v4095_v37  ;;  %v4409_v60 = vpack.c.bf16 %v4349_v22, %v4348_v33  ;;  %v3983_v33 = vmul.f32 %v12571_v5, %v3727_v26  ;;  %v4096_v22 = vld [vmem:[#allocation2 + $0x79] sm:$0xff]  ;;  %v4353_v5 = vmul.f32 %v12759_v57, %v4097_v4  ;;  %v4099_v26 = vld [vmem:[#allocation2 + $0x91] sm:$0xff] }
 0x34a   :  { %v12908_v20 = vpop.f32.mrb[132].mxu0  ;;  %v4033_v11 = vpack.c.bf16 %v3981_v61, %v3980_v9  ;;  %v9612_v9 = vld [vmem:[#allocation2 + $0x1c1] sm:$0xff]  ;;  %v14868_v4 = vld [vmem:[#allocation96_spill] sm:$0xff] }
 0x34b   :  { %v12911_v38 = vpop.permute.xlu1 %4264  ;;  %v5513_v28 = vpop.f32.mrb[133].mxu0  ;;  %v4410_v6 = vpack.c.bf16 %v4351_v49, %v4350_v19  ;;  %v12929_v61 = vmul.f32 %v9612_v9, %v12864_v40  ;;  %v4352_v19 = vmul.f32 %v12852_v43, %v4096_v22  ;;  %v4355_v43 = vmul.f32 %v12782_v25, %v4099_v26  ;;  %v9614_v22 = vld [vmem:[#allocation2 + $0x1d1] sm:$0xff] }
 0x34c   :  { %v12918_v2 = vmul.f32 %v12911_v38, %v4134_v15  ;;  %v12920_v14 = vpop.f32.mrb[134].mxu0  ;;  %v4136_v28 = vld [vmem:[#allocation2 + $0x1b9] sm:$0xff]  ;;  %v9613_v15 = vld [vmem:[#allocation2 + $0xe8] sm:$0xff]  ;;  %v14869_v51 = vld [vmem:[#allocation56_spill] sm:$0xff] }
 0x34d   :  { %14865 = vst [vmem:[#allocation40_spill] sm:$0xff] %v12920_v14  ;;  %6321 = vmatmul.mubr.bf16.gmra.mrb[124].mxu1 %v3648_v44  ;;  %v5516_v35 = vpop.f32.mrb[135].mxu0  ;;  %v3982_v49 = vmul.f32 %v9613_v15, %v14781_v10  ;;  %v12948_v10 = vmul.f32 %v9614_v22, %v12895_v7  ;;  %v12950_v15 = vpop.permute.xlu0 %4309  ;;  %v4411_v57 = vpack.c.bf16 %v4353_v5, %v4352_v19  ;;  %v3343_v14 = vld [vmem:[#allocation2 + $0xef] sm:$0xff]  ;;  %v9615_v19 = vld [vmem:[#allocation2 + $0x1e1] sm:$0xff] }
 0x34e   :  { %6328 = vmatprep.mubr.bf16.mxu1 %v4033_v11  ;;  %v3599_v22 = vmul.f32 %v12591_v32, %v3343_v14  ;;  %v12966_v5 = vmul.f32 %v9615_v19, %v12922_v17  ;;  %v9616_v14 = vld [vmem:[#allocation2 + $0x100] sm:$0xff]  ;;  %v4358_v19 = vmul.f32 %v12911_v38, %v12824_v56 }
 0x34f   :  { %v12926_v37 = vpop.permute.xlu1 %4274  ;;  %8181 = vmatmul.mubr.bf16.gmra.mrb[196].mxu0 %v4409_v60  ;;  %v4354_v60 = vmul.f32 %v12873_v50, %v12751_v31  ;;  %v4034_v31 = vpack.c.bf16 %v3983_v33, %v3982_v49  ;;  %v3728_v33 = vld [vmem:[#allocation2 + $0xf8] sm:$0xff] }
 0x350   :  { %v12933_v44 = vmul.f32 %v12926_v37, %v4136_v28  ;;  %8184 = vmatprep.mubr.bf16.mxu0 %v4410_v6  ;;  %v4138_v6 = vld [vmem:[#allocation2 + $0x1c9] sm:$0xff] }
 0x351   :  { %v4412_v25 = vpack.c.bf16 %v4355_v43, %v4354_v60  ;;  %v14871_v43 = vld [vmem:[#allocation6_spill] sm:$0xff] }
 0x352   :  { %v12941_v35 = vpop.f32.mrb[136].mxu0 }
 0x353   :  { %14866 = vst [vmem:[#allocation28_spill] sm:$0xff] %v12941_v35  ;;  %v12944_v28 = vpop.permute.xlu1 %4284  ;;  %v5521_v9 = vpop.f32.mrb[137].mxu0  ;;  %v14870_v35 = vpack.c.bf16 %v14868_v4, %v14869_v51  ;;  %v3984_v51 = vmul.f32 %v12613_v12, %v3728_v33  ;;  %v3985_v4 = vmul.f32 %v9616_v14, %v14791_v42  ;;  %v9617_v14 = vld [vmem:[#allocation2 + $0x1f1] sm:$0xff] }
 0x354   :  { %v12953_v50 = vmul.f32 %v12944_v28, %v4138_v6  ;;  %v12955_v11 = vpop.f32.mrb[138].mxu0  ;;  %v4140_v6 = vld [vmem:[#allocation2 + $0x1d9] sm:$0xff]  ;;  %v12988_v26 = vmul.f32 %v9617_v14, %v12950_v15 }
 0x355   :  { %14867 = vst [vmem:[#allocation107_spill] sm:$0xff] %v12955_v11  ;;  %6329 = vmatmul.mubr.bf16.gmra.mrb[0].mxu1 %v14870_v35  ;;  %v5524_v9 = vpop.f32.mrb[139].mxu0  ;;  %v3342_v11 = vld [vmem:[#allocation2 + $0xe7] sm:$0xff]  ;;  %v4100_v35 = vld [vmem:[#allocation2 + $0x99] sm:$0xff]  ;;  %v4035_v56 = vpack.c.bf16 %v3985_v4, %v3984_v51 }
 0x356   :  { %6336 = vmatprep.mubr.bf16.mxu1 %v4034_v31  ;;  %v3598_v31 = vmul.f32 %v14871_v43, %v3342_v11  ;;  %v4356_v32 = vmul.f32 %v12890_v29, %v4100_v35  ;;  %v12975_v9 = vpop.permute.xlu0 %4319  ;;  %v4142_v29 = vld [vmem:[#allocation2 + $0x1e9] sm:$0xff]  ;;  %v4144_v51 = vld [vmem:[#allocation2 + $0x1f9] sm:$0xff]  ;;  %v9618_v4 = vld [vmem:[#allocation2 + $0x201] sm:$0xff] }
 0x357   :  { %v12963_v49 = vpop.permute.xlu1 %4294  ;;  %8185 = vmatmul.mubr.bf16.gmra.mrb[200].mxu0 %v4411_v57  ;;  %v4101_v57 = vld [vmem:[#allocation2 + $0xa1] sm:$0xff] }
 0x358   :  { %v12970_v60 = vmul.f32 %v12963_v49, %v4140_v6  ;;  %8188 = vmatprep.mubr.bf16.mxu0 %v4412_v25  ;;  %v4357_v25 = vmul.f32 %v12809_v59, %v4101_v57  ;;  %v4103_v6 = vld [vmem:[#allocation2 + $0xb1] sm:$0xff]  ;;  %v3650_v11 = vpack.c.bf16 %v3599_v22, %v3598_v31  ;;  %v3345_v22 = vld [vmem:[#allocation2 + $0xff] sm:$0xff] }
 0x359   :  { %v4359_v42 = vmul.f32 %v12845_v48, %v4103_v6  ;;  %v3601_v48 = vmul.f32 %v12650_v39, %v3345_v22  ;;  %v3731_v6 = vld [vmem:[#allocation2 + $0x110] sm:$0xff]  ;;  %v4105_v22 = vld [vmem:[#allocation2 + $0xc1] sm:$0xff] }
 0x35a   :  { %v12981_v33 = vpop.f32.mrb[140].mxu0  ;;  %v4147_v57 = vld [vmem:[#allocation2 + $0x211] sm:$0xff] }
 0x35b   :  { %14872 = vst [vmem:[#allocation42_spill] sm:$0xff] %v12981_v33  ;;  %v12984_v43 = vpop.permute.xlu1 %4304  ;;  %v5529_v35 = vpop.f32.mrb[141].mxu0  ;;  %v4413_v33 = vpack.c.bf16 %v4357_v25, %v4356_v32  ;;  %v4414_v31 = vpack.c.bf16 %v4359_v42, %v4358_v19  ;;  %v3344_v32 = vld [vmem:[#allocation2 + $0xf7] sm:$0xff]  ;;  %v3987_v25 = vmul.f32 %v12667_v47, %v3731_v6  ;;  %v4149_v47 = vld [vmem:[#allocation2 + $0x221] sm:$0xff] }
 0x35c   :  { %v12991_v38 = vmul.f32 %v12984_v43, %v4142_v29  ;;  %v12993_v12 = vpop.f32.mrb[142].mxu0  ;;  %v13001_v29 = vmul.f32 %v9618_v4, %v12975_v9  ;;  %v13007_v42 = vpop.permute.xlu0 %4329  ;;  %v3600_v39 = vmul.f32 %v12637_v63, %v3344_v32 }
 0x35d   :  { %14873 = vst [vmem:[#allocation110_spill] sm:$0xff] %v12993_v12  ;;  %6337 = vmatmul.mubr.bf16.gmra.mrb[4].mxu1 %v3650_v11  ;;  %v5532_v59 = vpop.f32.mrb[143].mxu0  ;;  %v4104_v11 = vld [vmem:[#allocation2 + $0xb9] sm:$0xff] }
 0x35e   :  { %6344 = vmatprep.mubr.bf16.mxu1 %v4035_v56  ;;  %v4360_v14 = vmul.f32 %v12926_v37, %v4104_v11  ;;  %v4106_v56 = vld [vmem:[#allocation2 + $0xc9] sm:$0xff]  ;;  %v3651_v12 = vpack.c.bf16 %v3601_v48, %v3600_v39  ;;  %v4148_v48 = vld [vmem:[#allocation2 + $0x219] sm:$0xff] }
 0x35f   :  { %v12998_v35 = vpop.permute.xlu1 %4314  ;;  %8189 = vmatmul.mubr.bf16.gmra.mrb[204].mxu0 %v4413_v33  ;;  %v9619_v33 = vld [vmem:[#allocation2 + $0x108] sm:$0xff]  ;;  %v4362_v4 = vmul.f32 %v12944_v28, %v4106_v56 }
 0x360   :  { %v13005_v19 = vmul.f32 %v12998_v35, %v4144_v51  ;;  %8192 = vmatprep.mubr.bf16.mxu0 %v4414_v31  ;;  %v3986_v59 = vmul.f32 %v9619_v33, %v14807_v46  ;;  %v4361_v31 = vmul.f32 %v12864_v40, %v4105_v22  ;;  %v4107_v51 = vld [vmem:[#allocation2 + $0xd1] sm:$0xff]  ;;  %v4146_v37 = vld [vmem:[#allocation2 + $0x209] sm:$0xff]  ;;  %v13022_v46 = vmul.f32 %v13007_v42, %v4147_v57 }
 0x361   :  { %v4363_v11 = vmul.f32 %v12895_v7, %v4107_v51  ;;  %v3347_v39 = vld [vmem:[#allocation2 + $0x10f] sm:$0xff]  ;;  %v13031_v51 = vpop.permute.xlu0 %4339 }
 0x362   :  { %v13015_v6 = vpop.f32.mrb[144].mxu0  ;;  %v4036_v28 = vpack.c.bf16 %v3987_v25, %v3986_v59  ;;  %v4415_v40 = vpack.c.bf16 %v4361_v31, %v4360_v14  ;;  %v3603_v57 = vmul.f32 %v12687_v34, %v3347_v39  ;;  %v3732_v25 = vld [vmem:[#allocation2 + $0x118] sm:$0xff]  ;;  %v13037_v14 = vmul.f32 %v13031_v51, %v4149_v47  ;;  %v4110_v34 = vld [vmem:[#allocation2 + $0xe9] sm:$0xff] }
 0x363   :  { %14874 = vst [vmem:[#allocation44_spill] sm:$0xff] %v13015_v6  ;;  %v13018_v63 = vpop.permute.xlu1 %4324  ;;  %v5537_v32 = vpop.f32.mrb[145].mxu0  ;;  %v4416_v6 = vpack.c.bf16 %v4363_v11, %v4362_v4  ;;  %v4108_v31 = vld [vmem:[#allocation2 + $0xd9] sm:$0xff]  ;;  %v4366_v7 = vmul.f32 %v12984_v43, %v4110_v34  ;;  %v9621_v47 = vld [vmem:[#allocation2 + $0x130] sm:$0xff] }
 0x364   :  { %v13025_v56 = vmul.f32 %v13018_v63, %v4146_v37  ;;  %v13027_v33 = vpop.f32.mrb[146].mxu0  ;;  %v3346_v37 = vld [vmem:[#allocation2 + $0x107] sm:$0xff] }
 0x365   :  { %14875 = vst [vmem:[#allocation29_spill] sm:$0xff] %v13027_v33  ;;  %6345 = vmatmul.mubr.bf16.gmra.mrb[8].mxu1 %v3651_v12  ;;  %v5540_v22 = vpop.f32.mrb[147].mxu0  ;;  %v3988_v12 = vmul.f32 %v12709_v18, %v3732_v25  ;;  %v14876_v32 = vld [vmem:[#allocation15_spill] sm:$0xff]  ;;  %v4111_v25 = vld [vmem:[#allocation2 + $0xf1] sm:$0xff] }
 0x366   :  { %6352 = vmatprep.mubr.bf16.mxu1 %v4036_v28  ;;  %v3602_v11 = vmul.f32 %v14876_v32, %v3346_v37  ;;  %v4364_v28 = vmul.f32 %v12963_v49, %v4108_v31  ;;  %v9620_v22 = vld [vmem:[#allocation2 + $0x120] sm:$0xff]  ;;  %v4367_v37 = vmul.f32 %v12950_v15, %v4111_v25 }
 0x367   :  { %v13034_v59 = vpop.permute.xlu1 %4334  ;;  %8193 = vmatmul.mubr.bf16.gmra.mrb[208].mxu0 %v4415_v40  ;;  %v3989_v39 = vmul.f32 %v9620_v22, %v12611_v23  ;;  %v4109_v40 = vld [vmem:[#allocation2 + $0xe1] sm:$0xff] }
 0x368   :  { %v13041_v4 = vmul.f32 %v13034_v59, %v4148_v48  ;;  %8196 = vmatprep.mubr.bf16.mxu0 %v4416_v6  ;;  %v4365_v48 = vmul.f32 %v12922_v17, %v4109_v40  ;;  %v3652_v6 = vpack.c.bf16 %v3603_v57, %v3602_v11  ;;  %v3349_v22 = vld [vmem:[#allocation2 + $0x11f] sm:$0xff]  ;;  %v4418_v43 = vpack.c.bf16 %v4367_v37, %v4366_v7  ;;  %v3348_v40 = vld [vmem:[#allocation2 + $0x117] sm:$0xff] }
 0x369   :  { %v4037_v49 = vpack.c.bf16 %v3989_v39, %v3988_v12  ;;  %v3605_v34 = vmul.f32 %v12739_v55, %v3349_v22  ;;  %v4112_v57 = vld [vmem:[#allocation2 + $0xf9] sm:$0xff]  ;;  %v3604_v15 = vmul.f32 %v12728_v27, %v3348_v40  ;;  %v4114_v12 = vld [vmem:[#allocation2 + $0x109] sm:$0xff]  ;;  %v4113_v11 = vld [vmem:[#allocation2 + $0x101] sm:$0xff] }
 0x36a   :  { %v13049_v18 = vpop.f32.mrb[148].mxu0  ;;  %v4417_v32 = vpack.c.bf16 %v4365_v48, %v4364_v28  ;;  %v9622_v28 = vld [vmem:[#allocation2 + $0x128] sm:$0xff]  ;;  %v14879_v39 = vld [vmem:[#allocation98_spill] sm:$0xff]  ;;  %v4370_v7 = vmul.f32 %v13018_v63, %v4114_v12  ;;  %v4369_v55 = vmul.f32 %v12975_v9, %v4113_v11  ;;  %v9623_v40 = vld [vmem:[#allocation2 + $0x138] sm:$0xff] }
 0x36b   :  { %14877 = vst [vmem:[#allocation25_spill] sm:$0xff] %v13049_v18  ;;  %v5545_v33 = vpop.f32.mrb[149].mxu0  ;;  %v14878_v18 = vld [vmem:[#allocation97_spill] sm:$0xff]  ;;  %v3990_v48 = vmul.f32 %v9622_v28, %v14879_v39  ;;  %v14880_v9 = vld [vmem:[#allocation58_spill] sm:$0xff]  ;;  %v14882_v11 = vld [vmem:[#allocation111_spill] sm:$0xff] }
 0x36c   :  { %v13053_v31 = vpop.f32.mrb[150].mxu0  ;;  %v3991_v17 = vmul.f32 %v9621_v47, %v14878_v18  ;;  %v4368_v33 = vmul.f32 %v12998_v35, %v4112_v57  ;;  %v3653_v47 = vpack.c.bf16 %v3605_v34, %v3604_v15  ;;  %v8992_v35 = vld [vmem:[%s14121_s7] sm:$0xff]  }
 0x36d   :  { %6353 = vmatmul.mubr.bf16.gmra.mrb[12].mxu1 %v3652_v6  ;;  %v5548_v23 = vpop.f32.mrb[151].mxu0  ;;  %v4115_v6 = vld [vmem:[#allocation2 + $0x111] sm:$0xff]  ;;  %8240 = vmatprep.subr.bf16.mxu0 %v8992_v35  ;;  %v9624_v12 = vld [vmem:[#allocation2 + $0x121] sm:$0xff] }
 0x36e   :  { %6360 = vmatprep.mubr.bf16.mxu1 %v4037_v49  ;;  %v4371_v37 = vmul.f32 %v13007_v42, %v4115_v6  ;;  %v4038_v49 = vpack.c.bf16 %v3991_v17, %v3990_v48  ;;  %v4419_v23 = vpack.c.bf16 %v4369_v55, %v4368_v33  ;;  %v14881_v42 = vld [vmem:[#allocation99_spill] sm:$0xff]  ;;  %8241 = vmatpush3.bf16.msra.mxu0 %v8992_v35  ;;  %v14883_v48 = vld [vmem:[#allocation114_spill] sm:$0xff] }
 0x36f   :  { %8197 = vmatmul.mubr.bf16.gmra.mrb[212].mxu0 %v4417_v32  ;;  %v3351_v32 = vld [vmem:[#allocation2 + $0x12f] sm:$0xff]  ;;  %v3992_v17 = vmul.f32 %v9623_v40, %v14881_v42  ;;  %v4373_v33 = vmul.f32 %v9624_v12, %v13031_v51 }
 0x370   :  { %8200 = vmatprep.mubr.bf16.mxu0 %v4418_v43  ;;  %v4420_v22 = vpack.c.bf16 %v4371_v37, %v4370_v7  ;;  %v4116_v43 = vld [vmem:[#allocation2 + $0x119] sm:$0xff]  ;;  %v3607_v34 = vmul.f32 %v14880_v9, %v3351_v32  ;;  %v14884_v51 = vld [vmem:[#allocation123_spill] sm:$0xff]  ;;  %v14888_v12 = vld [vmem:[#allocation60_spill] sm:$0xff] }
 0x371   :  { %v4372_v57 = vmul.f32 %v13034_v59, %v4116_v43  ;;  %v4039_v7 = vpack.c.bf16 %v14883_v48, %v3992_v17  ;;  %v3352_v59 = vld [vmem:[#allocation2 + $0x137] sm:$0xff]  ;;  %v14885_v32 = vpack.c.bf16 %v12771_v62, %v14884_v51  ;;  %v3355_v62 = vld [vmem:[#allocation2 + $0x14f] sm:$0xff] }
 0x372   :  { %v13061_v25 = vpop.f32.mrb[152].mxu0  ;;  %v3654_v28 = vpack.c.bf16 %v3607_v34, %v14882_v11  ;;  %v14887_v43 = vld [vmem:[#allocation112_spill] sm:$0xff] }
 0x373   :  { %v5553_v18 = vpop.f32.mrb[153].mxu0  ;;  %v4421_v6 = vpack.c.bf16 %v4373_v33, %v4372_v57  ;;  %v3611_v33 = vmul.f32 %v14888_v12, %v3355_v62  ;;  %v14889_v11 = vld [vmem:[#allocation4_spill] sm:$0xff] }
 0x374   :  { %v13065_v27 = vpop.f32.mrb[154].mxu0  ;;  %v3353_v18 = vld [vmem:[#allocation2 + $0x13f] sm:$0xff] }
 0x375   :  { %6361 = vmatmul.mubr.bf16.gmra.mrb[16].mxu1 %v3653_v47  ;;  %v5556_v63 = vpop.f32.mrb[155].mxu0  ;;  %v3609_v37 = vmul.f32 %v12093_v0, %v3353_v18  ;;  %v8993_v0 = vld [vmem:[%s14121_s7 + $0x8] sm:$0xff]  }
 0x376   :  { %6368 = vmatprep.mubr.bf16.mxu1 %v4038_v49  ;;  %v9625_v49 = vld [vmem:[#allocation2 + $0x150] sm:$0xff]  ;;  %v14886_v63 = vld [vmem:[#allocation101_spill] sm:$0xff]  ;;  %8242 = vmatprep.subr.bf16.mxu0 %v8993_v0 }
 0x377   :  { %8201 = vmatmul.mubr.bf16.gmra.mrb[216].mxu0 %v4419_v23  ;;  %v3995_v35 = vmul.f32 %v9625_v49, %v12102_v8  ;;  %v3738_v23 = vld [vmem:[#allocation2 + $0x148] sm:$0xff]  ;;  %v14894_v49 = vld [vmem:[#allocation117_spill] sm:$0xff] }
 0x378   :  { %8204 = vmatprep.mubr.bf16.mxu0 %v4420_v22  ;;  %v3608_v22 = vmul.f32 %v14886_v63, %v3352_v59  ;;  %v3994_v9 = vmul.f32 %v14887_v43, %v3738_v23  ;;  %8243 = vmatpush3.bf16.msra.mxu0 %v8993_v0 }
 0x37a   :  { %v13073_v15 = vpop.f32.mrb[156].mxu0  ;;  %v3655_v40 = vpack.c.bf16 %v3609_v37, %v3608_v22  ;;  %v4040_v17 = vpack.c.bf16 %v3995_v35, %v3994_v9  ;;  %v14895_v35 = vld [vmem:[#allocation105_spill] sm:$0xff]  ;;  %v8994_v22 = vld [vmem:[%s14121_s7 + $0x10] sm:$0xff]  }
 0x37b   :  { %v5561_v39 = vpop.f32.mrb[157].mxu0  ;;  %v14896_v51 = vpack.c.bf16 %v14894_v49, %v14895_v35  ;;  %v14900_v9 = vld [vmem:[#allocation116_spill] sm:$0xff]  ;;  %8244 = vmatprep.subr.bf16.mxu0 %v8994_v22 }
 0x37c   :  { %v13078_v55 = vpop.f32.mrb[158].mxu0  ;;  %v14891_v39 = vld [vmem:[#allocation34_spill] sm:$0xff]  ;;  %8245 = vmatpush3.bf16.msra.mxu0 %v8994_v22  ;;  %v14920_v35 = vld [vmem:[#allocation12_spill] sm:$0xff] }
 0x37d   :  { %6369 = vmatmul.mubr.bf16.gmra.mrb[20].mxu1 %v3654_v28  ;;  %v5564_v47 = vpop.f32.mrb[159].mxu0  ;;  %v14890_v28 = vpack.c.bf16 %v12780_v58, %v14889_v11  ;;  %v14892_v48 = vpack.c.bf16 %v12799_v30, %v14891_v39  ;;  %v14897_v58 = vld [vmem:[#allocation21_spill] sm:$0xff]  ;;  %v14899_v30 = vpack.c.bf16 %v12843_v41, %v12848_v1  ;;  %v14906_v41 = vpack.c.bf16 %v12855_v3, %v12859_v24  ;;  %v14910_v11 = vld [vmem:[#allocation115_spill] sm:$0xff] }
 0x37e   :  { %6376 = vmatprep.mubr.bf16.mxu1 %v4039_v7  ;;  %v14907_v1 = vpack.c.bf16 %v12877_v36, %v12880_v13  ;;  %v14916_v3 = vpack.c.bf16 %v12893_v16, %v12899_v53  ;;  %v14917_v24 = vpack.c.bf16 %v12915_v45, %v12918_v2  ;;  %v14923_v16 = vld [vmem:[#allocation88_spill] sm:$0xff]  ;;  %v14924_v53 = vld [vmem:[#allocation7_spill] sm:$0xff]  ;;  %v14926_v45 = vpack.c.bf16 %v12929_v61, %v12933_v44 }
 0x37f   :  { %8205 = vmatmul.mubr.bf16.gmra.mrb[220].mxu0 %v4421_v6  ;;  %v14893_v6 = vld [vmem:[#allocation121_spill] sm:$0xff]  ;;  %v14927_v2 = vpack.c.bf16 %v12948_v10, %v12953_v50  ;;  %v14936_v61 = vpack.c.bf16 %v12966_v5, %v12970_v60  ;;  %v14937_v44 = vpack.c.bf16 %v12988_v26, %v12991_v38  ;;  %v14946_v5 = vpack.c.bf16 %v13001_v29, %v13005_v19  ;;  %v8996_v19 = vld [vmem:[%s14121_s7 + $0x20] sm:$0xff]  }
 0x380   :  { %8208 = vmatprep.mubr.bf16.mxu0 %v14885_v32  ;;  %v3656_v47 = vpack.c.bf16 %v3611_v33, %v14893_v6  ;;  %v14898_v32 = vpack.c.bf16 %v12818_v54, %v14897_v58  ;;  %v14903_v54 = vld [vmem:[#allocation127_spill] sm:$0xff]  ;;  %v14913_v6 = vld [vmem:[#allocation126_spill] sm:$0xff]  ;;  %v14947_v26 = vpack.c.bf16 %v13022_v46, %v13025_v56  ;;  %v14956_v29 = vpack.c.bf16 %v13037_v14, %v13041_v4 }
 0x382   :  { %v13087_v34 = vpop.f32.mrb[160].mxu0 }
 0x383   :  { %v5569_v42 = vpop.f32.mrb[161].mxu0 }
 0x384   :  { %v13092_v57 = vpop.f32.mrb[162].mxu0 }
 0x385   :  { %6377 = vmatmul.mubr.bf16.gmra.mrb[24].mxu1 %v3655_v40  ;;  %v5572_v8 = vpop.f32.mrb[163].mxu0  ;;  %v14901_v40 = vld [vmem:[#allocation62_spill] sm:$0xff] }
 0x386   :  { %6384 = vmatprep.mubr.bf16.mxu1 %v4040_v17  ;;  %v14902_v42 = vpack.c.bf16 %v14900_v9, %v14901_v40  ;;  %v14904_v17 = vld [vmem:[#allocation64_spill] sm:$0xff]  ;;  %v14930_v40 = vld [vmem:[#allocation122_spill] sm:$0xff] }
 0x387   :  { %8209 = vmatmul.mubr.bf16.gmra.mrb[224].mxu0 %v14890_v28  ;;  %v14905_v8 = vpack.c.bf16 %v14903_v54, %v14904_v17  ;;  %v14911_v28 = vld [vmem:[#allocation82_spill] sm:$0xff] }
 0x388   :  { %8212 = vmatprep.mubr.bf16.mxu0 %v14892_v48  ;;  %v14912_v39 = vpack.c.bf16 %v14910_v11, %v14911_v28  ;;  %v14933_v17 = vld [vmem:[#allocation22_spill] sm:$0xff] }
 0x389   :  { %v14941_v11 = vld [vmem:[#allocation90_spill] sm:$0xff] }
 0x38a   :  { %v13101_v7 = vpop.f32.mrb[164].mxu0 }
 0x38b   :  { %v5577_v18 = vpop.f32.mrb[165].mxu0 }
 0x38c   :  { %v13104_v37 = vpop.f32.mrb[166].mxu0 }
 0x38d   :  { %6385 = vmatmul.mubr.bf16.gmra.mrb[28].mxu1 %v3656_v47  ;;  %v5580_v59 = vpop.f32.mrb[167].mxu0  ;;  %v14914_v47 = vld [vmem:[#allocation13_spill] sm:$0xff] }
 0x38e   :  { %6392 = vmatprep.mubr.bf16.mxu1 %v14896_v51  ;;  %v14915_v18 = vpack.c.bf16 %v14913_v6, %v14914_v47  ;;  %v8995_v59 = vld [vmem:[%s14121_s7 + $0x18] sm:$0xff]   ;;  %v14921_v51 = vld [vmem:[#allocation11_spill] sm:$0xff]  ;;  %v14944_v6 = vld [vmem:[#allocation14_spill] sm:$0xff] }
 0x38f   :  { %8213 = vmatmul.mubr.bf16.gmra.mrb[228].mxu0 %v14898_v32  ;;  %v14922_v58 = vpack.c.bf16 %v14920_v35, %v14921_v51  ;;  %8246 = vmatprep.subr.bf16.mxu0 %v8995_v59  ;;  %v14953_v35 = vld [vmem:[#allocation91_spill] sm:$0xff]  ;;  %v14954_v51 = vld [vmem:[#allocation53_spill] sm:$0xff] }
 0x390   :  { %8216 = vmatprep.mubr.bf16.mxu0 %v14899_v30  ;;  %v14925_v30 = vpack.c.bf16 %v14923_v16, %v14924_v53  ;;  %8247 = vmatpush3.bf16.msra.mxu0 %v8995_v59  ;;  %v14957_v16 = vld [vmem:[#allocation87_spill] sm:$0xff]  ;;  %v14958_v53 = vld [vmem:[#allocation92_spill] sm:$0xff] }
 0x391   :  { %8248 = vmatprep.subr.bf16.mxu0 %v8996_v19 }
 0x392   :  { %v13115_v23 = vpop.f32.mrb[168].mxu0 }
 0x393   :  { %v5585_v63 = vpop.f32.mrb[169].mxu0 }
 0x394   :  { %v13120_v43 = vpop.f32.mrb[170].mxu0  ;;  %8249 = vmatpush3.bf16.msra.mxu0 %v8996_v19  ;;  %v14972_v19 = vld [vmem:[#allocation73_spill] sm:$0xff] }
 0x395   :  { %6393 = vmatmul.mubr.bf16.gmra.mrb[32].mxu1 %v14902_v42  ;;  %v5588_v0 = vpop.f32.mrb[171].mxu0  ;;  %v14931_v42 = vld [vmem:[#allocation103_spill] sm:$0xff] }
 0x396   :  { %6400 = vmatprep.mubr.bf16.mxu1 %v14905_v8  ;;  %v14932_v0 = vpack.c.bf16 %v14930_v40, %v14931_v42  ;;  %v14934_v8 = vld [vmem:[#allocation24_spill] sm:$0xff]  ;;  %v13226_v42 = vld [vmem:[%s14122_s6] ss:$0 sm:$0xff] }
 0x397   :  { %8217 = vmatmul.mubr.bf16.gmra.mrb[232].mxu0 %v14906_v41  ;;  %v14935_v41 = vpack.c.bf16 %v14933_v17, %v14934_v8  ;;  %v14964_v17 = vld [vmem:[#allocation94_spill] sm:$0xff] }
 0x398   :  { %8220 = vmatprep.mubr.bf16.mxu0 %v14907_v1 }
 0x39a   :  { %v13134_v62 = vpop.f32.mrb[172].mxu0 }
 0x39b   :  { %14908 = vst [vmem:[#allocation5_spill] sm:$0xff] %v13134_v62  ;;  %v5593_v12 = vpop.f32.mrb[173].mxu0 }
 0x39c   :  { %v13136_v33 = vpop.f32.mrb[174].mxu0  ;;  %v14940_v12 = vld [vmem:[#allocation106_spill] sm:$0xff] }
 0x39d   :  { %14909 = vst [vmem:[#allocation48_spill] sm:$0xff] %v13136_v33  ;;  %6401 = vmatmul.mubr.bf16.gmra.mrb[36].mxu1 %v14912_v39  ;;  %v5596_v48 = vpop.f32.mrb[175].mxu0  ;;  %v14942_v28 = vpack.c.bf16 %v14940_v12, %v14941_v11 }
 0x39e   :  { %6408 = vmatprep.mubr.bf16.mxu1 %v14915_v18  ;;  %v14943_v48 = vld [vmem:[#allocation26_spill] sm:$0xff] }
 0x39f   :  { %8221 = vmatmul.mubr.bf16.gmra.mrb[236].mxu0 %v14916_v3  ;;  %v14945_v47 = vpack.c.bf16 %v14943_v48, %v14944_v6  ;;  %v14950_v3 = vld [vmem:[#allocation18_spill] sm:$0xff] }
 0x3a0   :  { %8224 = vmatprep.mubr.bf16.mxu0 %v14917_v24  ;;  %v14951_v24 = vld [vmem:[#allocation131_spill] sm:$0xff] }
 0x3a2   :  { %v13150_v36 = vpop.f32.mrb[176].mxu0 }
 0x3a3   :  { %14918 = vst [vmem:[#allocation46_spill] sm:$0xff] %v13150_v36  ;;  %v5601_v13 = vpop.f32.mrb[177].mxu0 }
 0x3a4   :  { %v13155_v49 = vpop.f32.mrb[178].mxu0  ;;  %v14952_v13 = vpack.c.bf16 %v14950_v3, %v14951_v24 }
 0x3a5   :  { %14919 = vst [vmem:[#allocation50_spill] sm:$0xff] %v13155_v49  ;;  %6409 = vmatmul.mubr.bf16.gmra.mrb[40].mxu1 %v14922_v58  ;;  %v5604_v32 = vpop.f32.mrb[179].mxu0  ;;  %v14955_v58 = vpack.c.bf16 %v14953_v35, %v14954_v51  ;;  %v14970_v35 = vld [vmem:[#allocation66_spill] sm:$0xff] }
 0x3a6   :  { %6416 = vmatprep.mubr.bf16.mxu1 %v14925_v30  ;;  %v14959_v30 = vpack.c.bf16 %v14957_v16, %v14958_v53 }
 0x3a7   :  { %8225 = vmatmul.mubr.bf16.gmra.mrb[240].mxu0 %v14926_v45 }
 0x3a8   :  { %8228 = vmatprep.mubr.bf16.mxu0 %v14927_v2  ;;  %v14960_v2 = vld [vmem:[#allocation128_spill] sm:$0xff] }
 0x3aa   :  { %v13169_v63 = vpop.f32.mrb[180].mxu0 }
 0x3ab   :  { %14928 = vst [vmem:[#allocation31_spill] sm:$0xff] %v13169_v63  ;;  %v5609_v22 = vpop.f32.mrb[181].mxu0 }
 0x3ac   :  { %v13171_v9 = vpop.f32.mrb[182].mxu0  ;;  %v14961_v22 = vld [vmem:[#allocation93_spill] sm:$0xff] }
 0x3ad   :  { %14929 = vst [vmem:[#allocation9_spill] sm:$0xff] %v13171_v9  ;;  %6417 = vmatmul.mubr.bf16.gmra.mrb[44].mxu1 %v14932_v0  ;;  %v5612_v54 = vpop.f32.mrb[183].mxu0  ;;  %v14962_v40 = vpack.c.bf16 %v14960_v2, %v14961_v22  ;;  %v8999_v22 = vld [vmem:[%s14121_s7 + $0x38] sm:$0xff]  }
 0x3ae   :  { %6424 = vmatprep.mubr.bf16.mxu1 %v14935_v41  ;;  %v14963_v54 = vld [vmem:[#allocation75_spill] sm:$0xff] }
 0x3af   :  { %8229 = vmatmul.mubr.bf16.gmra.mrb[244].mxu0 %v14936_v61  ;;  %v14965_v8 = vpack.c.bf16 %v14963_v54, %v14964_v17  ;;  %v14975_v17 = vld [vmem:[#allocation77_spill] sm:$0xff] }
 0x3b0   :  { %8232 = vmatprep.mubr.bf16.mxu0 %v14937_v44  ;;  %v14966_v44 = vld [vmem:[#allocation54_spill] sm:$0xff] }
 0x3b2   :  { %v13185_v10 = vpop.f32.mrb[184].mxu0 }
 0x3b3   :  { %14938 = vst [vmem:[#allocation52_spill] sm:$0xff] %v13185_v10  ;;  %v5617_v50 = vpop.f32.mrb[185].mxu0 }
 0x3b4   :  { %v13187_v1 = vpop.f32.mrb[186].mxu0  ;;  %v14967_v50 = vld [vmem:[#allocation104_spill] sm:$0xff] }
 0x3b5   :  { %14939 = vst [vmem:[#allocation120_spill] sm:$0xff] %v13187_v1  ;;  %6425 = vmatmul.mubr.bf16.gmra.mrb[48].mxu1 %v14942_v28  ;;  %v5620_v39 = vpop.f32.mrb[187].mxu0  ;;  %v14968_v12 = vpack.c.bf16 %v14966_v44, %v14967_v50  ;;  %v14978_v44 = vld [vmem:[#allocation79_spill] sm:$0xff]  ;;  %v14979_v50 = vld [vmem:[#allocation102_spill] sm:$0xff] }
 0x3b6   :  { %6432 = vmatprep.mubr.bf16.mxu1 %v14945_v47  ;;  %v8997_v39 = vld [vmem:[%s14121_s7 + $0x28] sm:$0xff]  }
 0x3b7   :  { %8233 = vmatmul.mubr.bf16.gmra.mrb[248].mxu0 %v14946_v5  ;;  %8250 = vmatprep.subr.bf16.mxu0 %v8997_v39 }
 0x3b8   :  { %8236 = vmatprep.mubr.bf16.mxu0 %v14947_v26  ;;  %8251 = vmatpush3.bf16.msra.mxu0 %v8997_v39 }
 0x3ba   :  { %v13201_v60 = vpop.f32.mrb[188].mxu0 }
 0x3bb   :  { %14948 = vst [vmem:[#allocation55_spill] sm:$0xff] %v13201_v60  ;;  %v5625_v38 = vpop.f32.mrb[189].mxu0 }
 0x3bc   :  { %v13203_v18 = vpop.f32.mrb[190].mxu0 }
 0x3bd   :  { %14949 = vst [vmem:[#allocation33_spill] sm:$0xff] %v13203_v18  ;;  %6433 = vmatmul.mubr.bf16.gmra.mrb[52].mxu1 %v14952_v13  ;;  %v5628_v59 = vpop.f32.mrb[191].mxu0  ;;  %v8998_v13 = vld [vmem:[%s14121_s7 + $0x30] sm:$0xff]  }
 0x3be   :  { %6440 = vmatprep.mubr.bf16.mxu1 %v14955_v58  ;;  %v14969_v59 = vld [vmem:[#allocation109_spill] sm:$0xff]  ;;  %8252 = vmatprep.subr.bf16.mxu0 %v8998_v13 }
 0x3bf   :  { %8237 = vmatmul.mubr.bf16.gmra.mrb[252].mxu0 %v14956_v29  ;;  %v14971_v51 = vpack.c.bf16 %v14969_v59, %v14970_v35 }
 0x3c0   :  { %8253 = vmatpush3.bf16.msra.mxu0 %v8998_v13 }
 0x3c1   :  { %8254 = vmatprep.subr.bf16.mxu0 %v8999_v22 }
 0x3c2   :  { %v5664_v46 = vpop.f32.mrb[64].mxu0 }
 0x3c3   :  { %v5666_v56 = vpop.f32.mrb[65].mxu0  ;;  %v8352_v41 = vadd.f32 %v13226_v42, %v5664_v46  ;;  %v14973_v46 = vld [vmem:[#allocation71_spill] sm:$0xff] }
 0x3c4   :  { %v5667_v32 = vpop.f32.mrb[66].mxu0  ;;  %v14974_v56 = vpack.c.bf16 %v14972_v19, %v14973_v46  ;;  %8255 = vmatpush3.bf16.msra.mxu0 %v8999_v22  ;;  %v14984_v46 = vld [vmem:[#allocation136_spill] sm:$0xff] }
 0x3c5   :  { %6441 = vmatmul.mubr.bf16.gmra.mrb[56].mxu1 %v14959_v30  ;;  %v5669_v45 = vpop.f32.mrb[67].mxu0  ;;  %v8354_v11 = vadd.f32 %v13226_v42, %v5667_v32 }
 0x3c6   :  { %6448 = vmatprep.mubr.bf16.mxu1 %v14962_v40 }
 0x3ca   :  { %v5672_v14 = vpop.f32.mrb[68].mxu0 }
 0x3cb   :  { %v5674_v4 = vpop.f32.mrb[69].mxu0  ;;  %v8356_v58 = vadd.f32 %v13226_v42, %v5672_v14 }
 0x3cc   :  { %v5675_v0 = vpop.f32.mrb[70].mxu0 }
 0x3cd   :  { %6449 = vmatmul.mubr.bf16.gmra.mrb[60].mxu1 %v14965_v8  ;;  %v5677_v61 = vpop.f32.mrb[71].mxu0  ;;  %v8358_v32 = vadd.f32 %v13226_v42, %v5675_v0  ;;  %v14976_v8 = vld [vmem:[#allocation86_spill] sm:$0xff] }
 0x3ce   :  { %6456 = vmatprep.mubr.bf16.mxu1 %v14968_v12  ;;  %v14977_v0 = vpack.c.bf16 %v14975_v17, %v14976_v8  ;;  %v14980_v12 = vpack.c.bf16 %v14978_v44, %v14979_v50 }
 0x3d0   :  { %v6242_v28 = vpop.f32.mrb[84].mxu1 }
 0x3d1   :  { %v6244_v48 = vpop.f32.mrb[85].mxu1  ;;  %v13239_v6 = vadd.f32 %v8352_v41, %v6242_v28 }
 0x3d2   :  { %v6245_v47 = vpop.f32.mrb[86].mxu1  ;;  %v5680_v5 = vpop.f32.mrb[72].mxu0 }
 0x3d3   :  { %v6247_v26 = vpop.f32.mrb[87].mxu1  ;;  %v5682_v38 = vpop.f32.mrb[73].mxu0  ;;  %v13241_v3 = vadd.f32 %v8354_v11, %v6245_v47  ;;  %v8360_v41 = vadd.f32 %v13226_v42, %v5680_v5  ;;  %v14981_v5 = vld [vmem:[#allocation137_spill] sm:$0xff] }
 0x3d4   :  { %v5683_v24 = vpop.f32.mrb[74].mxu0 }
 0x3d5   :  { %6457 = vmatmul.mubr.bf16.gmra.mrb[64].mxu1 %v14971_v51  ;;  %v5685_v29 = vpop.f32.mrb[75].mxu0  ;;  %v8362_v11 = vadd.f32 %v13226_v42, %v5683_v24  ;;  %v14982_v51 = vld [vmem:[#allocation135_spill] sm:$0xff]  ;;  %v14985_v24 = vld [vmem:[#allocation81_spill] sm:$0xff] }
 0x3d6   :  { %6464 = vmatprep.mubr.bf16.mxu1 %v14974_v56  ;;  %v14986_v56 = vpack.c.bf16 %v14984_v46, %v14985_v24  ;;  %v14993_v46 = vld [vmem:[#allocation20_spill] sm:$0xff] }
 0x3d8   :  { %v6250_v16 = vpop.f32.mrb[88].mxu1 }
 0x3d9   :  { %v6252_v53 = vpop.f32.mrb[89].mxu1  ;;  %v13254_v30 = vadd.f32 %v8356_v58, %v6250_v16  ;;  %v14983_v58 = vpack.c.bf16 %v14981_v5, %v14982_v51 }
 0x3da   :  { %v6253_v45 = vpop.f32.mrb[90].mxu1  ;;  %v5688_v2 = vpop.f32.mrb[76].mxu0 }
 0x3db   :  { %v6255_v40 = vpop.f32.mrb[91].mxu1  ;;  %v5690_v14 = vpop.f32.mrb[77].mxu0  ;;  %v13259_v4 = vadd.f32 %v8358_v32, %v6253_v45  ;;  %v8364_v29 = vadd.f32 %v13226_v42, %v5688_v2  ;;  %v14988_v2 = vld [vmem:[#allocation17_spill] sm:$0xff] }
 0x3dc   :  { %v5691_v54 = vpop.f32.mrb[78].mxu0 }
 0x3dd   :  { %6465 = vmatmul.mubr.bf16.gmra.mrb[68].mxu1 %v14977_v0  ;;  %v5693_v61 = vpop.f32.mrb[79].mxu0  ;;  %v8366_v32 = vadd.f32 %v13226_v42, %v5691_v54  ;;  %v14991_v54 = vld [vmem:[#allocation113_spill] sm:$0xff] }
 0x3de   :  { %6472 = vmatprep.mubr.bf16.mxu1 %v14980_v12  ;;  %v14990_v12 = vld [vmem:[#allocation119_spill] sm:$0xff] }
 0x3e0   :  { %v6258_v28 = vpop.f32.mrb[92].mxu1 }
 0x3e1   :  { %v6260_v39 = vpop.f32.mrb[93].mxu1  ;;  %v13269_v48 = vadd.f32 %v8360_v41, %v6258_v28  ;;  %v14987_v41 = vld [vmem:[#allocation132_spill] sm:$0xff] }
 0x3e2   :  { %v6261_v47 = vpop.f32.mrb[94].mxu1  ;;  %v5696_v26 = vpop.f32.mrb[80].mxu0  ;;  %v14989_v61 = vpack.c.bf16 %v14987_v41, %v14988_v2 }
 0x3e3   :  { %v6263_v38 = vpop.f32.mrb[95].mxu1  ;;  %v5698_v13 = vpop.f32.mrb[81].mxu0  ;;  %v13271_v59 = vadd.f32 %v8362_v11, %v6261_v47  ;;  %v8368_v44 = vadd.f32 %v13226_v42, %v5696_v26  ;;  %v14992_v11 = vpack.c.bf16 %v14990_v12, %v14991_v54  ;;  %v14994_v26 = vld [vmem:[#allocation133_spill] sm:$0xff] }
 0x3e4   :  { %v5699_v35 = vpop.f32.mrb[82].mxu0  ;;  %v14995_v24 = vpack.c.bf16 %v14993_v46, %v14994_v26 }
 0x3e5   :  { %6473 = vmatmul.mubr.bf16.gmra.mrb[72].mxu1 %v14983_v58  ;;  %v5701_v19 = vpop.f32.mrb[83].mxu0  ;;  %v8370_v28 = vadd.f32 %v13226_v42, %v5699_v35 }
 0x3e6   :  { %6480 = vmatprep.mubr.bf16.mxu1 %v14986_v56 }
 0x3e8   :  { %v6266_v16 = vpop.f32.mrb[96].mxu1 }
 0x3e9   :  { %v6268_v53 = vpop.f32.mrb[97].mxu1  ;;  %v13281_v45 = vadd.f32 %v8364_v29, %v6266_v16 }
 0x3ea   :  { %v6269_v22 = vpop.f32.mrb[98].mxu1  ;;  %v5704_v40 = vpop.f32.mrb[84].mxu0 }
 0x3eb   :  { %v6271_v14 = vpop.f32.mrb[99].mxu1  ;;  %v5706_v17 = vpop.f32.mrb[85].mxu0  ;;  %v13283_v8 = vadd.f32 %v8366_v32, %v6269_v22  ;;  %v8372_v56 = vadd.f32 %v13226_v42, %v5704_v40 }
 0x3ec   :  { %v5707_v0 = vpop.f32.mrb[86].mxu0 }
 0x3ed   :  { %6481 = vmatmul.mubr.bf16.gmra.mrb[76].mxu1 %v14989_v61  ;;  %v5709_v50 = vpop.f32.mrb[87].mxu0  ;;  %v8374_v35 = vadd.f32 %v13226_v42, %v5707_v0 }
 0x3ee   :  { %6488 = vmatprep.mubr.bf16.mxu1 %v14992_v11 }
 0x3f0   :  { %v6274_v39 = vpop.f32.mrb[100].mxu1 }
 0x3f1   :  { %v6276_v47 = vpop.f32.mrb[101].mxu1  ;;  %v13293_v38 = vadd.f32 %v8368_v44, %v6274_v39 }
 0x3f2   :  { %v6277_v13 = vpop.f32.mrb[102].mxu1  ;;  %v5712_v5 = vpop.f32.mrb[88].mxu0 }
 0x3f3   :  { %v6279_v51 = vpop.f32.mrb[103].mxu1  ;;  %v5714_v58 = vpop.f32.mrb[89].mxu0  ;;  %v13295_v29 = vadd.f32 %v8370_v28, %v6277_v13  ;;  %v8376_v50 = vadd.f32 %v13226_v42, %v5712_v5 }
 0x3f4   :  { %v5715_v19 = vpop.f32.mrb[90].mxu0 }
 0x3f5   :  { %6489 = vmatmul.mubr.bf16.gmra.mrb[80].mxu1 %v14995_v24  ;;  %v5717_v32 = vpop.f32.mrb[91].mxu0  ;;  %v8378_v54 = vadd.f32 %v13226_v42, %v5715_v19 }
 0x3f8   :  { %v6282_v16 = vpop.f32.mrb[104].mxu1 }
 0x3f9   :  { %v6284_v53 = vpop.f32.mrb[105].mxu1  ;;  %v13302_v22 = vadd.f32 %v8372_v56, %v6282_v16 }
 0x3fa   :  { %v6285_v14 = vpop.f32.mrb[106].mxu1  ;;  %v5720_v17 = vpop.f32.mrb[92].mxu0 }
 0x3fb   :  { %v6287_v41 = vpop.f32.mrb[107].mxu1  ;;  %v5722_v2 = vpop.f32.mrb[93].mxu0  ;;  %v13304_v61 = vadd.f32 %v8374_v35, %v6285_v14  ;;  %v8380_v46 = vadd.f32 %v13226_v42, %v5720_v17 }
 0x3fc   :  { %v5723_v44 = vpop.f32.mrb[94].mxu0 }
 0x3fd   :  { %v5725_v12 = vpop.f32.mrb[95].mxu0  ;;  %v8382_v24 = vadd.f32 %v13226_v42, %v5723_v44 }
 0x400   :  { %v6290_v40 = vpop.f32.mrb[108].mxu1 }
 0x401   :  { %v6292_v11 = vpop.f32.mrb[109].mxu1  ;;  %v13308_v28 = vadd.f32 %v8376_v50, %v6290_v40 }
 0x402   :  { %v6293_v0 = vpop.f32.mrb[110].mxu1  ;;  %v5728_v39 = vpop.f32.mrb[96].mxu0 }
 0x403   :  { %v6295_v47 = vpop.f32.mrb[111].mxu1  ;;  %v5730_v13 = vpop.f32.mrb[97].mxu0  ;;  %v13310_v51 = vadd.f32 %v8378_v54, %v6293_v0  ;;  %v8384_v2 = vadd.f32 %v13226_v42, %v5728_v39 }
 0x404   :  { %v5731_v58 = vpop.f32.mrb[98].mxu0 }
 0x405   :  { %v5733_v26 = vpop.f32.mrb[99].mxu0  ;;  %v8386_v12 = vadd.f32 %v13226_v42, %v5731_v58 }
 0x408   :  { %v6298_v5 = vpop.f32.mrb[112].mxu1 }
 0x409   :  { %v6300_v56 = vpop.f32.mrb[113].mxu1  ;;  %v13314_v32 = vadd.f32 %v8380_v46, %v6298_v5 }
 0x40a   :  { %v6301_v19 = vpop.f32.mrb[114].mxu1  ;;  %v5736_v35 = vpop.f32.mrb[100].mxu0 }
 0x40b   :  { %v6303_v16 = vpop.f32.mrb[115].mxu1  ;;  %v5738_v53 = vpop.f32.mrb[101].mxu0  ;;  %v13316_v14 = vadd.f32 %v8382_v24, %v6301_v19  ;;  %v8388_v26 = vadd.f32 %v13226_v42, %v5736_v35 }
 0x40c   :  { %v5739_v41 = vpop.f32.mrb[102].mxu0 }
 0x40d   :  { %v5741_v50 = vpop.f32.mrb[103].mxu0  ;;  %v8390_v5 = vadd.f32 %v13226_v42, %v5739_v41 }
 0x410   :  { %v6306_v17 = vpop.f32.mrb[116].mxu1 }
 0x411   :  { %v6308_v54 = vpop.f32.mrb[117].mxu1  ;;  %v13320_v40 = vadd.f32 %v8384_v2, %v6306_v17 }
 0x412   :  { %v6309_v44 = vpop.f32.mrb[118].mxu1  ;;  %v5744_v11 = vpop.f32.mrb[104].mxu0 }
 0x413   :  { %v6311_v0 = vpop.f32.mrb[119].mxu1  ;;  %v5746_v47 = vpop.f32.mrb[105].mxu0  ;;  %v13322_v13 = vadd.f32 %v8386_v12, %v6309_v44  ;;  %v8392_v54 = vadd.f32 %v13226_v42, %v5744_v11 }
 0x414   :  { %v5747_v46 = vpop.f32.mrb[106].mxu0 }
 0x415   :  { %v5749_v24 = vpop.f32.mrb[107].mxu0 }
 0x418   :  { %v6314_v39 = vpop.f32.mrb[120].mxu1 }
 0x419   :  { %v6316_v56 = vpop.f32.mrb[121].mxu1  ;;  %v13326_v19 = vadd.f32 %v8388_v26, %v6314_v39  ;;  %v8394_v26 = vadd.f32 %v13226_v42, %v5747_v46 }
 0x41a   :  { %v6317_v58 = vpop.f32.mrb[122].mxu1  ;;  %v8178_v16 = vpop.f32.mrb[192].mxu0 }
 0x41b   :  { %v6319_v53 = vpop.f32.mrb[123].mxu1  ;;  %v13329_v2 = vadd.f32 %v13254_v30, %v8178_v16  ;;  %v6531_v50 = vpop.f32.mrb[193].mxu0  ;;  %v13331_v17 = vadd.f32 %v8390_v5, %v6317_v58 }
 0x41c   :  { %v13334_v12 = vadd.f32 %v13239_v6, %v6531_v50  ;;  %v8179_v35 = vpop.f32.mrb[194].mxu0 }
 0x41d   :  { %v7904_v41 = vmul.f32 -1.442695, %v13329_v2  ;;  %v13339_v44 = vadd.f32 %v13259_v4, %v8179_v35  ;;  %v6534_v0 = vpop.f32.mrb[195].mxu0 }
 0x41e   :  { %v7902_v47 = vmul.f32 -1.442695, %v13334_v12  ;;  %v13343_v30 = vadd.f32 %v13241_v3, %v6534_v0 }
 0x41f   :  { %9256 = vpow2.f32 %v7904_v41  ;;  %v7905_v6 = vmul.f32 -1.442695, %v13339_v44 }
 0x420   :  { %v6322_v24 = vpop.f32.mrb[124].mxu1  ;;  %9258 = vpow2.f32 %v7902_v47  ;;  %v7903_v11 = vmul.f32 -1.442695, %v13343_v30 }
 0x421   :  { %v6324_v5 = vpop.f32.mrb[125].mxu1  ;;  %9260 = vpow2.f32 %v7905_v6  ;;  %v13348_v39 = vadd.f32 %v8392_v54, %v6322_v24 }
 0x422   :  { %v6325_v4 = vpop.f32.mrb[126].mxu1  ;;  %9262 = vpow2.f32 %v7903_v11  ;;  %v8182_v56 = vpop.f32.mrb[196].mxu0  ;;  %v14997_v5 = vld [vmem:[#allocation19_spill] sm:$0xff] }
 0x423   :  { %v6327_v58 = vpop.f32.mrb[127].mxu1  ;;  %v13351_v3 = vadd.f32 %v13281_v45, %v8182_v56  ;;  %v6547_v16 = vpop.f32.mrb[197].mxu0  ;;  %v13353_v46 = vadd.f32 %v8394_v26, %v6325_v4  ;;  %v14996_v45 = vld [vmem:[#allocation108_spill] sm:$0xff] }
 0x424   :  { %v13356_v53 = vadd.f32 %v13269_v48, %v6547_v16  ;;  %v8183_v50 = vpop.f32.mrb[198].mxu0  ;;  %v5464_v6 = vadd.f32 %v13226_v42, %v14996_v45 }
 0x425   :  { %v7908_v35 = vmul.f32 -1.442695, %v13351_v3  ;;  %v13360_v41 = vadd.f32 %v13283_v8, %v8183_v50  ;;  %v6550_v54 = vpop.f32.mrb[199].mxu0  ;;  %v5467_v8 = vadd.f32 %v13226_v42, %v14997_v5 }
 0x426   :  { %v7906_v0 = vmul.f32 -1.442695, %v13356_v53  ;;  %v13364_v47 = vadd.f32 %v13271_v59, %v6550_v54 }
 0x427   :  { %9264 = vpow2.f32 %v7908_v35  ;;  %v7909_v26 = vmul.f32 -1.442695, %v13360_v41 }
 0x428   :  { %v6330_v48 = vpop.f32.mrb[0].mxu1  ;;  %9266 = vpow2.f32 %v7906_v0  ;;  %v7907_v24 = vmul.f32 -1.442695, %v13364_v47 }
 0x429   :  { %v9257_v11 = vpop.eup %9256  ;;  %v13372_v4 = vadd.f32 %v6330_v48, %v5464_v6  ;;  %v6332_v56 = vpop.f32.mrb[1].mxu1  ;;  %9268 = vpow2.f32 %v7909_v26 }
 0x42a   :  { %v9259_v59 = vpop.eup %9258  ;;  %v6333_v58 = vpop.f32.mrb[2].mxu1  ;;  %v6980_v16 = vadd.f32 1.0, %v9257_v11  ;;  %9270 = vpow2.f32 %v7907_v24 }
 0x42b   :  { %v8186_v50 = vpop.f32.mrb[200].mxu0  ;;  %v9261_v35 = vpop.eup %9260  ;;  %v13374_v54 = vadd.f32 %v6333_v58, %v5467_v8  ;;  %v6978_v0 = vadd.f32 1.0, %v9259_v59  ;;  %v14998_v59 = vld [vmem:[#allocation118_spill] sm:$0xff] }
 0x42c   :  { %v6335_v45 = vpop.f32.mrb[3].mxu1  ;;  %v13377_v18 = vadd.f32 %v13302_v22, %v8186_v50  ;;  %v6563_v60 = vpop.f32.mrb[201].mxu0  ;;  %9272 = vrcp.f32 %v6980_v16  ;;  %v6981_v6 = vadd.f32 1.0, %v9261_v35  ;;  %v5472_v58 = vadd.f32 %v13226_v42, %v14998_v59 }
 0x42d   :  { %v9263_v1 = vpop.eup %9262  ;;  %v13380_v48 = vadd.f32 %v13293_v38, %v6563_v60  ;;  %v8187_v26 = vpop.f32.mrb[202].mxu0  ;;  %9274 = vrcp.f32 %v6978_v0 }
 0x42e   :  { %v6979_v11 = vadd.f32 1.0, %v9263_v1  ;;  %v7912_v24 = vmul.f32 -1.442695, %v13377_v18  ;;  %v13384_v5 = vadd.f32 %v13304_v61, %v8187_v26  ;;  %v6566_v8 = vpop.f32.mrb[203].mxu0  ;;  %9276 = vrcp.f32 %v6981_v6  ;;  %v14999_v61 = vld [vmem:[#allocation95_spill] sm:$0xff] }
 0x42f   :  { %v7910_v22 = vmul.f32 -1.442695, %v13380_v48  ;;  %v13388_v56 = vadd.f32 %v13295_v29, %v6566_v8  ;;  %v5475_v50 = vadd.f32 %v13226_v42, %v14999_v61 }
 0x430   :  { %9278 = vrcp.f32 %v6979_v11  ;;  %v7913_v60 = vmul.f32 -1.442695, %v13384_v5  ;;  %v6338_v38 = vpop.f32.mrb[4].mxu1 }
 0x431   :  { %9280 = vpow2.f32 %v7912_v24  ;;  %v7911_v1 = vmul.f32 -1.442695, %v13388_v56  ;;  %v9265_v16 = vpop.eup %9264  ;;  %v13396_v35 = vadd.f32 %v6338_v38, %v5472_v58  ;;  %v6340_v45 = vpop.f32.mrb[5].mxu1 }
 0x432   :  { %9282 = vpow2.f32 %v7910_v22  ;;  %v9267_v29 = vpop.eup %9266  ;;  %v6341_v0 = vpop.f32.mrb[6].mxu1  ;;  %v6984_v6 = vadd.f32 1.0, %v9265_v16 }
 0x433   :  { %9284 = vpow2.f32 %v7913_v60  ;;  %v8190_v26 = vpop.f32.mrb[204].mxu0  ;;  %v9269_v11 = vpop.eup %9268  ;;  %v13398_v8 = vadd.f32 %v6341_v0, %v5475_v50  ;;  %v6982_v24 = vadd.f32 1.0, %v9267_v29 }
 0x434   :  { %v6343_v59 = vpop.f32.mrb[7].mxu1  ;;  %9286 = vpow2.f32 %v7911_v1  ;;  %v13401_v10 = vadd.f32 %v13314_v32, %v8190_v26  ;;  %v6579_v9 = vpop.f32.mrb[205].mxu0  ;;  %v6985_v58 = vadd.f32 1.0, %v9269_v11  ;;  %v15001_v11 = vld [vmem:[#allocation30_spill] sm:$0xff] }
 0x435   :  { %v9271_v61 = vpop.eup %9270  ;;  %9288 = vrcp.f32 %v6984_v6  ;;  %v13404_v22 = vadd.f32 %v13308_v28, %v6579_v9  ;;  %v8191_v38 = vpop.f32.mrb[206].mxu0  ;;  %v15000_v6 = vld [vmem:[#allocation27_spill] sm:$0xff] }
 0x436   :  { %9290 = vrcp.f32 %v6982_v24  ;;  %v6983_v60 = vadd.f32 1.0, %v9271_v61  ;;  %v7916_v16 = vmul.f32 -1.442695, %v13401_v10  ;;  %v13408_v50 = vadd.f32 %v13316_v14, %v8191_v38  ;;  %v6582_v45 = vpop.f32.mrb[207].mxu0  ;;  %v9273_v1 = vpop.eup %9272 }
 0x437   :  { %9292 = vrcp.f32 %v6985_v58  ;;  %v7914_v32 = vmul.f32 -1.442695, %v13404_v22  ;;  %v13412_v29 = vadd.f32 %v13310_v51, %v6582_v45  ;;  %v9275_v0 = vpop.eup %9274  ;;  %v5480_v9 = vadd.f32 %v13226_v42, %v15000_v6 }
 0x438   :  { %9294 = vrcp.f32 %v6983_v60  ;;  %v7917_v28 = vmul.f32 -1.442695, %v13408_v50  ;;  %v9277_v26 = vpop.eup %9276  ;;  %v5483_v14 = vadd.f32 %v13226_v42, %v15001_v11  ;;  %v6346_v59 = vpop.f32.mrb[8].mxu1  ;;  %v7172_v58 = vmul.f32 %v9273_v1, %v13329_v2 }
 0x439   :  { %9296 = vpow2.f32 %v7916_v16  ;;  %v7915_v24 = vmul.f32 -1.442695, %v13412_v29  ;;  %v7173_v51 = vmul.f32 %v9277_v26, %v13339_v44  ;;  %v13422_v38 = vadd.f32 %v6346_v59, %v5480_v9  ;;  %v6348_v45 = vpop.f32.mrb[9].mxu1 }
 0x43a   :  { %v9279_v61 = vpop.eup %9278  ;;  %9298 = vpow2.f32 %v7914_v32  ;;  %v7170_v6 = vmul.f32 %v9275_v0, %v13334_v12  ;;  %v6349_v49 = vpop.f32.mrb[10].mxu1  ;;  %v15003_v45 = vld [vmem:[#allocation32_spill] sm:$0xff] }
 0x43b   :  { %v9281_v60 = vpop.eup %9280  ;;  %v7171_v63 = vmul.f32 %v9279_v61, %v13343_v30  ;;  %9300 = vpow2.f32 %v7917_v28  ;;  %v8194_v11 = vpop.f32.mrb[208].mxu0  ;;  %v7235_v36 = vpack.c.bf16 %v7173_v51, %v7172_v58  ;;  %v13426_v33 = vadd.f32 %v6349_v49, %v5483_v14 }
 0x43c   :  { %v9283_v16 = vpop.eup %9282  ;;  %v6351_v62 = vpop.f32.mrb[11].mxu1  ;;  %v6988_v2 = vadd.f32 1.0, %v9281_v60  ;;  %9302 = vpow2.f32 %v7915_v24  ;;  %v13429_v32 = vadd.f32 %v13326_v19, %v8194_v11  ;;  %v5491_v60 = vadd.f32 %v13226_v42, %v15003_v45 }
 0x43d   :  { %v6595_v44 = vpop.f32.mrb[209].mxu0  ;;  %v9285_v1 = vpop.eup %9284  ;;  %v6986_v9 = vadd.f32 1.0, %v9283_v16  ;;  %v7234_v0 = vpack.c.bf16 %v7171_v63, %v7170_v6 }
 0x43e   :  { %v13432_v12 = vadd.f32 %v13320_v40, %v6595_v44  ;;  %v8195_v30 = vpop.f32.mrb[210].mxu0  ;;  %v9287_v28 = vpop.eup %9286  ;;  %9304 = vrcp.f32 %v6988_v2  ;;  %v6989_v26 = vadd.f32 1.0, %v9285_v1  ;;  %v7920_v24 = vmul.f32 -1.442695, %v13429_v32  ;;  %v15002_v40 = vld [vmem:[#allocation23_spill] sm:$0xff] }
 0x43f   :  { %v13435_v49 = vadd.f32 %v13331_v17, %v8195_v30  ;;  %v6598_v62 = vpop.f32.mrb[211].mxu0  ;;  %v9289_v14 = vpop.eup %9288  ;;  %9306 = vrcp.f32 %v6986_v9  ;;  %v6987_v59 = vadd.f32 1.0, %v9287_v28  ;;  %8256 = vmatprep.mubr.bf16.mxu0 %v7234_v0  ;;  %v5488_v58 = vadd.f32 %v13226_v42, %v15002_v40 }
 0x440   :  { %v7918_v19 = vmul.f32 -1.442695, %v13432_v12  ;;  %v9291_v61 = vpop.eup %9290  ;;  %9308 = vrcp.f32 %v6989_v26  ;;  %v13443_v51 = vadd.f32 %v13322_v13, %v6598_v62  ;;  %8257 = vmatmul.mubr.bf16.vlgmr.msra.gmra.mrb[0].mxu0 %v7235_v36  ;;  %v7176_v6 = vmul.f32 %v9289_v14, %v13351_v3  ;;  %v6354_v11 = vpop.f32.mrb[12].mxu1 }
 0x441   :  { %v7921_v63 = vmul.f32 -1.442695, %v13435_v49  ;;  %v9293_v17 = vpop.eup %9292  ;;  %9310 = vrcp.f32 %v6987_v59  ;;  %v13449_v44 = vadd.f32 %v6354_v11, %v5488_v58  ;;  %v6356_v1 = vpop.f32.mrb[13].mxu1  ;;  %v7174_v36 = vmul.f32 %v9291_v61, %v13356_v53 }
 0x442   :  { %v9295_v16 = vpop.eup %9294  ;;  %v7177_v2 = vmul.f32 %v9293_v17, %v13360_v41  ;;  %9312 = vpow2.f32 %v7920_v24  ;;  %v7919_v9 = vmul.f32 -1.442695, %v13443_v51  ;;  %v6357_v0 = vpop.f32.mrb[14].mxu1 }
 0x443   :  { %v9297_v13 = vpop.eup %9296  ;;  %v7175_v30 = vmul.f32 %v9295_v16, %v13364_v47  ;;  %9314 = vpow2.f32 %v7918_v19  ;;  %v8198_v28 = vpop.f32.mrb[212].mxu0  ;;  %v13454_v62 = vadd.f32 %v6357_v0, %v5491_v60  ;;  %v15004_v16 = vld [vmem:[#allocation36_spill] sm:$0xff] }
 0x444   :  { %v9299_v3 = vpop.eup %9298  ;;  %v7237_v26 = vpack.c.bf16 %v7177_v2, %v7176_v6  ;;  %v6359_v14 = vpop.f32.mrb[15].mxu1  ;;  %v6992_v41 = vadd.f32 1.0, %v9297_v13  ;;  %9316 = vpow2.f32 %v7921_v63  ;;  %v13457_v58 = vadd.f32 %v13372_v4, %v8198_v28 }
 0x445   :  { %v6611_v59 = vpop.f32.mrb[213].mxu0  ;;  %v9301_v40 = vpop.eup %9300  ;;  %v6990_v24 = vadd.f32 1.0, %v9299_v3  ;;  %9318 = vpow2.f32 %v7919_v9  ;;  %v7236_v60 = vpack.c.bf16 %v7175_v30, %v7174_v36  ;;  %v15005_v36 = vld [vmem:[#allocation38_spill] sm:$0xff] }
 0x446   :  { %v13460_v53 = vadd.f32 %v13348_v39, %v6611_v59  ;;  %v8199_v47 = vpop.f32.mrb[214].mxu0  ;;  %v9303_v19 = vpop.eup %9302  ;;  %9320 = vrcp.f32 %v6992_v41  ;;  %v6993_v61 = vadd.f32 1.0, %v9301_v40  ;;  %v7924_v6 = vmul.f32 -1.442695, %v13457_v58 }
 0x447   :  { %v13463_v17 = vadd.f32 %v13374_v54, %v8199_v47  ;;  %v6614_v45 = vpop.f32.mrb[215].mxu0  ;;  %9322 = vrcp.f32 %v6990_v24  ;;  %v6991_v63 = vadd.f32 1.0, %v9303_v19  ;;  %v5496_v39 = vadd.f32 %v13226_v42, %v15004_v16  ;;  %8260 = vmatprep.mubr.bf16.mxu0 %v7236_v60 }
 0x448   :  { %v7922_v11 = vmul.f32 -1.442695, %v13460_v53  ;;  %v9305_v4 = vpop.eup %9304  ;;  %9324 = vrcp.f32 %v6993_v61  ;;  %v13471_v1 = vadd.f32 %v13353_v46, %v6614_v45  ;;  %v6362_v9 = vpop.f32.mrb[16].mxu1  ;;  %8261 = vmatmul.mubr.bf16.gmra.mrb[4].mxu0 %v7237_v26  ;;  %v5499_v30 = vadd.f32 %v13226_v42, %v15005_v36 }
 0x449   :  { %v7925_v2 = vmul.f32 -1.442695, %v13463_v17  ;;  %v9307_v54 = vpop.eup %9306  ;;  %9326 = vrcp.f32 %v6991_v63  ;;  %v13475_v0 = vadd.f32 %v6362_v9, %v5496_v39  ;;  %v6364_v28 = vpop.f32.mrb[17].mxu1  ;;  %v7180_v41 = vmul.f32 %v9305_v4, %v13377_v18 }
 0x44a   :  { %v9309_v13 = vpop.eup %9308  ;;  %9328 = vpow2.f32 %v7924_v6  ;;  %v7923_v3 = vmul.f32 -1.442695, %v13471_v1  ;;  %v7178_v46 = vmul.f32 %v9307_v54, %v13380_v48  ;;  %v6365_v40 = vpop.f32.mrb[18].mxu1 }
 0x44b   :  { %v9311_v14 = vpop.eup %9310  ;;  %v7181_v59 = vmul.f32 %v9309_v13, %v13384_v5  ;;  %9330 = vpow2.f32 %v7922_v11  ;;  %v8202_v26 = vpop.f32.mrb[216].mxu0  ;;  %v8415_v19 = vadd.f32 %v6365_v40, %v5499_v30  ;;  %v5512_v40 = vadd.f32 %v13226_v42, %v12908_v20 }
 0x44c   :  { %v9313_v24 = vpop.eup %9312  ;;  %v7179_v47 = vmul.f32 %v9311_v14, %v13388_v56  ;;  %v6367_v61 = vpop.f32.mrb[19].mxu1  ;;  %9332 = vpow2.f32 %v7925_v2  ;;  %v13483_v45 = vadd.f32 %v13422_v38, %v8202_v26 }
 0x44d   :  { %v6627_v60 = vpop.f32.mrb[217].mxu0  ;;  %v9315_v63 = vpop.eup %9314  ;;  %v7239_v6 = vpack.c.bf16 %v7181_v59, %v7180_v41  ;;  %v6996_v18 = vadd.f32 1.0, %v9313_v24  ;;  %9334 = vpow2.f32 %v7923_v3 }
 0x44e   :  { %v13486_v48 = vadd.f32 %v13396_v35, %v6627_v60  ;;  %v8203_v5 = vpop.f32.mrb[218].mxu0  ;;  %v9317_v11 = vpop.eup %9316  ;;  %v6994_v4 = vadd.f32 1.0, %v9315_v63  ;;  %v7238_v39 = vpack.c.bf16 %v7179_v47, %v7178_v46  ;;  %v7928_v54 = vmul.f32 -1.442695, %v13483_v45 }
 0x44f   :  { %v13489_v16 = vadd.f32 %v13426_v33, %v8203_v5  ;;  %v6630_v56 = vpop.f32.mrb[219].mxu0  ;;  %v9319_v2 = vpop.eup %9318  ;;  %9336 = vrcp.f32 %v6996_v18  ;;  %v6997_v38 = vadd.f32 1.0, %v9317_v11  ;;  %v5504_v35 = vadd.f32 %v13226_v42, %v12870_v21 }
 0x450   :  { %v13493_v9 = vadd.f32 %v13398_v8, %v6630_v56  ;;  %v9321_v13 = vpop.eup %9320  ;;  %9338 = vrcp.f32 %v6994_v4  ;;  %v6995_v36 = vadd.f32 1.0, %v9319_v2  ;;  %v7926_v30 = vmul.f32 -1.442695, %v13486_v48  ;;  %8264 = vmatprep.mubr.bf16.mxu0 %v7238_v39  ;;  %v6370_v28 = vpop.f32.mrb[20].mxu1 }
 0x451   :  { %v9323_v33 = vpop.eup %9322  ;;  %9340 = vrcp.f32 %v6997_v38  ;;  %v7929_v3 = vmul.f32 -1.442695, %v13489_v16  ;;  %8265 = vmatmul.mubr.bf16.gmra.mrb[8].mxu0 %v7239_v6  ;;  %v5507_v8 = vadd.f32 %v13226_v42, %v12882_v52  ;;  %v13501_v41 = vadd.f32 %v6370_v28, %v5504_v35  ;;  %v6372_v46 = vpop.f32.mrb[21].mxu1 }
 0x452   :  { %v9325_v14 = vpop.eup %9324  ;;  %9342 = vrcp.f32 %v6995_v36  ;;  %v7927_v21 = vmul.f32 -1.442695, %v13493_v9  ;;  %v7184_v26 = vmul.f32 %v9321_v13, %v13401_v10  ;;  %v6373_v47 = vpop.f32.mrb[22].mxu1  ;;  %v7182_v39 = vmul.f32 %v9323_v33, %v13404_v22 }
 0x453   :  { %v9327_v59 = vpop.eup %9326  ;;  %v7185_v24 = vmul.f32 %v9325_v14, %v13408_v50  ;;  %9344 = vpow2.f32 %v7928_v54  ;;  %v8206_v61 = vpop.f32.mrb[220].mxu0  ;;  %v13509_v63 = vadd.f32 %v6373_v47, %v5507_v8 }
 0x454   :  { %v9329_v60 = vpop.eup %9328  ;;  %v7183_v52 = vmul.f32 %v9327_v59, %v13412_v29  ;;  %v6375_v6 = vpop.f32.mrb[23].mxu1  ;;  %9346 = vpow2.f32 %v7926_v30  ;;  %v13512_v18 = vadd.f32 %v13475_v0, %v8206_v61 }
 0x455   :  { %v6643_v5 = vpop.f32.mrb[221].mxu0  ;;  %v9331_v11 = vpop.eup %9330  ;;  %v7241_v20 = vpack.c.bf16 %v7185_v24, %v7184_v26  ;;  %v7000_v4 = vadd.f32 1.0, %v9329_v60  ;;  %9348 = vpow2.f32 %v7929_v3  ;;  %v15006_v3 = vld [vmem:[#allocation40_spill] sm:$0xff] }
 0x456   :  { %v13515_v10 = vadd.f32 %v13449_v44, %v6643_v5  ;;  %v8207_v50 = vpop.f32.mrb[222].mxu0  ;;  %v9333_v56 = vpop.eup %9332  ;;  %v6998_v29 = vadd.f32 1.0, %v9331_v11  ;;  %9350 = vpow2.f32 %v7927_v21  ;;  %v7932_v13 = vmul.f32 -1.442695, %v13512_v18 }
 0x457   :  { %v13518_v2 = vadd.f32 %v8415_v19, %v8207_v50  ;;  %v6646_v38 = vpop.f32.mrb[223].mxu0  ;;  %v9335_v54 = vpop.eup %9334  ;;  %9352 = vrcp.f32 %v7000_v4  ;;  %v7001_v0 = vadd.f32 1.0, %v9333_v56  ;;  %v7240_v30 = vpack.c.bf16 %v7183_v52, %v7182_v39 }
 0x458   :  { %v13522_v35 = vadd.f32 %v13454_v62, %v6646_v38  ;;  %9354 = vrcp.f32 %v6998_v29  ;;  %v6999_v44 = vadd.f32 1.0, %v9335_v54  ;;  %v7930_v36 = vmul.f32 -1.442695, %v13515_v10  ;;  %v6378_v22 = vpop.f32.mrb[24].mxu1  ;;  %v15007_v38 = vld [vmem:[#allocation28_spill] sm:$0xff] }
 0x459   :  { %v9337_v28 = vpop.eup %9336  ;;  %9356 = vrcp.f32 %v7001_v0  ;;  %v7933_v19 = vmul.f32 -1.442695, %v13518_v2  ;;  %v5515_v14 = vadd.f32 %v13226_v42, %v15006_v3  ;;  %v8421_v8 = vadd.f32 %v6378_v22, %v5512_v40  ;;  %v6380_v46 = vpop.f32.mrb[25].mxu1  ;;  %8268 = vmatprep.mubr.bf16.mxu0 %v7240_v30  ;;  %v15008_v3 = vld [vmem:[#allocation107_spill] sm:$0xff] }
 0x45a   :  { %v9339_v33 = vpop.eup %9338  ;;  %9358 = vrcp.f32 %v6999_v44  ;;  %v7931_v62 = vmul.f32 -1.442695, %v13522_v35  ;;  %v7188_v59 = vmul.f32 %v9337_v28, %v13429_v32  ;;  %v6381_v26 = vpop.f32.mrb[26].mxu1  ;;  %8269 = vmatmul.mubr.bf16.gmra.mrb[12].mxu0 %v7241_v20  ;;  %v5520_v54 = vadd.f32 %v13226_v42, %v15007_v38 }
 0x45b   :  { %v9341_v21 = vpop.eup %9340  ;;  %9360 = vpow2.f32 %v7932_v13  ;;  %v8210_v24 = vpop.f32.mrb[224].mxu0  ;;  %v8423_v60 = vadd.f32 %v6381_v26, %v5515_v14  ;;  %v7186_v20 = vmul.f32 %v9339_v33, %v13432_v12  ;;  %v5523_v14 = vadd.f32 %v13226_v42, %v15008_v3 }
 0x45c   :  { %v9343_v47 = vpop.eup %9342  ;;  %v7189_v61 = vmul.f32 %v9341_v21, %v13435_v49  ;;  %v6383_v52 = vpop.f32.mrb[27].mxu1  ;;  %9362 = vpow2.f32 %v7930_v36  ;;  %v13531_v6 = vadd.f32 %v8421_v8, %v8210_v24 }
 0x45d   :  { %v6659_v40 = vpop.f32.mrb[225].mxu0  ;;  %v9345_v5 = vpop.eup %9344  ;;  %v7187_v11 = vmul.f32 %v9343_v47, %v13443_v51  ;;  %9364 = vpow2.f32 %v7933_v19 }
 0x45e   :  { %v13535_v4 = vadd.f32 %v13501_v41, %v6659_v40  ;;  %v8211_v32 = vpop.f32.mrb[226].mxu0  ;;  %v9347_v50 = vpop.eup %9346  ;;  %v7243_v56 = vpack.c.bf16 %v7189_v61, %v7188_v59  ;;  %v7004_v39 = vadd.f32 1.0, %v9345_v5  ;;  %9366 = vpow2.f32 %v7931_v62 }
 0x45f   :  { %v6662_v49 = vpop.f32.mrb[227].mxu0  ;;  %v9349_v29 = vpop.eup %9348  ;;  %v7002_v0 = vadd.f32 1.0, %v9347_v50  ;;  %v13540_v13 = vadd.f32 %v8423_v60, %v8211_v32  ;;  %v7936_v36 = vmul.f32 -1.442695, %v13531_v6  ;;  %v7242_v12 = vpack.c.bf16 %v7187_v11, %v7186_v20 }
 0x460   :  { %v13543_v51 = vadd.f32 %v13509_v63, %v6662_v49  ;;  %v9351_v41 = vpop.eup %9350  ;;  %9368 = vrcp.f32 %v7004_v39  ;;  %v7005_v44 = vadd.f32 1.0, %v9349_v29  ;;  %v6386_v22 = vpop.f32.mrb[28].mxu1  ;;  %v7934_v19 = vmul.f32 -1.442695, %v13535_v4  ;;  %v15009_v29 = vld [vmem:[#allocation42_spill] sm:$0xff] }
 0x461   :  { %v9353_v30 = vpop.eup %9352  ;;  %9370 = vrcp.f32 %v7002_v0  ;;  %v7003_v28 = vadd.f32 1.0, %v9351_v41  ;;  %v8425_v8 = vadd.f32 %v6386_v22, %v5520_v54  ;;  %v6388_v63 = vpop.f32.mrb[29].mxu1  ;;  %v7937_v46 = vmul.f32 -1.442695, %v13540_v13  ;;  %8272 = vmatprep.mubr.bf16.mxu0 %v7242_v12  ;;  %v15010_v22 = vld [vmem:[#allocation110_spill] sm:$0xff] }
 0x462   :  { %v9355_v33 = vpop.eup %9354  ;;  %9372 = vrcp.f32 %v7005_v44  ;;  %v6389_v21 = vpop.f32.mrb[30].mxu1  ;;  %v7935_v59 = vmul.f32 -1.442695, %v13543_v51  ;;  %8273 = vmatmul.mubr.bf16.gmra.mrb[16].mxu0 %v7243_v56  ;;  %v7192_v47 = vmul.f32 %v9353_v30, %v13457_v58 }
 0x463   :  { %v9357_v62 = vpop.eup %9356  ;;  %9374 = vrcp.f32 %v7003_v28  ;;  %v8214_v26 = vpop.f32.mrb[228].mxu0  ;;  %v8427_v60 = vadd.f32 %v6389_v21, %v5523_v14  ;;  %v7190_v20 = vmul.f32 %v9355_v33, %v13460_v53 }
 0x464   :  { %v9359_v24 = vpop.eup %9358  ;;  %v7193_v61 = vmul.f32 %v9357_v62, %v13463_v17  ;;  %v6391_v42 = vpop.f32.mrb[31].mxu1  ;;  %9376 = vpow2.f32 %v7936_v36  ;;  %v13560_v17 = vld [vmem:[%s14122_s6] ss:$0 sm:$0xff] }
 0x465   :  { %v6675_v52 = vpop.f32.mrb[229].mxu0  ;;  %v9361_v40 = vpop.eup %9360  ;;  %v7191_v5 = vmul.f32 %v9359_v24, %v13471_v1  ;;  %9378 = vpow2.f32 %v7934_v19  ;;  %v5528_v1 = vadd.f32 %v13560_v17, %v15009_v29  ;;  %v5531_v19 = vadd.f32 %v13560_v17, %v15010_v22 }
 0x466   :  { %v13554_v11 = vadd.f32 %v8425_v8, %v6675_v52  ;;  %v8215_v32 = vpop.f32.mrb[230].mxu0  ;;  %v9363_v50 = vpop.eup %9362  ;;  %v7245_v56 = vpack.c.bf16 %v7193_v61, %v7192_v47  ;;  %v7008_v39 = vadd.f32 1.0, %v9361_v40  ;;  %9380 = vpow2.f32 %v7937_v46 }
 0x467   :  { %v6678_v58 = vpop.f32.mrb[231].mxu0  ;;  %v9365_v49 = vpop.eup %9364  ;;  %v7006_v38 = vadd.f32 1.0, %v9363_v50  ;;  %9382 = vpow2.f32 %v7935_v59  ;;  %v7244_v44 = vpack.c.bf16 %v7191_v5, %v7190_v20 }
 0x468   :  { %v13564_v54 = vadd.f32 %v8427_v60, %v6678_v58  ;;  %v9367_v0 = vpop.eup %9366  ;;  %9384 = vrcp.f32 %v7008_v39  ;;  %v7009_v53 = vadd.f32 1.0, %v9365_v49  ;;  %v7938_v41 = vmul.f32 -1.442695, %v13554_v11  ;;  %v6394_v12 = vpop.f32.mrb[32].mxu1 }
 0x469   :  { %9386 = vrcp.f32 %v7006_v38  ;;  %v7007_v36 = vadd.f32 1.0, %v9367_v0  ;;  %v8429_v33 = vadd.f32 %v6394_v12, %v5528_v1  ;;  %v6396_v3 = vpop.f32.mrb[33].mxu1  ;;  %8276 = vmatprep.mubr.bf16.mxu0 %v7244_v44 }
 0x46a   :  { %v7939_v30 = vmul.f32 -1.442695, %v13564_v54  ;;  %v9369_v28 = vpop.eup %9368  ;;  %9388 = vrcp.f32 %v7009_v53  ;;  %v6397_v8 = vpop.f32.mrb[34].mxu1  ;;  %8277 = vmatmul.mubr.bf16.gmra.mrb[20].mxu0 %v7245_v56 }
 0x46b   :  { %v9371_v14 = vpop.eup %9370  ;;  %9390 = vrcp.f32 %v7007_v36  ;;  %v13570_v63 = vpop.f32.mrb[232].mxu0  ;;  %v8431_v62 = vadd.f32 %v6397_v8, %v5531_v19  ;;  %v13572_v59 = vadd.f32 %v8429_v33, %v8214_v26  ;;  %v7196_v61 = vmul.f32 %v9369_v28, %v13483_v45  ;;  %v15011_v45 = vld [vmem:[#allocation44_spill] sm:$0xff] }
 0x46c   :  { %v9373_v46 = vpop.eup %9372  ;;  %v6399_v21 = vpop.f32.mrb[35].mxu1  ;;  %9392 = vpow2.f32 %v7938_v41  ;;  %v7194_v40 = vmul.f32 %v9371_v14, %v13486_v48 }
 0x46d   :  { %v6691_v24 = vpop.f32.mrb[233].mxu0  ;;  %v9375_v47 = vpop.eup %9374  ;;  %v7197_v60 = vmul.f32 %v9373_v46, %v13489_v16  ;;  %9394 = vpow2.f32 %v7939_v30  ;;  %v7940_v50 = vmul.f32 -1.442695, %v13572_v59  ;;  %v13581_v20 = vadd.f32 %v8431_v62, %v8215_v32  ;;  %v15012_v32 = vld [vmem:[#allocation29_spill] sm:$0xff] }
 0x46e   :  { %v13576_v42 = vpop.f32.mrb[234].mxu0  ;;  %v9377_v52 = vpop.eup %9376  ;;  %v7195_v5 = vmul.f32 %v9375_v47, %v13493_v9  ;;  %v5536_v16 = vadd.f32 %v13560_v17, %v15011_v45  ;;  %v5539_v41 = vadd.f32 %v13560_v17, %v15012_v32 }
 0x46f   :  { %v6694_v26 = vpop.f32.mrb[235].mxu0  ;;  %v9379_v56 = vpop.eup %9378  ;;  %v7247_v39 = vpack.c.bf16 %v7197_v60, %v7196_v61  ;;  %v7012_v58 = vadd.f32 1.0, %v9377_v52  ;;  %9396 = vpow2.f32 %v7940_v50  ;;  %v7941_v9 = vmul.f32 -1.442695, %v13581_v20 }
 0x470   :  { %v9381_v49 = vpop.eup %9380  ;;  %v7010_v29 = vadd.f32 1.0, %v9379_v56  ;;  %v7246_v1 = vpack.c.bf16 %v7195_v5, %v7194_v40  ;;  %v6402_v0 = vpop.f32.mrb[36].mxu1  ;;  %v15013_v56 = vld [vmem:[#allocation25_spill] sm:$0xff] }
 0x471   :  { %v9383_v38 = vpop.eup %9382  ;;  %9398 = vrcp.f32 %v7012_v58  ;;  %v7013_v48 = vadd.f32 1.0, %v9381_v49  ;;  %v8433_v36 = vadd.f32 %v6402_v0, %v5536_v16  ;;  %v6404_v12 = vpop.f32.mrb[37].mxu1 }
 0x472   :  { %v9385_v53 = vpop.eup %9384  ;;  %9400 = vrcp.f32 %v7010_v29  ;;  %v7011_v44 = vadd.f32 1.0, %v9383_v38  ;;  %8280 = vmatprep.mubr.bf16.mxu0 %v7246_v1  ;;  %v6405_v28 = vpop.f32.mrb[38].mxu1 }
 0x473   :  { %v9387_v30 = vpop.eup %9386  ;;  %9402 = vrcp.f32 %v7013_v48  ;;  %8281 = vmatmul.mubr.bf16.gmra.mrb[24].mxu0 %v7247_v39  ;;  %v13588_v22 = vpop.f32.mrb[236].mxu0  ;;  %v8435_v33 = vadd.f32 %v6405_v28, %v5539_v41  ;;  %v13590_v14 = vadd.f32 %v8433_v36, %v6691_v24  ;;  %v7200_v62 = vmul.f32 %v9385_v53, %v13512_v18 }
 0x474   :  { %v9389_v19 = vpop.eup %9388  ;;  %9404 = vrcp.f32 %v7011_v44  ;;  %v6407_v3 = vpop.f32.mrb[39].mxu1  ;;  %v7198_v60 = vmul.f32 %v9387_v30, %v13515_v10  ;;  %v5544_v18 = vadd.f32 %v13560_v17, %v15013_v56 }
 0x475   :  { %v13592_v8 = vpop.f32.mrb[237].mxu0  ;;  %v9391_v46 = vpop.eup %9390  ;;  %v7201_v21 = vmul.f32 %v9389_v19, %v13518_v2  ;;  %9406 = vpow2.f32 %v7941_v9  ;;  %v7942_v40 = vmul.f32 -1.442695, %v13590_v14  ;;  %v13601_v5 = vadd.f32 %v8435_v33, %v6694_v26 }
 0x476   :  { %v13596_v47 = vpop.f32.mrb[238].mxu0  ;;  %v9393_v61 = vpop.eup %9392  ;;  %v7199_v52 = vmul.f32 %v9391_v46, %v13522_v35  ;;  %v5547_v26 = vadd.f32 %v13560_v17, %v13053_v31 }
 0x477   :  { %v13603_v24 = vpop.f32.mrb[239].mxu0  ;;  %v9395_v50 = vpop.eup %9394  ;;  %v7249_v39 = vpack.c.bf16 %v7201_v21, %v7200_v62  ;;  %v7014_v2 = vadd.f32 1.0, %v9393_v61  ;;  %9408 = vpow2.f32 %v7942_v40  ;;  %v7943_v49 = vmul.f32 -1.442695, %v13601_v5 }
 0x478   :  { %v7015_v58 = vadd.f32 1.0, %v9395_v50  ;;  %v7248_v45 = vpack.c.bf16 %v7199_v52, %v7198_v60  ;;  %v6410_v10 = vpop.f32.mrb[40].mxu1  ;;  %v5555_v40 = vadd.f32 %v13560_v17, %v13065_v27 }
 0x479   :  { %9410 = vrcp.f32 %v7014_v2  ;;  %v9397_v35 = vpop.eup %9396  ;;  %v8437_v16 = vadd.f32 %v6410_v10, %v5544_v18  ;;  %v6412_v29 = vpop.f32.mrb[41].mxu1 }
 0x47a   :  { %9412 = vrcp.f32 %v7015_v58  ;;  %8284 = vmatprep.mubr.bf16.mxu0 %v7248_v45  ;;  %v7016_v38 = vadd.f32 1.0, %v9397_v35  ;;  %v6413_v48 = vpop.f32.mrb[42].mxu1  ;;  %v13610_v0 = vpop.f32.mrb[240].mxu0 }
 0x47b   :  { %v9399_v1 = vpop.eup %9398  ;;  %9414 = vpow2.f32 %v7943_v49  ;;  %8285 = vmatmul.mubr.bf16.gmra.mrb[28].mxu0 %v7249_v39  ;;  %v8439_v53 = vadd.f32 %v6413_v48, %v5547_v26  ;;  %v6415_v32 = vpop.f32.mrb[43].mxu1  ;;  %v13613_v41 = vadd.f32 %v8437_v16, %v13570_v63  ;;  %v5552_v63 = vadd.f32 %v13560_v17, %v13061_v25 }
 0x47c   :  { %v9401_v9 = vpop.eup %9400  ;;  %v13615_v44 = vpop.f32.mrb[241].mxu0  ;;  %v7204_v30 = vmul.f32 %v9399_v1, %v13531_v6  ;;  %9416 = vrcp.f32 %v7016_v38  ;;  %v5560_v48 = vadd.f32 %v13560_v17, %v13073_v15  ;;  %v5563_v32 = vadd.f32 %v13560_v17, %v13078_v55 }
 0x47d   :  { %v9403_v31 = vpop.eup %9402  ;;  %v13617_v36 = vpop.f32.mrb[242].mxu0  ;;  %v7944_v19 = vmul.f32 -1.442695, %v13613_v41  ;;  %v13623_v33 = vadd.f32 %v8439_v53, %v13576_v42  ;;  %v7202_v62 = vmul.f32 %v9401_v9, %v13535_v4 }
 0x47e   :  { %v9405_v12 = vpop.eup %9404  ;;  %v7205_v28 = vmul.f32 %v9403_v31, %v13540_v13  ;;  %v13625_v3 = vpop.f32.mrb[243].mxu0 }
 0x47f   :  { %v9407_v46 = vpop.eup %9406  ;;  %v7203_v21 = vmul.f32 %v9405_v12, %v13543_v51  ;;  %9418 = vpow2.f32 %v7944_v19  ;;  %v7945_v13 = vmul.f32 -1.442695, %v13623_v33 }
 0x480   :  { %v7251_v61 = vpack.c.bf16 %v7205_v28, %v7204_v30  ;;  %v7017_v6 = vadd.f32 1.0, %v9407_v46  ;;  %v6418_v60 = vpop.f32.mrb[44].mxu1 }
 0x481   :  { %v7250_v52 = vpack.c.bf16 %v7203_v21, %v7202_v62  ;;  %v9409_v42 = vpop.eup %9408  ;;  %v8441_v50 = vadd.f32 %v6418_v60, %v5552_v63  ;;  %v6420_v56 = vpop.f32.mrb[45].mxu1 }
 0x482   :  { %9420 = vrcp.f32 %v7017_v6  ;;  %v7018_v18 = vadd.f32 1.0, %v9409_v42  ;;  %v6421_v4 = vpop.f32.mrb[46].mxu1  ;;  %v13634_v51 = vpop.f32.mrb[244].mxu0 }
 0x483   :  { %v9411_v25 = vpop.eup %9410  ;;  %9422 = vpow2.f32 %v7945_v13  ;;  %8288 = vmatprep.mubr.bf16.mxu0 %v7250_v52  ;;  %v8443_v2 = vadd.f32 %v6421_v4, %v5555_v40  ;;  %v6423_v58 = vpop.f32.mrb[47].mxu1  ;;  %v13637_v49 = vadd.f32 %v8441_v50, %v13592_v8  ;;  %v5568_v50 = vadd.f32 %v13560_v17, %v13087_v34 }
 0x484   :  { %v9413_v39 = vpop.eup %9412  ;;  %8289 = vmatmul.mubr.bf16.gmra.mrb[32].mxu0 %v7251_v61  ;;  %v13639_v45 = vpop.f32.mrb[245].mxu0  ;;  %v7206_v10 = vmul.f32 %v9411_v25, %v13554_v11  ;;  %9424 = vrcp.f32 %v7018_v18  ;;  %v5571_v25 = vadd.f32 %v13560_v17, %v13092_v57 }
 0x485   :  { %v9415_v27 = vpop.eup %9414  ;;  %v7207_v35 = vmul.f32 %v9413_v39, %v13564_v54  ;;  %v13643_v26 = vpop.f32.mrb[246].mxu0  ;;  %v7946_v29 = vmul.f32 -1.442695, %v13637_v49  ;;  %v13647_v1 = vadd.f32 %v8443_v2, %v13603_v24 }
 0x486   :  { %v7019_v16 = vadd.f32 1.0, %v9415_v27  ;;  %v13649_v38 = vpop.f32.mrb[247].mxu0  ;;  %v9417_v9 = vpop.eup %9416 }
 0x487   :  { %v7252_v8 = vpack.c.bf16 %v7207_v35, %v7206_v10  ;;  %v7947_v11 = vmul.f32 -1.442695, %v13647_v1  ;;  %v7208_v61 = vmul.f32 %v9417_v9, %v13572_v59 }
 0x488   :  { %9426 = vrcp.f32 %v7019_v16  ;;  %v6426_v54 = vpop.f32.mrb[48].mxu1 }
 0x489   :  { %9428 = vpow2.f32 %v7946_v29  ;;  %8292 = vmatprep.mubr.bf16.mxu0 %v7252_v8  ;;  %v9419_v53 = vpop.eup %9418  ;;  %v8445_v24 = vadd.f32 %v6426_v54, %v5560_v48  ;;  %v6428_v31 = vpop.f32.mrb[49].mxu1  ;;  %v5576_v54 = vadd.f32 %v13560_v17, %v13101_v7 }
 0x48a   :  { %9430 = vpow2.f32 %v7947_v11  ;;  %v7020_v12 = vadd.f32 1.0, %v9419_v53  ;;  %v6429_v30 = vpop.f32.mrb[50].mxu1  ;;  %v13656_v28 = vpop.f32.mrb[248].mxu0  ;;  %v5579_v31 = vadd.f32 %v13560_v17, %v13104_v37 }
 0x48b   :  { %v13659_v15 = vadd.f32 %v8445_v24, %v13588_v22  ;;  %v8447_v46 = vadd.f32 %v6429_v30, %v5563_v32  ;;  %v6431_v63 = vpop.f32.mrb[51].mxu1  ;;  %v13661_v62 = vpop.f32.mrb[249].mxu0 }
 0x48c   :  { %v9421_v19 = vpop.eup %9420  ;;  %v13665_v6 = vpop.f32.mrb[250].mxu0  ;;  %9432 = vrcp.f32 %v7020_v12 }
 0x48d   :  { %v9423_v21 = vpop.eup %9422  ;;  %v7209_v55 = vmul.f32 %v9421_v19, %v13581_v20  ;;  %v7948_v60 = vmul.f32 -1.442695, %v13659_v15  ;;  %v13669_v52 = vadd.f32 %v8447_v46, %v13596_v47  ;;  %v13671_v22 = vpop.f32.mrb[251].mxu0 }
 0x48e   :  { %v7021_v13 = vadd.f32 1.0, %v9423_v21  ;;  %v9425_v40 = vpop.eup %9424 }
 0x48f   :  { %v7253_v42 = vpack.c.bf16 %v7209_v55, %v7208_v61  ;;  %v7949_v59 = vmul.f32 -1.442695, %v13669_v52  ;;  %v7210_v39 = vmul.f32 %v9425_v40, %v13590_v14 }
 0x490   :  { %9434 = vrcp.f32 %v7021_v13  ;;  %v6434_v20 = vpop.f32.mrb[52].mxu1 }
 0x491   :  { %9436 = vpow2.f32 %v7948_v60  ;;  %8293 = vmatmul.mubr.bf16.gmra.mrb[36].mxu0 %v7253_v42  ;;  %v8449_v47 = vadd.f32 %v6434_v20, %v5568_v50  ;;  %v6436_v18 = vpop.f32.mrb[53].mxu1 }
 0x492   :  { %v9427_v56 = vpop.eup %9426  ;;  %9438 = vpow2.f32 %v7949_v59  ;;  %v6437_v58 = vpop.f32.mrb[54].mxu1  ;;  %v5587_v59 = vadd.f32 %v13560_v17, %v13120_v43 }
 0x493   :  { %v9429_v4 = vpop.eup %9428  ;;  %v7211_v2 = vmul.f32 %v9427_v56, %v13601_v5  ;;  %v13680_v34 = vpop.f32.mrb[252].mxu0  ;;  %v13683_v35 = vadd.f32 %v8449_v47, %v13615_v44  ;;  %v8451_v16 = vadd.f32 %v6437_v58, %v5571_v25 }
 0x494   :  { %v9431_v27 = vpop.eup %9430  ;;  %v7022_v10 = vadd.f32 1.0, %v9429_v4  ;;  %v6439_v29 = vpop.f32.mrb[55].mxu1 }
 0x495   :  { %v13685_v8 = vpop.f32.mrb[253].mxu0  ;;  %v7023_v57 = vadd.f32 1.0, %v9431_v27  ;;  %v7254_v48 = vpack.c.bf16 %v7211_v2, %v7210_v39  ;;  %v7950_v14 = vmul.f32 -1.442695, %v13683_v35  ;;  %v13691_v5 = vadd.f32 %v8451_v16, %v13625_v3  ;;  %v15014_v29 = vld [vmem:[#allocation5_spill] sm:$0xff] }
 0x496   :  { %v13687_v11 = vpop.f32.mrb[254].mxu0  ;;  %9440 = vrcp.f32 %v7022_v10  ;;  %v9433_v44 = vpop.eup %9432 }
 0x497   :  { %v13693_v9 = vpop.f32.mrb[255].mxu0  ;;  %9442 = vrcp.f32 %v7023_v57  ;;  %8296 = vmatprep.mubr.bf16.mxu0 %v7254_v48  ;;  %v7951_v53 = vmul.f32 -1.442695, %v13691_v5  ;;  %v7212_v19 = vmul.f32 %v9433_v44, %v13613_v41  ;;  %v5592_v57 = vadd.f32 %v13560_v17, %v15014_v29 }
 0x498   :  { %9444 = vpow2.f32 %v7950_v14  ;;  %v6442_v32 = vpop.f32.mrb[56].mxu1  ;;  %v15015_v14 = vld [vmem:[#allocation48_spill] sm:$0xff] }
 0x499   :  { %9446 = vpow2.f32 %v7951_v53  ;;  %v8453_v12 = vadd.f32 %v6442_v32, %v5576_v54  ;;  %v6444_v3 = vpop.f32.mrb[57].mxu1  ;;  %v5595_v44 = vadd.f32 %v13560_v17, %v15015_v14 }
 0x49a   :  { %v9435_v24 = vpop.eup %9434  ;;  %v6445_v63 = vpop.f32.mrb[58].mxu1 }
 0x49b   :  { %v9437_v30 = vpop.eup %9436  ;;  %v7213_v46 = vmul.f32 %v9435_v24, %v13623_v33  ;;  %v13703_v7 = vadd.f32 %v8453_v12, %v13610_v0  ;;  %v8455_v55 = vadd.f32 %v6445_v63, %v5579_v31  ;;  %v6447_v13 = vpop.f32.mrb[59].mxu1  ;;  %v5584_v33 = vadd.f32 %v13560_v17, %v13115_v23 }
 0x49c   :  { %v9439_v21 = vpop.eup %9438  ;;  %v7024_v61 = vadd.f32 1.0, %v9437_v30  ;;  %v15016_v13 = vld [vmem:[#allocation46_spill] sm:$0xff] }
 0x49d   :  { %v7255_v60 = vpack.c.bf16 %v7213_v46, %v7212_v19  ;;  %v7025_v42 = vadd.f32 1.0, %v9439_v21  ;;  %v7952_v37 = vmul.f32 -1.442695, %v13703_v7  ;;  %v13707_v40 = vadd.f32 %v8455_v55, %v13617_v36 }
 0x49e   :  { %9448 = vrcp.f32 %v7024_v61 }
 0x49f   :  { %9450 = vrcp.f32 %v7025_v42  ;;  %8297 = vmatmul.mubr.bf16.gmra.mrb[40].mxu0 %v7255_v60  ;;  %v7953_v0 = vmul.f32 -1.442695, %v13707_v40  ;;  %v5600_v60 = vadd.f32 %v13560_v17, %v15016_v13 }
 0x4a0   :  { %v9441_v41 = vpop.eup %9440  ;;  %9452 = vpow2.f32 %v7952_v37  ;;  %v6450_v20 = vpop.f32.mrb[60].mxu1  ;;  %v15017_v37 = vld [vmem:[#allocation50_spill] sm:$0xff] }
 0x4a1   :  { %v9443_v50 = vpop.eup %9442  ;;  %v7214_v25 = vmul.f32 %v9441_v41, %v13637_v49  ;;  %9454 = vpow2.f32 %v7953_v0  ;;  %v8457_v47 = vadd.f32 %v6450_v20, %v5584_v33  ;;  %v6452_v18 = vpop.f32.mrb[61].mxu1  ;;  %v5603_v41 = vadd.f32 %v13560_v17, %v15017_v37 }
 0x4a2   :  { %v9445_v56 = vpop.eup %9444  ;;  %v7215_v36 = vmul.f32 %v9443_v50, %v13647_v1  ;;  %v6453_v39 = vpop.f32.mrb[62].mxu1 }
 0x4a3   :  { %v7026_v4 = vadd.f32 1.0, %v9445_v56  ;;  %v9447_v2 = vpop.eup %9446  ;;  %v13717_v23 = vadd.f32 %v8457_v47, %v13639_v45  ;;  %v8459_v58 = vadd.f32 %v6453_v39, %v5587_v59  ;;  %v6455_v27 = vpop.f32.mrb[63].mxu1 }
 0x4a4   :  { %v7256_v10 = vpack.c.bf16 %v7215_v36, %v7214_v25  ;;  %v7027_v43 = vadd.f32 1.0, %v9447_v2  ;;  %v15018_v27 = vld [vmem:[#allocation31_spill] sm:$0xff] }
 0x4a5   :  { %9456 = vrcp.f32 %v7026_v4  ;;  %v7954_v16 = vmul.f32 -1.442695, %v13717_v23  ;;  %v13721_v49 = vadd.f32 %v8459_v58, %v13649_v38 }
 0x4a6   :  { %8300 = vmatprep.mubr.bf16.mxu0 %v7256_v10  ;;  %9458 = vrcp.f32 %v7027_v43  ;;  %v5608_v10 = vadd.f32 %v13560_v17, %v15018_v27 }
 0x4a7   :  { %9460 = vpow2.f32 %v7954_v16  ;;  %v7955_v45 = vmul.f32 -1.442695, %v13721_v49  ;;  %v15019_v16 = vld [vmem:[#allocation9_spill] sm:$0xff] }
 0x4a8   :  { %v9449_v1 = vpop.eup %9448  ;;  %v6458_v54 = vpop.f32.mrb[64].mxu1 }
 0x4a9   :  { %v9451_v48 = vpop.eup %9450  ;;  %v7216_v32 = vmul.f32 %v9449_v1, %v13659_v15  ;;  %9462 = vpow2.f32 %v7955_v45  ;;  %v8461_v24 = vadd.f32 %v6458_v54, %v5592_v57  ;;  %v6460_v31 = vpop.f32.mrb[65].mxu1  ;;  %v5611_v1 = vadd.f32 %v13560_v17, %v15019_v16 }
 0x4aa   :  { %v9453_v53 = vpop.eup %9452  ;;  %v7217_v38 = vmul.f32 %v9451_v48, %v13669_v52  ;;  %v6461_v3 = vpop.f32.mrb[66].mxu1 }
 0x4ab   :  { %v7028_v12 = vadd.f32 1.0, %v9453_v53  ;;  %v9455_v30 = vpop.eup %9454  ;;  %v13731_v46 = vadd.f32 %v8461_v24, %v13634_v51  ;;  %v8463_v63 = vadd.f32 %v6461_v3, %v5595_v44  ;;  %v6463_v21 = vpop.f32.mrb[67].mxu1 }
 0x4ac   :  { %v7257_v19 = vpack.c.bf16 %v7217_v38, %v7216_v32  ;;  %v7029_v61 = vadd.f32 1.0, %v9455_v30  ;;  %v15020_v30 = vld [vmem:[#allocation52_spill] sm:$0xff] }
 0x4ad   :  { %9464 = vrcp.f32 %v7028_v12  ;;  %v7956_v55 = vmul.f32 -1.442695, %v13731_v46  ;;  %v13735_v15 = vadd.f32 %v8463_v63, %v13643_v26  ;;  %v15021_v21 = vld [vmem:[#allocation120_spill] sm:$0xff] }
 0x4ae   :  { %8301 = vmatmul.mubr.bf16.gmra.mrb[44].mxu0 %v7257_v19  ;;  %9466 = vrcp.f32 %v7029_v61  ;;  %v5616_v19 = vadd.f32 %v13560_v17, %v15020_v30  ;;  %v5619_v61 = vadd.f32 %v13560_v17, %v15021_v21 }
 0x4af   :  { %v9457_v52 = vpop.eup %9456  ;;  %9468 = vpow2.f32 %v7956_v55  ;;  %v7957_v42 = vmul.f32 -1.442695, %v13735_v15 }
 0x4b0   :  { %v9459_v51 = vpop.eup %9458  ;;  %v6466_v33 = vpop.f32.mrb[68].mxu1  ;;  %v7218_v50 = vmul.f32 %v9457_v52, %v13683_v35 }
 0x4b1   :  { %v9461_v0 = vpop.eup %9460  ;;  %v7219_v26 = vmul.f32 %v9459_v51, %v13691_v5  ;;  %9470 = vpow2.f32 %v7957_v42  ;;  %v8465_v59 = vadd.f32 %v6466_v33, %v5600_v60  ;;  %v6468_v20 = vpop.f32.mrb[69].mxu1 }
 0x4b2   :  { %v7030_v56 = vadd.f32 1.0, %v9461_v0  ;;  %v6469_v25 = vpop.f32.mrb[70].mxu1 }
 0x4b3   :  { %v9463_v36 = vpop.eup %9462  ;;  %v13745_v47 = vadd.f32 %v8465_v59, %v13661_v62  ;;  %v8467_v18 = vadd.f32 %v6469_v25, %v5603_v41  ;;  %v6471_v4 = vpop.f32.mrb[71].mxu1  ;;  %v7258_v39 = vpack.c.bf16 %v7219_v26, %v7218_v50 }
 0x4b4   :  { %9472 = vrcp.f32 %v7030_v56  ;;  %v7031_v2 = vadd.f32 1.0, %v9463_v36  ;;  %v15022_v56 = vld [vmem:[#allocation55_spill] sm:$0xff] }
 0x4b5   :  { %v7958_v58 = vmul.f32 -1.442695, %v13745_v47  ;;  %v13749_v35 = vadd.f32 %v8467_v18, %v13671_v22  ;;  %8304 = vmatprep.mubr.bf16.mxu0 %v7258_v39  ;;  %v5624_v25 = vadd.f32 %v13560_v17, %v15022_v56 }
 0x4b6   :  { %9474 = vrcp.f32 %v7031_v2 }
 0x4b7   :  { %v9465_v5 = vpop.eup %9464  ;;  %9476 = vpow2.f32 %v7958_v58  ;;  %v7959_v62 = vmul.f32 -1.442695, %v13749_v35 }
 0x4b8   :  { %v9467_v43 = vpop.eup %9466  ;;  %v6474_v29 = vpop.f32.mrb[72].mxu1  ;;  %v7220_v45 = vmul.f32 %v9465_v5, %v13703_v7 }
 0x4b9   :  { %v9469_v57 = vpop.eup %9468  ;;  %v7221_v22 = vmul.f32 %v9467_v43, %v13707_v40  ;;  %9478 = vpow2.f32 %v7959_v62  ;;  %v8469_v48 = vadd.f32 %v6474_v29, %v5608_v10  ;;  %v6476_v14 = vpop.f32.mrb[73].mxu1 }
 0x4ba   :  { %v7032_v44 = vadd.f32 1.0, %v9469_v57  ;;  %v6477_v54 = vpop.f32.mrb[74].mxu1 }
 0x4bb   :  { %v9471_v53 = vpop.eup %9470  ;;  %v7259_v32 = vpack.c.bf16 %v7221_v22, %v7220_v45  ;;  %v13759_v38 = vadd.f32 %v8469_v48, %v13656_v28  ;;  %v8471_v24 = vadd.f32 %v6477_v54, %v5611_v1  ;;  %v6479_v31 = vpop.f32.mrb[75].mxu1 }
 0x4bc   :  { %9480 = vrcp.f32 %v7032_v44  ;;  %v7033_v12 = vadd.f32 1.0, %v9471_v53 }
 0x4bd   :  { %v7960_v3 = vmul.f32 -1.442695, %v13759_v38  ;;  %v13763_v7 = vadd.f32 %v8471_v24, %v13665_v6  ;;  %8305 = vmatmul.mubr.bf16.gmra.mrb[48].mxu0 %v7259_v32 }
 0x4be   :  { %v9473_v40 = vpop.eup %9472  ;;  %9482 = vrcp.f32 %v7033_v12 }
 0x4bf   :  { %9484 = vpow2.f32 %v7960_v3  ;;  %v7961_v63 = vmul.f32 -1.442695, %v13763_v7  ;;  %v7222_v13 = vmul.f32 %v9473_v40, %v13717_v23 }
 0x4c0   :  { %v9475_v28 = vpop.eup %9474  ;;  %v6482_v55 = vpop.f32.mrb[76].mxu1 }
 0x4c1   :  { %v9477_v52 = vpop.eup %9476  ;;  %v7223_v6 = vmul.f32 %v9475_v28, %v13721_v49  ;;  %9486 = vpow2.f32 %v7961_v63  ;;  %v8473_v60 = vadd.f32 %v6482_v55, %v5616_v19  ;;  %v6484_v42 = vpop.f32.mrb[77].mxu1 }
 0x4c2   :  { %v7034_v51 = vadd.f32 1.0, %v9477_v52  ;;  %v6485_v37 = vpop.f32.mrb[78].mxu1 }
 0x4c3   :  { %v9479_v41 = vpop.eup %9478  ;;  %v13773_v33 = vadd.f32 %v8473_v60, %v13685_v8  ;;  %v8475_v0 = vadd.f32 %v6485_v37, %v5619_v61  ;;  %v6487_v50 = vpop.f32.mrb[79].mxu1  ;;  %v7260_v26 = vpack.c.bf16 %v7223_v6, %v7222_v13  ;;  %v15023_v8 = vld [vmem:[#allocation33_spill] sm:$0xff] }
 0x4c4   :  { %9488 = vrcp.f32 %v7034_v51  ;;  %v7035_v59 = vadd.f32 1.0, %v9479_v41  ;;  %v5627_v4 = vadd.f32 %v13560_v17, %v15023_v8 }
 0x4c5   :  { %v7962_v20 = vmul.f32 -1.442695, %v13773_v33  ;;  %v6775_v23 = vadd.f32 %v8475_v0, %v13693_v9  ;;  %8308 = vmatprep.mubr.bf16.mxu0 %v7260_v26 }
 0x4c6   :  { %v9481_v49 = vpop.eup %9480  ;;  %9490 = vrcp.f32 %v7035_v59 }
 0x4c7   :  { %9492 = vpow2.f32 %v7962_v20  ;;  %v7963_v36 = vmul.f32 -1.442695, %v6775_v23  ;;  %v7224_v58 = vmul.f32 %v9481_v49, %v13731_v46 }
 0x4c8   :  { %v9483_v18 = vpop.eup %9482  ;;  %v6490_v39 = vpop.f32.mrb[80].mxu1 }
 0x4c9   :  { %v9485_v2 = vpop.eup %9484  ;;  %v7225_v5 = vmul.f32 %v9483_v18, %v13735_v15  ;;  %9494 = vpow2.f32 %v7963_v36  ;;  %v8477_v9 = vadd.f32 %v6490_v39, %v5624_v25  ;;  %v6492_v27 = vpop.f32.mrb[81].mxu1 }
 0x4ca   :  { %v7036_v10 = vadd.f32 1.0, %v9485_v2  ;;  %v6493_v62 = vpop.f32.mrb[82].mxu1 }
 0x4cb   :  { %v9487_v43 = vpop.eup %9486  ;;  %v7261_v16 = vpack.c.bf16 %v7225_v5, %v7224_v58  ;;  %v6780_v1 = vadd.f32 %v8477_v9, %v13680_v34  ;;  %v8479_v29 = vadd.f32 %v6493_v62, %v5627_v4  ;;  %v6495_v57 = vpop.f32.mrb[83].mxu1 }
 0x4cc   :  { %9496 = vrcp.f32 %v7036_v10  ;;  %v7037_v45 = vadd.f32 1.0, %v9487_v43 }
 0x4cd   :  { %v7964_v17 = vmul.f32 -1.442695, %v6780_v1  ;;  %v6783_v22 = vadd.f32 %v8479_v29, %v13687_v11  ;;  %8309 = vmatmul.mubr.bf16.gmra.mrb[52].mxu0 %v7261_v16 }
 0x4ce   :  { %v9489_v46 = vpop.eup %9488  ;;  %9498 = vrcp.f32 %v7037_v45 }
 0x4cf   :  { %9500 = vpow2.f32 %v7964_v17  ;;  %v7965_v15 = vmul.f32 -1.442695, %v6783_v22  ;;  %v7226_v44 = vmul.f32 %v9489_v46, %v13745_v47 }
 0x4d0   :  { %v9491_v48 = vpop.eup %9490 }
 0x4d1   :  { %v9493_v14 = vpop.eup %9492  ;;  %v7227_v54 = vmul.f32 %v9491_v48, %v13749_v35  ;;  %9502 = vpow2.f32 %v7965_v15 }
 0x4d2   :  { %v7038_v34 = vadd.f32 1.0, %v9493_v14 }
 0x4d3   :  { %v9495_v53 = vpop.eup %9494  ;;  %v7262_v32 = vpack.c.bf16 %v7227_v54, %v7226_v44 }
 0x4d4   :  { %9504 = vrcp.f32 %v7038_v34  ;;  %v7039_v24 = vadd.f32 1.0, %v9495_v53 }
 0x4d5   :  { %8312 = vmatprep.mubr.bf16.mxu0 %v7262_v32 }
 0x4d6   :  { %v9497_v31 = vpop.eup %9496  ;;  %9506 = vrcp.f32 %v7039_v24 }
 0x4d7   :  { %v7228_v3 = vmul.f32 %v9497_v31, %v13759_v38 }
 0x4d8   :  { %v9499_v11 = vpop.eup %9498 }
 0x4d9   :  { %v9501_v12 = vpop.eup %9500  ;;  %v7229_v40 = vmul.f32 %v9499_v11, %v13763_v7  ;;  %v13793_v7 = vld [vmem:[%s14123_s8] ss:$0 sm:$0xff] }
 0x4da   :  { %v7040_v30 = vadd.f32 1.0, %v9501_v12 }
 0x4db   :  { %v9503_v19 = vpop.eup %9502  ;;  %v7263_v47 = vpack.c.bf16 %v7229_v40, %v7228_v3 }
 0x4dc   :  { %9508 = vrcp.f32 %v7040_v30  ;;  %v7041_v35 = vadd.f32 1.0, %v9503_v19 }
 0x4dd   :  { %8313 = vmatmul.mubr.bf16.gmra.mrb[56].mxu0 %v7263_v47 }
 0x4de   :  { %v9505_v63 = vpop.eup %9504  ;;  %9510 = vrcp.f32 %v7041_v35 }
 0x4df   :  { %v7230_v21 = vmul.f32 %v9505_v63, %v13773_v33 }
 0x4e0   :  { %v9507_v28 = vpop.eup %9506 }
 0x4e1   :  { %v7231_v61 = vmul.f32 %v9507_v28, %v6775_v23 }
 0x4e3   :  { %v7264_v55 = vpack.c.bf16 %v7231_v61, %v7230_v21 }
 0x4e5   :  { %8316 = vmatprep.mubr.bf16.mxu0 %v7264_v55 }
 0x4e6   :  { %v9509_v52 = vpop.eup %9508 }
 0x4e7   :  { %v7232_v6 = vmul.f32 %v9509_v52, %v6780_v1 }
 0x4e8   :  { %v9511_v13 = vpop.eup %9510 }
 0x4e9   :  { %v7233_v38 = vmul.f32 %v9511_v13, %v6783_v22 }
 0x4eb   :  { %v7265_v60 = vpack.c.bf16 %v7233_v38, %v7232_v6 }
 0x4ed   :  { %8317 = vmatmul.mubr.bf16.gmra.mrb[60].mxu0 %v7265_v60 }
 0x513   :  { %v8258_v42 = vpop.f32.mrb[0].mxu0 }
 0x514   :  { %v7380_v51 = vadd.f32 %v8258_v42, %v13793_v7  ;;  %v7371_v37 = vpop.f32.mrb[1].mxu0 }
 0x515   :  { %v7372_v41 = vadd.f32 %v13793_v7, %v7371_v37  ;;  %v8259_v33 = vpop.f32.mrb[2].mxu0 }
 0x516   :  { %7629 = vst.msk [vmem:[%s14124_s9 + $0x10] sm:$0xff] %vm7626_vm2, %v7380_v51  ;;  %v7383_v0 = vadd.f32 %v8259_v33, %v13793_v7  ;;  %v7374_v50 = vpop.f32.mrb[3].mxu0 }
 0x517   :  { %7627 = vst.msk [vmem:[%s14124_s9] sm:$0xff] %vm7626_vm2, %v7372_v41  ;;  %v7375_v26 = vadd.f32 %v13793_v7, %v7374_v50 }
 0x518   :  { %7630 = vst.msk [vmem:[%s14124_s9 + $0x18] sm:$0xff] %vm7626_vm2, %v7383_v0 }
 0x519   :  { %7628 = vst.msk [vmem:[%s14124_s9 + $0x8] sm:$0xff] %vm7626_vm2, %v7375_v26 }
 0x51b   :  { %v8262_v59 = vpop.f32.mrb[4].mxu0 }
 0x51c   :  { %v7396_v20 = vadd.f32 %v8262_v59, %v13793_v7  ;;  %v7387_v23 = vpop.f32.mrb[5].mxu0 }
 0x51d   :  { %v7388_v49 = vadd.f32 %v13793_v7, %v7387_v23  ;;  %v8263_v56 = vpop.f32.mrb[6].mxu0 }
 0x51e   :  { %7633 = vst.msk [vmem:[%s14124_s9 + $0x30] sm:$0xff] %vm7626_vm2, %v7396_v20  ;;  %v7399_v25 = vadd.f32 %v8263_v56, %v13793_v7  ;;  %v7390_v36 = vpop.f32.mrb[7].mxu0 }
 0x51f   :  { %7631 = vst.msk [vmem:[%s14124_s9 + $0x20] sm:$0xff] %vm7626_vm2, %v7388_v49  ;;  %v7391_v18 = vadd.f32 %v13793_v7, %v7390_v36 }
 0x520   :  { %7634 = vst.msk [vmem:[%s14124_s9 + $0x38] sm:$0xff] %vm7626_vm2, %v7399_v25 }
 0x521   :  { %7632 = vst.msk [vmem:[%s14124_s9 + $0x28] sm:$0xff] %vm7626_vm2, %v7391_v18 }
 0x524   :  { %v8266_v8 = vpop.f32.mrb[8].mxu0 }
 0x525   :  { %v7412_v4 = vadd.f32 %v8266_v8, %v13793_v7  ;;  %v7403_v39 = vpop.f32.mrb[9].mxu0 }
 0x526   :  { %v7404_v2 = vadd.f32 %v13793_v7, %v7403_v39  ;;  %v8267_v58 = vpop.f32.mrb[10].mxu0 }
 0x527   :  { %7637 = vst.msk [vmem:[%s14124_s9 + $0x50] sm:$0xff] %vm7626_vm2, %v7412_v4  ;;  %v7415_v5 = vadd.f32 %v8267_v58, %v13793_v7  ;;  %v7406_v9 = vpop.f32.mrb[11].mxu0 }
 0x528   :  { %7635 = vst.msk [vmem:[%s14124_s9 + $0x40] sm:$0xff] %vm7626_vm2, %v7404_v2  ;;  %v7407_v27 = vadd.f32 %v13793_v7, %v7406_v9 }
 0x529   :  { %7638 = vst.msk [vmem:[%s14124_s9 + $0x58] sm:$0xff] %vm7626_vm2, %v7415_v5 }
 0x52a   :  { %7636 = vst.msk [vmem:[%s14124_s9 + $0x48] sm:$0xff] %vm7626_vm2, %v7407_v27 }
 0x52d   :  { %v8270_v10 = vpop.f32.mrb[12].mxu0 }
 0x52e   :  { %v7428_v62 = vadd.f32 %v8270_v10, %v13793_v7  ;;  %v7419_v43 = vpop.f32.mrb[13].mxu0 }
 0x52f   :  { %v7420_v16 = vadd.f32 %v13793_v7, %v7419_v43  ;;  %v8271_v1 = vpop.f32.mrb[14].mxu0 }
 0x530   :  { %7641 = vst.msk [vmem:[%s14124_s9 + $0x70] sm:$0xff] %vm7626_vm2, %v7428_v62  ;;  %v7431_v29 = vadd.f32 %v8271_v1, %v13793_v7  ;;  %v7422_v57 = vpop.f32.mrb[15].mxu0 }
 0x531   :  { %7639 = vst.msk [vmem:[%s14124_s9 + $0x60] sm:$0xff] %vm7626_vm2, %v7420_v16  ;;  %v7423_v45 = vadd.f32 %v13793_v7, %v7422_v57 }
 0x532   :  { %7642 = vst.msk [vmem:[%s14124_s9 + $0x78] sm:$0xff] %vm7626_vm2, %v7431_v29 }
 0x533   :  { %7640 = vst.msk [vmem:[%s14124_s9 + $0x68] sm:$0xff] %vm7626_vm2, %v7423_v45 }
 0x535   :  { %v8274_v17 = vpop.f32.mrb[16].mxu0 }
 0x536   :  { %v7444_v22 = vadd.f32 %v8274_v17, %v13793_v7  ;;  %v7435_v46 = vpop.f32.mrb[17].mxu0 }
 0x537   :  { %v7436_v15 = vadd.f32 %v13793_v7, %v7435_v46  ;;  %v8275_v48 = vpop.f32.mrb[18].mxu0 }
 0x538   :  { %7645 = vst.msk [vmem:[%s14124_s9 + $0x90] sm:$0xff] %vm7626_vm2, %v7444_v22  ;;  %v7447_v14 = vadd.f32 %v8275_v48, %v13793_v7  ;;  %v7438_v44 = vpop.f32.mrb[19].mxu0 }
 0x539   :  { %7643 = vst.msk [vmem:[%s14124_s9 + $0x80] sm:$0xff] %vm7626_vm2, %v7436_v15  ;;  %v7439_v54 = vadd.f32 %v13793_v7, %v7438_v44 }
 0x53a   :  { %7646 = vst.msk [vmem:[%s14124_s9 + $0x98] sm:$0xff] %vm7626_vm2, %v7447_v14 }
 0x53b   :  { %7644 = vst.msk [vmem:[%s14124_s9 + $0x88] sm:$0xff] %vm7626_vm2, %v7439_v54 }
 0x53d   :  { %v8278_v34 = vpop.f32.mrb[20].mxu0 }
 0x53e   :  { %v7460_v53 = vadd.f32 %v8278_v34, %v13793_v7  ;;  %v7451_v32 = vpop.f32.mrb[21].mxu0 }
 0x53f   :  { %v7452_v24 = vadd.f32 %v13793_v7, %v7451_v32  ;;  %v8279_v31 = vpop.f32.mrb[22].mxu0 }
 0x540   :  { %7649 = vst.msk [vmem:[%s14124_s9 + $0xb0] sm:$0xff] %vm7626_vm2, %v7460_v53  ;;  %v7463_v11 = vadd.f32 %v8279_v31, %v13793_v7  ;;  %v7454_v12 = vpop.f32.mrb[23].mxu0 }
 0x541   :  { %7647 = vst.msk [vmem:[%s14124_s9 + $0xa0] sm:$0xff] %vm7626_vm2, %v7452_v24  ;;  %v7455_v3 = vadd.f32 %v13793_v7, %v7454_v12 }
 0x542   :  { %7650 = vst.msk [vmem:[%s14124_s9 + $0xb8] sm:$0xff] %vm7626_vm2, %v7463_v11 }
 0x543   :  { %7648 = vst.msk [vmem:[%s14124_s9 + $0xa8] sm:$0xff] %vm7626_vm2, %v7455_v3 }
 0x546   :  { %v8282_v40 = vpop.f32.mrb[24].mxu0 }
 0x547   :  { %v7476_v30 = vadd.f32 %v8282_v40, %v13793_v7  ;;  %v7467_v19 = vpop.f32.mrb[25].mxu0 }
 0x548   :  { %v7468_v47 = vadd.f32 %v13793_v7, %v7467_v19  ;;  %v8283_v35 = vpop.f32.mrb[26].mxu0 }
 0x549   :  { %7653 = vst.msk [vmem:[%s14124_s9 + $0xd0] sm:$0xff] %vm7626_vm2, %v7476_v30  ;;  %v7479_v63 = vadd.f32 %v8283_v35, %v13793_v7  ;;  %v7470_v28 = vpop.f32.mrb[27].mxu0 }
 0x54a   :  { %7651 = vst.msk [vmem:[%s14124_s9 + $0xc0] sm:$0xff] %vm7626_vm2, %v7468_v47  ;;  %v7471_v21 = vadd.f32 %v13793_v7, %v7470_v28 }
 0x54b   :  { %7654 = vst.msk [vmem:[%s14124_s9 + $0xd8] sm:$0xff] %vm7626_vm2, %v7479_v63 }
 0x54c   :  { %7652 = vst.msk [vmem:[%s14124_s9 + $0xc8] sm:$0xff] %vm7626_vm2, %v7471_v21 }
 0x54e   :  { %v8286_v61 = vpop.f32.mrb[28].mxu0 }
 0x54f   :  { %v7492_v55 = vadd.f32 %v8286_v61, %v13793_v7  ;;  %v7483_v52 = vpop.f32.mrb[29].mxu0 }
 0x550   :  { %v7484_v13 = vadd.f32 %v13793_v7, %v7483_v52  ;;  %v8287_v6 = vpop.f32.mrb[30].mxu0 }
 0x551   :  { %7657 = vst.msk [vmem:[%s14124_s9 + $0xf0] sm:$0xff] %vm7626_vm2, %v7492_v55  ;;  %v7495_v38 = vadd.f32 %v8287_v6, %v13793_v7  ;;  %v7486_v60 = vpop.f32.mrb[31].mxu0 }
 0x552   :  { %7655 = vst.msk [vmem:[%s14124_s9 + $0xe0] sm:$0xff] %vm7626_vm2, %v7484_v13  ;;  %v7487_v42 = vadd.f32 %v13793_v7, %v7486_v60 }
 0x553   :  { %7658 = vst.msk [vmem:[%s14124_s9 + $0xf8] sm:$0xff] %vm7626_vm2, %v7495_v38 }
 0x554   :  { %7656 = vst.msk [vmem:[%s14124_s9 + $0xe8] sm:$0xff] %vm7626_vm2, %v7487_v42 }
 0x557   :  { %v8290_v51 = vpop.f32.mrb[32].mxu0 }
 0x558   :  { %v7508_v37 = vadd.f32 %v8290_v51, %v13793_v7  ;;  %v7499_v41 = vpop.f32.mrb[33].mxu0 }
 0x559   :  { %v7500_v33 = vadd.f32 %v13793_v7, %v7499_v41  ;;  %v8291_v0 = vpop.f32.mrb[34].mxu0 }
 0x55a   :  { %7661 = vst.msk [vmem:[%s14124_s9 + $0x110] sm:$0xff] %vm7626_vm2, %v7508_v37  ;;  %v7511_v50 = vadd.f32 %v8291_v0, %v13793_v7  ;;  %v7502_v26 = vpop.f32.mrb[35].mxu0 }
 0x55b   :  { %7659 = vst.msk [vmem:[%s14124_s9 + $0x100] sm:$0xff] %vm7626_vm2, %v7500_v33  ;;  %v7503_v59 = vadd.f32 %v13793_v7, %v7502_v26 }
 0x55c   :  { %7662 = vst.msk [vmem:[%s14124_s9 + $0x118] sm:$0xff] %vm7626_vm2, %v7511_v50 }
 0x55d   :  { %7660 = vst.msk [vmem:[%s14124_s9 + $0x108] sm:$0xff] %vm7626_vm2, %v7503_v59 }
 0x564   :  { %v8294_v20 = vpop.f32.mrb[36].mxu0 }
 0x565   :  { %v7524_v23 = vadd.f32 %v8294_v20, %v13793_v7  ;;  %v7515_v49 = vpop.f32.mrb[37].mxu0 }
 0x566   :  { %v7516_v56 = vadd.f32 %v13793_v7, %v7515_v49  ;;  %v8295_v25 = vpop.f32.mrb[38].mxu0 }
 0x567   :  { %7665 = vst.msk [vmem:[%s14124_s9 + $0x130] sm:$0xff] %vm7626_vm2, %v7524_v23  ;;  %v7527_v36 = vadd.f32 %v8295_v25, %v13793_v7  ;;  %v7518_v18 = vpop.f32.mrb[39].mxu0 }
 0x568   :  { %7663 = vst.msk [vmem:[%s14124_s9 + $0x120] sm:$0xff] %vm7626_vm2, %v7516_v56  ;;  %v7519_v8 = vadd.f32 %v13793_v7, %v7518_v18 }
 0x569   :  { %7666 = vst.msk [vmem:[%s14124_s9 + $0x138] sm:$0xff] %vm7626_vm2, %v7527_v36 }
 0x56a   :  { %7664 = vst.msk [vmem:[%s14124_s9 + $0x128] sm:$0xff] %vm7626_vm2, %v7519_v8 }
 0x572   :  { %v8298_v4 = vpop.f32.mrb[40].mxu0 }
 0x573   :  { %v7540_v39 = vadd.f32 %v8298_v4, %v13793_v7  ;;  %v7531_v2 = vpop.f32.mrb[41].mxu0 }
 0x574   :  { %v7532_v58 = vadd.f32 %v13793_v7, %v7531_v2  ;;  %v8299_v5 = vpop.f32.mrb[42].mxu0 }
 0x575   :  { %7669 = vst.msk [vmem:[%s14124_s9 + $0x150] sm:$0xff] %vm7626_vm2, %v7540_v39  ;;  %v7543_v9 = vadd.f32 %v8299_v5, %v13793_v7  ;;  %v7534_v27 = vpop.f32.mrb[43].mxu0 }
 0x576   :  { %7667 = vst.msk [vmem:[%s14124_s9 + $0x140] sm:$0xff] %vm7626_vm2, %v7532_v58  ;;  %v7535_v10 = vadd.f32 %v13793_v7, %v7534_v27 }
 0x577   :  { %7670 = vst.msk [vmem:[%s14124_s9 + $0x158] sm:$0xff] %vm7626_vm2, %v7543_v9 }
 0x578   :  { %7668 = vst.msk [vmem:[%s14124_s9 + $0x148] sm:$0xff] %vm7626_vm2, %v7535_v10 }
 0x581   :  { %v8302_v62 = vpop.f32.mrb[44].mxu0 }
 0x582   :  { %v7556_v43 = vadd.f32 %v8302_v62, %v13793_v7  ;;  %v7547_v16 = vpop.f32.mrb[45].mxu0 }
 0x583   :  { %v7548_v1 = vadd.f32 %v13793_v7, %v7547_v16  ;;  %v8303_v29 = vpop.f32.mrb[46].mxu0 }
 0x584   :  { %7673 = vst.msk [vmem:[%s14124_s9 + $0x170] sm:$0xff] %vm7626_vm2, %v7556_v43  ;;  %v7559_v57 = vadd.f32 %v8303_v29, %v13793_v7  ;;  %v7550_v45 = vpop.f32.mrb[47].mxu0 }
 0x585   :  { %7671 = vst.msk [vmem:[%s14124_s9 + $0x160] sm:$0xff] %vm7626_vm2, %v7548_v1  ;;  %v7551_v17 = vadd.f32 %v13793_v7, %v7550_v45 }
 0x586   :  { %7674 = vst.msk [vmem:[%s14124_s9 + $0x178] sm:$0xff] %vm7626_vm2, %v7559_v57 }
 0x587   :  { %7672 = vst.msk [vmem:[%s14124_s9 + $0x168] sm:$0xff] %vm7626_vm2, %v7551_v17 }
 0x590   :  { %v8306_v22 = vpop.f32.mrb[48].mxu0 }
 0x591   :  { %v7572_v46 = vadd.f32 %v8306_v22, %v13793_v7  ;;  %v7563_v15 = vpop.f32.mrb[49].mxu0 }
 0x592   :  { %v7564_v48 = vadd.f32 %v13793_v7, %v7563_v15  ;;  %v8307_v14 = vpop.f32.mrb[50].mxu0 }
 0x593   :  { %7677 = vst.msk [vmem:[%s14124_s9 + $0x190] sm:$0xff] %vm7626_vm2, %v7572_v46  ;;  %v7575_v44 = vadd.f32 %v8307_v14, %v13793_v7  ;;  %v7566_v54 = vpop.f32.mrb[51].mxu0 }
 0x594   :  { %7675 = vst.msk [vmem:[%s14124_s9 + $0x180] sm:$0xff] %vm7626_vm2, %v7564_v48  ;;  %v7567_v34 = vadd.f32 %v13793_v7, %v7566_v54 }
 0x595   :  { %7678 = vst.msk [vmem:[%s14124_s9 + $0x198] sm:$0xff] %vm7626_vm2, %v7575_v44 }
 0x596   :  { %7676 = vst.msk [vmem:[%s14124_s9 + $0x188] sm:$0xff] %vm7626_vm2, %v7567_v34 }
 0x5a0   :  { %v8310_v53 = vpop.f32.mrb[52].mxu0 }
 0x5a1   :  { %v7588_v32 = vadd.f32 %v8310_v53, %v13793_v7  ;;  %v7579_v24 = vpop.f32.mrb[53].mxu0 }
 0x5a2   :  { %v7580_v31 = vadd.f32 %v13793_v7, %v7579_v24  ;;  %v8311_v11 = vpop.f32.mrb[54].mxu0 }
 0x5a3   :  { %7681 = vst.msk [vmem:[%s14124_s9 + $0x1b0] sm:$0xff] %vm7626_vm2, %v7588_v32  ;;  %v7591_v12 = vadd.f32 %v8311_v11, %v13793_v7  ;;  %v7582_v3 = vpop.f32.mrb[55].mxu0 }
 0x5a4   :  { %7679 = vst.msk [vmem:[%s14124_s9 + $0x1a0] sm:$0xff] %vm7626_vm2, %v7580_v31  ;;  %v7583_v40 = vadd.f32 %v13793_v7, %v7582_v3 }
 0x5a5   :  { %7682 = vst.msk [vmem:[%s14124_s9 + $0x1b8] sm:$0xff] %vm7626_vm2, %v7591_v12 }
 0x5a6   :  { %7680 = vst.msk [vmem:[%s14124_s9 + $0x1a8] sm:$0xff] %vm7626_vm2, %v7583_v40 }
 0x5b0   :  { %v8314_v30 = vpop.f32.mrb[56].mxu0 }
 0x5b1   :  { %v7604_v19 = vadd.f32 %v8314_v30, %v13793_v7  ;;  %v7595_v47 = vpop.f32.mrb[57].mxu0 }
 0x5b2   :  { %v7596_v35 = vadd.f32 %v13793_v7, %v7595_v47  ;;  %v8315_v63 = vpop.f32.mrb[58].mxu0 }
 0x5b3   :  { %7685 = vst.msk [vmem:[%s14124_s9 + $0x1d0] sm:$0xff] %vm7626_vm2, %v7604_v19  ;;  %v7607_v28 = vadd.f32 %v8315_v63, %v13793_v7  ;;  %v7598_v21 = vpop.f32.mrb[59].mxu0 }
 0x5b4   :  { %7683 = vst.msk [vmem:[%s14124_s9 + $0x1c0] sm:$0xff] %vm7626_vm2, %v7596_v35  ;;  %v7599_v61 = vadd.f32 %v13793_v7, %v7598_v21 }
 0x5b5   :  { %7686 = vst.msk [vmem:[%s14124_s9 + $0x1d8] sm:$0xff] %vm7626_vm2, %v7607_v28 }
 0x5b6   :  { %7684 = vst.msk [vmem:[%s14124_s9 + $0x1c8] sm:$0xff] %vm7626_vm2, %v7599_v61 }
 0x5c0   :  { %v8318_v55 = vpop.f32.mrb[60].mxu0 }
 0x5c1   :  { %v7620_v52 = vadd.f32 %v8318_v55, %v13793_v7  ;;  %v7611_v13 = vpop.f32.mrb[61].mxu0 }
 0x5c2   :  { %v7612_v6 = vadd.f32 %v13793_v7, %v7611_v13  ;;  %v8319_v38 = vpop.f32.mrb[62].mxu0 }
 0x5c3   :  { %7689 = vst.msk [vmem:[%s14124_s9 + $0x1f0] sm:$0xff] %vm7626_vm2, %v7620_v52  ;;  %v7623_v60 = vadd.f32 %v8319_v38, %v13793_v7  ;;  %v7614_v42 = vpop.f32.mrb[63].mxu0 }
 0x5c4   :  { %7687 = vst.msk [vmem:[%s14124_s9 + $0x1e0] sm:$0xff] %vm7626_vm2, %v7612_v6  ;;  %v7615_v51 = vadd.f32 %v13793_v7, %v7614_v42 }
 0x5c5   :  { %7690 = vst.msk [vmem:[%s14124_s9 + $0x1f8] sm:$0xff] %vm7626_vm2, %v7623_v60 }
 0x5c6   :  { %7688 = vst.msk [vmem:[%s14124_s9 + $0x1e8] sm:$0xff] %vm7626_vm2, %v7615_v51 }

</bundles_post_ra>
